<compile_context>
chip_gen: v6e
topology: v6e:2x2x1
jax: 0.10.0
libtpu: 0.0.40
codegen_flags: <defaults>
</compile_context>

<pallas_src>
import jax
import jax.numpy as jnp
import numpy as np
from jax import lax
from jax.experimental import pallas as pl
from jax.experimental.pallas import tpu as pltpu

GROWTH = 32           # growth channels (hard-coded 32 in the module)
LRELU_SLOPE = 0.01    # nn.LeakyReLU default negative_slope (the spec uses the
                      # default; ESRGAN variants use 0.2 — confirmed against spec)


def _round_up(x, m):
    return ((x + m - 1) // m) * m


# ----------------------------------------------------------------------------
# Pallas kernel + wrapper
# ----------------------------------------------------------------------------
def rdb_forward_pallas(x_nchw, params, out_dtype=jnp.float32):
    """Forward pass of ResidualDenseBlock_out.

    x_nchw   : (N, Cin, H, W) float32  (PyTorch NCHW — consumed without transpose)
    params   : dict with 'conv{i}_w' (Cout_i, Cin_i, 3, 3) and 'conv{i}_b' (Cout_i,)
    out_dtype: jnp.float32 (default, module-faithful) or jnp.bfloat16
               (halves output HBM traffic; features are already bf16).
    returns  : (N, Cout, H, W) out_dtype
    """
    N, Cin, H, W = x_nchw.shape
    Cout = int(params["conv5_w"].shape[0])
    P = H * W

    # Channel padding (review): Cin -> multiple of 32 so channel-prefix slices
    # and growth write-back offsets are sublane aligned; Cout -> multiple of 8
    # for the conv5 matmul (extra rows are zero and sliced off before the store).
    Cin_p = _round_up(Cin, GROWTH)
    Cout_p = _round_up(max(Cout, 8), 8)
    Ctot = Cin_p + 4 * GROWTH
    maxCo = max(GROWTH, Cout_p)
    kin_list = [Cin_p + i * GROWTH for i in range(5)]     # K of conv1..conv5

    # Flat spatial layout of the packed scratch (per channel):
    #   scratch[c, BASE + r*W + w]  = vertically padded map, row r in [0,H+2), col w
    # Image pixel (h, w) is staged at STAGE + h*W + w with STAGE = BASE + W
    # rounded up to a multiple of 128 (lane-aligned interior stores).
    STAGE = _round_up(W + 1, 128)
    BASE = STAGE - W                   # >= 1
    TAIL = STAGE + P                   # first flat index of the bottom pad row
    L = _round_up(BASE + (H + 2) * W + 1, 128)

    # ---- input: NCHW consumed directly (free reshape, no transpose pass). ---
    x_flat = x_nchw.reshape(N, Cin, P)

    # ---- weights: (3, 3, Co_p, Kin_p) bf16 in transposed-matmul layout. -----
    # torch.cat((x, x1, ...), 1) channel order == packed scratch prefix order;
    # the x part of the input channels is zero-padded from Cin to Cin_p.
    w_list = []
    for i in range(5):
        co = GROWTH if i < 4 else Cout
        co_p = GROWTH if i < 4 else Cout_p
        w_t = jnp.transpose(params[f"conv{i + 1}_w"].astype(jnp.float32),
                            (2, 3, 0, 1))                  # (3, 3, co, Cin + i*32)
        pieces = [w_t[..., :Cin]]
        if Cin_p > Cin:
            pieces.append(jnp.zeros((3, 3, co, Cin_p - Cin), jnp.float32))
        if i > 0:
            pieces.append(w_t[..., Cin:])
        wk = jnp.concatenate(pieces, axis=-1) if len(pieces) > 1 else pieces[0]
        if co_p > co:
            wk = jnp.pad(wk, ((0, 0), (0, 0), (0, co_p - co), (0, 0)))
        w_list.append(wk.astype(jnp.bfloat16))              # (3, 3, co_p, kin_i)

    # ---- biases: one (5, maxCo, 1) f32 pack ((co, 1) bias column per conv). -
    b_rows = []
    for i in range(5):
        b = params[f"conv{i + 1}_b"].astype(jnp.float32)
        b_rows.append(jnp.pad(b, (0, maxCo - b.shape[0])))
    b_pack = jnp.stack(b_rows)[..., None]                    # (5, maxCo, 1)

    # ---- horizontal "same"-padding masks over output columns p = h*W + w. ---
    # kw=0 tap is invalid at w==0, kw=2 tap at w==W-1 (vertical pads are real
    # zero rows in the scratch, so only these two masks are needed).
    mask_np = np.ones((2, P), np.float32)
    mask_np[0, 0::W] = 0.0
    mask_np[1, W - 1::W] = 0.0
    masks = jnp.asarray(mask_np)

    def kernel(x_ref, w1, w2, w3, w4, w5, b_ref, m_ref, out_ref, feat_ref):
        w_refs = (w1, w2, w3, w4, w5)
        mask_l = m_ref[0:1]                                  # (1, P) f32, kw == 0
        mask_r = m_ref[1:2]                                  # (1, P) f32, kw == 2

        # Vertical pads + slice tail: two small zeroed flat ranges (cheap, done
        # every step -> correct under any megacore grid sharding).
        feat_ref[:, 0:STAGE] = jnp.zeros((Ctot, STAGE), feat_ref.dtype)
        feat_ref[:, TAIL:L] = jnp.zeros((Ctot, L - TAIL), feat_ref.dtype)

        # Stage the image: (Cin, H*W) f32 -> bf16, zero-pad channels to Cin_p,
        # single 128-lane-aligned store into the scratch prefix.
        x_b = x_ref[0].astype(feat_ref.dtype)
        if Cin_p > Cin:
            x_b = jnp.concatenate(
                [x_b, jnp.zeros((Cin_p - Cin, P), feat_ref.dtype)], axis=0)
        feat_ref[:Cin_p, STAGE:TAIL] = x_b

        def conv3x3(ci, co_p):
            # 3x3 "same" conv over the packed channel prefix [:kin] in the
            # transposed MXU orientation: (co_p, kin) x (kin, H*W) per tap.
            kin = kin_list[ci]
            w_ref = w_refs[ci]
            bias_col = b_ref[ci][:co_p]                      # (co_p, 1) f32
            acc = jnp.broadcast_to(bias_col, (co_p, P))      # bias-initialized acc
            for kh in range(3):
                for kw in range(3):
                    off = BASE + kh * W + (kw - 1)
                    win = feat_ref[:kin, off:off + P]        # (kin, P) bf16
                    part = jnp.dot(w_ref[kh, kw], win,
                                   preferred_element_type=jnp.float32)
                    if kw == 0:
                        part = part * mask_l
                    elif kw == 2:
                        part = part * mask_r
                    acc = acc + part
            return acc                                       # (co_p, P) f32

        # conv1..conv4: LeakyReLU in f32, bf16 write-back into the dense prefix
        # (128-aligned lane offset, 32-aligned channel offset).
        for i in range(4):
            y = conv3x3(i, GROWTH)
            y = jnp.where(y >= 0, y, LRELU_SLOPE * y)
            c0 = Cin_p + i * GROWTH
            feat_ref[c0:c0 + GROWTH, STAGE:TAIL] = y.astype(feat_ref.dtype)

        # conv5: no activation; lane-dense (Cout, H*W) store.
        y5 = conv3x3(4, Cout_p)
        out_ref[0] = y5[:Cout].astype(out_ref.dtype)

    in_specs = [pl.BlockSpec((1, Cin, P), lambda n: (n, 0, 0))]
    for w in w_list:
        in_specs.append(pl.BlockSpec(w.shape, lambda n: (0, 0, 0, 0)))
    in_specs.append(pl.BlockSpec(b_pack.shape, lambda n: (0, 0, 0)))
    in_specs.append(pl.BlockSpec(masks.shape, lambda n: (0, 0)))
    out_specs = pl.BlockSpec((1, Cout, P), lambda n: (n, 0, 0))

    # VMEM budget (review): derive from the actual footprint instead of a
    # hard-coded 48 MiB; clamp to [32 MiB, 64 MiB] (v7x physical VMEM = 64 MiB).
    def nbytes(shape, dt):
        return int(np.prod(shape)) * jnp.dtype(dt).itemsize

    need = (nbytes((Ctot, L), jnp.bfloat16)                  # packed scratch
            + 2 * nbytes((1, Cin, P), x_flat.dtype)          # input block (dbl buf)
            + 2 * nbytes((1, Cout, P), out_dtype)            # output block (dbl buf)
            + 2 * sum(nbytes(w.shape, jnp.bfloat16) for w in w_list)
            + 2 * nbytes(b_pack.shape, jnp.float32)
            + 2 * nbytes(masks.shape, jnp.float32)
            + nbytes((Ctot, P), jnp.bfloat16)                # live tap window
            + 3 * nbytes((maxCo, P), jnp.float32))           # acc / partials
    vmem_limit = int(min(max(int(need * 1.25) + (4 << 20), 32 << 20), 64 << 20))

    grid_spec = pltpu.PrefetchScalarGridSpec(
        num_scalar_prefetch=0,
        grid=(N,),
        in_specs=in_specs,
        out_specs=out_specs,
        scratch_shapes=[pltpu.VMEM((Ctot, L), jnp.bfloat16)],
    )

    out_flat = pl.pallas_call(
        kernel,
        out_shape=jax.ShapeDtypeStruct((N, Cout, P), out_dtype),
        grid_spec=grid_spec,
        compiler_params=pltpu.CompilerParams(
            dimension_semantics=("parallel",),
            vmem_limit_bytes=vmem_limit),
    )(x_flat, *w_list, b_pack, masks)

    # (N, Cout, H*W) -> (N, Cout, H, W): free reshape, already NCHW.
    return out_flat.reshape(N, Cout, H, W)


# ----------------------------------------------------------------------------
# Pure-JAX reference (NCHW). compute_dtype=float32 is the exact module math;
# compute_dtype=bfloat16 mirrors the kernel's precision (bf16 operands,
# f32 accumulation, f32 LeakyReLU, bf16 inter-layer features).
# ----------------------------------------------------------------------------
def rdb_forward_ref(x, params, compute_dtype=jnp.float32):
    def conv(inp, w, b):
        y = lax.conv_general_dilated(
            inp.astype(compute_dtype), w.astype(compute_dtype),
            window_strides=(1, 1), padding="SAME",
            dimension_numbers=("NCHW", "OIHW", "NCHW"),
            preferred_element_type=jnp.float32)
        return y + b[None, :, None, None].astype(jnp.float32)

    def lrelu(v):
        return jnp.where(v >= 0, v, LRELU_SLOPE * v)

    def cast(v):
        return v.astype(compute_dtype)

    x0 = cast(x)
    x1 = lrelu(conv(x0, params["conv1_w"], params["conv1_b"]))
    x2 = lrelu(conv(jnp.concatenate([x0, cast(x1)], 1),
                    params["conv2_w"], params["conv2_b"]))
    x3 = lrelu(conv(jnp.concatenate([x0, cast(x1), cast(x2)], 1),
                    params["conv3_w"], params["conv3_b"]))
    x4 = lrelu(conv(jnp.concatenate([x0, cast(x1), cast(x2), cast(x3)], 1),
                    params["conv4_w"], params["conv4_b"]))
    x5 = conv(jnp.concatenate([x0, cast(x1), cast(x2), cast(x3), cast(x4)], 1),
              params["conv5_w"], params["conv5_b"])
    return x5


# ----------------------------------------------------------------------------
# Deterministic synthetic parameters (shapes from the module __init__)
# ----------------------------------------------------------------------------
def make_params(key, in_channel, out_channel, conv5_scale):
    # conv5_scale=0.0 reproduces mutil.initialize_weights([self.conv5], 0.0)
    # (conv5 weights and bias zeroed); a non-zero scale is used only to
    # numerically exercise/verify the full dense path.
    chans_in = [in_channel + k * GROWTH for k in range(5)]
    chans_out = [GROWTH, GROWTH, GROWTH, GROWTH, out_channel]
    keys = jax.random.split(key, 10)
    params = {}
    for i in range(5):
        ci, co = chans_in[i], chans_out[i]
        scale = conv5_scale if i == 4 else 0.1
        fan_in = ci * 9
        w = jax.random.normal(keys[2 * i], (co, ci, 3, 3), jnp.float32) * (scale / np.sqrt(fan_in))
        if i == 4:
            b = jnp.zeros((co,), jnp.float32)
        else:
            b = jax.random.normal(keys[2 * i + 1], (co,), jnp.float32) * 0.05
        params[f"conv{i + 1}_w"] = w
        params[f"conv{i + 1}_b"] = b
    return params


if __name__ == "__main__":
    key = jax.random.PRNGKey(0)
    kx, kp = jax.random.split(key)

    N, Cin, H, W = 2, 4, 16, 16
    Cout = 4
    x = jax.random.normal(kx, (N, Cin, H, W), jnp.float32)

    # 1) Verification config: non-zero conv5 so the whole dense path is checked.
    params_chk = make_params(kp, Cin, Cout, conv5_scale=1.0)
    out_kernel = jax.block_until_ready(rdb_forward_pallas(x, params_chk))
    #   tight check vs the precision-matched (bf16 operand / f32 acc) reference
    out_ref_bf16 = jax.block_until_ready(
        rdb_forward_ref(x, params_chk, compute_dtype=jnp.bfloat16))
    np.testing.assert_allclose(np.asarray(out_kernel), np.asarray(out_ref_bf16),
                               rtol=2e-3, atol=2e-3)
    #   loose check vs the exact f32 module math (bounds bf16 feature drift)
    out_ref_f32 = jax.block_until_ready(
        rdb_forward_ref(x, params_chk, compute_dtype=jnp.float32))
    np.testing.assert_allclose(np.asarray(out_kernel), np.asarray(out_ref_f32),
                               rtol=5e-2, atol=2e-2)

    # Optional bf16 output path (review): same kernel, half the HBM writeback.
    out_bf16 = jax.block_until_ready(
        rdb_forward_pallas(x, params_chk, out_dtype=jnp.bfloat16))
    np.testing.assert_allclose(np.asarray(out_bf16.astype(jnp.float32)),
                               np.asarray(out_kernel), rtol=2e-2, atol=2e-2)

    # 2) Faithful config: conv5 zero-initialized exactly as in the module.
    params_faithful = make_params(kp, Cin, Cout, conv5_scale=0.0)
    out_faithful = jax.block_until_ready(rdb_forward_pallas(x, params_faithful))
    out_faithful_ref = jax.block_until_ready(
        rdb_forward_ref(x, params_faithful, compute_dtype=jnp.float32))
    np.testing.assert_allclose(np.asarray(out_faithful),
                               np.asarray(out_faithful_ref),
                               rtol=2e-3, atol=2e-3)

    assert out_faithful.shape == (N, Cout, H, W)
    print("KERNEL_OK")
</pallas_src>

<mosaic_0001>
module attributes {stable_mosaic.version = 11 : i64} {
  func.func @kernel(%arg0: i32, %arg1: memref<1x4x256xf32, #tpu.memory_space<vmem>>, %arg2: memref<3x3x32x32xbf16, #tpu.memory_space<vmem>>, %arg3: memref<3x3x32x64xbf16, #tpu.memory_space<vmem>>, %arg4: memref<3x3x32x96xbf16, #tpu.memory_space<vmem>>, %arg5: memref<3x3x32x128xbf16, #tpu.memory_space<vmem>>, %arg6: memref<3x3x8x160xbf16, #tpu.memory_space<vmem>>, %arg7: memref<5x32x1xf32, #tpu.memory_space<vmem>>, %arg8: memref<2x256xf32, #tpu.memory_space<vmem>>, %arg9: memref<1x4x256xf32, #tpu.memory_space<vmem>>, %arg10: memref<160x512xbf16, #tpu.memory_space<vmem>>) attributes {dimension_semantics = [#tpu.dimension_semantics<parallel>], iteration_bounds = array<i64: 2>, scalar_prefetch = 0 : i64, scratch_operands = 1 : i64, tpu.core_type = #tpu.core_type<tc>, window_params = [{transform_indices = @transform_0, window_bounds = array<i64: 1, 4, 256>}, {pipeline_mode = #tpu.pipeline_mode<synchronous>, transform_indices = @transform_1, window_bounds = array<i64: 3, 3, 32, 32>}, {pipeline_mode = #tpu.pipeline_mode<synchronous>, transform_indices = @transform_2, window_bounds = array<i64: 3, 3, 32, 64>}, {pipeline_mode = #tpu.pipeline_mode<synchronous>, transform_indices = @transform_3, window_bounds = array<i64: 3, 3, 32, 96>}, {pipeline_mode = #tpu.pipeline_mode<synchronous>, transform_indices = @transform_4, window_bounds = array<i64: 3, 3, 32, 128>}, {pipeline_mode = #tpu.pipeline_mode<synchronous>, transform_indices = @transform_5, window_bounds = array<i64: 3, 3, 8, 160>}, {pipeline_mode = #tpu.pipeline_mode<synchronous>, transform_indices = @transform_6, window_bounds = array<i64: 5, 32, 1>}, {pipeline_mode = #tpu.pipeline_mode<synchronous>, transform_indices = @transform_7, window_bounds = array<i64: 2, 256>}, {transform_indices = @transform_8, window_bounds = array<i64: 1, 4, 256>}]} {
    %c0 = arith.constant 0 : index
    %c0_0 = arith.constant 0 : index
    %0 = vector.load %arg8[%c0, %c0_0] : memref<2x256xf32, #tpu.memory_space<vmem>>, vector<1x256xf32>
    %c1 = arith.constant 1 : index
    %c0_1 = arith.constant 0 : index
    %1 = vector.load %arg8[%c1, %c0_1] : memref<2x256xf32, #tpu.memory_space<vmem>>, vector<1x256xf32>
    %cst = arith.constant 0.000000e+00 : bf16
    %2 = vector.broadcast %cst : bf16 to vector<160x128xbf16>
    %c0_2 = arith.constant 0 : index
    %c0_3 = arith.constant 0 : index
    %3 = vector.load %arg10[%c0_2, %c0_3] : memref<160x512xbf16, #tpu.memory_space<vmem>>, vector<160x128xbf16>
    tpu.vector_store %arg10[%c0_2, %c0_3], %2 {strides = array<i32>} : memref<160x512xbf16, #tpu.memory_space<vmem>>, vector<160x128xbf16>,
    %cst_4 = arith.constant 0.000000e+00 : bf16
    %4 = vector.broadcast %cst_4 : bf16 to vector<160x128xbf16>
    %c0_5 = arith.constant 0 : index
    %c384 = arith.constant 384 : index
    %5 = vector.load %arg10[%c0_5, %c384] : memref<160x512xbf16, #tpu.memory_space<vmem>>, vector<160x128xbf16>
    tpu.vector_store %arg10[%c0_5, %c384], %4 {strides = array<i32>} : memref<160x512xbf16, #tpu.memory_space<vmem>>, vector<160x128xbf16>,
    %c0_6 = arith.constant 0 : index
    %c0_7 = arith.constant 0 : index
    %c0_8 = arith.constant 0 : index
    %6 = vector.load %arg1[%c0_6, %c0_7, %c0_8] : memref<1x4x256xf32, #tpu.memory_space<vmem>>, vector<1x4x256xf32>
    %7 = vector.shape_cast %6 : vector<1x4x256xf32> to vector<4x256xf32>
    %8 = arith.truncf %7 : vector<4x256xf32> to vector<4x256xbf16>
    %cst_9 = arith.constant 0.000000e+00 : bf16
    %9 = vector.broadcast %cst_9 : bf16 to vector<28x256xbf16>
    %10 = tpu.concatenate %8, %9 in 0 : vector<4x256xbf16>, vector<28x256xbf16> -> vector<32x256xbf16>
    %c0_10 = arith.constant 0 : index
    %c128 = arith.constant 128 : index
    %11 = vector.load %arg10[%c0_10, %c128] : memref<160x512xbf16, #tpu.memory_space<vmem>>, vector<32x256xbf16>
    tpu.vector_store %arg10[%c0_10, %c128], %10 {strides = array<i32>} : memref<160x512xbf16, #tpu.memory_space<vmem>>, vector<32x256xbf16>,
    %c0_11 = arith.constant 0 : index
    %c0_12 = arith.constant 0 : index
    %c0_13 = arith.constant 0 : index
    %12 = vector.load %arg7[%c0_11, %c0_12, %c0_13] : memref<5x32x1xf32, #tpu.memory_space<vmem>>, vector<1x32x1xf32>
    %13 = vector.shape_cast %12 : vector<1x32x1xf32> to vector<32x1xf32>
    %14 = vector.shape_cast %13 : vector<32x1xf32> to vector<32x1xf32>
    %15 = vector.broadcast %14 : vector<32x1xf32> to vector<32x256xf32>
    %c0_14 = arith.constant 0 : index
    %c111 = arith.constant 111 : index
    %16 = vector.load %arg10[%c0_14, %c111] : memref<160x512xbf16, #tpu.memory_space<vmem>>, vector<32x256xbf16>
    %c0_15 = arith.constant 0 : index
    %c0_16 = arith.constant 0 : index
    %c0_17 = arith.constant 0 : index
    %c0_18 = arith.constant 0 : index
    %17 = vector.load %arg2[%c0_15, %c0_16, %c0_17, %c0_18] : memref<3x3x32x32xbf16, #tpu.memory_space<vmem>>, vector<1x1x32x32xbf16>
    %18 = vector.shape_cast %17 : vector<1x1x32x32xbf16> to vector<32x32xbf16>
    %cst_19 = arith.constant dense<0.000000e+00> : vector<32x256xf32>
    %19 = tpu.matmul %18, %16, %cst_19 {dimension_numbers = #tpu.dot_dimension_numbers<[1], [0], [0], [1], [0, 0, 1, 1], [], []>} : vector<32x32xbf16>, vector<32x256xbf16>, vector<32x256xf32> -> vector<32x256xf32>
    %20 = vector.broadcast %0 : vector<1x256xf32> to vector<32x256xf32>
    %21 = arith.mulf %19, %20 : vector<32x256xf32>
    %22 = arith.addf %15, %21 : vector<32x256xf32>
    %c0_20 = arith.constant 0 : index
    %c112 = arith.constant 112 : index
    %23 = vector.load %arg10[%c0_20, %c112] : memref<160x512xbf16, #tpu.memory_space<vmem>>, vector<32x256xbf16>
    %c0_21 = arith.constant 0 : index
    %c1_22 = arith.constant 1 : index
    %c0_23 = arith.constant 0 : index
    %c0_24 = arith.constant 0 : index
    %24 = vector.load %arg2[%c0_21, %c1_22, %c0_23, %c0_24] : memref<3x3x32x32xbf16, #tpu.memory_space<vmem>>, vector<1x1x32x32xbf16>
    %25 = vector.shape_cast %24 : vector<1x1x32x32xbf16> to vector<32x32xbf16>
    %cst_25 = arith.constant dense<0.000000e+00> : vector<32x256xf32>
    %26 = tpu.matmul %25, %23, %cst_25 {dimension_numbers = #tpu.dot_dimension_numbers<[1], [0], [0], [1], [0, 0, 1, 1], [], []>} : vector<32x32xbf16>, vector<32x256xbf16>, vector<32x256xf32> -> vector<32x256xf32>
    %27 = arith.addf %22, %26 : vector<32x256xf32>
    %c0_26 = arith.constant 0 : index
    %c113 = arith.constant 113 : index
    %28 = vector.load %arg10[%c0_26, %c113] : memref<160x512xbf16, #tpu.memory_space<vmem>>, vector<32x256xbf16>
    %c0_27 = arith.constant 0 : index
    %c2 = arith.constant 2 : index
    %c0_28 = arith.constant 0 : index
    %c0_29 = arith.constant 0 : index
    %29 = vector.load %arg2[%c0_27, %c2, %c0_28, %c0_29] : memref<3x3x32x32xbf16, #tpu.memory_space<vmem>>, vector<1x1x32x32xbf16>
    %30 = vector.shape_cast %29 : vector<1x1x32x32xbf16> to vector<32x32xbf16>
    %cst_30 = arith.constant dense<0.000000e+00> : vector<32x256xf32>
    %31 = tpu.matmul %30, %28, %cst_30 {dimension_numbers = #tpu.dot_dimension_numbers<[1], [0], [0], [1], [0, 0, 1, 1], [], []>} : vector<32x32xbf16>, vector<32x256xbf16>, vector<32x256xf32> -> vector<32x256xf32>
    %32 = vector.broadcast %1 : vector<1x256xf32> to vector<32x256xf32>
    %33 = arith.mulf %31, %32 : vector<32x256xf32>
    %34 = arith.addf %27, %33 : vector<32x256xf32>
    %c0_31 = arith.constant 0 : index
    %c127 = arith.constant 127 : index
    %35 = vector.load %arg10[%c0_31, %c127] : memref<160x512xbf16, #tpu.memory_space<vmem>>, vector<32x256xbf16>
    %c1_32 = arith.constant 1 : index
    %c0_33 = arith.constant 0 : index
    %c0_34 = arith.constant 0 : index
    %c0_35 = arith.constant 0 : index
    %36 = vector.load %arg2[%c1_32, %c0_33, %c0_34, %c0_35] : memref<3x3x32x32xbf16, #tpu.memory_space<vmem>>, vector<1x1x32x32xbf16>
    %37 = vector.shape_cast %36 : vector<1x1x32x32xbf16> to vector<32x32xbf16>
    %cst_36 = arith.constant dense<0.000000e+00> : vector<32x256xf32>
    %38 = tpu.matmul %37, %35, %cst_36 {dimension_numbers = #tpu.dot_dimension_numbers<[1], [0], [0], [1], [0, 0, 1, 1], [], []>} : vector<32x32xbf16>, vector<32x256xbf16>, vector<32x256xf32> -> vector<32x256xf32>
    %39 = vector.broadcast %0 : vector<1x256xf32> to vector<32x256xf32>
    %40 = arith.mulf %38, %39 : vector<32x256xf32>
    %41 = arith.addf %34, %40 : vector<32x256xf32>
    %c0_37 = arith.constant 0 : index
    %c128_38 = arith.constant 128 : index
    %42 = vector.load %arg10[%c0_37, %c128_38] : memref<160x512xbf16, #tpu.memory_space<vmem>>, vector<32x256xbf16>
    %c1_39 = arith.constant 1 : index
    %c1_40 = arith.constant 1 : index
    %c0_41 = arith.constant 0 : index
    %c0_42 = arith.constant 0 : index
    %43 = vector.load %arg2[%c1_39, %c1_40, %c0_41, %c0_42] : memref<3x3x32x32xbf16, #tpu.memory_space<vmem>>, vector<1x1x32x32xbf16>
    %44 = vector.shape_cast %43 : vector<1x1x32x32xbf16> to vector<32x32xbf16>
    %cst_43 = arith.constant dense<0.000000e+00> : vector<32x256xf32>
    %45 = tpu.matmul %44, %42, %cst_43 {dimension_numbers = #tpu.dot_dimension_numbers<[1], [0], [0], [1], [0, 0, 1, 1], [], []>} : vector<32x32xbf16>, vector<32x256xbf16>, vector<32x256xf32> -> vector<32x256xf32>
    %46 = arith.addf %41, %45 : vector<32x256xf32>
    %c0_44 = arith.constant 0 : index
    %c129 = arith.constant 129 : index
    %47 = vector.load %arg10[%c0_44, %c129] : memref<160x512xbf16, #tpu.memory_space<vmem>>, vector<32x256xbf16>
    %c1_45 = arith.constant 1 : index
    %c2_46 = arith.constant 2 : index
    %c0_47 = arith.constant 0 : index
    %c0_48 = arith.constant 0 : index
    %48 = vector.load %arg2[%c1_45, %c2_46, %c0_47, %c0_48] : memref<3x3x32x32xbf16, #tpu.memory_space<vmem>>, vector<1x1x32x32xbf16>
    %49 = vector.shape_cast %48 : vector<1x1x32x32xbf16> to vector<32x32xbf16>
    %cst_49 = arith.constant dense<0.000000e+00> : vector<32x256xf32>
    %50 = tpu.matmul %49, %47, %cst_49 {dimension_numbers = #tpu.dot_dimension_numbers<[1], [0], [0], [1], [0, 0, 1, 1], [], []>} : vector<32x32xbf16>, vector<32x256xbf16>, vector<32x256xf32> -> vector<32x256xf32>
    %51 = vector.broadcast %1 : vector<1x256xf32> to vector<32x256xf32>
    %52 = arith.mulf %50, %51 : vector<32x256xf32>
    %53 = arith.addf %46, %52 : vector<32x256xf32>
    %c0_50 = arith.constant 0 : index
    %c143 = arith.constant 143 : index
    %54 = vector.load %arg10[%c0_50, %c143] : memref<160x512xbf16, #tpu.memory_space<vmem>>, vector<32x256xbf16>
    %c2_51 = arith.constant 2 : index
    %c0_52 = arith.constant 0 : index
    %c0_53 = arith.constant 0 : index
    %c0_54 = arith.constant 0 : index
    %55 = vector.load %arg2[%c2_51, %c0_52, %c0_53, %c0_54] : memref<3x3x32x32xbf16, #tpu.memory_space<vmem>>, vector<1x1x32x32xbf16>
    %56 = vector.shape_cast %55 : vector<1x1x32x32xbf16> to vector<32x32xbf16>
    %cst_55 = arith.constant dense<0.000000e+00> : vector<32x256xf32>
    %57 = tpu.matmul %56, %54, %cst_55 {dimension_numbers = #tpu.dot_dimension_numbers<[1], [0], [0], [1], [0, 0, 1, 1], [], []>} : vector<32x32xbf16>, vector<32x256xbf16>, vector<32x256xf32> -> vector<32x256xf32>
    %58 = vector.broadcast %0 : vector<1x256xf32> to vector<32x256xf32>
    %59 = arith.mulf %57, %58 : vector<32x256xf32>
    %60 = arith.addf %53, %59 : vector<32x256xf32>
    %c0_56 = arith.constant 0 : index
    %c144 = arith.constant 144 : index
    %61 = vector.load %arg10[%c0_56, %c144] : memref<160x512xbf16, #tpu.memory_space<vmem>>, vector<32x256xbf16>
    %c2_57 = arith.constant 2 : index
    %c1_58 = arith.constant 1 : index
    %c0_59 = arith.constant 0 : index
    %c0_60 = arith.constant 0 : index
    %62 = vector.load %arg2[%c2_57, %c1_58, %c0_59, %c0_60] : memref<3x3x32x32xbf16, #tpu.memory_space<vmem>>, vector<1x1x32x32xbf16>
    %63 = vector.shape_cast %62 : vector<1x1x32x32xbf16> to vector<32x32xbf16>
    %cst_61 = arith.constant dense<0.000000e+00> : vector<32x256xf32>
    %64 = tpu.matmul %63, %61, %cst_61 {dimension_numbers = #tpu.dot_dimension_numbers<[1], [0], [0], [1], [0, 0, 1, 1], [], []>} : vector<32x32xbf16>, vector<32x256xbf16>, vector<32x256xf32> -> vector<32x256xf32>
    %65 = arith.addf %60, %64 : vector<32x256xf32>
    %c0_62 = arith.constant 0 : index
    %c145 = arith.constant 145 : index
    %66 = vector.load %arg10[%c0_62, %c145] : memref<160x512xbf16, #tpu.memory_space<vmem>>, vector<32x256xbf16>
    %c2_63 = arith.constant 2 : index
    %c2_64 = arith.constant 2 : index
    %c0_65 = arith.constant 0 : index
    %c0_66 = arith.constant 0 : index
    %67 = vector.load %arg2[%c2_63, %c2_64, %c0_65, %c0_66] : memref<3x3x32x32xbf16, #tpu.memory_space<vmem>>, vector<1x1x32x32xbf16>
    %68 = vector.shape_cast %67 : vector<1x1x32x32xbf16> to vector<32x32xbf16>
    %cst_67 = arith.constant dense<0.000000e+00> : vector<32x256xf32>
    %69 = tpu.matmul %68, %66, %cst_67 {dimension_numbers = #tpu.dot_dimension_numbers<[1], [0], [0], [1], [0, 0, 1, 1], [], []>} : vector<32x32xbf16>, vector<32x256xbf16>, vector<32x256xf32> -> vector<32x256xf32>
    %70 = vector.broadcast %1 : vector<1x256xf32> to vector<32x256xf32>
    %71 = arith.mulf %69, %70 : vector<32x256xf32>
    %72 = arith.addf %65, %71 : vector<32x256xf32>
    %cst_68 = arith.constant 0.000000e+00 : f32
    %73 = vector.broadcast %cst_68 : f32 to vector<32x256xf32>
    %74 = arith.cmpf oge, %72, %73 : vector<32x256xf32>
    %cst_69 = arith.constant 0.00999999977 : f32
    %75 = vector.broadcast %cst_69 : f32 to vector<32x256xf32>
    %76 = arith.mulf %75, %72 : vector<32x256xf32>
    %77 = arith.select %74, %72, %76 : vector<32x256xi1>, vector<32x256xf32>
    %78 = arith.truncf %77 : vector<32x256xf32> to vector<32x256xbf16>
    %c32 = arith.constant 32 : index
    %c128_70 = arith.constant 128 : index
    %79 = vector.load %arg10[%c32, %c128_70] : memref<160x512xbf16, #tpu.memory_space<vmem>>, vector<32x256xbf16>
    tpu.vector_store %arg10[%c32, %c128_70], %78 {strides = array<i32>} : memref<160x512xbf16, #tpu.memory_space<vmem>>, vector<32x256xbf16>,
    %c1_71 = arith.constant 1 : index
    %c0_72 = arith.constant 0 : index
    %c0_73 = arith.constant 0 : index
    %80 = vector.load %arg7[%c1_71, %c0_72, %c0_73] : memref<5x32x1xf32, #tpu.memory_space<vmem>>, vector<1x32x1xf32>
    %81 = vector.shape_cast %80 : vector<1x32x1xf32> to vector<32x1xf32>
    %82 = vector.shape_cast %81 : vector<32x1xf32> to vector<32x1xf32>
    %83 = vector.broadcast %82 : vector<32x1xf32> to vector<32x256xf32>
    %c0_74 = arith.constant 0 : index
    %c111_75 = arith.constant 111 : index
    %84 = vector.load %arg10[%c0_74, %c111_75] : memref<160x512xbf16, #tpu.memory_space<vmem>>, vector<64x256xbf16>
    %c0_76 = arith.constant 0 : index
    %c0_77 = arith.constant 0 : index
    %c0_78 = arith.constant 0 : index
    %c0_79 = arith.constant 0 : index
    %85 = vector.load %arg3[%c0_76, %c0_77, %c0_78, %c0_79] : memref<3x3x32x64xbf16, #tpu.memory_space<vmem>>, vector<1x1x32x64xbf16>
    %86 = vector.shape_cast %85 : vector<1x1x32x64xbf16> to vector<32x64xbf16>
    %cst_80 = arith.constant dense<0.000000e+00> : vector<32x256xf32>
    %87 = tpu.matmul %86, %84, %cst_80 {dimension_numbers = #tpu.dot_dimension_numbers<[1], [0], [0], [1], [0, 0, 1, 1], [], []>} : vector<32x64xbf16>, vector<64x256xbf16>, vector<32x256xf32> -> vector<32x256xf32>
    %88 = vector.broadcast %0 : vector<1x256xf32> to vector<32x256xf32>
    %89 = arith.mulf %87, %88 : vector<32x256xf32>
    %90 = arith.addf %83, %89 : vector<32x256xf32>
    %c0_81 = arith.constant 0 : index
    %c112_82 = arith.constant 112 : index
    %91 = vector.load %arg10[%c0_81, %c112_82] : memref<160x512xbf16, #tpu.memory_space<vmem>>, vector<64x256xbf16>
    %c0_83 = arith.constant 0 : index
    %c1_84 = arith.constant 1 : index
    %c0_85 = arith.constant 0 : index
    %c0_86 = arith.constant 0 : index
    %92 = vector.load %arg3[%c0_83, %c1_84, %c0_85, %c0_86] : memref<3x3x32x64xbf16, #tpu.memory_space<vmem>>, vector<1x1x32x64xbf16>
    %93 = vector.shape_cast %92 : vector<1x1x32x64xbf16> to vector<32x64xbf16>
    %cst_87 = arith.constant dense<0.000000e+00> : vector<32x256xf32>
    %94 = tpu.matmul %93, %91, %cst_87 {dimension_numbers = #tpu.dot_dimension_numbers<[1], [0], [0], [1], [0, 0, 1, 1], [], []>} : vector<32x64xbf16>, vector<64x256xbf16>, vector<32x256xf32> -> vector<32x256xf32>
    %95 = arith.addf %90, %94 : vector<32x256xf32>
    %c0_88 = arith.constant 0 : index
    %c113_89 = arith.constant 113 : index
    %96 = vector.load %arg10[%c0_88, %c113_89] : memref<160x512xbf16, #tpu.memory_space<vmem>>, vector<64x256xbf16>
    %c0_90 = arith.constant 0 : index
    %c2_91 = arith.constant 2 : index
    %c0_92 = arith.constant 0 : index
    %c0_93 = arith.constant 0 : index
    %97 = vector.load %arg3[%c0_90, %c2_91, %c0_92, %c0_93] : memref<3x3x32x64xbf16, #tpu.memory_space<vmem>>, vector<1x1x32x64xbf16>
    %98 = vector.shape_cast %97 : vector<1x1x32x64xbf16> to vector<32x64xbf16>
    %cst_94 = arith.constant dense<0.000000e+00> : vector<32x256xf32>
    %99 = tpu.matmul %98, %96, %cst_94 {dimension_numbers = #tpu.dot_dimension_numbers<[1], [0], [0], [1], [0, 0, 1, 1], [], []>} : vector<32x64xbf16>, vector<64x256xbf16>, vector<32x256xf32> -> vector<32x256xf32>
    %100 = vector.broadcast %1 : vector<1x256xf32> to vector<32x256xf32>
    %101 = arith.mulf %99, %100 : vector<32x256xf32>
    %102 = arith.addf %95, %101 : vector<32x256xf32>
    %c0_95 = arith.constant 0 : index
    %c127_96 = arith.constant 127 : index
    %103 = vector.load %arg10[%c0_95, %c127_96] : memref<160x512xbf16, #tpu.memory_space<vmem>>, vector<64x256xbf16>
    %c1_97 = arith.constant 1 : index
    %c0_98 = arith.constant 0 : index
    %c0_99 = arith.constant 0 : index
    %c0_100 = arith.constant 0 : index
    %104 = vector.load %arg3[%c1_97, %c0_98, %c0_99, %c0_100] : memref<3x3x32x64xbf16, #tpu.memory_space<vmem>>, vector<1x1x32x64xbf16>
    %105 = vector.shape_cast %104 : vector<1x1x32x64xbf16> to vector<32x64xbf16>
    %cst_101 = arith.constant dense<0.000000e+00> : vector<32x256xf32>
    %106 = tpu.matmul %105, %103, %cst_101 {dimension_numbers = #tpu.dot_dimension_numbers<[1], [0], [0], [1], [0, 0, 1, 1], [], []>} : vector<32x64xbf16>, vector<64x256xbf16>, vector<32x256xf32> -> vector<32x256xf32>
    %107 = vector.broadcast %0 : vector<1x256xf32> to vector<32x256xf32>
    %108 = arith.mulf %106, %107 : vector<32x256xf32>
    %109 = arith.addf %102, %108 : vector<32x256xf32>
    %c0_102 = arith.constant 0 : index
    %c128_103 = arith.constant 128 : index
    %110 = vector.load %arg10[%c0_102, %c128_103] : memref<160x512xbf16, #tpu.memory_space<vmem>>, vector<64x256xbf16>
    %c1_104 = arith.constant 1 : index
    %c1_105 = arith.constant 1 : index
    %c0_106 = arith.constant 0 : index
    %c0_107 = arith.constant 0 : index
    %111 = vector.load %arg3[%c1_104, %c1_105, %c0_106, %c0_107] : memref<3x3x32x64xbf16, #tpu.memory_space<vmem>>, vector<1x1x32x64xbf16>
    %112 = vector.shape_cast %111 : vector<1x1x32x64xbf16> to vector<32x64xbf16>
    %cst_108 = arith.constant dense<0.000000e+00> : vector<32x256xf32>
    %113 = tpu.matmul %112, %110, %cst_108 {dimension_numbers = #tpu.dot_dimension_numbers<[1], [0], [0], [1], [0, 0, 1, 1], [], []>} : vector<32x64xbf16>, vector<64x256xbf16>, vector<32x256xf32> -> vector<32x256xf32>
    %114 = arith.addf %109, %113 : vector<32x256xf32>
    %c0_109 = arith.constant 0 : index
    %c129_110 = arith.constant 129 : index
    %115 = vector.load %arg10[%c0_109, %c129_110] : memref<160x512xbf16, #tpu.memory_space<vmem>>, vector<64x256xbf16>
    %c1_111 = arith.constant 1 : index
    %c2_112 = arith.constant 2 : index
    %c0_113 = arith.constant 0 : index
    %c0_114 = arith.constant 0 : index
    %116 = vector.load %arg3[%c1_111, %c2_112, %c0_113, %c0_114] : memref<3x3x32x64xbf16, #tpu.memory_space<vmem>>, vector<1x1x32x64xbf16>
    %117 = vector.shape_cast %116 : vector<1x1x32x64xbf16> to vector<32x64xbf16>
    %cst_115 = arith.constant dense<0.000000e+00> : vector<32x256xf32>
    %118 = tpu.matmul %117, %115, %cst_115 {dimension_numbers = #tpu.dot_dimension_numbers<[1], [0], [0], [1], [0, 0, 1, 1], [], []>} : vector<32x64xbf16>, vector<64x256xbf16>, vector<32x256xf32> -> vector<32x256xf32>
    %119 = vector.broadcast %1 : vector<1x256xf32> to vector<32x256xf32>
    %120 = arith.mulf %118, %119 : vector<32x256xf32>
    %121 = arith.addf %114, %120 : vector<32x256xf32>
    %c0_116 = arith.constant 0 : index
    %c143_117 = arith.constant 143 : index
    %122 = vector.load %arg10[%c0_116, %c143_117] : memref<160x512xbf16, #tpu.memory_space<vmem>>, vector<64x256xbf16>
    %c2_118 = arith.constant 2 : index
    %c0_119 = arith.constant 0 : index
    %c0_120 = arith.constant 0 : index
    %c0_121 = arith.constant 0 : index
    %123 = vector.load %arg3[%c2_118, %c0_119, %c0_120, %c0_121] : memref<3x3x32x64xbf16, #tpu.memory_space<vmem>>, vector<1x1x32x64xbf16>
    %124 = vector.shape_cast %123 : vector<1x1x32x64xbf16> to vector<32x64xbf16>
    %cst_122 = arith.constant dense<0.000000e+00> : vector<32x256xf32>
    %125 = tpu.matmul %124, %122, %cst_122 {dimension_numbers = #tpu.dot_dimension_numbers<[1], [0], [0], [1], [0, 0, 1, 1], [], []>} : vector<32x64xbf16>, vector<64x256xbf16>, vector<32x256xf32> -> vector<32x256xf32>
    %126 = vector.broadcast %0 : vector<1x256xf32> to vector<32x256xf32>
    %127 = arith.mulf %125, %126 : vector<32x256xf32>
    %128 = arith.addf %121, %127 : vector<32x256xf32>
    %c0_123 = arith.constant 0 : index
    %c144_124 = arith.constant 144 : index
    %129 = vector.load %arg10[%c0_123, %c144_124] : memref<160x512xbf16, #tpu.memory_space<vmem>>, vector<64x256xbf16>
    %c2_125 = arith.constant 2 : index
    %c1_126 = arith.constant 1 : index
    %c0_127 = arith.constant 0 : index
    %c0_128 = arith.constant 0 : index
    %130 = vector.load %arg3[%c2_125, %c1_126, %c0_127, %c0_128] : memref<3x3x32x64xbf16, #tpu.memory_space<vmem>>, vector<1x1x32x64xbf16>
    %131 = vector.shape_cast %130 : vector<1x1x32x64xbf16> to vector<32x64xbf16>
    %cst_129 = arith.constant dense<0.000000e+00> : vector<32x256xf32>
    %132 = tpu.matmul %131, %129, %cst_129 {dimension_numbers = #tpu.dot_dimension_numbers<[1], [0], [0], [1], [0, 0, 1, 1], [], []>} : vector<32x64xbf16>, vector<64x256xbf16>, vector<32x256xf32> -> vector<32x256xf32>
    %133 = arith.addf %128, %132 : vector<32x256xf32>
    %c0_130 = arith.constant 0 : index
    %c145_131 = arith.constant 145 : index
    %134 = vector.load %arg10[%c0_130, %c145_131] : memref<160x512xbf16, #tpu.memory_space<vmem>>, vector<64x256xbf16>
    %c2_132 = arith.constant 2 : index
    %c2_133 = arith.constant 2 : index
    %c0_134 = arith.constant 0 : index
    %c0_135 = arith.constant 0 : index
    %135 = vector.load %arg3[%c2_132, %c2_133, %c0_134, %c0_135] : memref<3x3x32x64xbf16, #tpu.memory_space<vmem>>, vector<1x1x32x64xbf16>
    %136 = vector.shape_cast %135 : vector<1x1x32x64xbf16> to vector<32x64xbf16>
    %cst_136 = arith.constant dense<0.000000e+00> : vector<32x256xf32>
    %137 = tpu.matmul %136, %134, %cst_136 {dimension_numbers = #tpu.dot_dimension_numbers<[1], [0], [0], [1], [0, 0, 1, 1], [], []>} : vector<32x64xbf16>, vector<64x256xbf16>, vector<32x256xf32> -> vector<32x256xf32>
    %138 = vector.broadcast %1 : vector<1x256xf32> to vector<32x256xf32>
    %139 = arith.mulf %137, %138 : vector<32x256xf32>
    %140 = arith.addf %133, %139 : vector<32x256xf32>
    %cst_137 = arith.constant 0.000000e+00 : f32
    %141 = vector.broadcast %cst_137 : f32 to vector<32x256xf32>
    %142 = arith.cmpf oge, %140, %141 : vector<32x256xf32>
    %cst_138 = arith.constant 0.00999999977 : f32
    %143 = vector.broadcast %cst_138 : f32 to vector<32x256xf32>
    %144 = arith.mulf %143, %140 : vector<32x256xf32>
    %145 = arith.select %142, %140, %144 : vector<32x256xi1>, vector<32x256xf32>
    %146 = arith.truncf %145 : vector<32x256xf32> to vector<32x256xbf16>
    %c64 = arith.constant 64 : index
    %c128_139 = arith.constant 128 : index
    %147 = vector.load %arg10[%c64, %c128_139] : memref<160x512xbf16, #tpu.memory_space<vmem>>, vector<32x256xbf16>
    tpu.vector_store %arg10[%c64, %c128_139], %146 {strides = array<i32>} : memref<160x512xbf16, #tpu.memory_space<vmem>>, vector<32x256xbf16>,
    %c2_140 = arith.constant 2 : index
    %c0_141 = arith.constant 0 : index
    %c0_142 = arith.constant 0 : index
    %148 = vector.load %arg7[%c2_140, %c0_141, %c0_142] : memref<5x32x1xf32, #tpu.memory_space<vmem>>, vector<1x32x1xf32>
    %149 = vector.shape_cast %148 : vector<1x32x1xf32> to vector<32x1xf32>
    %150 = vector.shape_cast %149 : vector<32x1xf32> to vector<32x1xf32>
    %151 = vector.broadcast %150 : vector<32x1xf32> to vector<32x256xf32>
    %c0_143 = arith.constant 0 : index
    %c111_144 = arith.constant 111 : index
    %152 = vector.load %arg10[%c0_143, %c111_144] : memref<160x512xbf16, #tpu.memory_space<vmem>>, vector<96x256xbf16>
    %c0_145 = arith.constant 0 : index
    %c0_146 = arith.constant 0 : index
    %c0_147 = arith.constant 0 : index
    %c0_148 = arith.constant 0 : index
    %153 = vector.load %arg4[%c0_145, %c0_146, %c0_147, %c0_148] : memref<3x3x32x96xbf16, #tpu.memory_space<vmem>>, vector<1x1x32x96xbf16>
    %154 = vector.shape_cast %153 : vector<1x1x32x96xbf16> to vector<32x96xbf16>
    %cst_149 = arith.constant dense<0.000000e+00> : vector<32x256xf32>
    %155 = tpu.matmul %154, %152, %cst_149 {dimension_numbers = #tpu.dot_dimension_numbers<[1], [0], [0], [1], [0, 0, 1, 1], [], []>} : vector<32x96xbf16>, vector<96x256xbf16>, vector<32x256xf32> -> vector<32x256xf32>
    %156 = vector.broadcast %0 : vector<1x256xf32> to vector<32x256xf32>
    %157 = arith.mulf %155, %156 : vector<32x256xf32>
    %158 = arith.addf %151, %157 : vector<32x256xf32>
    %c0_150 = arith.constant 0 : index
    %c112_151 = arith.constant 112 : index
    %159 = vector.load %arg10[%c0_150, %c112_151] : memref<160x512xbf16, #tpu.memory_space<vmem>>, vector<96x256xbf16>
    %c0_152 = arith.constant 0 : index
    %c1_153 = arith.constant 1 : index
    %c0_154 = arith.constant 0 : index
    %c0_155 = arith.constant 0 : index
    %160 = vector.load %arg4[%c0_152, %c1_153, %c0_154, %c0_155] : memref<3x3x32x96xbf16, #tpu.memory_space<vmem>>, vector<1x1x32x96xbf16>
    %161 = vector.shape_cast %160 : vector<1x1x32x96xbf16> to vector<32x96xbf16>
    %cst_156 = arith.constant dense<0.000000e+00> : vector<32x256xf32>
    %162 = tpu.matmul %161, %159, %cst_156 {dimension_numbers = #tpu.dot_dimension_numbers<[1], [0], [0], [1], [0, 0, 1, 1], [], []>} : vector<32x96xbf16>, vector<96x256xbf16>, vector<32x256xf32> -> vector<32x256xf32>
    %163 = arith.addf %158, %162 : vector<32x256xf32>
    %c0_157 = arith.constant 0 : index
    %c113_158 = arith.constant 113 : index
    %164 = vector.load %arg10[%c0_157, %c113_158] : memref<160x512xbf16, #tpu.memory_space<vmem>>, vector<96x256xbf16>
    %c0_159 = arith.constant 0 : index
    %c2_160 = arith.constant 2 : index
    %c0_161 = arith.constant 0 : index
    %c0_162 = arith.constant 0 : index
    %165 = vector.load %arg4[%c0_159, %c2_160, %c0_161, %c0_162] : memref<3x3x32x96xbf16, #tpu.memory_space<vmem>>, vector<1x1x32x96xbf16>
    %166 = vector.shape_cast %165 : vector<1x1x32x96xbf16> to vector<32x96xbf16>
    %cst_163 = arith.constant dense<0.000000e+00> : vector<32x256xf32>
    %167 = tpu.matmul %166, %164, %cst_163 {dimension_numbers = #tpu.dot_dimension_numbers<[1], [0], [0], [1], [0, 0, 1, 1], [], []>} : vector<32x96xbf16>, vector<96x256xbf16>, vector<32x256xf32> -> vector<32x256xf32>
    %168 = vector.broadcast %1 : vector<1x256xf32> to vector<32x256xf32>
    %169 = arith.mulf %167, %168 : vector<32x256xf32>
    %170 = arith.addf %163, %169 : vector<32x256xf32>
    %c0_164 = arith.constant 0 : index
    %c127_165 = arith.constant 127 : index
    %171 = vector.load %arg10[%c0_164, %c127_165] : memref<160x512xbf16, #tpu.memory_space<vmem>>, vector<96x256xbf16>
    %c1_166 = arith.constant 1 : index
    %c0_167 = arith.constant 0 : index
    %c0_168 = arith.constant 0 : index
    %c0_169 = arith.constant 0 : index
    %172 = vector.load %arg4[%c1_166, %c0_167, %c0_168, %c0_169] : memref<3x3x32x96xbf16, #tpu.memory_space<vmem>>, vector<1x1x32x96xbf16>
    %173 = vector.shape_cast %172 : vector<1x1x32x96xbf16> to vector<32x96xbf16>
    %cst_170 = arith.constant dense<0.000000e+00> : vector<32x256xf32>
    %174 = tpu.matmul %173, %171, %cst_170 {dimension_numbers = #tpu.dot_dimension_numbers<[1], [0], [0], [1], [0, 0, 1, 1], [], []>} : vector<32x96xbf16>, vector<96x256xbf16>, vector<32x256xf32> -> vector<32x256xf32>
    %175 = vector.broadcast %0 : vector<1x256xf32> to vector<32x256xf32>
    %176 = arith.mulf %174, %175 : vector<32x256xf32>
    %177 = arith.addf %170, %176 : vector<32x256xf32>
    %c0_171 = arith.constant 0 : index
    %c128_172 = arith.constant 128 : index
    %178 = vector.load %arg10[%c0_171, %c128_172] : memref<160x512xbf16, #tpu.memory_space<vmem>>, vector<96x256xbf16>
    %c1_173 = arith.constant 1 : index
    %c1_174 = arith.constant 1 : index
    %c0_175 = arith.constant 0 : index
    %c0_176 = arith.constant 0 : index
    %179 = vector.load %arg4[%c1_173, %c1_174, %c0_175, %c0_176] : memref<3x3x32x96xbf16, #tpu.memory_space<vmem>>, vector<1x1x32x96xbf16>
    %180 = vector.shape_cast %179 : vector<1x1x32x96xbf16> to vector<32x96xbf16>
    %cst_177 = arith.constant dense<0.000000e+00> : vector<32x256xf32>
    %181 = tpu.matmul %180, %178, %cst_177 {dimension_numbers = #tpu.dot_dimension_numbers<[1], [0], [0], [1], [0, 0, 1, 1], [], []>} : vector<32x96xbf16>, vector<96x256xbf16>, vector<32x256xf32> -> vector<32x256xf32>
    %182 = arith.addf %177, %181 : vector<32x256xf32>
    %c0_178 = arith.constant 0 : index
    %c129_179 = arith.constant 129 : index
    %183 = vector.load %arg10[%c0_178, %c129_179] : memref<160x512xbf16, #tpu.memory_space<vmem>>, vector<96x256xbf16>
    %c1_180 = arith.constant 1 : index
    %c2_181 = arith.constant 2 : index
    %c0_182 = arith.constant 0 : index
    %c0_183 = arith.constant 0 : index
    %184 = vector.load %arg4[%c1_180, %c2_181, %c0_182, %c0_183] : memref<3x3x32x96xbf16, #tpu.memory_space<vmem>>, vector<1x1x32x96xbf16>
    %185 = vector.shape_cast %184 : vector<1x1x32x96xbf16> to vector<32x96xbf16>
    %cst_184 = arith.constant dense<0.000000e+00> : vector<32x256xf32>
    %186 = tpu.matmul %185, %183, %cst_184 {dimension_numbers = #tpu.dot_dimension_numbers<[1], [0], [0], [1], [0, 0, 1, 1], [], []>} : vector<32x96xbf16>, vector<96x256xbf16>, vector<32x256xf32> -> vector<32x256xf32>
    %187 = vector.broadcast %1 : vector<1x256xf32> to vector<32x256xf32>
    %188 = arith.mulf %186, %187 : vector<32x256xf32>
    %189 = arith.addf %182, %188 : vector<32x256xf32>
    %c0_185 = arith.constant 0 : index
    %c143_186 = arith.constant 143 : index
    %190 = vector.load %arg10[%c0_185, %c143_186] : memref<160x512xbf16, #tpu.memory_space<vmem>>, vector<96x256xbf16>
    %c2_187 = arith.constant 2 : index
    %c0_188 = arith.constant 0 : index
    %c0_189 = arith.constant 0 : index
    %c0_190 = arith.constant 0 : index
    %191 = vector.load %arg4[%c2_187, %c0_188, %c0_189, %c0_190] : memref<3x3x32x96xbf16, #tpu.memory_space<vmem>>, vector<1x1x32x96xbf16>
    %192 = vector.shape_cast %191 : vector<1x1x32x96xbf16> to vector<32x96xbf16>
    %cst_191 = arith.constant dense<0.000000e+00> : vector<32x256xf32>
    %193 = tpu.matmul %192, %190, %cst_191 {dimension_numbers = #tpu.dot_dimension_numbers<[1], [0], [0], [1], [0, 0, 1, 1], [], []>} : vector<32x96xbf16>, vector<96x256xbf16>, vector<32x256xf32> -> vector<32x256xf32>
    %194 = vector.broadcast %0 : vector<1x256xf32> to vector<32x256xf32>
    %195 = arith.mulf %193, %194 : vector<32x256xf32>
    %196 = arith.addf %189, %195 : vector<32x256xf32>
    %c0_192 = arith.constant 0 : index
    %c144_193 = arith.constant 144 : index
    %197 = vector.load %arg10[%c0_192, %c144_193] : memref<160x512xbf16, #tpu.memory_space<vmem>>, vector<96x256xbf16>
    %c2_194 = arith.constant 2 : index
    %c1_195 = arith.constant 1 : index
    %c0_196 = arith.constant 0 : index
    %c0_197 = arith.constant 0 : index
    %198 = vector.load %arg4[%c2_194, %c1_195, %c0_196, %c0_197] : memref<3x3x32x96xbf16, #tpu.memory_space<vmem>>, vector<1x1x32x96xbf16>
    %199 = vector.shape_cast %198 : vector<1x1x32x96xbf16> to vector<32x96xbf16>
    %cst_198 = arith.constant dense<0.000000e+00> : vector<32x256xf32>
    %200 = tpu.matmul %199, %197, %cst_198 {dimension_numbers = #tpu.dot_dimension_numbers<[1], [0], [0], [1], [0, 0, 1, 1], [], []>} : vector<32x96xbf16>, vector<96x256xbf16>, vector<32x256xf32> -> vector<32x256xf32>
    %201 = arith.addf %196, %200 : vector<32x256xf32>
    %c0_199 = arith.constant 0 : index
    %c145_200 = arith.constant 145 : index
    %202 = vector.load %arg10[%c0_199, %c145_200] : memref<160x512xbf16, #tpu.memory_space<vmem>>, vector<96x256xbf16>
    %c2_201 = arith.constant 2 : index
    %c2_202 = arith.constant 2 : index
    %c0_203 = arith.constant 0 : index
    %c0_204 = arith.constant 0 : index
    %203 = vector.load %arg4[%c2_201, %c2_202, %c0_203, %c0_204] : memref<3x3x32x96xbf16, #tpu.memory_space<vmem>>, vector<1x1x32x96xbf16>
    %204 = vector.shape_cast %203 : vector<1x1x32x96xbf16> to vector<32x96xbf16>
    %cst_205 = arith.constant dense<0.000000e+00> : vector<32x256xf32>
    %205 = tpu.matmul %204, %202, %cst_205 {dimension_numbers = #tpu.dot_dimension_numbers<[1], [0], [0], [1], [0, 0, 1, 1], [], []>} : vector<32x96xbf16>, vector<96x256xbf16>, vector<32x256xf32> -> vector<32x256xf32>
    %206 = vector.broadcast %1 : vector<1x256xf32> to vector<32x256xf32>
    %207 = arith.mulf %205, %206 : vector<32x256xf32>
    %208 = arith.addf %201, %207 : vector<32x256xf32>
    %cst_206 = arith.constant 0.000000e+00 : f32
    %209 = vector.broadcast %cst_206 : f32 to vector<32x256xf32>
    %210 = arith.cmpf oge, %208, %209 : vector<32x256xf32>
    %cst_207 = arith.constant 0.00999999977 : f32
    %211 = vector.broadcast %cst_207 : f32 to vector<32x256xf32>
    %212 = arith.mulf %211, %208 : vector<32x256xf32>
    %213 = arith.select %210, %208, %212 : vector<32x256xi1>, vector<32x256xf32>
    %214 = arith.truncf %213 : vector<32x256xf32> to vector<32x256xbf16>
    %c96 = arith.constant 96 : index
    %c128_208 = arith.constant 128 : index
    %215 = vector.load %arg10[%c96, %c128_208] : memref<160x512xbf16, #tpu.memory_space<vmem>>, vector<32x256xbf16>
    tpu.vector_store %arg10[%c96, %c128_208], %214 {strides = array<i32>} : memref<160x512xbf16, #tpu.memory_space<vmem>>, vector<32x256xbf16>,
    %c3 = arith.constant 3 : index
    %c0_209 = arith.constant 0 : index
    %c0_210 = arith.constant 0 : index
    %216 = vector.load %arg7[%c3, %c0_209, %c0_210] : memref<5x32x1xf32, #tpu.memory_space<vmem>>, vector<1x32x1xf32>
    %217 = vector.shape_cast %216 : vector<1x32x1xf32> to vector<32x1xf32>
    %218 = vector.shape_cast %217 : vector<32x1xf32> to vector<32x1xf32>
    %219 = vector.broadcast %218 : vector<32x1xf32> to vector<32x256xf32>
    %c0_211 = arith.constant 0 : index
    %c111_212 = arith.constant 111 : index
    %220 = vector.load %arg10[%c0_211, %c111_212] : memref<160x512xbf16, #tpu.memory_space<vmem>>, vector<128x256xbf16>
    %c0_213 = arith.constant 0 : index
    %c0_214 = arith.constant 0 : index
    %c0_215 = arith.constant 0 : index
    %c0_216 = arith.constant 0 : index
    %221 = vector.load %arg5[%c0_213, %c0_214, %c0_215, %c0_216] : memref<3x3x32x128xbf16, #tpu.memory_space<vmem>>, vector<1x1x32x128xbf16>
    %222 = vector.shape_cast %221 : vector<1x1x32x128xbf16> to vector<32x128xbf16>
    %cst_217 = arith.constant dense<0.000000e+00> : vector<32x256xf32>
    %223 = tpu.matmul %222, %220, %cst_217 {dimension_numbers = #tpu.dot_dimension_numbers<[1], [0], [0], [1], [0, 0, 1, 1], [], []>} : vector<32x128xbf16>, vector<128x256xbf16>, vector<32x256xf32> -> vector<32x256xf32>
    %224 = vector.broadcast %0 : vector<1x256xf32> to vector<32x256xf32>
    %225 = arith.mulf %223, %224 : vector<32x256xf32>
    %226 = arith.addf %219, %225 : vector<32x256xf32>
    %c0_218 = arith.constant 0 : index
    %c112_219 = arith.constant 112 : index
    %227 = vector.load %arg10[%c0_218, %c112_219] : memref<160x512xbf16, #tpu.memory_space<vmem>>, vector<128x256xbf16>
    %c0_220 = arith.constant 0 : index
    %c1_221 = arith.constant 1 : index
    %c0_222 = arith.constant 0 : index
    %c0_223 = arith.constant 0 : index
    %228 = vector.load %arg5[%c0_220, %c1_221, %c0_222, %c0_223] : memref<3x3x32x128xbf16, #tpu.memory_space<vmem>>, vector<1x1x32x128xbf16>
    %229 = vector.shape_cast %228 : vector<1x1x32x128xbf16> to vector<32x128xbf16>
    %cst_224 = arith.constant dense<0.000000e+00> : vector<32x256xf32>
    %230 = tpu.matmul %229, %227, %cst_224 {dimension_numbers = #tpu.dot_dimension_numbers<[1], [0], [0], [1], [0, 0, 1, 1], [], []>} : vector<32x128xbf16>, vector<128x256xbf16>, vector<32x256xf32> -> vector<32x256xf32>
    %231 = arith.addf %226, %230 : vector<32x256xf32>
    %c0_225 = arith.constant 0 : index
    %c113_226 = arith.constant 113 : index
    %232 = vector.load %arg10[%c0_225, %c113_226] : memref<160x512xbf16, #tpu.memory_space<vmem>>, vector<128x256xbf16>
    %c0_227 = arith.constant 0 : index
    %c2_228 = arith.constant 2 : index
    %c0_229 = arith.constant 0 : index
    %c0_230 = arith.constant 0 : index
    %233 = vector.load %arg5[%c0_227, %c2_228, %c0_229, %c0_230] : memref<3x3x32x128xbf16, #tpu.memory_space<vmem>>, vector<1x1x32x128xbf16>
    %234 = vector.shape_cast %233 : vector<1x1x32x128xbf16> to vector<32x128xbf16>
    %cst_231 = arith.constant dense<0.000000e+00> : vector<32x256xf32>
    %235 = tpu.matmul %234, %232, %cst_231 {dimension_numbers = #tpu.dot_dimension_numbers<[1], [0], [0], [1], [0, 0, 1, 1], [], []>} : vector<32x128xbf16>, vector<128x256xbf16>, vector<32x256xf32> -> vector<32x256xf32>
    %236 = vector.broadcast %1 : vector<1x256xf32> to vector<32x256xf32>
    %237 = arith.mulf %235, %236 : vector<32x256xf32>
    %238 = arith.addf %231, %237 : vector<32x256xf32>
    %c0_232 = arith.constant 0 : index
    %c127_233 = arith.constant 127 : index
    %239 = vector.load %arg10[%c0_232, %c127_233] : memref<160x512xbf16, #tpu.memory_space<vmem>>, vector<128x256xbf16>
    %c1_234 = arith.constant 1 : index
    %c0_235 = arith.constant 0 : index
    %c0_236 = arith.constant 0 : index
    %c0_237 = arith.constant 0 : index
    %240 = vector.load %arg5[%c1_234, %c0_235, %c0_236, %c0_237] : memref<3x3x32x128xbf16, #tpu.memory_space<vmem>>, vector<1x1x32x128xbf16>
    %241 = vector.shape_cast %240 : vector<1x1x32x128xbf16> to vector<32x128xbf16>
    %cst_238 = arith.constant dense<0.000000e+00> : vector<32x256xf32>
    %242 = tpu.matmul %241, %239, %cst_238 {dimension_numbers = #tpu.dot_dimension_numbers<[1], [0], [0], [1], [0, 0, 1, 1], [], []>} : vector<32x128xbf16>, vector<128x256xbf16>, vector<32x256xf32> -> vector<32x256xf32>
    %243 = vector.broadcast %0 : vector<1x256xf32> to vector<32x256xf32>
    %244 = arith.mulf %242, %243 : vector<32x256xf32>
    %245 = arith.addf %238, %244 : vector<32x256xf32>
    %c0_239 = arith.constant 0 : index
    %c128_240 = arith.constant 128 : index
    %246 = vector.load %arg10[%c0_239, %c128_240] : memref<160x512xbf16, #tpu.memory_space<vmem>>, vector<128x256xbf16>
    %c1_241 = arith.constant 1 : index
    %c1_242 = arith.constant 1 : index
    %c0_243 = arith.constant 0 : index
    %c0_244 = arith.constant 0 : index
    %247 = vector.load %arg5[%c1_241, %c1_242, %c0_243, %c0_244] : memref<3x3x32x128xbf16, #tpu.memory_space<vmem>>, vector<1x1x32x128xbf16>
    %248 = vector.shape_cast %247 : vector<1x1x32x128xbf16> to vector<32x128xbf16>
    %cst_245 = arith.constant dense<0.000000e+00> : vector<32x256xf32>
    %249 = tpu.matmul %248, %246, %cst_245 {dimension_numbers = #tpu.dot_dimension_numbers<[1], [0], [0], [1], [0, 0, 1, 1], [], []>} : vector<32x128xbf16>, vector<128x256xbf16>, vector<32x256xf32> -> vector<32x256xf32>
    %250 = arith.addf %245, %249 : vector<32x256xf32>
    %c0_246 = arith.constant 0 : index
    %c129_247 = arith.constant 129 : index
    %251 = vector.load %arg10[%c0_246, %c129_247] : memref<160x512xbf16, #tpu.memory_space<vmem>>, vector<128x256xbf16>
    %c1_248 = arith.constant 1 : index
    %c2_249 = arith.constant 2 : index
    %c0_250 = arith.constant 0 : index
    %c0_251 = arith.constant 0 : index
    %252 = vector.load %arg5[%c1_248, %c2_249, %c0_250, %c0_251] : memref<3x3x32x128xbf16, #tpu.memory_space<vmem>>, vector<1x1x32x128xbf16>
    %253 = vector.shape_cast %252 : vector<1x1x32x128xbf16> to vector<32x128xbf16>
    %cst_252 = arith.constant dense<0.000000e+00> : vector<32x256xf32>
    %254 = tpu.matmul %253, %251, %cst_252 {dimension_numbers = #tpu.dot_dimension_numbers<[1], [0], [0], [1], [0, 0, 1, 1], [], []>} : vector<32x128xbf16>, vector<128x256xbf16>, vector<32x256xf32> -> vector<32x256xf32>
    %255 = vector.broadcast %1 : vector<1x256xf32> to vector<32x256xf32>
    %256 = arith.mulf %254, %255 : vector<32x256xf32>
    %257 = arith.addf %250, %256 : vector<32x256xf32>
    %c0_253 = arith.constant 0 : index
    %c143_254 = arith.constant 143 : index
    %258 = vector.load %arg10[%c0_253, %c143_254] : memref<160x512xbf16, #tpu.memory_space<vmem>>, vector<128x256xbf16>
    %c2_255 = arith.constant 2 : index
    %c0_256 = arith.constant 0 : index
    %c0_257 = arith.constant 0 : index
    %c0_258 = arith.constant 0 : index
    %259 = vector.load %arg5[%c2_255, %c0_256, %c0_257, %c0_258] : memref<3x3x32x128xbf16, #tpu.memory_space<vmem>>, vector<1x1x32x128xbf16>
    %260 = vector.shape_cast %259 : vector<1x1x32x128xbf16> to vector<32x128xbf16>
    %cst_259 = arith.constant dense<0.000000e+00> : vector<32x256xf32>
    %261 = tpu.matmul %260, %258, %cst_259 {dimension_numbers = #tpu.dot_dimension_numbers<[1], [0], [0], [1], [0, 0, 1, 1], [], []>} : vector<32x128xbf16>, vector<128x256xbf16>, vector<32x256xf32> -> vector<32x256xf32>
    %262 = vector.broadcast %0 : vector<1x256xf32> to vector<32x256xf32>
    %263 = arith.mulf %261, %262 : vector<32x256xf32>
    %264 = arith.addf %257, %263 : vector<32x256xf32>
    %c0_260 = arith.constant 0 : index
    %c144_261 = arith.constant 144 : index
    %265 = vector.load %arg10[%c0_260, %c144_261] : memref<160x512xbf16, #tpu.memory_space<vmem>>, vector<128x256xbf16>
    %c2_262 = arith.constant 2 : index
    %c1_263 = arith.constant 1 : index
    %c0_264 = arith.constant 0 : index
    %c0_265 = arith.constant 0 : index
    %266 = vector.load %arg5[%c2_262, %c1_263, %c0_264, %c0_265] : memref<3x3x32x128xbf16, #tpu.memory_space<vmem>>, vector<1x1x32x128xbf16>
    %267 = vector.shape_cast %266 : vector<1x1x32x128xbf16> to vector<32x128xbf16>
    %cst_266 = arith.constant dense<0.000000e+00> : vector<32x256xf32>
    %268 = tpu.matmul %267, %265, %cst_266 {dimension_numbers = #tpu.dot_dimension_numbers<[1], [0], [0], [1], [0, 0, 1, 1], [], []>} : vector<32x128xbf16>, vector<128x256xbf16>, vector<32x256xf32> -> vector<32x256xf32>
    %269 = arith.addf %264, %268 : vector<32x256xf32>
    %c0_267 = arith.constant 0 : index
    %c145_268 = arith.constant 145 : index
    %270 = vector.load %arg10[%c0_267, %c145_268] : memref<160x512xbf16, #tpu.memory_space<vmem>>, vector<128x256xbf16>
    %c2_269 = arith.constant 2 : index
    %c2_270 = arith.constant 2 : index
    %c0_271 = arith.constant 0 : index
    %c0_272 = arith.constant 0 : index
    %271 = vector.load %arg5[%c2_269, %c2_270, %c0_271, %c0_272] : memref<3x3x32x128xbf16, #tpu.memory_space<vmem>>, vector<1x1x32x128xbf16>
    %272 = vector.shape_cast %271 : vector<1x1x32x128xbf16> to vector<32x128xbf16>
    %cst_273 = arith.constant dense<0.000000e+00> : vector<32x256xf32>
    %273 = tpu.matmul %272, %270, %cst_273 {dimension_numbers = #tpu.dot_dimension_numbers<[1], [0], [0], [1], [0, 0, 1, 1], [], []>} : vector<32x128xbf16>, vector<128x256xbf16>, vector<32x256xf32> -> vector<32x256xf32>
    %274 = vector.broadcast %1 : vector<1x256xf32> to vector<32x256xf32>
    %275 = arith.mulf %273, %274 : vector<32x256xf32>
    %276 = arith.addf %269, %275 : vector<32x256xf32>
    %cst_274 = arith.constant 0.000000e+00 : f32
    %277 = vector.broadcast %cst_274 : f32 to vector<32x256xf32>
    %278 = arith.cmpf oge, %276, %277 : vector<32x256xf32>
    %cst_275 = arith.constant 0.00999999977 : f32
    %279 = vector.broadcast %cst_275 : f32 to vector<32x256xf32>
    %280 = arith.mulf %279, %276 : vector<32x256xf32>
    %281 = arith.select %278, %276, %280 : vector<32x256xi1>, vector<32x256xf32>
    %282 = arith.truncf %281 : vector<32x256xf32> to vector<32x256xbf16>
    %c128_276 = arith.constant 128 : index
    %c128_277 = arith.constant 128 : index
    %283 = vector.load %arg10[%c128_276, %c128_277] : memref<160x512xbf16, #tpu.memory_space<vmem>>, vector<32x256xbf16>
    tpu.vector_store %arg10[%c128_276, %c128_277], %282 {strides = array<i32>} : memref<160x512xbf16, #tpu.memory_space<vmem>>, vector<32x256xbf16>,
    %c4 = arith.constant 4 : index
    %c0_278 = arith.constant 0 : index
    %c0_279 = arith.constant 0 : index
    %284 = vector.load %arg7[%c4, %c0_278, %c0_279] : memref<5x32x1xf32, #tpu.memory_space<vmem>>, vector<1x32x1xf32>
    %285 = vector.shape_cast %284 : vector<1x32x1xf32> to vector<32x1xf32>
    %286 = vector.extract_strided_slice %285 {offsets = [0, 0], sizes = [8, 1], strides = [1, 1]} : vector<32x1xf32> to vector<8x1xf32>
    %287 = vector.shape_cast %286 : vector<8x1xf32> to vector<8x1xf32>
    %288 = vector.broadcast %287 : vector<8x1xf32> to vector<8x256xf32>
    %c0_280 = arith.constant 0 : index
    %c111_281 = arith.constant 111 : index
    %289 = vector.load %arg10[%c0_280, %c111_281] : memref<160x512xbf16, #tpu.memory_space<vmem>>, vector<160x256xbf16>
    %c0_282 = arith.constant 0 : index
    %c0_283 = arith.constant 0 : index
    %c0_284 = arith.constant 0 : index
    %c0_285 = arith.constant 0 : index
    %290 = vector.load %arg6[%c0_282, %c0_283, %c0_284, %c0_285] : memref<3x3x8x160xbf16, #tpu.memory_space<vmem>>, vector<1x1x8x160xbf16>
    %291 = vector.shape_cast %290 : vector<1x1x8x160xbf16> to vector<8x160xbf16>
    %cst_286 = arith.constant dense<0.000000e+00> : vector<8x256xf32>
    %292 = tpu.matmul %291, %289, %cst_286 {dimension_numbers = #tpu.dot_dimension_numbers<[1], [0], [0], [1], [0, 0, 1, 1], [], []>} : vector<8x160xbf16>, vector<160x256xbf16>, vector<8x256xf32> -> vector<8x256xf32>
    %293 = vector.broadcast %0 : vector<1x256xf32> to vector<8x256xf32>
    %294 = arith.mulf %292, %293 : vector<8x256xf32>
    %295 = arith.addf %288, %294 : vector<8x256xf32>
    %c0_287 = arith.constant 0 : index
    %c112_288 = arith.constant 112 : index
    %296 = vector.load %arg10[%c0_287, %c112_288] : memref<160x512xbf16, #tpu.memory_space<vmem>>, vector<160x256xbf16>
    %c0_289 = arith.constant 0 : index
    %c1_290 = arith.constant 1 : index
    %c0_291 = arith.constant 0 : index
    %c0_292 = arith.constant 0 : index
    %297 = vector.load %arg6[%c0_289, %c1_290, %c0_291, %c0_292] : memref<3x3x8x160xbf16, #tpu.memory_space<vmem>>, vector<1x1x8x160xbf16>
    %298 = vector.shape_cast %297 : vector<1x1x8x160xbf16> to vector<8x160xbf16>
    %cst_293 = arith.constant dense<0.000000e+00> : vector<8x256xf32>
    %299 = tpu.matmul %298, %296, %cst_293 {dimension_numbers = #tpu.dot_dimension_numbers<[1], [0], [0], [1], [0, 0, 1, 1], [], []>} : vector<8x160xbf16>, vector<160x256xbf16>, vector<8x256xf32> -> vector<8x256xf32>
    %300 = arith.addf %295, %299 : vector<8x256xf32>
    %c0_294 = arith.constant 0 : index
    %c113_295 = arith.constant 113 : index
    %301 = vector.load %arg10[%c0_294, %c113_295] : memref<160x512xbf16, #tpu.memory_space<vmem>>, vector<160x256xbf16>
    %c0_296 = arith.constant 0 : index
    %c2_297 = arith.constant 2 : index
    %c0_298 = arith.constant 0 : index
    %c0_299 = arith.constant 0 : index
    %302 = vector.load %arg6[%c0_296, %c2_297, %c0_298, %c0_299] : memref<3x3x8x160xbf16, #tpu.memory_space<vmem>>, vector<1x1x8x160xbf16>
    %303 = vector.shape_cast %302 : vector<1x1x8x160xbf16> to vector<8x160xbf16>
    %cst_300 = arith.constant dense<0.000000e+00> : vector<8x256xf32>
    %304 = tpu.matmul %303, %301, %cst_300 {dimension_numbers = #tpu.dot_dimension_numbers<[1], [0], [0], [1], [0, 0, 1, 1], [], []>} : vector<8x160xbf16>, vector<160x256xbf16>, vector<8x256xf32> -> vector<8x256xf32>
    %305 = vector.broadcast %1 : vector<1x256xf32> to vector<8x256xf32>
    %306 = arith.mulf %304, %305 : vector<8x256xf32>
    %307 = arith.addf %300, %306 : vector<8x256xf32>
    %c0_301 = arith.constant 0 : index
    %c127_302 = arith.constant 127 : index
    %308 = vector.load %arg10[%c0_301, %c127_302] : memref<160x512xbf16, #tpu.memory_space<vmem>>, vector<160x256xbf16>
    %c1_303 = arith.constant 1 : index
    %c0_304 = arith.constant 0 : index
    %c0_305 = arith.constant 0 : index
    %c0_306 = arith.constant 0 : index
    %309 = vector.load %arg6[%c1_303, %c0_304, %c0_305, %c0_306] : memref<3x3x8x160xbf16, #tpu.memory_space<vmem>>, vector<1x1x8x160xbf16>
    %310 = vector.shape_cast %309 : vector<1x1x8x160xbf16> to vector<8x160xbf16>
    %cst_307 = arith.constant dense<0.000000e+00> : vector<8x256xf32>
    %311 = tpu.matmul %310, %308, %cst_307 {dimension_numbers = #tpu.dot_dimension_numbers<[1], [0], [0], [1], [0, 0, 1, 1], [], []>} : vector<8x160xbf16>, vector<160x256xbf16>, vector<8x256xf32> -> vector<8x256xf32>
    %312 = vector.broadcast %0 : vector<1x256xf32> to vector<8x256xf32>
    %313 = arith.mulf %311, %312 : vector<8x256xf32>
    %314 = arith.addf %307, %313 : vector<8x256xf32>
    %c0_308 = arith.constant 0 : index
    %c128_309 = arith.constant 128 : index
    %315 = vector.load %arg10[%c0_308, %c128_309] : memref<160x512xbf16, #tpu.memory_space<vmem>>, vector<160x256xbf16>
    %c1_310 = arith.constant 1 : index
    %c1_311 = arith.constant 1 : index
    %c0_312 = arith.constant 0 : index
    %c0_313 = arith.constant 0 : index
    %316 = vector.load %arg6[%c1_310, %c1_311, %c0_312, %c0_313] : memref<3x3x8x160xbf16, #tpu.memory_space<vmem>>, vector<1x1x8x160xbf16>
    %317 = vector.shape_cast %316 : vector<1x1x8x160xbf16> to vector<8x160xbf16>
    %cst_314 = arith.constant dense<0.000000e+00> : vector<8x256xf32>
    %318 = tpu.matmul %317, %315, %cst_314 {dimension_numbers = #tpu.dot_dimension_numbers<[1], [0], [0], [1], [0, 0, 1, 1], [], []>} : vector<8x160xbf16>, vector<160x256xbf16>, vector<8x256xf32> -> vector<8x256xf32>
    %319 = arith.addf %314, %318 : vector<8x256xf32>
    %c0_315 = arith.constant 0 : index
    %c129_316 = arith.constant 129 : index
    %320 = vector.load %arg10[%c0_315, %c129_316] : memref<160x512xbf16, #tpu.memory_space<vmem>>, vector<160x256xbf16>
    %c1_317 = arith.constant 1 : index
    %c2_318 = arith.constant 2 : index
    %c0_319 = arith.constant 0 : index
    %c0_320 = arith.constant 0 : index
    %321 = vector.load %arg6[%c1_317, %c2_318, %c0_319, %c0_320] : memref<3x3x8x160xbf16, #tpu.memory_space<vmem>>, vector<1x1x8x160xbf16>
    %322 = vector.shape_cast %321 : vector<1x1x8x160xbf16> to vector<8x160xbf16>
    %cst_321 = arith.constant dense<0.000000e+00> : vector<8x256xf32>
    %323 = tpu.matmul %322, %320, %cst_321 {dimension_numbers = #tpu.dot_dimension_numbers<[1], [0], [0], [1], [0, 0, 1, 1], [], []>} : vector<8x160xbf16>, vector<160x256xbf16>, vector<8x256xf32> -> vector<8x256xf32>
    %324 = vector.broadcast %1 : vector<1x256xf32> to vector<8x256xf32>
    %325 = arith.mulf %323, %324 : vector<8x256xf32>
    %326 = arith.addf %319, %325 : vector<8x256xf32>
    %c0_322 = arith.constant 0 : index
    %c143_323 = arith.constant 143 : index
    %327 = vector.load %arg10[%c0_322, %c143_323] : memref<160x512xbf16, #tpu.memory_space<vmem>>, vector<160x256xbf16>
    %c2_324 = arith.constant 2 : index
    %c0_325 = arith.constant 0 : index
    %c0_326 = arith.constant 0 : index
    %c0_327 = arith.constant 0 : index
    %328 = vector.load %arg6[%c2_324, %c0_325, %c0_326, %c0_327] : memref<3x3x8x160xbf16, #tpu.memory_space<vmem>>, vector<1x1x8x160xbf16>
    %329 = vector.shape_cast %328 : vector<1x1x8x160xbf16> to vector<8x160xbf16>
    %cst_328 = arith.constant dense<0.000000e+00> : vector<8x256xf32>
    %330 = tpu.matmul %329, %327, %cst_328 {dimension_numbers = #tpu.dot_dimension_numbers<[1], [0], [0], [1], [0, 0, 1, 1], [], []>} : vector<8x160xbf16>, vector<160x256xbf16>, vector<8x256xf32> -> vector<8x256xf32>
    %331 = vector.broadcast %0 : vector<1x256xf32> to vector<8x256xf32>
    %332 = arith.mulf %330, %331 : vector<8x256xf32>
    %333 = arith.addf %326, %332 : vector<8x256xf32>
    %c0_329 = arith.constant 0 : index
    %c144_330 = arith.constant 144 : index
    %334 = vector.load %arg10[%c0_329, %c144_330] : memref<160x512xbf16, #tpu.memory_space<vmem>>, vector<160x256xbf16>
    %c2_331 = arith.constant 2 : index
    %c1_332 = arith.constant 1 : index
    %c0_333 = arith.constant 0 : index
    %c0_334 = arith.constant 0 : index
    %335 = vector.load %arg6[%c2_331, %c1_332, %c0_333, %c0_334] : memref<3x3x8x160xbf16, #tpu.memory_space<vmem>>, vector<1x1x8x160xbf16>
    %336 = vector.shape_cast %335 : vector<1x1x8x160xbf16> to vector<8x160xbf16>
    %cst_335 = arith.constant dense<0.000000e+00> : vector<8x256xf32>
    %337 = tpu.matmul %336, %334, %cst_335 {dimension_numbers = #tpu.dot_dimension_numbers<[1], [0], [0], [1], [0, 0, 1, 1], [], []>} : vector<8x160xbf16>, vector<160x256xbf16>, vector<8x256xf32> -> vector<8x256xf32>
    %338 = arith.addf %333, %337 : vector<8x256xf32>
    %c0_336 = arith.constant 0 : index
    %c145_337 = arith.constant 145 : index
    %339 = vector.load %arg10[%c0_336, %c145_337] : memref<160x512xbf16, #tpu.memory_space<vmem>>, vector<160x256xbf16>
    %c2_338 = arith.constant 2 : index
    %c2_339 = arith.constant 2 : index
    %c0_340 = arith.constant 0 : index
    %c0_341 = arith.constant 0 : index
    %340 = vector.load %arg6[%c2_338, %c2_339, %c0_340, %c0_341] : memref<3x3x8x160xbf16, #tpu.memory_space<vmem>>, vector<1x1x8x160xbf16>
    %341 = vector.shape_cast %340 : vector<1x1x8x160xbf16> to vector<8x160xbf16>
    %cst_342 = arith.constant dense<0.000000e+00> : vector<8x256xf32>
    %342 = tpu.matmul %341, %339, %cst_342 {dimension_numbers = #tpu.dot_dimension_numbers<[1], [0], [0], [1], [0, 0, 1, 1], [], []>} : vector<8x160xbf16>, vector<160x256xbf16>, vector<8x256xf32> -> vector<8x256xf32>
    %343 = vector.broadcast %1 : vector<1x256xf32> to vector<8x256xf32>
    %344 = arith.mulf %342, %343 : vector<8x256xf32>
    %345 = arith.addf %338, %344 : vector<8x256xf32>
    %346 = vector.extract_strided_slice %345 {offsets = [0, 0], sizes = [4, 256], strides = [1, 1]} : vector<8x256xf32> to vector<4x256xf32>
    %c0_343 = arith.constant 0 : index
    %c0_344 = arith.constant 0 : index
    %c0_345 = arith.constant 0 : index
    %347 = vector.load %arg9[%c0_343, %c0_344, %c0_345] : memref<1x4x256xf32, #tpu.memory_space<vmem>>, vector<1x4x256xf32>
    %348 = vector.shape_cast %347 : vector<1x4x256xf32> to vector<4x256xf32>
    %349 = vector.shape_cast %346 : vector<4x256xf32> to vector<1x4x256xf32>
    tpu.vector_store %arg9[%c0_343, %c0_344, %c0_345], %349 {strides = array<i32>} : memref<1x4x256xf32, #tpu.memory_space<vmem>>, vector<1x4x256xf32>,
    return
  }
  func.func @transform_0(%arg0: i32) -> (i32, i32, i32) {
    %c0_i32 = arith.constant 0 : i32
    %c0_i32_0 = arith.constant 0 : i32
    %c0_i32_1 = arith.constant 0 : i32
    return %arg0, %c0_i32, %c0_i32_0 : i32, i32, i32
  }
  func.func @transform_1(%arg0: i32) -> (i32, i32, i32, i32) {
    %c0_i32 = arith.constant 0 : i32
    %c0_i32_0 = arith.constant 0 : i32
    %c0_i32_1 = arith.constant 0 : i32
    %c0_i32_2 = arith.constant 0 : i32
    %c0_i32_3 = arith.constant 0 : i32
    return %c0_i32, %c0_i32_0, %c0_i32_1, %c0_i32_2 : i32, i32, i32, i32
  }
  func.func @transform_2(%arg0: i32) -> (i32, i32, i32, i32) {
    %c0_i32 = arith.constant 0 : i32
    %c0_i32_0 = arith.constant 0 : i32
    %c0_i32_1 = arith.constant 0 : i32
    %c0_i32_2 = arith.constant 0 : i32
    %c0_i32_3 = arith.constant 0 : i32
    return %c0_i32, %c0_i32_0, %c0_i32_1, %c0_i32_2 : i32, i32, i32, i32
  }
  func.func @transform_3(%arg0: i32) -> (i32, i32, i32, i32) {
    %c0_i32 = arith.constant 0 : i32
    %c0_i32_0 = arith.constant 0 : i32
    %c0_i32_1 = arith.constant 0 : i32
    %c0_i32_2 = arith.constant 0 : i32
    %c0_i32_3 = arith.constant 0 : i32
    return %c0_i32, %c0_i32_0, %c0_i32_1, %c0_i32_2 : i32, i32, i32, i32
  }
  func.func @transform_4(%arg0: i32) -> (i32, i32, i32, i32) {
    %c0_i32 = arith.constant 0 : i32
    %c0_i32_0 = arith.constant 0 : i32
    %c0_i32_1 = arith.constant 0 : i32
    %c0_i32_2 = arith.constant 0 : i32
    %c0_i32_3 = arith.constant 0 : i32
    return %c0_i32, %c0_i32_0, %c0_i32_1, %c0_i32_2 : i32, i32, i32, i32
  }
  func.func @transform_5(%arg0: i32) -> (i32, i32, i32, i32) {
    %c0_i32 = arith.constant 0 : i32
    %c0_i32_0 = arith.constant 0 : i32
    %c0_i32_1 = arith.constant 0 : i32
    %c0_i32_2 = arith.constant 0 : i32
    %c0_i32_3 = arith.constant 0 : i32
    return %c0_i32, %c0_i32_0, %c0_i32_1, %c0_i32_2 : i32, i32, i32, i32
  }
  func.func @transform_6(%arg0: i32) -> (i32, i32, i32) {
    %c0_i32 = arith.constant 0 : i32
    %c0_i32_0 = arith.constant 0 : i32
    %c0_i32_1 = arith.constant 0 : i32
    %c0_i32_2 = arith.constant 0 : i32
    return %c0_i32, %c0_i32_0, %c0_i32_1 : i32, i32, i32
  }
  func.func @transform_7(%arg0: i32) -> (i32, i32) {
    %c0_i32 = arith.constant 0 : i32
    %c0_i32_0 = arith.constant 0 : i32
    %c0_i32_1 = arith.constant 0 : i32
    return %c0_i32, %c0_i32_0 : i32, i32
  }
  func.func @transform_8(%arg0: i32) -> (i32, i32, i32) {
    %c0_i32 = arith.constant 0 : i32
    %c0_i32_0 = arith.constant 0 : i32
    %c0_i32_1 = arith.constant 0 : i32
    return %arg0, %c0_i32, %c0_i32_0 : i32, i32, i32
  }
}

</mosaic_0001>

<bundles_post_ra>
// kernel: tpu_custom_call.1
= control target key start
LH: loop header
LB: loop body
LE: loop exit
PB: predicated region body
PF: predicated region fallthrough
CT: control target
= control target key end

     0   :  { %13 = vsyncpa [#allocation4], 0  ;;  %s14575_s0 = inlined_call_operand.vmem [shape: f32[2,4,256], index: 0, kind: input, shape index: {}]   ;;  %s14576_s1 = inlined_call_operand.vmem [shape: bf16[3,3,32,32], index: 1, kind: input, shape index: {}]   ;;  %s14577_s2 = inlined_call_operand.hbm [shape: bf16[3,3,32,64], index: 2, kind: input, shape index: {}]   ;;  %s14578_s3 = inlined_call_operand.hbm [shape: bf16[3,3,32,96], index: 3, kind: input, shape index: {}]   ;;  %s14579_s4 = inlined_call_operand.hbm [shape: bf16[3,3,32,128], index: 4, kind: input, shape index: {}]   ;;  %s14580_s5 = inlined_call_operand.hbm [shape: bf16[3,3,8,160], index: 5, kind: input, shape index: {}]   ;;  %s14581_s6 = inlined_call_operand.vmem [shape: f32[5,32,1], index: 6, kind: input, shape index: {}]   ;;  %s14582_s7 = inlined_call_operand.vmem [shape: f32[2,256], index: 7, kind: input, shape index: {}]   ;;  %s14583_s8 = inlined_call_operand.hbm [shape: f32[2,4,256], index: 8, kind: output, shape index: {}]  }
   0x1   :  { %14 = vsyncpa [#allocation7], 0 }
   0x2   :  { %15 = vsyncpa [#allocation10], 0 }
   0x3   :  { %16 = vsyncpa [#allocation5], 0 }
   0x4   :  { %18 = vsyncpa [#allocation5 + $0x1], 0  ;;  %s9480_s27 = smov 0   ;;  %s9482_s28 = smov 0  }
   0x5   :  { %s9484_s29 = smov 0   ;;  %s9486_s30 = smov 0  }
   0x6 LB: > { %s9501_s9 = sadd.s32 4294967295, %s9415_s30   ;;  %s8288_s10 = sadd.s32 4294967294, %s9415_s30   ;;  %s9415_s30 = sphi %s9486_s30, %s15479_s30   ;;  %s9411_s29 = sphi %s9484_s29, %s15478_s29   ;;  %s9407_s28 = sphi %s9482_s28, %s15477_s28   ;;  %s9403_s27 = sphi %s9480_s27, %s15476_s27  }
   0x7   : > { %s9505_s11 = sadd.s32 1, %s9415_s30   ;;  %s204_s12 = sadd.s32 1, %s9411_s29 }
   0x8   : > { %s201_s13 = ssub.s32 %s9415_s30, %s9505_s11  ;;  %p214_p0 = scmp.ne.s32.totalorder %s9411_s29, %s9407_s28 }
   0x9   : > { %p202_p1 = scmp.eq.s32.totalorder %s201_s13, 0  ;;  %p215_p2 = scmp.eq.s32.totalorder %s9501_s9, 1 }
   0xa   : > { %p220_p3 = scmp.ne.s32.totalorder %s9407_s28, %s9403_s27  ;;  %p221_p4 = scmp.eq.s32.totalorder %s8288_s10, 1 }
   0xb   : > { %s9516_s14 = scalar_select %p202_p1, %s9411_s29, %s204_s12  }
   0xc   : > { %p9518_p5 = por %p215_p2, %p214_p0  ;;  %p9522_p6 = por %p221_p4, %p220_p3 }
   0xd   : > { %p8289_p7 = scmp.ge.s32.totalorder %s9415_s30, 1  ;;  %p228_p8 = scmp.lt.s32.totalorder %s9415_s30, 3 }
   0xe   : > { %s14796_s15 = scalar_select %p9518_p5, 1, 0 }
   0xf   : > { %s14797_s16 = scalar_select %p9522_p6, 1, 0 }
  0x10   : > { %p14584_p9 = scmp.eq.s32.totalorder %s9501_s9, 0  ;;  %p9529_p10 = pnand %p8289_p7, %p228_p8 }
  0x11   : > { %s9417_s18 = smov [#allocation6]   ;;  %s9418_s21 = smov [#allocation3]  }
  0x12   : > { %p8803_p11 = pneg %p9529_p10  ;;  %s256_s19 = sshll.u32 %s9417_s18, 4  ;;  %s257_s19 = int_to_ptr.vmem [resolvable:$true] %s256_s19 }
  0x13   : > { %s243_s22 = sshll.u32 %s9418_s21, 4  ;;  %s9419_s23 = smov [#allocation8]   ;;  %s244_s22 = int_to_ptr.vmem [resolvable:$true] %s243_s22 }
  0x14   : > { %p9537_p12 = pnand %p14584_p9, %p8803_p11  ;;  %s269_s24 = sshll.u32 %s9419_s23, 4  ;;  %s270_s24 = int_to_ptr.vmem [resolvable:$true] %s269_s24 }
  0x15   : > { %s9250_s25 = scalar_lea.vmem %s257_s19, 2304  ;;  %p9258_p3 = scmp.lt.s32.totalorder %s257_s19, %s257_s19 }
  0x16   : > { %p9241_p13 = pneg %p9537_p12  ;;  %p9251_p0 = scmp.ne.s32.totalorder %s257_s19, %s9250_s25 }
  0x17   : > { %p9259_p4 = scmp.lt.s32.totalorder %s9250_s25, %s9250_s25 }
  0x18   : > { %p9253_p1 = pnand %p9251_p0, %p9241_p13 }
  0x19   : > { %p9260_p7 = por %p9259_p4, %p9258_p3 }
  0x1a   : > { %p9254_p2 = pneg %p9253_p1 }
  0x1c   : > { %p9261_p8 = pnand %p9260_p7, %p9254_p2 }
  0x1e   : > { %9264 = shalt.err (!%p9261_p8)
}
  0x1f   : > { %s9420_s26 = smov 64   ;;  %s9421_s10 = smov 4  }
  0x20   : > { %8809 = dma.hbm_to_vmem [thread:$0]  (!%p9537_p12), %s14578_s3, 2304, %s257_s19, [#allocation7], %s9420_s26, %s9420_s26, %s9421_s10  }
  0x21   : > { %s9276_s18 = scalar_lea.vmem %s244_s22, 2304  ;;  %p9284_p9 = scmp.lt.s32.totalorder %s244_s22, %s244_s22 }
  0x22   : > { %p9277_p11 = scmp.ne.s32.totalorder %s244_s22, %s9276_s18  ;;  %p9285_p6 = scmp.lt.s32.totalorder %s9276_s18, %s9276_s18 }
  0x24   : > { %p9279_p0 = pnand %p9277_p11, %p9241_p13  ;;  %p9286_p3 = por %p9285_p6, %p9284_p9 }
  0x26   : > { %p9280_p1 = pneg %p9279_p0 }
  0x28   : > { %p9287_p2 = pnand %p9286_p3, %p9280_p1 }
  0x2a   : > { %9290 = shalt.err (!%p9287_p2)
}
  0x2b   : > { %8806 = dma.hbm_to_vmem [thread:$0]  (!%p9537_p12), %s14577_s2, 2304, %s244_s22, [#allocation4], %s9420_s26, %s9420_s26, %s9421_s10  }
  0x2c   : > { %s9302_s19 = scalar_lea.vmem %s270_s24, 2304  ;;  %p9310_p11 = scmp.lt.s32.totalorder %s270_s24, %s270_s24 }
  0x2d   : > { %p9303_p4 = scmp.ne.s32.totalorder %s270_s24, %s9302_s19  ;;  %p9311_p0 = scmp.lt.s32.totalorder %s9302_s19, %s9302_s19 }
  0x2f   : > { %p9305_p7 = pnand %p9303_p4, %p9241_p13  ;;  %p9312_p5 = por %p9311_p0, %p9310_p11 }
  0x31   : > { %p9306_p8 = pneg %p9305_p7 }
  0x33   : > { %p9313_p6 = pnand %p9312_p5, %p9306_p8 }
  0x35   : > { %9316 = shalt.err (!%p9313_p6)
}
  0x36   : > { %8812 = dma.hbm_to_vmem [thread:$0]  (!%p9537_p12), %s14579_s4, 2304, %s270_s24, [#allocation7], %s9420_s26, %s9420_s26, %s9421_s10  }
  0x37   : > { %s9422_s22 = smov [#allocation9]  }
  0x38   : > { %s282_s13 = sshll.u32 %s9422_s22, 4  ;;  %s283_s13 = int_to_ptr.vmem [resolvable:$true] %s282_s13 }
  0x39   : > { %s9328_s18 = scalar_lea.vmem %s283_s13, 1152  ;;  %p9336_p2 = scmp.lt.s32.totalorder %s283_s13, %s283_s13 }
  0x3a   : > { %p9329_p9 = scmp.ne.s32.totalorder %s283_s13, %s9328_s18  ;;  %p9337_p4 = scmp.lt.s32.totalorder %s9328_s18, %s9328_s18 }
  0x3c   : > { %p9331_p1 = pnand %p9329_p9, %p9241_p13  ;;  %p9338_p5 = por %p9337_p4, %p9336_p2 }
  0x3e   : > { %p9332_p3 = pneg %p9331_p1 }
  0x40   : > { %p9339_p7 = pnand %p9338_p5, %p9332_p3 }
  0x42   : > { %9342 = shalt.err (!%p9339_p7)
}
  0x43   : > { %s9423_s21 = smov 128   ;;  %s9424_s23 = smov 8  }
  0x44   : > { %8815 = dma.hbm_to_vmem [thread:$0]  (!%p9537_p12), %s14580_s5, 1152, %s283_s13, [#allocation10], %s9423_s21, %s9423_s21, %s9424_s23  }
  0x45   : > { %312 = sbr.rel (%p9529_p10) target bundleno = 2578 (0xa12), region = 52 }
  0x4a   : > { %p14800_p8 = scmp.eq.s32.totalorder %s9501_s9, 0 }
  0x4c   : > { %9386 = dma.done.wait (%p14800_p8), [#allocation4], 2304   ;;  %p14801_p13 = pmov %p14800_p8 }
  0x4d   : > { %p14802_p11 = pmov %p14800_p8 }
  0x4e   : > { %9388 = vsyncadd (%p14801_p13), [#allocation4], 4294964992 }
  0x4f   : > { %9390 = dma.done.wait (%p14802_p11), [#allocation7], 4608   ;;  %p14803_p0 = pmov %p14800_p8 }
  0x51   : > { %9392 = vsyncadd (%p14803_p0), [#allocation7], 4294962688  ;;  %p14804_p6 = pmov %p14803_p0 }
  0x52   : > { %p14805_p12 = pmov %p14803_p0 }
  0x53   : > { %9394 = dma.done.wait (%p14804_p6), [#allocation10], 1152  }
  0x54   : > { %9396 = vsyncadd (%p14805_p12), [#allocation10], 4294966144  ;;  %v14592_v0 = vmov 0   ;;  %p358_p10 = scmp.lt.s32.totalorder %s9501_s9, 1  ;;  %vm413_vm0 = vcmask 1041408   ;;  %s9426_s12 = smov 17  }
  0x55   : > { %369 = vst [vmem:[#allocation2 + $0x20] sm:$0xf] %v14592_v0  ;;  %370 = vst [vmem:[#allocation2 + $0x30] sm:$0xf] %v14592_v0  ;;  %v8306_v1 = vcombine.low %v14592_v0, %v14592_v0  ;;  %v8307_v2 = vcombine.high %v14592_v0, %v14592_v0  ;;  %572 = vmatprep.mubr.bf16.mxu1 %v14592_v0  ;;  %797 = vmatprep.mubr.bf16.mxu0 %v14592_v0  ;;  %s9427_s22 = smov 16   ;;  %s9428_s13 = smov 15  }
  0x56   : > { %367 = vst [vmem:[#allocation2] sm:$0xf] %v14592_v0  ;;  %368 = vst [vmem:[#allocation2 + $0x10] sm:$0xf] %v14592_v0  ;;  %8879 = vset.pattern.permute.xlu1 %v14592_v0  ;;  %8878 = vset.pattern.permute.xlu0 %v14592_v0  ;;  %s359_s17 = scalar_select %p358_p10, %s9501_s9, 1  ;;  %v442_v19 = vld [vmem:[%s14581_s6 + $0x10] sm:$0xff] }
  0x57   : > { %371 = vst [vmem:[#allocation2 + $0x40] sm:$0xf] %v14592_v0  ;;  %372 = vst [vmem:[#allocation2 + $0x50] sm:$0xf] %v14592_v0  ;;  %s14590_s18 = smov 1   ;;  %s14588_s21 = smov 127  }
  0x58   : > { %373 = vst [vmem:[#allocation2 + $0x60] sm:$0xf] %v14592_v0  ;;  %374 = vst [vmem:[#allocation2 + $0x70] sm:$0xf] %v14592_v0  ;;  %s8767_s20 = sshll.u32 %s359_s17, 3  ;;  %s14586_s23 = smov 113  }
  0x59   : > { %375 = vst [vmem:[#allocation2 + $0x80] sm:$0xf] %v14592_v0  ;;  %376 = vst [vmem:[#allocation2 + $0x90] sm:$0xf] %v14592_v0  ;;  %s362_s25 = scalar_lea.vmem %s14575_s0, %s8767_s20  ;;  %s9432_s19 = smov 112   ;;  %v443_v20 = vld [vmem:[%s14581_s6 + $0x18] sm:$0xff] }
  0x5a   : > { %377 = vst [vmem:[#allocation2 + $0xa0] sm:$0xf] %v14592_v0  ;;  %378 = vst [vmem:[#allocation2 + $0xb0] sm:$0xf] %v14592_v0  ;;  %v407_v3 = vld [vmem:[%s362_s25] sm:$0xff]  ;;  %s9433_s24 = smov 111  }
  0x5b   : > { %379 = vst [vmem:[#allocation2 + $0xc0] sm:$0xf] %v14592_v0  ;;  %380 = vst [vmem:[#allocation2 + $0xd0] sm:$0xf] %v14592_v0  ;;  %v409_v4 = vcombine.high %v407_v3, %v407_v3  ;;  %v411_v5 = vpack.c.bf16 %v407_v3, %v407_v3  ;;  %v441_v21 = vld [vmem:[%s14581_s6 + $0x8] sm:$0xff]  ;;  %v440_v22 = vld [vmem:[%s14581_s6] sm:$0xff] }
  0x5c   : > { %381 = vst [vmem:[#allocation2 + $0xe0] sm:$0xf] %v14592_v0  ;;  %382 = vst [vmem:[#allocation2 + $0xf0] sm:$0xf] %v14592_v0  ;;  %v9649_v9 = vld [vmem:[#allocation2 + $0x20] ss:$16 sps:$4 sm:$0xff]  }
  0x5d   : > { %383 = vst [vmem:[#allocation2 + $0x100] sm:$0xf] %v14592_v0  ;;  %384 = vst [vmem:[#allocation2 + $0x110] sm:$0xf] %v14592_v0  ;;  %v9644_v7 = vpack.c.bf16 %v409_v4, %v409_v4  ;;  %v9647_v8 = vsel %vm413_vm0, %v411_v5, 0  ;;  %518 = vrot.lane.b32.xlu1 %v9649_v9, %s9426_s12  ;;  %vm524_vm1 = vcmask 138240  }
  0x5e   : > { %385 = vst [vmem:[#allocation2 + $0x120] sm:$0xf] %v14592_v0  ;;  %386 = vst [vmem:[#allocation2 + $0x130] sm:$0xf] %v14592_v0  ;;  %v9670_v16 = vld [vmem:[#allocation2] ss:$16 sps:$4 sm:$0xff]  }
  0x5f   : > { %387 = vst [vmem:[#allocation2 + $0xc] sm:$0xf] %v14592_v0  ;;  %388 = vst [vmem:[#allocation2 + $0x1c] sm:$0xf] %v14592_v0  ;;  %v418_v11 = vsel %vm413_vm0, %v9644_v7, 0  ;;  %vm750_vm2 = vcmask 121856  }
  0x60   : > { %389 = vst [vmem:[#allocation2 + $0x2c] sm:$0xf] %v14592_v0  ;;  %390 = vst [vmem:[#allocation2 + $0x3c] sm:$0xf] %v14592_v0  ;;  %v8304_v12 = vcombine.low %v9647_v8, %v418_v11  ;;  %v8305_v13 = vcombine.high %v9647_v8, %v418_v11  ;;  %vm647_vm3 = vcmask 130048   ;;  %v8891_v41 = vld [vmem:[%s14576_s1] sm:$0xff]  }
  0x61   : > { %391 = vst [vmem:[#allocation2 + $0x4c] sm:$0xf] %v14592_v0  ;;  %392 = vst [vmem:[#allocation2 + $0x5c] sm:$0xf] %v14592_v0  ;;  %vm533_vm4 = vcmask 261120   ;;  %v8892_v50 = vld [vmem:[%s14576_s1 + $0x8] sm:$0xff]  }
  0x62   : > { %393 = vst [vmem:[#allocation2 + $0x6c] sm:$0xf] %v14592_v0  ;;  %394 = vst [vmem:[#allocation2 + $0x7c] sm:$0xf] %v14592_v0  ;;  %v8894_v55 = vld [vmem:[%s14576_s1 + $0x20] sm:$0xff]   ;;  %vm872_vm5 = vcmask 7168  }
  0x63   : > { %395 = vst [vmem:[#allocation2 + $0x8c] sm:$0xf] %v14592_v0  ;;  %396 = vst [vmem:[#allocation2 + $0x9c] sm:$0xf] %v14592_v0  ;;  %v8893_v59 = vld [vmem:[%s14576_s1 + $0x10] sm:$0xff]   ;;  %v8896_v63 = vld [vmem:[%s14576_s1 + $0x28] sm:$0xff]  }
  0x64   : > { %397 = vst [vmem:[#allocation2 + $0xac] sm:$0xf] %v14592_v0  ;;  %398 = vst [vmem:[#allocation2 + $0xbc] sm:$0xf] %v14592_v0  ;;  %v8895_v5 = vld [vmem:[%s14576_s1 + $0x18] sm:$0xff]   ;;  %vm1123_vm6 = vcmask 1039360  }
  0x65   : > { %399 = vst [vmem:[#allocation2 + $0xcc] sm:$0xf] %v14592_v0  ;;  %400 = vst [vmem:[#allocation2 + $0xdc] sm:$0xf] %v14592_v0  ;;  %vm1234_vm7 = vcmask 924672   ;;  %vm1345_vm8 = vcmask 916480  }
  0x66   : > { %401 = vst [vmem:[#allocation2 + $0xec] sm:$0xf] %v14592_v0  ;;  %402 = vst [vmem:[#allocation2 + $0xfc] sm:$0xf] %v14592_v0  ;;  %v8890_v18 = vld [vmem:[#allocation2 + $0xc] ss:$16 sps:$4 sm:$0xff]  }
  0x67   : > { %403 = vst [vmem:[#allocation2 + $0x10c] sm:$0xf] %v14592_v0  ;;  %404 = vst [vmem:[#allocation2 + $0x11c] sm:$0xf] %v14592_v0  ;;  %v8889_v17 = vld [vmem:[#allocation2 + $0x2c] ss:$16 sps:$4 sm:$0xff]  }
  0x68   : > { %405 = vst [vmem:[#allocation2 + $0x12c] sm:$0xf] %v14592_v0  ;;  %406 = vst [vmem:[#allocation2 + $0x13c] sm:$0xf] %v14592_v0  ;;  %vm1448_vm9 = vcmask 908288   ;;  %s14806_s20 = smov 1  }
  0x69   : > { %438 = vst [vmem:[#allocation2 + $0x24] sm:$0xff] %v8306_v1  ;;  %439 = vst [vmem:[#allocation2 + $0x34] sm:$0xff] %v8307_v2  ;;  %s14808_s26 = smov 127   ;;  %s14809_s10 = smov 113  }
  0x6a   : > { %436 = vst [vmem:[#allocation2 + $0x4] sm:$0xff] %v8304_v12  ;;  %437 = vst [vmem:[#allocation2 + $0x14] sm:$0xff] %v8305_v13  ;;  %v8897_v13 = vld [vmem:[%s14576_s1 + $0x30] sm:$0xff]   ;;  %p15474_p1 = scmp.ne.s32.totalorder %s14796_s15, 0 }
  0x70   : > { %v9642_v6 = vld [vmem:[#allocation2 + $0x24] ss:$16 sps:$4 sm:$0xff]   ;;  %v8883_v10 = vld [vmem:[#allocation2 + $0x28] ss:$16 sps:$4 sm:$0xff]  }
  0x71   : > { %520 = vrot.lane.b32.xlu0 %v9642_v6, %s9426_s12  ;;  %645 = vrot.lane.b32.xlu1 %v8883_v10, %s9427_s22  ;;  %v9666_v14 = vld [vmem:[#allocation2 + $0x4] ss:$16 sps:$4 sm:$0xff]   ;;  %v8887_v15 = vld [vmem:[#allocation2 + $0x8] ss:$16 sps:$4 sm:$0xff]  }
  0x75   : > { %522 = vrot.lane.b32.xlu0 %v8883_v10, %s9426_s12  ;;  %748 = vrot.lane.b32.xlu1 %v8883_v10, %s9428_s13 }
  0x79   : > { %643 = vrot.lane.b32.xlu0 %v9642_v6, %s9427_s22  ;;  %744 = vrot.lane.b32.xlu1 %v9649_v9, %s9428_s13 }
  0x7d   : > { %746 = vrot.lane.b32.xlu0 %v9642_v6, %s9428_s13  ;;  %514 = vrot.lane.b32.xlu1 %v9666_v14, %s9426_s12 }
  0x81   : > { %641 = vrot.lane.b32.xlu0 %v9649_v9, %s9427_s22  ;;  %512 = vrot.lane.b32.xlu1 %v9670_v16, %s9426_s12 }
  0x85   : > { %516 = vrot.lane.b32.xlu0 %v8887_v15, %s9426_s12  ;;  %639 = vrot.lane.b32.xlu1 %v8887_v15, %s9427_s22 }
  0x89   : > { %637 = vrot.lane.b32.xlu0 %v9666_v14, %s9427_s22  ;;  %742 = vrot.lane.b32.xlu1 %v8887_v15, %s9428_s13 }
  0x8d   : > { %740 = vrot.lane.b32.xlu0 %v9666_v14, %s9428_s13  ;;  %738 = vrot.lane.b32.xlu1 %v9670_v16, %s9428_s13 }
  0x91   : > { %635 = vrot.lane.b32.xlu0 %v9670_v16, %s9427_s22  ;;  %870 = vrot.lane.b32.xlu1 %v8883_v10, %s14590_s18 }
  0x95   : > { %868 = vrot.lane.b32.xlu0 %v9642_v6, %s14590_s18  ;;  %862 = vrot.lane.b32.xlu1 %v9666_v14, %s14590_s18 }
  0x99   : > { %866 = vrot.lane.b32.xlu0 %v9649_v9, %s14590_s18  ;;  %860 = vrot.lane.b32.xlu1 %v9670_v16, %s14590_s18 }
  0x9d   : > { %864 = vrot.lane.b32.xlu0 %v8887_v15, %s14590_s18  ;;  %1121 = vrot.lane.b32.xlu1 %v8889_v17, %s14588_s21 }
  0xa1   : > { %1119 = vrot.lane.b32.xlu0 %v14592_v0, %s14588_s21  ;;  %1232 = vrot.lane.b32.xlu1 %v8889_v17, %s14586_s23 }
  0xa5   : > { %1230 = vrot.lane.b32.xlu0 %v14592_v0, %s14586_s23  ;;  %1228 = vrot.lane.b32.xlu1 %v14592_v0, %s14586_s23 }
  0xa9   : > { %1117 = vrot.lane.b32.xlu0 %v14592_v0, %s14588_s21  ;;  %1115 = vrot.lane.b32.xlu1 %v8890_v18, %s14588_s21 }
  0xad   : > { %1113 = vrot.lane.b32.xlu0 %v418_v11, %s14588_s21  ;;  %1226 = vrot.lane.b32.xlu1 %v8890_v18, %s14586_s23 }
  0xb1   : > { %1224 = vrot.lane.b32.xlu0 %v418_v11, %s14586_s23  ;;  %1222 = vrot.lane.b32.xlu1 %v9647_v8, %s14586_s23 }
  0xb5   : > { %1111 = vrot.lane.b32.xlu0 %v9647_v8, %s14588_s21  ;;  %1343 = vrot.lane.b32.xlu1 %v8889_v17, %s9432_s19 }
  0xb9   : > { %1341 = vrot.lane.b32.xlu0 %v14592_v0, %s9432_s19  ;;  %1446 = vrot.lane.b32.xlu1 %v8889_v17, %s9433_s24 }
  0xbd   : > { %1444 = vrot.lane.b32.xlu0 %v14592_v0, %s9433_s24  ;;  %1442 = vrot.lane.b32.xlu1 %v14592_v0, %s9433_s24 }
  0xc1   : > { %1339 = vrot.lane.b32.xlu0 %v14592_v0, %s9432_s19  ;;  %1337 = vrot.lane.b32.xlu1 %v8890_v18, %s9432_s19 }
  0xc5   : > { %1335 = vrot.lane.b32.xlu0 %v418_v11, %s9432_s19  ;;  %1440 = vrot.lane.b32.xlu1 %v8890_v18, %s9433_s24 }
  0xc9   : > { %1438 = vrot.lane.b32.xlu0 %v418_v11, %s9433_s24  ;;  %1436 = vrot.lane.b32.xlu1 %v9647_v8, %s9433_s24 }
  0xcd   : > { %1333 = vrot.lane.b32.xlu0 %v9647_v8, %s9432_s19  ;;  %461 = vperm.xlu1 %8879, %v443_v20   ;;  %v8900_v20 = vld [vmem:[%s14576_s1 + $0x48] sm:$0xff]  }
  0xcf   : > { %v519_v24 = vpop.permute.xlu1 %518 }
  0xd1   : > { %456 = vperm.xlu0 %8878, %v442_v19   ;;  %446 = vperm.xlu1 %8879, %v440_v22  }
  0xd5   : > { %451 = vperm.xlu0 %8878, %v441_v21   ;;  %1699 = vrot.lane.b32.xlu1 %v9642_v6, %s9426_s12 }
  0xd9   : > { %1697 = vrot.lane.b32.xlu1 %v9649_v9, %s9426_s12  ;;  %v8898_v9 = vld [vmem:[%s14576_s1 + $0x40] sm:$0xff]  }
  0xe3   : > { %v521_v23 = vpop.permute.xlu0 %520  ;;  %v646_v26 = vpop.permute.xlu1 %645 }
  0xe4   : > { %v527_v28 = vsel %vm524_vm1, %v519_v24, %v521_v23  ;;  %v8899_v24 = vld [vmem:[%s14576_s1 + $0x38] sm:$0xff]  }
  0xe7   : > { %v523_v25 = vpop.permute.xlu0 %522  ;;  %v749_v30 = vpop.permute.xlu1 %748 }
  0xe8   : > { %v528_v27 = vsel %vm524_vm1, %v521_v23, %v523_v25 }
  0xe9   : > { %552 = vmatprep.subr.bf16.mxu1 %v528_v27 }
  0xea   : > { %553 = vmatpush1.bf16.msra.mxu1 %v527_v28 }
  0xeb   : > { %v644_v29 = vpop.permute.xlu0 %643  ;;  %v745_v32 = vpop.permute.xlu1 %744 }
  0xec   : > { %v651_v42 = vsel %vm647_vm3, %v644_v29, %v646_v26 }
  0xef   : > { %v747_v31 = vpop.permute.xlu0 %746  ;;  %v515_v36 = vpop.permute.xlu1 %514 }
  0xf0   : > { %v754_v33 = vsel %vm750_vm2, %v747_v31, %v749_v30  ;;  %v753_v34 = vsel %vm750_vm2, %v745_v32, %v747_v31  ;;  %v8901_v32 = vld [vmem:[%s14576_s1 + $0x50] sm:$0xff]  }
  0xf1   : > { %777 = vmatprep.subr.bf16.mxu0 %v754_v33  ;;  %v8902_v33 = vld [vmem:[%s14576_s1 + $0x60] sm:$0xff]  }
  0xf2   : > { %778 = vmatpush1.bf16.msra.mxu0 %v753_v34 }
  0xf3   : > { %v642_v35 = vpop.permute.xlu0 %641  ;;  %v513_v38 = vpop.permute.xlu1 %512 }
  0xf4   : > { %v525_v40 = vsel %vm524_vm1, %v513_v38, %v515_v36  ;;  %v650_v45 = vsel %vm647_vm3, %v642_v35, %v644_v29 }
  0xf7   : > { %v517_v37 = vpop.permute.xlu0 %516  ;;  %v640_v44 = vpop.permute.xlu1 %639 }
  0xf8   : > { %v526_v39 = vsel %vm524_vm1, %v515_v36, %v517_v37 }
  0xf9   : > { %554 = vmatprep.subr.bf16.mxu1 %v526_v39 }
  0xfa   : > { %555 = vmatpush1.bf16.msra.mxu1 %v525_v40  ;;  %v8903_v40 = vld [vmem:[%s14576_s1 + $0x58] sm:$0xff]  }
  0xfb   : > { %v638_v43 = vpop.permute.xlu0 %637  ;;  %674 = vmatprep.subr.bf16.mxu1 %v651_v42  ;;  %v743_v48 = vpop.permute.xlu1 %742 }
  0xfc   : > { %v649_v46 = vsel %vm647_vm3, %v638_v43, %v640_v44 }
  0xfd   : > { %8316 = vmatmul.mubr.msk.bf16.vlgmr.msra.gmra.mxu1 %vm533_vm4, %v8891_v41  ;;  %v8904_v41 = vld [vmem:[%s14576_s1 + $0x68] sm:$0xff]  }
  0xfe   : > { %675 = vmatpush1.bf16.msra.mxu1 %v650_v45  ;;  %582 = vmatprep.mubr.bf16.mxu1 %v14592_v0 }
  0xff   : > { %v741_v47 = vpop.permute.xlu0 %740  ;;  %676 = vmatprep.subr.bf16.mxu1 %v649_v46  ;;  %v739_v53 = vpop.permute.xlu1 %738 }
 0x100   : > { %v752_v49 = vsel %vm750_vm2, %v741_v47, %v743_v48  ;;  %v751_v54 = vsel %vm750_vm2, %v739_v53, %v741_v47 }
 0x101   : > { %779 = vmatprep.subr.bf16.mxu0 %v752_v49 }
 0x102   : > { %780 = vmatpush1.bf16.msra.mxu0 %v751_v54 }
 0x103   : > { %v636_v51 = vpop.permute.xlu0 %635  ;;  %1013 = vmatprep.subr.bf16.mxu0 %v14592_v0  ;;  %v871_v57 = vpop.permute.xlu1 %870 }
 0x104   : > { %v648_v52 = vsel %vm647_vm3, %v636_v51, %v638_v43 }
 0x105   : > { %8317 = vmatmul.mubr.msk.bf16.gmra.mxu1 %vm533_vm4, %v8892_v50  ;;  %8332 = vmatmul.mubr.msk.bf16.vlgmr.msra.gmra.mxu0 %vm533_vm4, %v8894_v55  ;;  %v8905_v55 = vld [vmem:[%s14576_s1 + $0x70] sm:$0xff]  }
 0x106   : > { %677 = vmatpush1.bf16.msra.mxu1 %v648_v52  ;;  %694 = vmatprep.mubr.bf16.mxu1 %v14592_v0 }
 0x107   : > { %v869_v56 = vpop.permute.xlu0 %868  ;;  %807 = vmatprep.mubr.bf16.mxu0 %v14592_v0  ;;  %1014 = vmatpush1.bf16.msra.mxu0 %v14592_v0  ;;  %v863_v62 = vpop.permute.xlu1 %862 }
 0x108   : > { %v876_v58 = vsel %vm872_vm5, %v869_v56, %v871_v57  ;;  %9221 = vmatprep.subr.msk.bf16.mxu0 %vm413_vm0, %v9644_v7  ;;  %v8906_v57 = vld [vmem:[%s14576_s1 + $0x80] sm:$0xff]  }
 0x109   : > { %899 = vmatprep.subr.bf16.mxu1 %v876_v58  ;;  %v8907_v58 = vld [vmem:[%s14576_s1 + $0x78] sm:$0xff]  }
 0x10b   : > { %v867_v60 = vpop.permute.xlu0 %866  ;;  %1016 = vmatpush1.bf16.msra.mxu0 %v9647_v8  ;;  %v861_v2 = vpop.permute.xlu1 %860 }
 0x10c   : > { %v875_v61 = vsel %vm872_vm5, %v867_v60, %v869_v56  ;;  %v873_v4 = vsel %vm872_vm5, %v861_v2, %v863_v62  ;;  %v8908_v60 = vld [vmem:[%s14576_s1 + $0x88] sm:$0xff]  }
 0x10d   : > { %8324 = vmatmul.mubr.msk.bf16.vlgmr.msra.gmra.mxu1 %vm533_vm4, %v8893_v59  ;;  %8333 = vmatmul.mubr.msk.bf16.gmra.mxu0 %vm533_vm4, %v8896_v63  ;;  %v8909_v59 = vld [vmem:[#allocation2 + $0x28] ss:$16 sps:$4 sm:$0xff]   ;;  %v9185_v63 = vld [vmem:[#allocation2 + $0x24] ss:$16 sps:$4 sm:$0xff]   ;;  %v9913_v2 = vld [vmem:[#allocation2 + $0x4c] ss:$16 sps:$4 sm:$0xff]  }
 0x10e   : > { %900 = vmatpush1.bf16.msra.mxu1 %v875_v61  ;;  %704 = vmatprep.mubr.bf16.mxu1 %v14592_v0  ;;  %v8910_v61 = vld [vmem:[#allocation2 + $0x8] ss:$16 sps:$4 sm:$0xff]   ;;  %14810 = vst [vmem:[#allocation17_spill] sm:$0xff] %v9913_v2 }
 0x10f   : > { %v865_v1 = vpop.permute.xlu0 %864  ;;  %1033 = vmatprep.mubr.bf16.mxu0 %v14592_v0  ;;  %v1122_v7 = vpop.permute.xlu1 %1121  ;;  %1701 = vrot.lane.b32.xlu0 %v8909_v59, %s9426_s12 }
 0x110   : > { %v874_v3 = vsel %vm872_vm5, %v863_v62, %v865_v1  ;;  %v9184_v62 = vld [vmem:[#allocation2 + $0x20] ss:$16 sps:$4 sm:$0xff]   ;;  %1695 = vrot.lane.b32.xlu1 %v8910_v61, %s9426_s12  ;;  %v9905_v1 = vld [vmem:[#allocation2 + $0x6c] ss:$16 sps:$4 sm:$0xff]  }
 0x111   : > { %901 = vmatprep.subr.bf16.mxu1 %v874_v3  ;;  %14807 = vst [vmem:[#allocation16_spill] sm:$0xff] %v9905_v1  ;;  %v9930_v3 = vld [vmem:[#allocation2 + $0x24] ss:$16 sps:$4 sm:$0xff]  }
 0x112   : > { %902 = vmatpush1.bf16.msra.mxu1 %v873_v4  ;;  %14813 = vst [vmem:[#allocation20_spill] sm:$0xff] %v9930_v3  ;;  %v9938_v4 = vld [vmem:[#allocation2 + $0x8] ss:$16 sps:$4 sm:$0xff]  }
 0x113   : > { %v1120_v6 = vpop.permute.xlu0 %1119  ;;  %v1233_v11 = vpop.permute.xlu1 %1232  ;;  %1693 = vrot.lane.b32.xlu0 %v9666_v14, %s9426_s12  ;;  %14814 = vst [vmem:[#allocation21_spill] sm:$0xff] %v9938_v4 }
 0x114   : > { %v1127_v8 = vsel %vm1123_vm6, %v1120_v6, %v1122_v7  ;;  %1830 = vrot.lane.b32.xlu1 %v9185_v63, %s9427_s22 }
 0x115   : > { %8325 = vmatmul.mubr.msk.bf16.gmra.mxu1 %vm533_vm4, %v8895_v5  ;;  %1150 = vmatprep.subr.bf16.mxu1 %v1127_v8 }
 0x116   : > { %919 = vmatprep.mubr.bf16.mxu1 %v14592_v0  ;;  %8352 = vmatmul.mubr.msk.bf16.vlgmr.msra.gmra.mxu0 %vm533_vm4, %v8898_v9 }
 0x117   : > { %v1231_v10 = vpop.permute.xlu0 %1230  ;;  %1043 = vmatprep.mubr.bf16.mxu0 %v14592_v0  ;;  %v1229_v18 = vpop.permute.xlu1 %1228  ;;  %1691 = vrot.lane.b32.xlu0 %v9670_v16, %s9426_s12 }
 0x118   : > { %v1238_v12 = vsel %vm1234_vm7, %v1231_v10, %v1233_v11  ;;  %v1237_v19 = vsel %vm1234_vm7, %v1229_v18, %v1231_v10  ;;  %1952 = vrot.lane.b32.xlu1 %v9185_v63, %s9428_s13 }
 0x119   : > { %1261 = vmatprep.subr.bf16.mxu0 %v1238_v12 }
 0x11a   : > { %1262 = vmatpush1.bf16.msra.mxu0 %v1237_v19 }
 0x11b   : > { %v1118_v15 = vpop.permute.xlu0 %1117  ;;  %v1116_v22 = vpop.permute.xlu1 %1115  ;;  %1832 = vrot.lane.b32.xlu0 %v8909_v59, %s9427_s22 }
 0x11c   : > { %v1126_v17 = vsel %vm1123_vm6, %v1118_v15, %v1120_v6  ;;  %1828 = vrot.lane.b32.xlu1 %v9184_v62, %s9427_s22 }
 0x11d   : > { %8340 = vmatmul.mubr.msk.bf16.vlgmr.msra.gmra.mxu1 %vm533_vm4, %v8897_v13 }
 0x11e   : > { %1151 = vmatpush1.bf16.msra.mxu1 %v1126_v17  ;;  %929 = vmatprep.mubr.bf16.mxu1 %v14592_v0 }
 0x11f   : > { %v1114_v21 = vpop.permute.xlu0 %1113  ;;  %8353 = vmatmul.mubr.msk.bf16.gmra.mxu0 %vm533_vm4, %v8900_v20  ;;  %v1227_v26 = vpop.permute.xlu1 %1226  ;;  %1954 = vrot.lane.b32.xlu0 %v8909_v59, %s9428_s13 }
 0x120   : > { %v1125_v23 = vsel %vm1123_vm6, %v1114_v21, %v1116_v22  ;;  %1281 = vmatprep.mubr.bf16.mxu0 %v14592_v0  ;;  %1824 = vrot.lane.b32.xlu1 %v9666_v14, %s9427_s22 }
 0x121   : > { %1152 = vmatprep.subr.bf16.mxu1 %v1125_v23 }
 0x123   : > { %v1225_v25 = vpop.permute.xlu0 %1224  ;;  %v1223_v30 = vpop.permute.xlu1 %1222  ;;  %1950 = vrot.lane.b32.xlu0 %v9184_v62, %s9428_s13 }
 0x124   : > { %v1236_v27 = vsel %vm1234_vm7, %v1225_v25, %v1227_v26  ;;  %v1235_v31 = vsel %vm1234_vm7, %v1223_v30, %v1225_v25  ;;  %1946 = vrot.lane.b32.xlu1 %v9666_v14, %s9428_s13 }
 0x125   : > { %8341 = vmatmul.mubr.msk.bf16.gmra.mxu1 %vm533_vm4, %v8899_v24  ;;  %1263 = vmatprep.subr.bf16.mxu0 %v1236_v27 }
 0x126   : > { %1170 = vmatprep.mubr.bf16.mxu1 %v14592_v0  ;;  %1264 = vmatpush1.bf16.msra.mxu0 %v1235_v31 }
 0x127   : > { %v1112_v28 = vpop.permute.xlu0 %1111  ;;  %v1344_v35 = vpop.permute.xlu1 %1343  ;;  %1826 = vrot.lane.b32.xlu0 %v8910_v61, %s9427_s22 }
 0x128   : > { %v1124_v29 = vsel %vm1123_vm6, %v1112_v28, %v1114_v21  ;;  %1822 = vrot.lane.b32.xlu1 %v9670_v16, %s9427_s22 }
 0x129   : > { %1153 = vmatpush1.bf16.msra.mxu1 %v1124_v29  ;;  %8374 = vmatmul.mubr.msk.bf16.vlgmr.msra.gmra.mxu0 %vm533_vm4, %v8902_v33  ;;  %v594_v33 = vlaneseq }
 0x12a   : > { %1291 = vmatprep.mubr.bf16.mxu0 %v14592_v0 }
 0x12b   : > { %v1342_v34 = vpop.permute.xlu0 %1341  ;;  %v1447_v38 = vpop.permute.xlu1 %1446  ;;  %1948 = vrot.lane.b32.xlu0 %v8910_v61, %s9428_s13 }
 0x12c   : > { %v1349_v36 = vsel %vm1345_vm8, %v1342_v34, %v1344_v35  ;;  %2082 = vrot.lane.b32.xlu1 %v9185_v63, %s14806_s20 }
 0x12d   : > { %8366 = vmatmul.mubr.msk.bf16.vlgmr.msra.gmra.mxu1 %vm533_vm4, %v8901_v32  ;;  %1372 = vmatprep.subr.bf16.mxu1 %v1349_v36 }
 0x12e   : > { %1180 = vmatprep.mubr.bf16.mxu1 %v14592_v0 }
 0x12f   : > { %v1445_v37 = vpop.permute.xlu0 %1444  ;;  %v1443_v44 = vpop.permute.xlu1 %1442  ;;  %1944 = vrot.lane.b32.xlu0 %v9670_v16, %s9428_s13 }
 0x130   : > { %v1452_v39 = vsel %vm1448_vm9, %v1445_v37, %v1447_v38  ;;  %v1451_v45 = vsel %vm1448_vm9, %v1443_v44, %v1445_v37  ;;  %2080 = vrot.lane.b32.xlu1 %v9184_v62, %s14806_s20  ;;  %v595_v38 = vshrl.u32 %v594_v33, 7  ;;  %v364_v44 = vld [vmem:[%s14582_s7] ss:$2 sm:$0x3] }
 0x131   : > { %1475 = vmatprep.subr.bf16.mxu0 %v1452_v39  ;;  %8375 = vmatmul.mubr.msk.bf16.gmra.mxu0 %vm533_vm4, %v8904_v41 }
 0x132   : > { %1476 = vmatpush1.bf16.msra.mxu0 %v1451_v45  ;;  %1495 = vmatprep.mubr.bf16.mxu0 %v14592_v0 }
 0x133   : > { %v1340_v42 = vpop.permute.xlu0 %1339  ;;  %v1338_v47 = vpop.permute.xlu1 %1337  ;;  %2084 = vrot.lane.b32.xlu0 %v8909_v59, %s14806_s20 }
 0x134   : > { %v1348_v43 = vsel %vm1345_vm8, %v1340_v42, %v1342_v34  ;;  %2078 = vrot.lane.b32.xlu1 %v8910_v61, %s14806_s20 }
 0x135   : > { %8367 = vmatmul.mubr.msk.bf16.gmra.mxu1 %vm533_vm4, %v8903_v40 }
 0x136   : > { %1373 = vmatpush1.bf16.msra.mxu1 %v1348_v43  ;;  %1392 = vmatprep.mubr.bf16.mxu1 %v14592_v0  ;;  %v596_v43 = vsub.s32 0, %v595_v38 }
 0x137   : > { %v1336_v46 = vpop.permute.xlu0 %1335  ;;  %v1441_v50 = vpop.permute.xlu1 %1440  ;;  %2076 = vrot.lane.b32.xlu0 %v9666_v14, %s14806_s20  ;;  %v9918_v14 = vld [vmem:[#allocation2 + $0x28] ss:$16 sps:$4 sm:$0xff]  }
 0x138   : > { %v1347_v48 = vsel %vm1345_vm8, %v1336_v46, %v1338_v47  ;;  %14811 = vst [vmem:[#allocation18_spill] sm:$0xff] %v9918_v14  ;;  %2410 = vrot.lane.b32.xlu1 %v9918_v14, %s14808_s26 }
 0x139   : > { %1374 = vmatprep.subr.bf16.mxu1 %v1347_v48  ;;  %v600_v48 = vsub.s32 1, %v595_v38 }
 0x13b   : > { %v1439_v49 = vpop.permute.xlu0 %1438  ;;  %v1437_v54 = vpop.permute.xlu1 %1436  ;;  %2074 = vrot.lane.b32.xlu0 %v9670_v16, %s14806_s20  ;;  %v9924_v16 = vld [vmem:[#allocation2 + $0x2c] ss:$16 sps:$4 sm:$0xff]  }
 0x13c   : > { %v1450_v51 = vsel %vm1448_vm9, %v1439_v49, %v1441_v50  ;;  %v1449_v56 = vsel %vm1448_vm9, %v1437_v54, %v1439_v49  ;;  %14812 = vst [vmem:[#allocation19_spill] sm:$0xff] %v9924_v16  ;;  %2540 = vrot.lane.b32.xlu1 %v9918_v14, %s14809_s10  ;;  %v9999_v50 = vrot.slane %v364_v44, %v596_v43 }
 0x13d   : > { %1477 = vmatprep.subr.bf16.mxu0 %v1450_v51  ;;  %v10005_v54 = vrot.slane %v364_v44, %v600_v48 }
 0x13e   : > { %1478 = vmatpush1.bf16.msra.mxu0 %v1449_v56  ;;  %14816 = vst [vmem:[#allocation23_spill] sm:$0xff] %v9999_v50 }
 0x13f   : > { %v1334_v52 = vpop.permute.xlu0 %1333  ;;  %2424 = vrot.lane.b32.xlu0 %v9905_v1, %s14808_s26  ;;  %14818 = vst [vmem:[#allocation25_spill] sm:$0xff] %v10005_v54 }
 0x140   : > { %v1346_v53 = vsel %vm1345_vm8, %v1334_v52, %v1336_v46  ;;  %2408 = vrot.lane.b32.xlu1 %v9930_v3, %s14808_s26 }
 0x141   : > { %1375 = vmatpush1.bf16.msra.mxu1 %v1346_v53  ;;  %8390 = vmatmul.mubr.msk.bf16.vlgmr.msra.gmra.mxu0 %vm533_vm4, %v8906_v57 }
 0x142   : > { %1505 = vmatprep.mubr.bf16.mxu0 %v14592_v0 }
 0x143   : > { %2554 = vrot.lane.b32.xlu0 %v9905_v1, %s14809_s10 }
 0x144   : > { %8382 = vmatmul.mubr.msk.bf16.vlgmr.msra.gmra.mxu1 %vm533_vm4, %v8905_v55  ;;  %2404 = vrot.lane.b32.xlu1 %v9938_v4, %s14808_s26  ;;  %v8303_v55 = vld [vmem:[%s14582_s7 + $0x1] ss:$2 sm:$0x3] }
 0x145   : > { %1402 = vmatprep.mubr.bf16.mxu1 %v14592_v0  ;;  %v10015_v61 = vrot.slane %v8303_v55, %v596_v43 }
 0x147   : > { %2418 = vrot.lane.b32.xlu0 %v9913_v2, %s14808_s26  ;;  %14819 = vst [vmem:[#allocation26_spill] sm:$0xff] %v10015_v61 }
 0x148   : > { %v462_v47 = vpop.permute.xlu1 %461 }
 0x149   : > { %8391 = vmatmul.mubr.msk.bf16.gmra.mxu0 %vm533_vm4, %v8908_v60 }
 0x14a   : > { %1900 = vmatprep.mubr.bf16.mxu0 %v14592_v0 }
 0x14b   : > { %2548 = vrot.lane.b32.xlu0 %v9913_v2, %s14809_s10 }
 0x14c   : > { %8383 = vmatmul.mubr.msk.bf16.gmra.mxu1 %vm533_vm4, %v8907_v58  ;;  %v457_v53 = vpop.permute.xlu0 %456  ;;  %v447_v58 = vpop.permute.xlu1 %446 }
 0x14d   : > { %1770 = vmatprep.mubr.bf16.mxu1 %v14592_v0 }
 0x14f   : > { %2412 = vrot.lane.b32.xlu0 %v9924_v16, %s14808_s26 }
 0x150   : > { %v452_v0 = vpop.permute.xlu0 %451 }
 0x153   : > { %2542 = vrot.lane.b32.xlu0 %v9924_v16, %s14809_s10  ;;  %v10022_v16 = vrot.slane %v8303_v55, %v600_v48 }
 0x155   : > { %14820 = vst [vmem:[#allocation27_spill] sm:$0xff] %v10022_v16 }
 0x157   : > { %2538 = vrot.lane.b32.xlu0 %v9930_v3, %s14809_s10 }
 0x1bd   : > { %v574_v5 = vpop.f32.mrf.mxu1 }
 0x1be   : > { %v604_v57 = vmul.f32 %v9999_v50, %v574_v5 }
 0x1bf   : > { %v576_v6 = vpop.f32.mrf.mxu1 }
 0x1c0   : > { %v605_v62 = vmul.f32 %v10005_v54, %v576_v6  ;;  %v612_v3 = vadd.f32 %v604_v57, %v447_v58 }
 0x1c1   : > { %v578_v7 = vpop.f32.mrf.mxu1 }
 0x1c2   : > { %v606_v38 = vmul.f32 %v9999_v50, %v578_v7  ;;  %v613_v6 = vadd.f32 %v605_v62, %v447_v58 }
 0x1c3   : > { %v580_v8 = vpop.f32.mrf.mxu1 }
 0x1c4   : > { %v607_v44 = vmul.f32 %v10005_v54, %v580_v8 }
 0x1c5   : > { %v584_v9 = vpop.f32.mrf.mxu1  ;;  %v799_v12 = vpop.f32.mrf.mxu0 }
 0x1c6   : > { %v608_v2 = vmul.f32 %v9999_v50, %v584_v9  ;;  %v829_v1 = vmul.f32 %v10015_v61, %v799_v12  ;;  %v615_v8 = vadd.f32 %v607_v44, %v452_v0 }
 0x1c7   : > { %v9942_v10 = vpop.f32.mrf.mxu1  ;;  %v9948_v15 = vpop.f32.mrf.mxu0 }
 0x1c8   : > { %v609_v7 = vmul.f32 %v10005_v54, %v9942_v10  ;;  %v830_v9 = vmul.f32 %v10022_v16, %v9948_v15  ;;  %v616_v10 = vadd.f32 %v608_v2, %v457_v53 }
 0x1c9   : > { %v9944_v11 = vpop.f32.mrf.mxu1  ;;  %v9950_v18 = vpop.f32.mrf.mxu0 }
 0x1ca   : > { %v610_v48 = vmul.f32 %v9999_v50, %v9944_v11  ;;  %v831_v57 = vmul.f32 %v10015_v61, %v9950_v18 }
 0x1cb   : > { %v9946_v13 = vpop.f32.mrf.mxu1  ;;  %v9954_v20 = vpop.f32.mrf.mxu0 }
 0x1cc   : > { %v611_v12 = vmul.f32 %v10005_v54, %v9946_v13  ;;  %v617_v13 = vadd.f32 %v609_v7, %v457_v53  ;;  %v618_v2 = vadd.f32 %v610_v48, %v462_v47 }
 0x1cd   : > { %v696_v17 = vpop.f32.mrf.mxu1  ;;  %v9958_v22 = vpop.f32.mrf.mxu0 }
 0x1ce   : > { %v715_v43 = vadd.f32 %v696_v17, %v612_v3 }
 0x1cf   : > { %v9952_v19 = vpop.f32.mrf.mxu1  ;;  %v9962_v24 = vpop.f32.mrf.mxu0 }
 0x1d0   : > { %v716_v55 = vadd.f32 %v9952_v19, %v613_v6  ;;  %v837_v17 = vadd.f32 %v829_v1, %v715_v43  ;;  %v832_v19 = vmul.f32 %v10022_v16, %v9954_v20  ;;  %v833_v1 = vmul.f32 %v10015_v61, %v9958_v22 }
 0x1d1   : > { %v9956_v21 = vpop.f32.mrf.mxu1  ;;  %v9966_v26 = vpop.f32.mrf.mxu0  ;;  %v834_v20 = vmul.f32 %v10022_v16, %v9962_v24 }
 0x1d2   : > { %v838_v18 = vadd.f32 %v830_v9, %v716_v55 }
 0x1d3   : > { %v9960_v23 = vpop.f32.mrf.mxu1  ;;  %v9970_v28 = vpop.f32.mrf.mxu0 }
 0x1d4   : > { %v718_v11 = vadd.f32 %v9960_v23, %v615_v8 }
 0x1d5   : > { %v9964_v25 = vpop.f32.mrf.mxu1 }
 0x1d6   : > { %v9974_v30 = vpop.f32.mrf.mxu0  ;;  %v840_v43 = vadd.f32 %v832_v19, %v718_v11 }
 0x1d7   : > { %v9968_v27 = vpop.f32.mrf.mxu1 }
 0x1d8   : > { %v9978_v32 = vpop.f32.mrf.mxu0  ;;  %v720_v23 = vadd.f32 %v9968_v27, %v617_v13  ;;  %v835_v27 = vmul.f32 %v10015_v61, %v9966_v26 }
 0x1d9   : > { %v9972_v29 = vpop.f32.mrf.mxu1 }
 0x1da   : > { %v9980_v35 = vpop.f32.mrf.mxu0  ;;  %v721_v8 = vadd.f32 %v9972_v29, %v618_v2  ;;  %v842_v55 = vadd.f32 %v834_v20, %v720_v23 }
 0x1db   : > { %v9976_v31 = vpop.f32.mrf.mxu1 }
 0x1dc   : > { %v9982_v37 = vpop.f32.mrf.mxu0 }
 0x1dd   : > { %v921_v34 = vpop.f32.mrf.mxu1 }
 0x1de   : > { %v940_v3 = vmul.f32 %v921_v34, %v9999_v50  ;;  %v719_v34 = vadd.f32 %v9964_v25, %v616_v10 }
 0x1df   : > { %v923_v36 = vpop.f32.mrf.mxu1  ;;  %v9984_v40 = vpop.f32.mrf.mxu0 }
 0x1e0   : > { %v941_v15 = vmul.f32 %v923_v36, %v10005_v54  ;;  %v841_v7 = vadd.f32 %v833_v1, %v719_v34 }
 0x1e1   : > { %v925_v39 = vpop.f32.mrf.mxu1  ;;  %v9988_v42 = vpop.f32.mrf.mxu0 }
 0x1e2   : > { %v949_v6 = vadd.f32 %v941_v15, %v838_v18 }
 0x1e3   : > { %v9986_v41 = vpop.f32.mrf.mxu1  ;;  %v9995_v46 = vpop.f32.mrf.mxu0 }
 0x1e4   : > { %14815 = vst [vmem:[#allocation22_spill] sm:$0xff] %v9995_v46  ;;  %v614_v46 = vadd.f32 %v606_v38, %v452_v0  ;;  %v948_v38 = vadd.f32 %v940_v3, %v837_v17  ;;  %v943_v36 = vmul.f32 %v9986_v41, %v10005_v54  ;;  %v1055_v3 = vadd.f32 %v9978_v32, %v949_v6 }
 0x1e5   : > { %v9993_v45 = vpop.f32.mrf.mxu1  ;;  %v10003_v52 = vpop.f32.mrf.mxu0  ;;  %v843_v17 = vadd.f32 %v835_v27, %v721_v8 }
 0x1e6   : > { %14817 = vst [vmem:[#allocation24_spill] sm:$0xff] %v10003_v52  ;;  %v717_v0 = vadd.f32 %v9956_v21, %v614_v46  ;;  %v942_v21 = vmul.f32 %v925_v39, %v9999_v50  ;;  %v619_v46 = vadd.f32 %v611_v12, %v462_v47  ;;  %v944_v24 = vmul.f32 %v9993_v45, %v9999_v50 }
 0x1e7   : > { %v9997_v49 = vpop.f32.mrf.mxu1  ;;  %v1054_v39 = vadd.f32 %v9974_v30, %v948_v38  ;;  %v951_v9 = vadd.f32 %v943_v36, %v840_v43 }
 0x1e8   : > { %v839_v25 = vadd.f32 %v831_v57, %v717_v0  ;;  %v945_v41 = vmul.f32 %v9997_v49, %v10005_v54  ;;  %v952_v57 = vadd.f32 %v944_v24, %v841_v7 }
 0x1e9   : > { %v10001_v51 = vpop.f32.mrf.mxu1  ;;  %v10013_v60 = vpop.f32.mrf.mxu0  ;;  %v1057_v11 = vadd.f32 %v9982_v37, %v951_v9 }
 0x1ea   : > { %v950_v47 = vadd.f32 %v942_v21, %v839_v25  ;;  %v946_v29 = vmul.f32 %v10001_v51, %v9999_v50  ;;  %v1302_v30 = vmul.f32 %v10013_v60, %v9999_v50  ;;  %v953_v0 = vadd.f32 %v945_v41, %v842_v55 }
 0x1eb   : > { %v10010_v56 = vpop.f32.mrf.mxu1  ;;  %v10018_v33 = vpop.f32.mrf.mxu0  ;;  %v1058_v13 = vadd.f32 %v9984_v40, %v952_v57 }
 0x1ec   : > { %v1056_v10 = vadd.f32 %v9980_v35, %v950_v47  ;;  %v1303_v32 = vmul.f32 %v10018_v33, %v10005_v54  ;;  %v947_v60 = vmul.f32 %v10010_v56, %v10005_v54  ;;  %v1059_v56 = vadd.f32 %v9988_v42, %v953_v0 }
 0x1ed   : > { %v1172_v59 = vpop.f32.mrf.mxu1  ;;  %v10024_v14 = vpop.f32.mrf.mxu0 }
 0x1ee   : > { %v1191_v22 = vmul.f32 %v1172_v59, %v10015_v61  ;;  %v836_v59 = vmul.f32 %v10022_v16, %v9970_v28 }
 0x1ef   : > { %v1174_v63 = vpop.f32.mrf.mxu1  ;;  %v10028_v52 = vpop.f32.mrf.mxu0 }
 0x1f0   : > { %v1192_v48 = vmul.f32 %v1174_v63, %v10022_v16  ;;  %v1199_v45 = vadd.f32 %v1191_v22, %v1054_v39  ;;  %v722_v63 = vadd.f32 %v9976_v31, %v619_v46  ;;  %v1304_v31 = vmul.f32 %v10024_v14, %v9999_v50  ;;  %v14821_v14 = vld [vmem:[#allocation22_spill] sm:$0xff] }
 0x1f1   : > { %v1176_v5 = vpop.f32.mrf.mxu1  ;;  %v10047_v62 = vpop.f32.mrf.mxu0  ;;  %v1305_v37 = vmul.f32 %v10028_v52, %v10005_v54 }
 0x1f2   : > { %v1193_v12 = vmul.f32 %v1176_v5, %v10015_v61  ;;  %v1200_v51 = vadd.f32 %v1192_v48, %v1055_v3  ;;  %v954_v5 = vadd.f32 %v946_v29, %v843_v17  ;;  %v1310_v35 = vadd.f32 %v1302_v30, %v1199_v45 }
 0x1f3   : > { %v1178_v4 = vpop.f32.mrf.mxu1  ;;  %v1295_v53 = vpop.f32.mrf.mxu0  ;;  %v844_v1 = vadd.f32 %v836_v59, %v722_v63  ;;  %v1306_v52 = vmul.f32 %v10047_v62, %v9999_v50 }
 0x1f4   : > { %v1194_v28 = vmul.f32 %v1178_v4, %v10022_v16  ;;  %v1201_v15 = vadd.f32 %v1193_v12, %v1056_v10  ;;  %v1311_v23 = vadd.f32 %v1303_v32, %v1200_v51  ;;  %v1060_v20 = vadd.f32 %v14821_v14, %v954_v5 }
 0x1f5   : > { %v1182_v58 = vpop.f32.mrf.mxu1  ;;  %v1297_v49 = vpop.f32.mrf.mxu0 }
 0x1f6   : > { %v1195_v4 = vmul.f32 %v1182_v58, %v10015_v61  ;;  %v1202_v18 = vadd.f32 %v1194_v28, %v1057_v11  ;;  %v955_v58 = vadd.f32 %v947_v60, %v844_v1  ;;  %v1312_v42 = vadd.f32 %v1304_v31, %v1201_v15 }
 0x1f7   : > { %v1184_v44 = vpop.f32.mrf.mxu1  ;;  %v1299_v34 = vpop.f32.mrf.mxu0  ;;  %v1308_v47 = vmul.f32 %v1297_v49, %v9999_v50  ;;  %v10377_v50 = vld [vmem:[#allocation2 + $0x20] ss:$16 sps:$4 sm:$0xff]  }
 0x1f8   : > { %v1196_v2 = vmul.f32 %v1184_v44, %v10022_v16  ;;  %v1203_v25 = vadd.f32 %v1195_v4, %v1058_v13  ;;  %v1307_v44 = vmul.f32 %v1295_v53, %v10005_v54  ;;  %v1313_v27 = vadd.f32 %v1305_v37, %v1202_v18 }
 0x1f9   : > { %v1186_v26 = vpop.f32.mrf.mxu1  ;;  %v1309_v12 = vmul.f32 %v1299_v34, %v10005_v54 }
 0x1fa   : > { %v1197_v46 = vmul.f32 %v1186_v26, %v10015_v61  ;;  %v1204_v24 = vadd.f32 %v1196_v2, %v1059_v56  ;;  %v14822_v26 = vld [vmem:[#allocation24_spill] sm:$0xff]  ;;  %v1314_v30 = vadd.f32 %v1306_v52, %v1203_v25 }
 0x1fb   : > { %v1188_v19 = vpop.f32.mrf.mxu1  ;;  %v1061_v53 = vadd.f32 %v14822_v26, %v955_v58 }
 0x1fc   : > { %v1198_v39 = vmul.f32 %v1188_v19, %v10022_v16  ;;  %v1205_v55 = vadd.f32 %v1197_v46, %v1060_v20  ;;  %v1315_v51 = vadd.f32 %v1307_v44, %v1204_v24 }
 0x1fe   : > { %v1206_v57 = vadd.f32 %v1198_v39, %v1061_v53  ;;  %v1316_v19 = vadd.f32 %v1308_v47, %v1205_v55 }
 0x200   : > { %v1317_v2 = vadd.f32 %v1309_v12, %v1206_v57  ;;  %v10174_v57 = vld [vmem:[#allocation2 + $0xc] ss:$16 sps:$4 sm:$0xff]  }
 0x201   : > { %v1497_v21 = vpop.f32.mrf.mxu0 }
 0x202   : > { %v1516_v36 = vmul.f32 %v1497_v21, %v10015_v61 }
 0x203   : > { %v1499_v6 = vpop.f32.mrf.mxu0 }
 0x204   : > { %v1394_v33 = vpop.f32.mrf.mxu1  ;;  %v1517_v7 = vmul.f32 %v1499_v6, %v10022_v16 }
 0x205   : > { %v1413_v38 = vadd.f32 %v1394_v33, %v1310_v35  ;;  %v1501_v48 = vpop.f32.mrf.mxu0 }
 0x206   : > { %v1396_v40 = vpop.f32.mrf.mxu1  ;;  %v1518_v9 = vmul.f32 %v1501_v48, %v10015_v61 }
 0x207   : > { %v1414_v43 = vadd.f32 %v1396_v40, %v1311_v23  ;;  %v1524_v22 = vadd.f32 %v1516_v36, %v1413_v38  ;;  %v1503_v45 = vpop.f32.mrf.mxu0 }
 0x208   : > { %v1398_v8 = vpop.f32.mrf.mxu1  ;;  %v1519_v28 = vmul.f32 %v1503_v45, %v10022_v16 }
 0x209   : > { %v1415_v41 = vadd.f32 %v1398_v8, %v1312_v42  ;;  %v1540_v59 = vmul.f32 0.01, %v1524_v22  ;;  %v1525_v62 = vadd.f32 %v1517_v7, %v1414_v43  ;;  %vm1532_vm10 = vcmp.ge.f32.partialorder %v1524_v22, 0.0  ;;  %v1507_v0 = vpop.f32.mrf.mxu0 }
 0x20a   : > { %v1400_v29 = vpop.f32.mrf.mxu1  ;;  %v1520_v60 = vmul.f32 %v1507_v0, %v10015_v61  ;;  %v10180_v0 = vld [vmem:[#allocation2 + $0x4] ss:$16 sps:$4 sm:$0xff]  }
 0x20b   : > { %v1416_v3 = vadd.f32 %v1400_v29, %v1313_v27  ;;  %vm1533_vm11 = vcmp.ge.f32.partialorder %v1525_v62, 0.0  ;;  %v1541_v17 = vmul.f32 0.01, %v1525_v62  ;;  %v1526_v63 = vadd.f32 %v1518_v9, %v1415_v41  ;;  %v1509_v35 = vpop.f32.mrf.mxu0  ;;  %v10125_v9 = vpop.permute.xlu0 %1701 }
 0x20c   : > { %v1404_v49 = vpop.f32.mrf.mxu1  ;;  %v1548_v32 = vsel %vm1532_vm10, %v1524_v22, %v1540_v59  ;;  %v1521_v13 = vmul.f32 %v1509_v35, %v10022_v16 }
 0x20d   : > { %v1417_v10 = vadd.f32 %v1404_v49, %v1314_v30  ;;  %v10105_v11 = vsel %vm1533_vm11, %v1525_v62, %v1541_v17  ;;  %v1542_v31 = vmul.f32 0.01, %v1526_v63  ;;  %v1527_v4 = vadd.f32 %v1519_v28, %v1416_v3  ;;  %v1511_v56 = vpop.f32.mrf.mxu0  ;;  %v10123_v62 = vld [vmem:[#allocation2 + $0x40] ss:$16 sps:$4 sm:$0xff]   ;;  %v10149_v3 = vpop.permute.xlu1 %1699 }
 0x20e   : > { %v1406_v5 = vpop.f32.mrf.mxu1  ;;  %v8768_v15 = vpack.c.bf16 %v10105_v11, %v1548_v32  ;;  %vm1534_vm12 = vcmp.ge.f32.partialorder %v1526_v63, 0.0  ;;  %v1522_v23 = vmul.f32 %v1511_v56, %v10015_v61  ;;  %vm1731_vm11 = vcmask 523264  }
 0x20f   : > { %v1418_v34 = vadd.f32 %v1406_v5, %v1315_v51  ;;  %v1528_v1 = vadd.f32 %v1520_v60, %v1417_v10  ;;  %vm1535_vm13 = vcmp.ge.f32.partialorder %v1527_v4, 0.0  ;;  %v1543_v37 = vmul.f32 0.01, %v1527_v4  ;;  %v1513_v36 = vpop.f32.mrf.mxu0  ;;  %v10134_v29 = vpop.permute.xlu0 %1693  ;;  %v14824_v10 = vld [vmem:[#allocation21_spill] sm:$0xff] }
 0x210   : > { %v1408_v18 = vpop.f32.mrf.mxu1  ;;  %1580 = vst [vmem:[#allocation2 + $0x44] sm:$0xff] %v8768_v15  ;;  %v1550_v20 = vsel %vm1534_vm12, %v1526_v63, %v1542_v31  ;;  %v1523_v43 = vmul.f32 %v1513_v36, %v10022_v16  ;;  %v14832_v36 = vld [vmem:[#allocation20_spill] sm:$0xff]  ;;  %v10365_v16 = vld [vmem:[#allocation2 + $0x24] ss:$16 sps:$4 sm:$0xff]  }
 0x211   : > { %v1419_v33 = vadd.f32 %v1408_v18, %v1316_v19  ;;  %v1544_v38 = vmul.f32 0.01, %v1528_v1  ;;  %v1529_v21 = vadd.f32 %v1521_v13, %v1418_v34  ;;  %v1551_v58 = vsel %vm1535_vm13, %v1527_v4, %v1543_v37  ;;  %v10159_v30 = vpop.permute.xlu1 %1697  ;;  %v14826_v34 = vld [vmem:[#allocation16_spill] sm:$0xff]  ;;  %v14827_v37 = vld [vmem:[#allocation17_spill] sm:$0xff] }
 0x212   : > { %v1410_v14 = vpop.f32.mrf.mxu1  ;;  %vm1536_vm14 = vcmp.ge.f32.partialorder %v1528_v1, 0.0  ;;  %v8769_v40 = vpack.c.bf16 %v1551_v58, %v1550_v20  ;;  %v10112_v44 = vpack.c.bf16 %v1550_v20, %v1548_v32  ;;  %v10145_v53 = vpack.c.bf16 %v1551_v58, %v10105_v11  ;;  %v10192_v11 = vld [vmem:[#allocation2 + $0x60] ss:$16 sps:$4 sm:$0xff]  }
 0x213   : > { %v1420_v46 = vadd.f32 %v1410_v14, %v1317_v2  ;;  %vm1537_vm15 = vcmp.ge.f32.partialorder %v1529_v21, 0.0  ;;  %v1545_v25 = vmul.f32 0.01, %v1529_v21  ;;  %v1530_v52 = vadd.f32 %v1522_v23, %v1419_v33  ;;  %v10139_v26 = vpop.permute.xlu0 %1691  ;;  %14825 = vst [vmem:[#allocation24_spill] sm:$0xff] %v10192_v11  ;;  %v14828_v2 = vld [vmem:[#allocation18_spill] sm:$0xff]  ;;  %v14830_v20 = vld [vmem:[#allocation19_spill] sm:$0xff] }
 0x214   : > { %1581 = vst [vmem:[#allocation2 + $0x54] sm:$0xff] %v8769_v40  ;;  %v1552_v6 = vsel %vm1536_vm14, %v1528_v1, %v1544_v38  ;;  %14823 = vst [vmem:[#allocation22_spill] sm:$0xff] %v10145_v53 }
 0x215   : > { %v1553_v42 = vsel %vm1537_vm15, %v1529_v21, %v1545_v25  ;;  %v1546_v7 = vmul.f32 0.01, %v1530_v52  ;;  %v1531_v8 = vadd.f32 %v1523_v43, %v1420_v46  ;;  %vm1538_vm0 = vcmp.ge.f32.partialorder %v1530_v52, 0.0  ;;  %v10171_v49 = vpop.permute.xlu1 %1695 }
 0x216   : > { %v8770_v22 = vpack.c.bf16 %v1553_v42, %v1552_v6 }
 0x217   : > { %vm1539_vm10 = vcmp.ge.f32.partialorder %v1531_v8, 0.0  ;;  %v1547_v27 = vmul.f32 0.01, %v1531_v8  ;;  %v1554_v24 = vsel %vm1538_vm0, %v1530_v52, %v1546_v7  ;;  %v10153_v45 = vpop.permute.xlu0 %1832  ;;  %v8399_v7 = vld [vmem:[%s14581_s6 + $0x38] sm:$0xff] }
 0x218   : > { %1582 = vst [vmem:[#allocation2 + $0x64] sm:$0xff] %v8770_v22  ;;  %v10118_v59 = vpack.c.bf16 %v1554_v24, %v1552_v6 }
 0x219   : > { %v1555_v39 = vsel %vm1539_vm10, %v1531_v8, %v1547_v27  ;;  %v10184_v51 = vpop.permute.xlu1 %1830 }
 0x21a   : > { %v8771_v47 = vpack.c.bf16 %v1555_v39, %v1554_v24  ;;  %v10116_v55 = vpack.c.bf16 %v1555_v39, %v1553_v42  ;;  %v8397_v24 = vld [vmem:[%s14581_s6 + $0x28] sm:$0xff] }
 0x21b   : > { %v8919_v41 = vld [vmem:[#allocation2 + $0x48] ss:$16 sps:$4 sm:$0xff]   ;;  %v10114_v48 = vld [vmem:[#allocation2 + $0x44] ss:$16 sps:$4 sm:$0xff]   ;;  %v10161_v12 = vpop.permute.xlu0 %1954 }
 0x21c   : > { %1583 = vst [vmem:[#allocation2 + $0x74] sm:$0xff] %v8771_v47  ;;  %1707 = vrot.lane.b32.xlu1 %v8919_v41, %s9426_s12  ;;  %1705 = vrot.lane.b32.xlu0 %v10114_v48, %s9426_s12 }
 0x21d   : > { %v10196_v60 = vpop.permute.xlu1 %1952 }
 0x21f   : > { %v10176_v28 = vpop.permute.xlu0 %1950 }
 0x220   : > { %1836 = vrot.lane.b32.xlu1 %v10114_v48, %s9427_s22  ;;  %1703 = vrot.lane.b32.xlu0 %v10123_v62, %s9426_s12 }
 0x221   : > { %v10204_v19 = vpop.permute.xlu1 %1828 }
 0x223   : > { %v10167_v17 = vld [vmem:[#allocation2 + $0x64] ss:$16 sps:$4 sm:$0xff]   ;;  %v8925_v63 = vld [vmem:[#allocation2 + $0x68] ss:$16 sps:$4 sm:$0xff]   ;;  %v10186_v32 = vpop.permute.xlu0 %1826 }
 0x224   : > { %1958 = vrot.lane.b32.xlu1 %v10114_v48, %s9428_s13  ;;  %1838 = vrot.lane.b32.xlu0 %v8919_v41, %s9427_s22 }
 0x225   : > { %v10214_v31 = vpop.permute.xlu1 %1824 }
 0x227   : > { %v10199_v5 = vpop.permute.xlu0 %1948 }
 0x228   : > { %1834 = vrot.lane.b32.xlu1 %v10123_v62, %s9427_s22  ;;  %1960 = vrot.lane.b32.xlu0 %v8919_v41, %s9428_s13 }
 0x229   : > { %v10224_v35 = vpop.permute.xlu1 %1946 }
 0x22b   : > { %v10206_v15 = vpop.permute.xlu0 %1944 }
 0x22c   : > { %2090 = vrot.lane.b32.xlu1 %v8919_v41, %s14806_s20  ;;  %1956 = vrot.lane.b32.xlu0 %v10123_v62, %s9428_s13 }
 0x22d   : > { %v10233_v13 = vpop.permute.xlu1 %1822 }
 0x22f   : > { %v10218_v4 = vpop.permute.xlu0 %2084 }
 0x230   : > { %2416 = vrot.lane.b32.xlu1 %v10145_v53, %s14808_s26  ;;  %2088 = vrot.lane.b32.xlu0 %v10114_v48, %s14806_s20 }
 0x231   : > { %v10243_v33 = vpop.permute.xlu1 %2082 }
 0x233   : > { %v10226_v1 = vpop.permute.xlu0 %2076 }
 0x234   : > { %2546 = vrot.lane.b32.xlu1 %v10145_v53, %s14809_s10  ;;  %2086 = vrot.lane.b32.xlu0 %v10123_v62, %s14806_s20 }
 0x235   : > { %v10253_v38 = vpop.permute.xlu1 %2080 }
 0x237   : > { %v10237_v18 = vpop.permute.xlu0 %2074 }
 0x238   : > { %2414 = vrot.lane.b32.xlu1 %v10112_v44, %s14808_s26  ;;  %2544 = vrot.lane.b32.xlu0 %v10112_v44, %s14809_s10 }
 0x239   : > { %v10263_v23 = vpop.permute.xlu1 %2078 }
 0x23b   : > { %v10245_v56 = vpop.permute.xlu0 %2424 }
 0x23c   : > { %1711 = vrot.lane.b32.xlu1 %v10167_v17, %s9426_s12  ;;  %1713 = vrot.lane.b32.xlu0 %v8925_v63, %s9426_s12 }
 0x23d   : > { %v10273_v58 = vpop.permute.xlu1 %2410 }
 0x23e   : > { %14831 = vst [vmem:[#allocation16_spill] sm:$0xff] %v10273_v58  ;;  %v10387_v58 = vld [vmem:[#allocation2 + $0x8] ss:$16 sps:$4 sm:$0xff]  }
 0x23f   : > { %v10257_v21 = vpop.permute.xlu0 %2554 }
 0x240   : > { %2534 = vrot.lane.b32.xlu1 %v14824_v10, %s14809_s10  ;;  %2406 = vrot.lane.b32.xlu0 %v10174_v57, %s14808_s26 }
 0x241   : > { %v10283_v40 = vpop.permute.xlu1 %2540 }
 0x242   : > { %14833 = vst [vmem:[#allocation17_spill] sm:$0xff] %v10283_v40 }
 0x243   : > { %v10265_v14 = vpop.permute.xlu0 %2418 }
 0x244   : > { %2402 = vrot.lane.b32.xlu1 %v10180_v0, %s14808_s26  ;;  %2536 = vrot.lane.b32.xlu0 %v10174_v57, %s14809_s10  ;;  %14829 = vst [vmem:[#allocation21_spill] sm:$0xff] %v10265_v14 }
 0x245   : > { %v10291_v52 = vpop.permute.xlu1 %2408 }
 0x246   : > { %14835 = vst [vmem:[#allocation19_spill] sm:$0xff] %v10291_v52 }
 0x247   : > { %v10277_v46 = vpop.permute.xlu0 %2548 }
 0x248   : > { %1709 = vrot.lane.b32.xlu1 %v10192_v11, %s9426_s12  ;;  %1844 = vrot.lane.b32.xlu0 %v8925_v63, %s9427_s22 }
 0x249   : > { %v10301_v6 = vpop.permute.xlu1 %2404 }
 0x24a   : > { %14837 = vst [vmem:[#allocation28_spill] sm:$0xff] %v10301_v6 }
 0x24b   : > { %v10285_v25 = vpop.permute.xlu0 %2412 }
 0x24c   : > { %1842 = vrot.lane.b32.xlu1 %v10167_v17, %s9427_s22  ;;  %1966 = vrot.lane.b32.xlu0 %v8925_v63, %s9428_s13  ;;  %14834 = vst [vmem:[#allocation18_spill] sm:$0xff] %v10285_v25 }
 0x24f   : > { %v10295_v43 = vpop.permute.xlu0 %2542 }
 0x250   : > { %1964 = vrot.lane.b32.xlu1 %v10167_v17, %s9428_s13  ;;  %1962 = vrot.lane.b32.xlu0 %v10192_v11, %s9428_s13  ;;  %14836 = vst [vmem:[#allocation20_spill] sm:$0xff] %v10295_v43 }
 0x253   : > { %v10305_v42 = vpop.permute.xlu0 %2538 }
 0x254   : > { %1840 = vrot.lane.b32.xlu1 %v10192_v11, %s9427_s22  ;;  %2532 = vrot.lane.b32.xlu0 %v10180_v0, %s14809_s10  ;;  %14838 = vst [vmem:[#allocation29_spill] sm:$0xff] %v10305_v42 }
 0x258   : > { %2094 = vrot.lane.b32.xlu1 %v10167_v17, %s14806_s20  ;;  %2684 = vrot.lane.b32.xlu0 %v14826_v34, %s9432_s19 }
 0x25c   : > { %2676 = vrot.lane.b32.xlu1 %v10145_v53, %s9432_s19  ;;  %2096 = vrot.lane.b32.xlu0 %v8925_v63, %s14806_s20  ;;  %v8398_v63 = vld [vmem:[%s14581_s6 + $0x30] sm:$0xff] }
 0x260   : > { %2798 = vrot.lane.b32.xlu1 %v10145_v53, %s9433_s24  ;;  %2806 = vrot.lane.b32.xlu0 %v14826_v34, %s9433_s24 }
 0x264   : > { %2674 = vrot.lane.b32.xlu1 %v10112_v44, %s9432_s19  ;;  %2678 = vrot.lane.b32.xlu0 %v14827_v37, %s9432_s19 }
 0x268   : > { %2670 = vrot.lane.b32.xlu1 %v14828_v2, %s9432_s19  ;;  %2800 = vrot.lane.b32.xlu0 %v14827_v37, %s9433_s24  ;;  %v10347_v37 = vld [vmem:[#allocation2 + $0x28] ss:$16 sps:$4 sm:$0xff]  }
 0x26c   : > { %2092 = vrot.lane.b32.xlu1 %v10192_v11, %s14806_s20  ;;  %2796 = vrot.lane.b32.xlu0 %v10112_v44, %s9433_s24 }
 0x270   : > { %2422 = vrot.lane.b32.xlu1 %v10116_v55, %s14808_s26  ;;  %2550 = vrot.lane.b32.xlu0 %v10118_v59, %s14809_s10 }
 0x274   : > { %2552 = vrot.lane.b32.xlu1 %v10116_v55, %s14809_s10  ;;  %2672 = vrot.lane.b32.xlu0 %v14830_v20, %s9432_s19 }
 0x278   : > { %2420 = vrot.lane.b32.xlu1 %v10118_v59, %s14808_s26  ;;  %2794 = vrot.lane.b32.xlu0 %v14830_v20, %s9433_s24 }
 0x27c   : > { %2792 = vrot.lane.b32.xlu1 %v14828_v2, %s9433_s24  ;;  %2790 = vrot.lane.b32.xlu0 %v14832_v36, %s9433_s24 }
 0x280   : > { %2668 = vrot.lane.b32.xlu1 %v14832_v36, %s9432_s19  ;;  %2802 = vrot.lane.b32.xlu0 %v10118_v59, %s9433_s24  ;;  %v10355_v36 = vld [vmem:[#allocation2 + $0x4] ss:$16 sps:$4 sm:$0xff]  }
 0x284   : > { %2682 = vrot.lane.b32.xlu1 %v10116_v55, %s9432_s19  ;;  %2666 = vrot.lane.b32.xlu0 %v10174_v57, %s9432_s19 }
 0x288   : > { %2804 = vrot.lane.b32.xlu1 %v10116_v55, %s9433_s24  ;;  %2788 = vrot.lane.b32.xlu0 %v10174_v57, %s9433_s24 }
 0x28c   : > { %2680 = vrot.lane.b32.xlu1 %v10118_v59, %s9432_s19  ;;  %2784 = vrot.lane.b32.xlu0 %v10180_v0, %s9433_s24 }
 0x28e   : > { %v10311_v22 = vpop.permute.xlu1 %1707  ;;  %v10316_v8 = vpop.permute.xlu0 %1705 }
 0x290   : > { %2664 = vrot.lane.b32.xlu1 %v14824_v10, %s9432_s19  ;;  %1606 = vperm.xlu0 %8878, %v8399_v7  }
 0x292   : > { %v10320_v27 = vpop.permute.xlu1 %1836  ;;  %v1704_v39 = vpop.permute.xlu0 %1703 }
 0x294   : > { %2786 = vrot.lane.b32.xlu1 %v14824_v10, %s9433_s24  ;;  %1596 = vperm.xlu0 %8878, %v8397_v24   ;;  %v8396_v10 = vld [vmem:[%s14581_s6 + $0x20] sm:$0xff]  ;;  %v10359_v24 = vld [vmem:[#allocation2 + $0x48] ss:$16 sps:$4 sm:$0xff]  }
 0x296   : > { %v10327_v47 = vpop.permute.xlu1 %1958  ;;  %v10329_v41 = vpop.permute.xlu0 %1838 }
 0x298   : > { %2662 = vrot.lane.b32.xlu1 %v10180_v0, %s9432_s19  ;;  %3106 = vrot.lane.b32.xlu0 %v10114_v48, %s9426_s12 }
 0x29a   : > { %v10338_v57 = vpop.permute.xlu1 %1834  ;;  %v10340_v34 = vpop.permute.xlu0 %1960 }
 0x29c   : > { %1601 = vperm.xlu1 %8879, %v8398_v63   ;;  %3104 = vrot.lane.b32.xlu0 %v10123_v62, %s9426_s12 }
 0x29e   : > { %v10349_v2 = vpop.permute.xlu1 %2090  ;;  %v10351_v20 = vpop.permute.xlu0 %1956 }
 0x2a0   : > { %1591 = vperm.xlu1 %8879, %v8396_v10   ;;  %3102 = vrot.lane.b32.xlu0 %v10347_v37, %s9426_s12  ;;  %v10369_v10 = vld [vmem:[#allocation2] ss:$16 sps:$4 sm:$0xff]  }
 0x2a2   : > { %v10357_v7 = vpop.permute.xlu1 %2416  ;;  %v10361_v63 = vpop.permute.xlu0 %2088 }
 0x2a3   : > { %14839 = vst [vmem:[#allocation30_spill] sm:$0xff] %v10357_v7 }
 0x2a4   : > { %3108 = vrot.lane.b32.xlu1 %v10359_v24, %s9426_s12  ;;  %3094 = vrot.lane.b32.xlu0 %v10355_v36, %s9426_s12 }
 0x2a6   : > { %v10371_v61 = vpop.permute.xlu1 %2546  ;;  %v10373_v54 = vpop.permute.xlu0 %2086 }
 0x2a8   : > { %3100 = vrot.lane.b32.xlu1 %v10365_v16, %s9426_s12  ;;  %3092 = vrot.lane.b32.xlu0 %v10369_v10, %s9426_s12 }
 0x2aa   : > { %v10381_v6 = vpop.permute.xlu1 %2414  ;;  %v10383_v52 = vpop.permute.xlu0 %2544 }
 0x2ab   : > { %14840 = vst [vmem:[#allocation31_spill] sm:$0xff] %v10381_v6 }
 0x2ac   : > { %3098 = vrot.lane.b32.xlu1 %v10377_v50, %s9426_s12  ;;  %3259 = vrot.lane.b32.xlu0 %v10359_v24, %s9427_s22 }
 0x2ae   : > { %v1712_v25 = vpop.permute.xlu1 %1711  ;;  %v1714_v42 = vpop.permute.xlu0 %1713 }
 0x2af   : > { %v1722_v11 = vsel %vm524_vm1, %v1712_v25, %v1714_v42 }
 0x2b0   : > { %3096 = vrot.lane.b32.xlu1 %v10387_v58, %s9426_s12  ;;  %3401 = vrot.lane.b32.xlu0 %v10359_v24, %s9428_s13 }
 0x2b1   : > { %1746 = vmatprep.subr.bf16.mxu1 %v1722_v11 }
 0x2b2   : > { %v10396_v6 = vpop.permute.xlu1 %2534  ;;  %v10398_v40 = vpop.permute.xlu0 %2406 }
 0x2b3   : > { %14841 = vst [vmem:[#allocation32_spill] sm:$0xff] %v10396_v6  ;;  %14842 = vst [vmem:[#allocation33_spill] sm:$0xff] %v10398_v40 }
 0x2b4   : > { %3257 = vrot.lane.b32.xlu1 %v10114_v48, %s9427_s22  ;;  %3397 = vrot.lane.b32.xlu0 %v10123_v62, %s9428_s13 }
 0x2b6   : > { %v10404_v43 = vpop.permute.xlu1 %2402  ;;  %v10406_v7 = vpop.permute.xlu0 %2536 }
 0x2b7   : > { %14843 = vst [vmem:[#allocation34_spill] sm:$0xff] %v10404_v43  ;;  %14844 = vst [vmem:[#allocation35_spill] sm:$0xff] %v10406_v7  ;;  %v1720_v43 = vsel %vm524_vm1, %v10316_v8, %v10311_v22  ;;  %v1719_v7 = vsel %vm524_vm1, %v1704_v39, %v10316_v8  ;;  %v1718_v22 = vsel %vm524_vm1, %v10149_v3, %v10125_v9 }
 0x2b8   : > { %3399 = vrot.lane.b32.xlu1 %v10114_v48, %s9428_s13  ;;  %3253 = vrot.lane.b32.xlu0 %v10347_v37, %s9427_s22  ;;  %v1717_v8 = vsel %vm524_vm1, %v10159_v30, %v10149_v3 }
 0x2ba   : > { %v1710_v11 = vpop.permute.xlu1 %1709  ;;  %v1845_v40 = vpop.permute.xlu0 %1844 }
 0x2bb   : > { %v1721_v42 = vsel %vm524_vm1, %v1710_v11, %v1712_v25  ;;  %v8938_v11 = vld [vmem:[#allocation3] sm:$0xff]  }
 0x2bc   : > { %3255 = vrot.lane.b32.xlu1 %v10123_v62, %s9427_s22  ;;  %1747 = vmatpush1.bf16.msra.mxu1 %v1721_v42 }
 0x2bd   : > { %3395 = vrot.lane.b32.xlu0 %v10347_v37, %s9428_s13  ;;  %1748 = vmatprep.subr.bf16.mxu1 %v1720_v43 }
 0x2be   : > { %v1843_v6 = vpop.permute.xlu1 %1842  ;;  %v1967_v14 = vpop.permute.xlu0 %1966 }
 0x2bf   : > { %v1853_v25 = vsel %vm647_vm3, %v1843_v6, %v1845_v40  ;;  %v1716_v40 = vsel %vm524_vm1, %v10134_v29, %v10171_v49  ;;  %v1851_v49 = vsel %vm647_vm3, %v10320_v27, %v10329_v41  ;;  %v1973_v41 = vsel %vm750_vm2, %v10327_v47, %v10340_v34 }
 0x2c0   : > { %3251 = vrot.lane.b32.xlu1 %v10365_v16, %s9427_s22  ;;  %1749 = vmatpush1.bf16.msra.mxu1 %v1719_v7  ;;  %v1715_v7 = vsel %vm524_vm1, %v10139_v26, %v10134_v29  ;;  %v1971_v34 = vsel %vm750_vm2, %v10196_v60, %v10161_v12  ;;  %v8940_v12 = vld [vmem:[#allocation3 + $0x10] sm:$0xff]  }
 0x2c1   : > { %3391 = vrot.lane.b32.xlu0 %v10377_v50, %s9428_s13  ;;  %1876 = vmatprep.subr.bf16.mxu0 %v1853_v25  ;;  %v1850_v25 = vsel %vm647_vm3, %v10338_v57, %v10320_v27  ;;  %v1972_v27 = vsel %vm750_vm2, %v10351_v20, %v10327_v47  ;;  %v1847_v47 = vsel %vm647_vm3, %v10214_v31, %v10186_v32 }
 0x2c2   : > { %1750 = vmatprep.subr.bf16.mxu1 %v1718_v22  ;;  %v1965_v43 = vpop.permute.xlu1 %1964  ;;  %v1963_v39 = vpop.permute.xlu0 %1962  ;;  %v1846_v32 = vsel %vm647_vm3, %v10233_v13, %v10214_v31 }
 0x2c3   : > { %v1975_v29 = vsel %vm750_vm2, %v1965_v43, %v1967_v14  ;;  %v1849_v14 = vsel %vm647_vm3, %v10184_v51, %v10153_v45  ;;  %v1848_v45 = vsel %vm647_vm3, %v10204_v19, %v10184_v51  ;;  %v1969_v19 = vsel %vm750_vm2, %v10224_v35, %v10199_v5  ;;  %v8941_v5 = vld [vmem:[#allocation3 + $0x20] sm:$0xff]  }
 0x2c4   : > { %3393 = vrot.lane.b32.xlu1 %v10365_v16, %s9428_s13  ;;  %1751 = vmatpush1.bf16.msra.mxu1 %v1717_v8  ;;  %v8939_v8 = vld [vmem:[#allocation3 + $0x8] sm:$0xff]  }
 0x2c5   : > { %3247 = vrot.lane.b32.xlu0 %v10387_v58, %s9427_s22  ;;  %1752 = vmatprep.subr.bf16.mxu1 %v1716_v40 }
 0x2c6   : > { %v1841_v9 = vpop.permute.xlu1 %1840  ;;  %v10444_v30 = vpop.permute.xlu0 %2532 }
 0x2c7   : > { %v1852_v3 = vsel %vm647_vm3, %v1841_v9, %v1843_v6  ;;  %v1974_v6 = vsel %vm750_vm2, %v1963_v39, %v1965_v43  ;;  %v14845_v43 = vmov 0   ;;  %v9186_v9 = vld [vmem:[#allocation2 + $0x28] ss:$16 sps:$4 sm:$0xff]  }
 0x2c8   : > { %3249 = vrot.lane.b32.xlu1 %v10377_v50, %s9427_s22  ;;  %1753 = vmatpush1.bf16.msra.mxu1 %v1715_v7 }
 0x2c9   : > { %3389 = vrot.lane.b32.xlu0 %v10387_v58, %s9428_s13  ;;  %1877 = vmatpush1.bf16.msra.mxu0 %v1852_v3 }
 0x2ca   : > { %1878 = vmatprep.subr.bf16.mxu0 %v1851_v49  ;;  %1998 = vmatprep.subr.bf16.mxu1 %v1975_v29  ;;  %v10454_v26 = vpop.permute.xlu1 %2094  ;;  %v10457_v42 = vpop.permute.xlu0 %2684  ;;  %v8946_v29 = vld [vmem:[#allocation3 + $0x40] sm:$0xff]  }
 0x2cb   : > { %8414 = vmatmul.mubr.msk.bf16.vlgmr.msra.gmra.mxu1 %vm1731_vm11, %v8938_v11  ;;  %v9188_v11 = vld [vmem:[#allocation2 + $0x8] ss:$16 sps:$4 sm:$0xff]  }
 0x2cc   : > { %3245 = vrot.lane.b32.xlu1 %v10355_v36, %s9427_s22  ;;  %1999 = vmatpush1.bf16.msra.mxu1 %v1974_v6  ;;  %v10603_v6 = vld [vmem:[#allocation2 + $0x6c] ss:$16 sps:$4 sm:$0xff]  }
 0x2cd   : > { %3385 = vrot.lane.b32.xlu0 %v10369_v10, %s9428_s13  ;;  %1879 = vmatpush1.bf16.msra.mxu0 %v1850_v25  ;;  %14846 = vst [vmem:[#allocation36_spill] sm:$0xff] %v10603_v6  ;;  %v14847_v25 = vld [vmem:[#allocation21_spill] sm:$0xff] }
 0x2ce   : > { %1880 = vmatprep.subr.bf16.mxu0 %v1849_v14  ;;  %2000 = vmatprep.subr.bf16.mxu1 %v1973_v41  ;;  %v10473_v22 = vpop.permute.xlu1 %2676  ;;  %v2097_v57 = vpop.permute.xlu0 %2096  ;;  %v14848_v14 = vld [vmem:[#allocation30_spill] sm:$0xff] }
 0x2cf   : > { %1780 = vmatprep.mubr.bf16.mxu1 %v14845_v43  ;;  %v2431_v41 = vsel %vm1123_vm6, %v14848_v14, %v14847_v25 }
 0x2d0   : > { %3387 = vrot.lane.b32.xlu1 %v10355_v36, %s9428_s13  ;;  %2001 = vmatpush1.bf16.msra.mxu1 %v1972_v27 }
 0x2d1   : > { %3549 = vrot.lane.b32.xlu0 %v10114_v48, %s14806_s20  ;;  %1881 = vmatpush1.bf16.msra.mxu0 %v1848_v45  ;;  %v1970_v48 = vsel %vm750_vm2, %v10176_v28, %v10196_v60  ;;  %v2105_v28 = vsel %vm872_vm5, %v10454_v26, %v2097_v57  ;;  %v8949_v57 = vld [vmem:[#allocation3 + $0x48] sm:$0xff]   ;;  %v14850_v45 = vld [vmem:[#allocation17_spill] sm:$0xff] }
 0x2d2   : > { %1882 = vmatprep.subr.bf16.mxu0 %v1847_v47  ;;  %2002 = vmatprep.subr.bf16.mxu1 %v1971_v34  ;;  %v10492_v20 = vpop.permute.xlu1 %2798  ;;  %v10494_v51 = vpop.permute.xlu0 %2806  ;;  %v8950_v34 = vld [vmem:[#allocation3 + $0x38] sm:$0xff]  }
 0x2d3   : > { %8415 = vmatmul.mubr.msk.bf16.gmra.mxu1 %vm1731_vm11, %v8939_v8  ;;  %v14849_v8 = vld [vmem:[#allocation20_spill] sm:$0xff] }
 0x2d4   : > { %3243 = vrot.lane.b32.xlu1 %v10369_v10, %s9427_s22  ;;  %2003 = vmatpush1.bf16.msra.mxu1 %v1970_v48  ;;  %v2559_v47 = vsel %vm1234_vm7, %v14850_v45, %v14849_v8  ;;  %v8962_v8 = vld [vmem:[#allocation3 + $0x78] sm:$0xff]  }
 0x2d5   : > { %3547 = vrot.lane.b32.xlu0 %v10123_v62, %s14806_s20  ;;  %1883 = vmatpush1.bf16.msra.mxu0 %v1846_v32  ;;  %v1968_v62 = vsel %vm750_vm2, %v10206_v15, %v10224_v35  ;;  %v14852_v32 = vld [vmem:[#allocation24_spill] sm:$0xff] }
 0x2d6   : > { %2004 = vmatprep.subr.bf16.mxu1 %v1969_v19  ;;  %2128 = vmatprep.subr.bf16.mxu0 %v2105_v28  ;;  %v10512_v60 = vpop.permute.xlu1 %2674  ;;  %v10514_v31 = vpop.permute.xlu0 %2678  ;;  %v14854_v28 = vld [vmem:[#allocation18_spill] sm:$0xff] }
 0x2d7   : > { %2022 = vmatprep.mubr.bf16.mxu1 %v14845_v43 }
 0x2d8   : > { %8418 = vmatmul.mubr.msk.bf16.vlgmr.msra.gmra.mxu0 %vm1731_vm11, %v8940_v12  ;;  %3551 = vrot.lane.b32.xlu1 %v10359_v24, %s14806_s20  ;;  %v8942_v24 = vld [vmem:[#allocation3 + $0x18] sm:$0xff]   ;;  %v14853_v12 = vld [vmem:[#allocation29_spill] sm:$0xff] }
 0x2d9   : > { %3545 = vrot.lane.b32.xlu0 %v10347_v37, %s14806_s20  ;;  %2005 = vmatpush1.bf16.msra.mxu1 %v1968_v62  ;;  %v8944_v37 = vld [vmem:[#allocation2 + $0xac] ss:$16 sps:$4 sm:$0xff]   ;;  %v2558_v19 = vsel %vm1234_vm7, %v14853_v12, %v14850_v45 }
 0x2da   : > { %2266 = vmatprep.subr.bf16.mxu1 %v10116_v55  ;;  %v10526_v13 = vpop.permute.xlu1 %2670  ;;  %1910 = vmatprep.mubr.bf16.mxu0 %v14845_v43  ;;  %v10529_v39 = vpop.permute.xlu0 %2800  ;;  %v14855_v62 = vld [vmem:[#allocation16_spill] sm:$0xff] }
 0x2dc   : > { %8422 = vmatmul.mubr.msk.bf16.vlgmr.msra.gmra.mxu1 %vm1731_vm11, %v8941_v5  ;;  %3543 = vrot.lane.b32.xlu1 %v10365_v16, %s14806_s20  ;;  %v8943_v16 = vld [vmem:[#allocation3 + $0x28] sm:$0xff]   ;;  %v2429_v5 = vsel %vm1123_vm6, %v14855_v62, %v14854_v28 }
 0x2dd   : > { %3537 = vrot.lane.b32.xlu0 %v10355_v36, %s14806_s20  ;;  %2267 = vmatpush1.bf16.msra.mxu1 %v10118_v59  ;;  %v2103_v59 = vsel %vm872_vm5, %v10361_v63, %v10349_v2  ;;  %v2101_v2 = vsel %vm872_vm5, %v10243_v33, %v10218_v4 }
 0x2de   : > { %2268 = vmatprep.subr.bf16.mxu1 %v10145_v53  ;;  %v2093_v55 = vpop.permute.xlu1 %2092  ;;  %2032 = vmatprep.mubr.bf16.mxu1 %v14845_v43  ;;  %v10541_v35 = vpop.permute.xlu0 %2796 }
 0x2df   : > { %v2104_v15 = vsel %vm872_vm5, %v2093_v55, %v10454_v26  ;;  %v14856_v55 = vld [vmem:[#allocation35_spill] sm:$0xff] }
 0x2e0   : > { %8419 = vmatmul.mubr.msk.bf16.gmra.mxu0 %vm1731_vm11, %v8942_v24  ;;  %3541 = vrot.lane.b32.xlu1 %v10377_v50, %s14806_s20  ;;  %v2102_v50 = vsel %vm872_vm5, %v10373_v54, %v10361_v63  ;;  %v2100_v54 = vsel %vm872_vm5, %v10253_v38, %v10243_v33  ;;  %v8945_v63 = vld [vmem:[#allocation2 + $0x8c] ss:$16 sps:$4 sm:$0xff]   ;;  %v2098_v38 = vsel %vm872_vm5, %v10237_v18, %v10226_v1 }
 0x2e1   : > { %3535 = vrot.lane.b32.xlu0 %v10369_v10, %s14806_s20  ;;  %2129 = vmatpush1.bf16.msra.mxu0 %v2104_v15  ;;  %v9187_v10 = vld [vmem:[#allocation2 + $0x24] ss:$16 sps:$4 sm:$0xff]   ;;  %v14857_v15 = vld [vmem:[#allocation32_spill] sm:$0xff] }
 0x2e2   : > { %2269 = vmatpush1.bf16.msra.mxu1 %v10112_v44  ;;  %2130 = vmatprep.subr.bf16.mxu0 %v2103_v59  ;;  %v2423_v36 = vpop.permute.xlu1 %2422  ;;  %v2551_v40 = vpop.permute.xlu0 %2550  ;;  %v14858_v59 = vld [vmem:[#allocation19_spill] sm:$0xff] }
 0x2e3   : > { %2270 = vmatprep.subr.bf16.mxu1 %v9186_v9  ;;  %2152 = vmatprep.mubr.bf16.mxu0 %v14845_v43  ;;  %v2556_v9 = vsel %vm1234_vm7, %v10444_v30, %v14857_v15  ;;  %v14862_v30 = vld [vmem:[#allocation34_spill] sm:$0xff] }
 0x2e4   : > { %8423 = vmatmul.mubr.msk.bf16.gmra.mxu1 %vm1731_vm11, %v8943_v16  ;;  %3539 = vrot.lane.b32.xlu1 %v10387_v58, %s14806_s20  ;;  %v2099_v58 = vsel %vm872_vm5, %v10226_v1, %v10263_v23  ;;  %v2561_v1 = vsel %vm1234_vm7, %v10371_v61, %v10277_v46  ;;  %v2560_v46 = vsel %vm1234_vm7, %v10383_v52, %v10371_v61  ;;  %v14851_v61 = vld [vmem:[#allocation31_spill] sm:$0xff] }
 0x2e5   : > { %3975 = vrot.lane.b32.xlu0 %v8944_v37, %s14808_s26  ;;  %2131 = vmatpush1.bf16.msra.mxu0 %v2102_v50  ;;  %v2430_v52 = vsel %vm1123_vm6, %v14851_v61, %v14848_v14  ;;  %v2557_v16 = vsel %vm1234_vm7, %v14857_v15, %v14856_v55  ;;  %v14860_v50 = vld [vmem:[#allocation33_spill] sm:$0xff]  ;;  %v10711_v14 = vld [vmem:[#allocation2 + $0x68] ss:$16 sps:$4 sm:$0xff]  }
 0x2e6   : > { %2271 = vmatpush1.bf16.msra.mxu1 %v9187_v10  ;;  %2132 = vmatprep.subr.bf16.mxu0 %v2101_v2  ;;  %v2553_v7 = vpop.permute.xlu1 %2552  ;;  %v10563_v3 = vpop.permute.xlu0 %2672  ;;  %v14861_v2 = vld [vmem:[#allocation28_spill] sm:$0xff] }
 0x2e7   : > { %2272 = vmatprep.subr.bf16.mxu1 %v9188_v11  ;;  %2290 = vmatprep.mubr.bf16.mxu1 %v14845_v43  ;;  %v2563_v4 = vsel %vm1234_vm7, %v2553_v7, %v10257_v21  ;;  %v8947_v21 = vld [vmem:[#allocation3 + $0x30] sm:$0xff]   ;;  %v2562_v23 = vsel %vm1234_vm7, %v2551_v40, %v2553_v7  ;;  %v2427_v10 = vsel %vm1123_vm6, %v14861_v2, %v14860_v50  ;;  %v8952_v11 = vld [vmem:[#allocation3 + $0x60] sm:$0xff]  }
 0x2e8   : > { %3955 = vrot.lane.b32.xlu1 %v10145_v53, %s14808_s26 }
 0x2e9   : > { %4125 = vrot.lane.b32.xlu0 %v8944_v37, %s14809_s10  ;;  %2133 = vmatpush1.bf16.msra.mxu0 %v2100_v54  ;;  %v2428_v37 = vsel %vm1123_vm6, %v14858_v59, %v14855_v62 }
 0x2ea   : > { %2273 = vmatpush1.bf16.msra.mxu1 %v10180_v0  ;;  %2134 = vmatprep.subr.bf16.mxu0 %v2099_v58  ;;  %v2421_v49 = vpop.permute.xlu1 %2420  ;;  %v10578_v33 = vpop.permute.xlu0 %2794  ;;  %v2433_v0 = vsel %vm1123_vm6, %v2423_v36, %v10245_v56  ;;  %v2426_v58 = vsel %vm1123_vm6, %v14862_v30, %v14861_v2 }
 0x2eb   : > { %2586 = vmatprep.subr.bf16.mxu1 %v2563_v4  ;;  %v2432_v56 = vsel %vm1123_vm6, %v2421_v49, %v2423_v36  ;;  %v10642_v36 = vld [vmem:[#allocation2 + $0x4c] ss:$16 sps:$4 sm:$0xff]  }
 0x2ec   : > { %4105 = vrot.lane.b32.xlu1 %v10145_v53, %s14809_s10  ;;  %14859 = vst [vmem:[#allocation21_spill] sm:$0xff] %v10642_v36 }
 0x2ed   : > { %3969 = vrot.lane.b32.xlu0 %v8945_v63, %s14808_s26  ;;  %2135 = vmatpush1.bf16.msra.mxu0 %v2098_v38  ;;  %v2813_v38 = vsel %vm1448_vm9, %v10492_v20, %v10529_v39  ;;  %v2691_v39 = vsel %vm1345_vm8, %v10473_v22, %v10514_v31 }
 0x2ee   : > { %8438 = vmatmul.mubr.msk.bf16.vlgmr.msra.gmra.mxu1 %vm1731_vm11, %v8946_v29  ;;  %2456 = vmatprep.subr.bf16.mxu0 %v2433_v0  ;;  %v10590_v26 = vpop.permute.xlu1 %2792  ;;  %v10595_v18 = vpop.permute.xlu0 %2790  ;;  %v8954_v0 = vld [vmem:[#allocation2 + $0x68] ss:$16 sps:$4 sm:$0xff]  }
 0x2ef   : > { %2587 = vmatpush1.bf16.msra.mxu1 %v2562_v23  ;;  %2300 = vmatprep.mubr.bf16.mxu1 %v14845_v43 }
 0x2f0   : > { %2588 = vmatprep.subr.bf16.mxu1 %v2561_v1  ;;  %8426 = vmatmul.mubr.msk.bf16.vlgmr.msra.gmra.mxu0 %vm1731_vm11, %v8947_v21  ;;  %v2811_v1 = vsel %vm1448_vm9, %v10590_v26, %v10578_v33  ;;  %v2689_v33 = vsel %vm1345_vm8, %v10526_v13, %v10563_v3 }
 0x2f1   : > { %3112 = vrot.lane.b32.xlu1 %v10167_v17, %s9426_s12  ;;  %4119 = vrot.lane.b32.xlu0 %v8945_v63, %s14809_s10  ;;  %v8953_v63 = vld [vmem:[#allocation3 + $0x50] sm:$0xff]  }
 0x2f2   : > { %2457 = vmatpush1.bf16.msra.mxu0 %v2432_v56  ;;  %v10611_v27 = vpop.permute.xlu1 %2668  ;;  %2162 = vmatprep.mubr.bf16.mxu0 %v14845_v43  ;;  %v2803_v48 = vpop.permute.xlu0 %2802  ;;  %v8955_v56 = vld [vmem:[#allocation3 + $0x68] sm:$0xff]  }
 0x2f3   : > { %2589 = vmatpush1.bf16.msra.mxu1 %v2560_v46  ;;  %2458 = vmatprep.subr.bf16.mxu0 %v2431_v41  ;;  %v2810_v46 = vsel %vm1448_vm9, %v10595_v18, %v10590_v26  ;;  %v8960_v41 = vld [vmem:[#allocation3 + $0x70] sm:$0xff]  }
 0x2f4   : > { %2590 = vmatprep.subr.bf16.mxu1 %v2559_v47 }
 0x2f5   : > { %3110 = vrot.lane.b32.xlu1 %v14852_v32, %s9426_s12  ;;  %3963 = vrot.lane.b32.xlu0 %v10603_v6, %s14808_s26 }
 0x2f6   : > { %2459 = vmatpush1.bf16.msra.mxu0 %v2430_v52  ;;  %8439 = vmatmul.mubr.msk.bf16.gmra.mxu1 %vm1731_vm11, %v8949_v57  ;;  %v2683_v24 = vpop.permute.xlu1 %2682  ;;  %v10644_v40 = vpop.permute.xlu0 %2666  ;;  %v8963_v57 = vld [vmem:[#allocation3 + $0x88] sm:$0xff]  }
 0x2f7   : > { %2591 = vmatpush1.bf16.msra.mxu1 %v2558_v19  ;;  %2460 = vmatprep.subr.bf16.mxu0 %v2429_v5 }
 0x2f8   : > { %2592 = vmatprep.subr.bf16.mxu1 %v2557_v16  ;;  %8427 = vmatmul.mubr.msk.bf16.gmra.mxu0 %vm1731_vm11, %v8950_v34 }
 0x2f9   : > { %3263 = vrot.lane.b32.xlu1 %v10167_v17, %s9427_s22  ;;  %4113 = vrot.lane.b32.xlu0 %v10603_v6, %s14809_s10 }
 0x2fa   : > { %2461 = vmatpush1.bf16.msra.mxu0 %v2428_v37  ;;  %v2805_v7 = vpop.permute.xlu1 %2804  ;;  %2610 = vmatprep.mubr.bf16.mxu1 %v14845_v43  ;;  %v2789_v21 = vpop.permute.xlu0 %2788 }
 0x2fb   : > { %2593 = vmatpush1.bf16.msra.mxu1 %v2556_v9  ;;  %2462 = vmatprep.subr.bf16.mxu0 %v2427_v10  ;;  %v2815_v54 = vsel %vm1448_vm9, %v2805_v7, %v10494_v51  ;;  %v2814_v4 = vsel %vm1448_vm9, %v2803_v48, %v2805_v7  ;;  %v2693_v51 = vsel %vm1345_vm8, %v2683_v24, %v10457_v42 }
 0x2fc   : > { %2838 = vmatprep.subr.bf16.mxu1 %v2815_v54  ;;  %2480 = vmatprep.mubr.bf16.mxu0 %v14845_v43  ;;  %v2812_v42 = vsel %vm1448_vm9, %v10541_v35, %v10492_v20  ;;  %v2690_v20 = vsel %vm1345_vm8, %v10512_v60, %v10473_v22  ;;  %v8956_v35 = vld [vmem:[#allocation3 + $0x58] sm:$0xff]   ;;  %v2688_v60 = vsel %vm1345_vm8, %v10611_v27, %v10526_v13  ;;  %v8959_v13 = vld [vmem:[#allocation3 + $0x80] sm:$0xff]  }
 0x2fd   : > { %3405 = vrot.lane.b32.xlu1 %v10167_v17, %s9428_s13  ;;  %3957 = vrot.lane.b32.xlu0 %v10642_v36, %s14808_s26  ;;  %v10725_v27 = vld [vmem:[#allocation2 + $0x64] ss:$16 sps:$4 sm:$0xff]  }
 0x2fe   : > { %2463 = vmatpush1.bf16.msra.mxu0 %v2426_v58  ;;  %8458 = vmatmul.mubr.msk.bf16.vlgmr.msra.gmra.mxu1 %vm1731_vm11, %v8952_v11  ;;  %v2681_v49 = vpop.permute.xlu1 %2680  ;;  %v2785_v31 = vpop.permute.xlu0 %2784  ;;  %14863 = vst [vmem:[#allocation30_spill] sm:$0xff] %v10725_v27 }
 0x2ff   : > { %2716 = vmatprep.subr.bf16.mxu0 %v2693_v51  ;;  %2839 = vmatpush1.bf16.msra.mxu1 %v2814_v4  ;;  %v2692_v29 = vsel %vm1345_vm8, %v2681_v49, %v2683_v24 }
 0x300   : > { %2840 = vmatprep.subr.bf16.mxu1 %v2813_v38  ;;  %2620 = vmatprep.mubr.bf16.mxu1 %v14845_v43 }
 0x301   : > { %8454 = vmatmul.mubr.msk.bf16.vlgmr.msra.gmra.mxu0 %vm1731_vm11, %v8953_v63  ;;  %3261 = vrot.lane.b32.xlu1 %v14852_v32, %s9427_s22 }
 0x302   : > { %3114 = vrot.lane.b32.xlu0 %v8954_v0, %s9426_s12  ;;  %2717 = vmatpush1.bf16.msra.mxu0 %v2692_v29  ;;  %v2665_v23 = vpop.permute.xlu1 %2664 }
 0x303   : > { %2718 = vmatprep.subr.bf16.mxu0 %v2691_v39  ;;  %2841 = vmatpush1.bf16.msra.mxu1 %v2812_v42  ;;  %v2687_v3 = vsel %vm1345_vm8, %v2665_v23, %v10644_v40 }
 0x304   : > { %2842 = vmatprep.subr.bf16.mxu1 %v2811_v1  ;;  %2490 = vmatprep.mubr.bf16.mxu0 %v14845_v43 }
 0x305   : > { %3555 = vrot.lane.b32.xlu1 %v10167_v17, %s14806_s20 }
 0x306   : > { %3265 = vrot.lane.b32.xlu0 %v8954_v0, %s9427_s22  ;;  %2719 = vmatpush1.bf16.msra.mxu0 %v2690_v20  ;;  %v2787_v25 = vpop.permute.xlu1 %2786 }
 0x307   : > { %2720 = vmatprep.subr.bf16.mxu0 %v2689_v33  ;;  %2843 = vmatpush1.bf16.msra.mxu1 %v2810_v46  ;;  %v2809_v22 = vsel %vm1448_vm9, %v2787_v25, %v2789_v21  ;;  %v2808_v17 = vsel %vm1448_vm9, %v2785_v31, %v2787_v25 }
 0x308   : > { %8459 = vmatmul.mubr.msk.bf16.gmra.mxu1 %vm1731_vm11, %v8955_v56  ;;  %2844 = vmatprep.subr.bf16.mxu1 %v2809_v22 }
 0x309   : > { %8455 = vmatmul.mubr.msk.bf16.gmra.mxu0 %vm1731_vm11, %v8956_v35  ;;  %3553 = vrot.lane.b32.xlu1 %v14852_v32, %s14806_s20 }
 0x30a   : > { %3407 = vrot.lane.b32.xlu0 %v8954_v0, %s9428_s13  ;;  %2721 = vmatpush1.bf16.msra.mxu0 %v2688_v60  ;;  %v2663_v26 = vpop.permute.xlu1 %2662 }
 0x30b   : > { %2722 = vmatprep.subr.bf16.mxu0 %v2687_v3  ;;  %v2686_v18 = vsel %vm1345_vm8, %v2663_v26, %v2665_v23  ;;  %2845 = vmatpush1.bf16.msra.mxu1 %v2808_v17  ;;  %v10740_v47 = vpop.permute.xlu0 %1606  ;;  %v14873_v3 = vld [vmem:[#allocation23_spill] sm:$0xff] }
 0x30c   : > { %2862 = vmatprep.mubr.bf16.mxu1 %v14845_v43  ;;  %2740 = vmatprep.mubr.bf16.mxu0 %v14845_v43 }
 0x30d   : > { %3961 = vrot.lane.b32.xlu1 %v10711_v14, %s14808_s26 }
 0x30e   : > { %3403 = vrot.lane.b32.xlu0 %v14852_v32, %s9428_s13  ;;  %2723 = vmatpush1.bf16.msra.mxu0 %v2686_v18  ;;  %v14874_v18 = vld [vmem:[#allocation25_spill] sm:$0xff] }
 0x30f   : > { %v10742_v48 = vpop.permute.xlu0 %1596 }
 0x310   : > { %8466 = vmatmul.mubr.msk.bf16.vlgmr.msra.gmra.mxu1 %vm1731_vm11, %v8959_v13 }
 0x311   : > { %8462 = vmatmul.mubr.msk.bf16.vlgmr.msra.gmra.mxu0 %vm1731_vm11, %v8960_v41  ;;  %4111 = vrot.lane.b32.xlu1 %v10711_v14, %s14809_s10 }
 0x312   : > { %3557 = vrot.lane.b32.xlu0 %v8954_v0, %s14806_s20  ;;  %2750 = vmatprep.mubr.bf16.mxu0 %v14845_v43 }
 0x313   : > { %2872 = vmatprep.mubr.bf16.mxu1 %v14845_v43  ;;  %v10744_v62 = vpop.permute.xlu0 %3106 }
 0x314   : > { %14864 = vst [vmem:[#allocation20_spill] sm:$0xff] %v10744_v62 }
 0x315   : > { %3959 = vrot.lane.b32.xlu1 %v10725_v27, %s14808_s26 }
 0x316   : > { %4109 = vrot.lane.b32.xlu0 %v10725_v27, %s14809_s10 }
 0x317   : > { %v10750_v37 = vpop.permute.xlu1 %1601  ;;  %v10752_v40 = vpop.permute.xlu0 %3104 }
 0x318   : > { %8467 = vmatmul.mubr.msk.bf16.gmra.mxu1 %vm1731_vm11, %v8963_v57  ;;  %14865 = vst [vmem:[#allocation17_spill] sm:$0xff] %v10752_v40 }
 0x319   : > { %8463 = vmatmul.mubr.msk.bf16.gmra.mxu0 %vm1731_vm11, %v8962_v8  ;;  %3953 = vrot.lane.b32.xlu1 %v10112_v44, %s14808_s26 }
 0x31a   : > { %4107 = vrot.lane.b32.xlu0 %v10642_v36, %s14809_s10  ;;  %3191 = vmatprep.mubr.bf16.mxu0 %v14845_v43 }
 0x31b   : > { %3341 = vmatprep.mubr.bf16.mxu1 %v14845_v43  ;;  %v1592_v7 = vpop.permute.xlu1 %1591  ;;  %v10758_v11 = vpop.permute.xlu0 %3102 }
 0x31c   : > { %14866 = vst [vmem:[#allocation31_spill] sm:$0xff] %v10758_v11 }
 0x31f   : > { %v10770_v51 = vpop.permute.xlu1 %3108  ;;  %v10772_v49 = vpop.permute.xlu0 %3094 }
 0x320   : > { %14867 = vst [vmem:[#allocation24_spill] sm:$0xff] %v10770_v51  ;;  %14868 = vst [vmem:[#allocation29_spill] sm:$0xff] %v10772_v49 }
 0x323   : > { %v10780_v42 = vpop.permute.xlu1 %3100  ;;  %v10782_v39 = vpop.permute.xlu0 %3092 }
 0x324   : > { %14869 = vst [vmem:[#allocation18_spill] sm:$0xff] %v10780_v42  ;;  %14870 = vst [vmem:[#allocation16_spill] sm:$0xff] %v10782_v39 }
 0x327   : > { %v10790_v46 = vpop.permute.xlu1 %3098  ;;  %v10792_v33 = vpop.permute.xlu0 %3259 }
 0x328   : > { %14871 = vst [vmem:[#allocation35_spill] sm:$0xff] %v10790_v46  ;;  %14872 = vst [vmem:[#allocation32_spill] sm:$0xff] %v10792_v33 }
 0x32b   : > { %v10804_v8 = vpop.permute.xlu1 %3096  ;;  %v10806_v43 = vpop.permute.xlu0 %3401 }
 0x32c   : > { %14875 = vst [vmem:[#allocation19_spill] sm:$0xff] %v10804_v8  ;;  %14876 = vst [vmem:[#allocation33_spill] sm:$0xff] %v10806_v43  ;;  %v14877_v8 = vld [vmem:[#allocation26_spill] sm:$0xff]  ;;  %v14878_v43 = vld [vmem:[#allocation27_spill] sm:$0xff] }
 0x38b   : > { %v1772_v45 = vpop.f32.mrf.mxu1 }
 0x38c   : > { %v1791_v26 = vmul.f32 %v1772_v45, %v14873_v3 }
 0x38d   : > { %v1774_v34 = vpop.f32.mrf.mxu1 }
 0x38e   : > { %v1792_v13 = vmul.f32 %v1774_v34, %v14874_v18  ;;  %v1799_v11 = vadd.f32 %v1791_v26, %v1592_v7 }
 0x38f   : > { %v1776_v61 = vpop.f32.mrf.mxu1 }
 0x390   : > { %v1793_v33 = vmul.f32 %v1776_v61, %v14873_v3  ;;  %v1800_v62 = vadd.f32 %v1792_v13, %v1592_v7 }
 0x391   : > { %v1778_v52 = vpop.f32.mrf.mxu1 }
 0x392   : > { %v1794_v39 = vmul.f32 %v1778_v52, %v14874_v18 }
 0x393   : > { %v1782_v32 = vpop.f32.mrf.mxu1 }
 0x394   : > { %v1795_v49 = vmul.f32 %v1782_v32, %v14873_v3  ;;  %v1801_v32 = vadd.f32 %v1793_v33, %v10742_v48  ;;  %v1802_v36 = vadd.f32 %v1794_v39, %v10742_v48 }
 0x395   : > { %v1784_v12 = vpop.f32.mrf.mxu1 }
 0x396   : > { %v1796_v45 = vmul.f32 %v1784_v12, %v14874_v18  ;;  %v1803_v27 = vadd.f32 %v1795_v49, %v10750_v37 }
 0x397   : > { %v1786_v19 = vpop.f32.mrf.mxu1 }
 0x398   : > { %v1902_v28 = vpop.f32.mrf.mxu0  ;;  %v1797_v34 = vmul.f32 %v1786_v19, %v14873_v3 }
 0x399   : > { %v1788_v5 = vpop.f32.mrf.mxu1  ;;  %v1921_v52 = vadd.f32 %v1902_v28, %v1799_v11  ;;  %v1804_v11 = vadd.f32 %v1796_v45, %v10750_v37 }
 0x39a   : > { %v1904_v24 = vpop.f32.mrf.mxu0  ;;  %v1798_v40 = vmul.f32 %v1788_v5, %v14874_v18  ;;  %v1805_v48 = vadd.f32 %v1797_v34, %v10740_v47 }
 0x39b   : > { %v1922_v6 = vadd.f32 %v1904_v24, %v1800_v62  ;;  %v10834_v62 = vpop.permute.xlu0 %3397 }
 0x39c   : > { %v10746_v55 = vpop.f32.mrf.mxu0  ;;  %v2024_v15 = vpop.f32.mrf.mxu1  ;;  %v1806_v49 = vadd.f32 %v1798_v40, %v10740_v47 }
 0x39d   : > { %v2043_v51 = vmul.f32 %v2024_v15, %v14877_v8  ;;  %v1923_v28 = vadd.f32 %v10746_v55, %v1801_v32 }
 0x39e   : > { %v10748_v16 = vpop.f32.mrf.mxu0  ;;  %v2026_v59 = vpop.f32.mrf.mxu1 }
 0x39f   : > { %v2044_v53 = vmul.f32 %v2026_v59, %v14878_v43  ;;  %v10828_v59 = vpop.permute.xlu1 %3257  ;;  %v2051_v24 = vadd.f32 %v2043_v51, %v1921_v52 }
 0x3a0   : > { %v2028_v9 = vpop.f32.mrf.mxu1  ;;  %v10754_v50 = vpop.f32.mrf.mxu0 }
 0x3a1   : > { %v2045_v19 = vmul.f32 %v2028_v9, %v14877_v8  ;;  %v1924_v9 = vadd.f32 %v10748_v16, %v1802_v36  ;;  %v1925_v26 = vadd.f32 %v10754_v50, %v1803_v27 }
 0x3a2   : > { %v2030_v2 = vpop.f32.mrf.mxu1  ;;  %v10760_v54 = vpop.f32.mrf.mxu0 }
 0x3a3   : > { %v2046_v5 = vmul.f32 %v2030_v2, %v14878_v43  ;;  %v2052_v2 = vadd.f32 %v2044_v53, %v1922_v6  ;;  %v2053_v13 = vadd.f32 %v2045_v19, %v1923_v28  ;;  %v1926_v51 = vadd.f32 %v10760_v54, %v1804_v11  ;;  %v10856_v34 = vpop.permute.xlu1 %3399 }
 0x3a4   : > { %v10756_v10 = vpop.f32.mrf.mxu1  ;;  %v10766_v58 = vpop.f32.mrf.mxu0 }
 0x3a5   : > { %v2047_v55 = vmul.f32 %v10756_v10, %v14877_v8  ;;  %v2054_v36 = vadd.f32 %v2046_v5, %v1924_v9  ;;  %v1927_v6 = vadd.f32 %v10766_v58, %v1805_v48 }
 0x3a6   : > { %v10762_v4 = vpop.f32.mrf.mxu1  ;;  %v10774_v29 = vpop.f32.mrf.mxu0 }
 0x3a7   : > { %v2048_v37 = vmul.f32 %v10762_v4, %v14878_v43  ;;  %v2055_v58 = vadd.f32 %v2047_v55, %v1925_v26  ;;  %v1928_v52 = vadd.f32 %v10774_v29, %v1806_v49 }
 0x3a8   : > { %v10764_v30 = vpop.f32.mrf.mxu1 }
 0x3a9   : > { %v2049_v16 = vmul.f32 %v10764_v30, %v14877_v8  ;;  %v2056_v30 = vadd.f32 %v2048_v37, %v1926_v51 }
 0x3aa   : > { %v10768_v63 = vpop.f32.mrf.mxu1 }
 0x3ab   : > { %v2050_v27 = vmul.f32 %v10768_v63, %v14878_v43  ;;  %v10859_v63 = vpop.permute.xlu0 %3253 }
 0x3ad   : > { %v2058_v28 = vadd.f32 %v2050_v27, %v1928_v52 }
 0x3ae   : > { %v10776_v38 = vpop.f32.mrf.mxu1 }
 0x3b0   : > { %v2154_v21 = vpop.f32.mrf.mxu0  ;;  %v10778_v0 = vpop.f32.mrf.mxu1 }
 0x3b1   : > { %v2173_v7 = vmul.f32 %v2154_v21, %v14873_v3 }
 0x3b2   : > { %v2156_v23 = vpop.f32.mrf.mxu0  ;;  %v10784_v1 = vpop.f32.mrf.mxu1 }
 0x3b3   : > { %v2174_v21 = vmul.f32 %v2156_v23, %v14874_v18  ;;  %v2181_v53 = vadd.f32 %v2173_v7, %v2051_v24  ;;  %v2057_v7 = vadd.f32 %v2049_v16, %v1927_v6 }
 0x3b4   : > { %v2158_v56 = vpop.f32.mrf.mxu0  ;;  %v10786_v20 = vpop.f32.mrf.mxu1 }
 0x3b5   : > { %v2175_v47 = vmul.f32 %v2158_v56, %v14873_v3  ;;  %v2182_v4 = vadd.f32 %v2174_v21, %v2052_v2 }
 0x3b6   : > { %v2160_v35 = vpop.f32.mrf.mxu0  ;;  %v10788_v31 = vpop.f32.mrf.mxu1 }
 0x3b7   : > { %v2176_v50 = vmul.f32 %v2160_v35, %v14874_v18  ;;  %v2183_v32 = vadd.f32 %v2175_v47, %v2053_v13  ;;  %v2312_v2 = vadd.f32 %v10778_v0, %v2182_v4 }
 0x3b8   : > { %v2164_v25 = vpop.f32.mrf.mxu0  ;;  %v10794_v22 = vpop.f32.mrf.mxu1 }
 0x3b9   : > { %v2177_v23 = vmul.f32 %v2164_v25, %v14873_v3  ;;  %v2184_v11 = vadd.f32 %v2176_v50, %v2054_v36 }
 0x3ba   : > { %v2166_v17 = vpop.f32.mrf.mxu0  ;;  %v10796_v60 = vpop.f32.mrf.mxu1 }
 0x3bb   : > { %v2178_v56 = vmul.f32 %v2166_v17, %v14874_v18  ;;  %v2311_v17 = vadd.f32 %v10776_v38, %v2181_v53  ;;  %v2185_v49 = vadd.f32 %v2177_v23, %v2055_v58  ;;  %v2314_v51 = vadd.f32 %v10786_v20, %v2184_v11  ;;  %v10876_v53 = vpop.permute.xlu0 %3395 }
 0x3bc   : > { %v10800_v41 = vpop.f32.mrf.mxu0  ;;  %v10802_v57 = vpop.f32.mrf.mxu1 }
 0x3bd   : > { %v2179_v35 = vmul.f32 %v10800_v41, %v14873_v3  ;;  %v2186_v24 = vadd.f32 %v2178_v56, %v2056_v30  ;;  %v2313_v41 = vadd.f32 %v10784_v1, %v2183_v32  ;;  %v2315_v6 = vadd.f32 %v10788_v31, %v2185_v49 }
 0x3be   : > { %v2170_v46 = vpop.f32.mrf.mxu0  ;;  %v10811_v42 = vpop.f32.mrf.mxu1 }
 0x3bf   : > { %v2180_v25 = vmul.f32 %v2170_v46, %v14874_v18  ;;  %v2187_v26 = vadd.f32 %v2179_v35, %v2057_v7  ;;  %v2631_v55 = vmul.f32 %v10811_v42, %v14873_v3  ;;  %v2316_v16 = vadd.f32 %v10794_v22, %v2186_v24 }
 0x3c0   : > { %v10818_v61 = vpop.f32.mrf.mxu1 }
 0x3c1   : > { %v2482_v12 = vpop.f32.mrf.mxu0  ;;  %v2632_v1 = vmul.f32 %v10818_v61, %v14874_v18  ;;  %v2317_v56 = vadd.f32 %v10796_v60, %v2187_v26 }
 0x3c2   : > { %v10826_v15 = vpop.f32.mrf.mxu1  ;;  %v2501_v54 = vmul.f32 %v2482_v12, %v14877_v8 }
 0x3c3   : > { %v2484_v39 = vpop.f32.mrf.mxu0  ;;  %v2633_v50 = vmul.f32 %v10826_v15, %v14873_v3 }
 0x3c4   : > { %v10838_v33 = vpop.f32.mrf.mxu1  ;;  %v2502_v12 = vmul.f32 %v2484_v39, %v14878_v43  ;;  %v2509_v9 = vadd.f32 %v2501_v54, %v2311_v17  ;;  %v2188_v39 = vadd.f32 %v2180_v25, %v2058_v28 }
 0x3c5   : > { %v2486_v40 = vpop.f32.mrf.mxu0  ;;  %v2634_v22 = vmul.f32 %v10838_v33, %v14874_v18 }
 0x3c6   : > { %v2503_v29 = vmul.f32 %v2486_v40, %v14877_v8  ;;  %v2510_v37 = vadd.f32 %v2502_v12, %v2312_v2  ;;  %v10872_v40 = vpop.permute.xlu1 %3255  ;;  %v2639_v27 = vadd.f32 %v2631_v55, %v2509_v9  ;;  %v2318_v54 = vadd.f32 %v10802_v57, %v2188_v39 }
 0x3c7   : > { %v2488_v10 = vpop.f32.mrf.mxu0 }
 0x3c8   : > { %v2622_v45 = vpop.f32.mrf.mxu1  ;;  %v2504_v46 = vmul.f32 %v2488_v10, %v14878_v43  ;;  %v2511_v13 = vadd.f32 %v2503_v29, %v2313_v41  ;;  %v2640_v31 = vadd.f32 %v2632_v1, %v2510_v37 }
 0x3c9   : > { %v2492_v19 = vpop.f32.mrf.mxu0  ;;  %v2635_v52 = vmul.f32 %v2622_v45, %v14873_v3  ;;  %v10897_v45 = vpop.permute.xlu0 %3391 }
 0x3ca   : > { %v2624_v5 = vpop.f32.mrf.mxu1  ;;  %v2505_v0 = vmul.f32 %v2492_v19, %v14877_v8  ;;  %v2512_v10 = vadd.f32 %v2504_v46, %v2314_v51  ;;  %v2641_v32 = vadd.f32 %v2633_v50, %v2511_v13  ;;  %v10893_v12 = vpop.permute.xlu1 %3251 }
 0x3cb   : > { %v2494_v48 = vpop.f32.mrf.mxu0  ;;  %v2636_v57 = vmul.f32 %v2624_v5, %v14874_v18 }
 0x3cc   : > { %v2626_v21 = vpop.f32.mrf.mxu1  ;;  %v2506_v20 = vmul.f32 %v2494_v48, %v14878_v43  ;;  %v2513_v30 = vadd.f32 %v2505_v0, %v2315_v6  ;;  %v2642_v11 = vadd.f32 %v2634_v22, %v2512_v10 }
 0x3cd   : > { %v2496_v38 = vpop.f32.mrf.mxu0  ;;  %v2637_v2 = vmul.f32 %v2626_v21, %v14873_v3 }
 0x3ce   : > { %v2628_v47 = vpop.f32.mrf.mxu1  ;;  %v2507_v19 = vmul.f32 %v2496_v38, %v14877_v8  ;;  %v2514_v7 = vadd.f32 %v2506_v20, %v2316_v16  ;;  %v2643_v5 = vadd.f32 %v2635_v52, %v2513_v30 }
 0x3cf   : > { %v2498_v36 = vpop.f32.mrf.mxu0  ;;  %v2638_v41 = vmul.f32 %v2628_v47, %v14874_v18 }
 0x3d0   : > { %v2864_v42 = vpop.f32.mrf.mxu1  ;;  %v2508_v28 = vmul.f32 %v2498_v36, %v14878_v43  ;;  %v2515_v38 = vadd.f32 %v2507_v19, %v2317_v56  ;;  %v2644_v36 = vadd.f32 %v2636_v57, %v2514_v7 }
 0x3d1   : > { %v2883_v4 = vmul.f32 %v2864_v42, %v14877_v8  ;;  %v2742_v23 = vpop.f32.mrf.mxu0  ;;  %v10908_v42 = vpop.permute.xlu1 %3393 }
 0x3d2   : > { %v2761_v61 = vadd.f32 %v2742_v23, %v2639_v27  ;;  %v2866_v58 = vpop.f32.mrf.mxu1  ;;  %v2516_v1 = vadd.f32 %v2508_v28, %v2318_v54  ;;  %v10913_v23 = vpop.permute.xlu0 %3247 }
 0x3d3   : > { %v2744_v15 = vpop.f32.mrf.mxu0  ;;  %v2884_v25 = vmul.f32 %v2866_v58, %v14878_v43 }
 0x3d4   : > { %v2891_v35 = vadd.f32 %v2883_v4, %v2761_v61  ;;  %v2762_v17 = vadd.f32 %v2744_v15, %v2640_v31  ;;  %v2868_v60 = vpop.f32.mrf.mxu1  ;;  %v2645_v61 = vadd.f32 %v2637_v2, %v2515_v38  ;;  %v2646_v19 = vadd.f32 %v2638_v41, %v2516_v1 }
 0x3d5   : > { %v2746_v33 = vpop.f32.mrf.mxu0  ;;  %v2885_v49 = vmul.f32 %v2868_v60, %v14877_v8 }
 0x3d6   : > { %v2907_v29 = vmul.f32 0.01, %v2891_v35  ;;  %v2892_v48 = vadd.f32 %v2884_v25, %v2762_v17  ;;  %v2763_v24 = vadd.f32 %v2746_v33, %v2641_v32  ;;  %v2870_v9 = vpop.f32.mrf.mxu1  ;;  %vm2899_vm12 = vcmp.ge.f32.partialorder %v2891_v35, 0.0  ;;  %v10917_v33 = vpop.permute.xlu1 %3249 }
 0x3d7   : > { %v2748_v46 = vpop.f32.mrf.mxu0  ;;  %v2886_v37 = vmul.f32 %v2870_v9, %v14878_v43 }
 0x3d8   : > { %vm2900_vm13 = vcmp.ge.f32.partialorder %v2892_v48, 0.0  ;;  %v2908_v26 = vmul.f32 0.01, %v2892_v48  ;;  %v2893_v39 = vadd.f32 %v2885_v49, %v2763_v24  ;;  %v2874_v55 = vpop.f32.mrf.mxu1  ;;  %v2764_v13 = vadd.f32 %v2748_v46, %v2642_v11 }
 0x3d9   : > { %v2752_v51 = vpop.f32.mrf.mxu0  ;;  %v2887_v0 = vmul.f32 %v2874_v55, %v14877_v8  ;;  %v10904_v6 = vsel %vm2899_vm12, %v2891_v35, %v2907_v29 }
 0x3da   : > { %v10906_v21 = vsel %vm2900_vm13, %v2892_v48, %v2908_v26  ;;  %v2765_v47 = vadd.f32 %v2752_v51, %v2643_v5  ;;  %v2876_v16 = vpop.f32.mrf.mxu1  ;;  %v2909_v50 = vmul.f32 0.01, %v2893_v39  ;;  %v2894_v10 = vadd.f32 %v2886_v37, %v2764_v13  ;;  %v10919_v48 = vpop.permute.xlu0 %3389 }
 0x3db   : > { %v8772_v27 = vpack.c.bf16 %v10906_v21, %v10904_v6  ;;  %v2754_v20 = vpop.f32.mrf.mxu0  ;;  %v2888_v4 = vmul.f32 %v2876_v16, %v14878_v43  ;;  %vm2901_vm14 = vcmp.ge.f32.partialorder %v2893_v39, 0.0  ;;  %v10921_v5 = vpop.permute.xlu1 %3245  ;;  %vm3152_vm13 = vcmask 785408  }
 0x3dc   : > { %v2895_v56 = vadd.f32 %v2887_v0, %v2765_v47  ;;  %v2766_v54 = vadd.f32 %v2754_v20, %v2644_v36  ;;  %v2878_v58 = vpop.f32.mrf.mxu1  ;;  %vm2902_vm15 = vcmp.ge.f32.partialorder %v2894_v10, 0.0  ;;  %v2910_v31 = vmul.f32 0.01, %v2894_v10  ;;  %v10938_v47 = vld [vmem:[#allocation2 + $0x80] ss:$16 sps:$4 sm:$0xff]  }
 0x3dd   : > { %2947 = vst [vmem:[#allocation2 + $0x84] sm:$0xff] %v8772_v27  ;;  %v2756_v22 = vpop.f32.mrf.mxu0  ;;  %v2889_v52 = vmul.f32 %v2878_v58, %v14877_v8  ;;  %v2917_v25 = vsel %vm2901_vm14, %v2893_v39, %v2909_v50  ;;  %v9190_v8 = vld [vmem:[#allocation2 + $0x8c] ss:$16 sps:$4 sm:$0xff]  }
 0x3de   : > { %v2911_v30 = vmul.f32 0.01, %v2895_v56  ;;  %v2896_v15 = vadd.f32 %v2888_v4, %v2766_v54  ;;  %v2767_v32 = vadd.f32 %v2756_v22, %v2645_v61  ;;  %v2880_v35 = vpop.f32.mrf.mxu1  ;;  %v2918_v17 = vsel %vm2902_vm15, %v2894_v10, %v2910_v31  ;;  %v10923_v39 = vpop.permute.xlu0 %3385 }
 0x3df   : > { %vm2903_vm0 = vcmp.ge.f32.partialorder %v2895_v56, 0.0  ;;  %v2758_v60 = vpop.f32.mrf.mxu0  ;;  %v2890_v57 = vmul.f32 %v2880_v35, %v14878_v43  ;;  %v8773_v7 = vpack.c.bf16 %v2918_v17, %v2917_v25  ;;  %v10934_v36 = vpop.permute.xlu1 %3387  ;;  %v10962_v20 = vpack.c.bf16 %v2918_v17, %v10906_v21  ;;  %v8975_v17 = vld [vmem:[#allocation2 + $0xa0] ss:$16 sps:$4 sm:$0xff]  }
 0x3e0   : > { %vm2904_vm10 = vcmp.ge.f32.partialorder %v2896_v15, 0.0  ;;  %v2912_v28 = vmul.f32 0.01, %v2896_v15  ;;  %v2897_v11 = vadd.f32 %v2889_v52, %v2767_v32  ;;  %v2768_v29 = vadd.f32 %v2758_v60, %v2646_v19  ;;  %v10990_v52 = vld [vmem:[#allocation2 + $0x28] ss:$16 sps:$4 sm:$0xff]  }
 0x3e1   : > { %2948 = vst [vmem:[#allocation2 + $0x94] sm:$0xff] %v8773_v7  ;;  %v2919_v49 = vsel %vm2903_vm0, %v2895_v56, %v2911_v30  ;;  %v10979_v21 = vpack.c.bf16 %v2917_v25, %v10904_v6  ;;  %v10999_v6 = vld [vmem:[#allocation2 + $0x2c] ss:$16 sps:$4 sm:$0xff]   ;;  %v11007_v19 = vld [vmem:[#allocation2 + $0x24] ss:$16 sps:$4 sm:$0xff]  }
 0x3e2   : > { %v2920_v24 = vsel %vm2904_vm10, %v2896_v15, %v2912_v28  ;;  %v2913_v2 = vmul.f32 0.01, %v2897_v11  ;;  %v2898_v41 = vadd.f32 %v2890_v57, %v2768_v29  ;;  %vm2905_vm11 = vcmp.ge.f32.partialorder %v2897_v11, 0.0  ;;  %v10936_v1 = vpop.permute.xlu0 %3549  ;;  %v11020_v60 = vld [vmem:[#allocation2 + $0x8] ss:$16 sps:$4 sm:$0xff]  }
 0x3e3   : > { %v8774_v9 = vpack.c.bf16 %v2920_v24, %v2919_v49  ;;  %v10944_v16 = vpop.permute.xlu1 %3243  ;;  %14887 = vst [vmem:[#allocation43_spill] sm:$0xff] %v11020_v60  ;;  %v11039_v29 = vld [vmem:[#allocation2 + $0xc] ss:$16 sps:$4 sm:$0xff]  }
 0x3e4   : > { %vm2906_vm12 = vcmp.ge.f32.partialorder %v2898_v41, 0.0  ;;  %v2914_v46 = vmul.f32 0.01, %v2898_v41  ;;  %v2921_v38 = vsel %vm2905_vm11, %v2897_v11, %v2913_v2  ;;  %v11052_v2 = vld [vmem:[#allocation2 + $0x4] ss:$16 sps:$4 sm:$0xff]  }
 0x3e5   : > { %2949 = vst [vmem:[#allocation2 + $0xa4] sm:$0xff] %v8774_v9  ;;  %v10929_v0 = vpack.c.bf16 %v2921_v38, %v2919_v49  ;;  %14891 = vst [vmem:[#allocation47_spill] sm:$0xff] %v11052_v2 }
 0x3e6   : > { %v2922_v26 = vsel %vm2906_vm12, %v2898_v41, %v2914_v46  ;;  %v10948_v27 = vpop.permute.xlu0 %3547 }
 0x3e7   : > { %v8775_v55 = vpack.c.bf16 %v2922_v26, %v2921_v38  ;;  %v10927_v51 = vpack.c.bf16 %v2922_v26, %v2920_v24  ;;  %v10954_v50 = vpop.permute.xlu1 %3551  ;;  %v9189_v26 = vld [vmem:[#allocation2 + $0xac] ss:$16 sps:$4 sm:$0xff]  }
 0x3e8   : > { %v8964_v37 = vld [vmem:[#allocation2 + $0x88] ss:$16 sps:$4 sm:$0xff]   ;;  %v10925_v13 = vld [vmem:[#allocation2 + $0x84] ss:$16 sps:$4 sm:$0xff]  }
 0x3e9   : > { %2950 = vst [vmem:[#allocation2 + $0xb4] sm:$0xff] %v8775_v55  ;;  %3120 = vrot.lane.b32.xlu1 %v8964_v37, %s9426_s12  ;;  %3118 = vrot.lane.b32.xlu0 %v10925_v13, %s9426_s12 }
 0x3ea   : > { %v10956_v10 = vpop.permute.xlu0 %3545 }
 0x3eb   : > { %v10964_v4 = vpop.permute.xlu1 %3543 }
 0x3ed   : > { %3269 = vrot.lane.b32.xlu1 %v10925_v13, %s9427_s22  ;;  %3116 = vrot.lane.b32.xlu0 %v10938_v47, %s9426_s12 }
 0x3ee   : > { %v10968_v56 = vpop.permute.xlu0 %3537 }
 0x3ef   : > { %14879 = vst [vmem:[#allocation28_spill] sm:$0xff] %v10968_v56  ;;  %v10976_v54 = vpop.permute.xlu1 %3541 }
 0x3f0   : > { %v8968_v58 = vld [vmem:[#allocation2 + $0xa4] ss:$16 sps:$4 sm:$0xff]   ;;  %v8970_v31 = vld [vmem:[#allocation2 + $0xa8] ss:$16 sps:$4 sm:$0xff]  }
 0x3f1   : > { %3411 = vrot.lane.b32.xlu1 %v10925_v13, %s9428_s13  ;;  %3271 = vrot.lane.b32.xlu0 %v8964_v37, %s9427_s22 }
 0x3f2   : > { %v10981_v61 = vpop.permute.xlu0 %3535 }
 0x3f3   : > { %14880 = vst [vmem:[#allocation34_spill] sm:$0xff] %v10981_v61  ;;  %v10987_v22 = vpop.permute.xlu1 %3539 }
 0x3f4   : > { %14881 = vst [vmem:[#allocation37_spill] sm:$0xff] %v10987_v22 }
 0x3f5   : > { %3267 = vrot.lane.b32.xlu1 %v10938_v47, %s9427_s22  ;;  %3413 = vrot.lane.b32.xlu0 %v8964_v37, %s9428_s13 }
 0x3f6   : > { %v10992_v30 = vpop.permute.xlu0 %3975 }
 0x3f7   : > { %14882 = vst [vmem:[#allocation38_spill] sm:$0xff] %v10992_v30  ;;  %v11001_v15 = vpop.permute.xlu1 %3955 }
 0x3f8   : > { %14883 = vst [vmem:[#allocation39_spill] sm:$0xff] %v11001_v15 }
 0x3f9   : > { %3563 = vrot.lane.b32.xlu1 %v8964_v37, %s14806_s20  ;;  %3409 = vrot.lane.b32.xlu0 %v10938_v47, %s9428_s13 }
 0x3fa   : > { %v11003_v32 = vpop.permute.xlu0 %4125 }
 0x3fb   : > { %14884 = vst [vmem:[#allocation40_spill] sm:$0xff] %v11003_v32  ;;  %v11011_v35 = vpop.permute.xlu1 %4105 }
 0x3fc   : > { %14885 = vst [vmem:[#allocation41_spill] sm:$0xff] %v11011_v35  ;;  %v14895_v35 = vld [vmem:[#allocation36_spill] sm:$0xff] }
 0x3fd   : > { %3967 = vrot.lane.b32.xlu1 %v10962_v20, %s14808_s26  ;;  %3561 = vrot.lane.b32.xlu0 %v10925_v13, %s14806_s20 }
 0x3fe   : > { %v11015_v25 = vpop.permute.xlu0 %3969 }
 0x3ff   : > { %14886 = vst [vmem:[#allocation42_spill] sm:$0xff] %v11015_v25  ;;  %v11024_v57 = vpop.permute.xlu1 %3112 }
 0x401   : > { %4117 = vrot.lane.b32.xlu1 %v10962_v20, %s14809_s10  ;;  %3559 = vrot.lane.b32.xlu0 %v10938_v47, %s14806_s20 }
 0x402   : > { %v11026_v7 = vpop.permute.xlu0 %4119 }
 0x403   : > { %14888 = vst [vmem:[#allocation44_spill] sm:$0xff] %v11026_v7  ;;  %v11031_v28 = vpop.permute.xlu1 %3110 }
 0x405   : > { %3965 = vrot.lane.b32.xlu1 %v10979_v21, %s14808_s26  ;;  %4115 = vrot.lane.b32.xlu0 %v10979_v21, %s14809_s10 }
 0x406   : > { %v11034_v11 = vpop.permute.xlu0 %3963 }
 0x407   : > { %14889 = vst [vmem:[#allocation45_spill] sm:$0xff] %v11034_v11  ;;  %v11041_v49 = vpop.permute.xlu1 %3263 }
 0x409   : > { %3124 = vrot.lane.b32.xlu1 %v8968_v58, %s9426_s12  ;;  %3126 = vrot.lane.b32.xlu0 %v8970_v31, %s9426_s12 }
 0x40a   : > { %v11043_v24 = vpop.permute.xlu0 %4113 }
 0x40b   : > { %14890 = vst [vmem:[#allocation46_spill] sm:$0xff] %v11043_v24  ;;  %v11048_v9 = vpop.permute.xlu1 %3405 }
 0x40d   : > { %3949 = vrot.lane.b32.xlu1 %v10990_v52, %s14808_s26  ;;  %4103 = vrot.lane.b32.xlu0 %v10112_v44, %s14809_s10 }
 0x40e   : > { %v11054_v41 = vpop.permute.xlu0 %3957 }
 0x40f   : > { %14892 = vst [vmem:[#allocation48_spill] sm:$0xff] %v11054_v41  ;;  %v11062_v46 = vpop.permute.xlu1 %3261  ;;  %v14897_v41 = vld [vmem:[#allocation30_spill] sm:$0xff] }
 0x411   : > { %4099 = vrot.lane.b32.xlu1 %v10990_v52, %s14809_s10  ;;  %3951 = vrot.lane.b32.xlu0 %v10999_v6, %s14808_s26 }
 0x412   : > { %v11064_v38 = vpop.permute.xlu0 %3114 }
 0x413   : > { %v11068_v55 = vpop.permute.xlu1 %3555 }
 0x415   : > { %3947 = vrot.lane.b32.xlu1 %v11007_v19, %s14808_s26  ;;  %4101 = vrot.lane.b32.xlu0 %v10999_v6, %s14809_s10 }
 0x416   : > { %v11072_v37 = vpop.permute.xlu0 %3265 }
 0x417   : > { %v11078_v43 = vpop.permute.xlu1 %3553 }
 0x419   : > { %3122 = vrot.lane.b32.xlu1 %v8975_v17, %s9426_s12  ;;  %4097 = vrot.lane.b32.xlu0 %v11007_v19, %s14809_s10 }
 0x41b   : > { %v11085_v18 = vpop.permute.xlu1 %3961 }
 0x41c   : > { %14893 = vst [vmem:[#allocation49_spill] sm:$0xff] %v11085_v18 }
 0x41d   : > { %3943 = vrot.lane.b32.xlu1 %v11020_v60, %s14808_s26  ;;  %3277 = vrot.lane.b32.xlu0 %v8970_v31, %s9427_s22 }
 0x421   : > { %3275 = vrot.lane.b32.xlu1 %v8968_v58, %s9427_s22  ;;  %3419 = vrot.lane.b32.xlu0 %v8970_v31, %s9428_s13 }
 0x425   : > { %3417 = vrot.lane.b32.xlu1 %v8968_v58, %s9428_s13  ;;  %3415 = vrot.lane.b32.xlu0 %v8975_v17, %s9428_s13 }
 0x429   : > { %3273 = vrot.lane.b32.xlu1 %v8975_v17, %s9427_s22  ;;  %3945 = vrot.lane.b32.xlu0 %v11039_v29, %s14808_s26 }
 0x42d   : > { %4093 = vrot.lane.b32.xlu1 %v11020_v60, %s14809_s10  ;;  %4095 = vrot.lane.b32.xlu0 %v11039_v29, %s14809_s10 }
 0x431   : > { %3941 = vrot.lane.b32.xlu1 %v11052_v2, %s14808_s26  ;;  %4091 = vrot.lane.b32.xlu0 %v11052_v2, %s14809_s10 }
 0x435   : > { %3567 = vrot.lane.b32.xlu1 %v8968_v58, %s14806_s20  ;;  %4275 = vrot.lane.b32.xlu0 %v9189_v26, %s9432_s19  ;;  %v11080_v58 = vpop.permute.xlu0 %3407 }
 0x439   : > { %4267 = vrot.lane.b32.xlu1 %v10962_v20, %s9432_s19  ;;  %3569 = vrot.lane.b32.xlu0 %v8970_v31, %s14806_s20  ;;  %v11089_v31 = vpop.permute.xlu0 %3403 }
 0x43d   : > { %4409 = vrot.lane.b32.xlu1 %v10962_v20, %s9433_s24  ;;  %4417 = vrot.lane.b32.xlu0 %v9189_v26, %s9433_s24  ;;  %v11095_v26 = vpop.permute.xlu1 %4111  ;;  %v11097_v3 = vpop.permute.xlu0 %3557 }
 0x43e   : > { %14894 = vst [vmem:[#allocation50_spill] sm:$0xff] %v11095_v26 }
 0x441   : > { %4265 = vrot.lane.b32.xlu1 %v10979_v21, %s9432_s19  ;;  %4269 = vrot.lane.b32.xlu0 %v9190_v8, %s9432_s19  ;;  %v11103_v15 = vpop.permute.xlu1 %3959 }
 0x442   : > { %14896 = vst [vmem:[#allocation36_spill] sm:$0xff] %v11103_v15 }
 0x445   : > { %4261 = vrot.lane.b32.xlu1 %v10711_v14, %s9432_s19  ;;  %4411 = vrot.lane.b32.xlu0 %v9190_v8, %s9433_s24  ;;  %v11107_v8 = vpop.permute.xlu0 %4109 }
 0x446   : > { %14898 = vst [vmem:[#allocation30_spill] sm:$0xff] %v11107_v8 }
 0x449   : > { %3565 = vrot.lane.b32.xlu1 %v8975_v17, %s14806_s20  ;;  %4407 = vrot.lane.b32.xlu0 %v10979_v21, %s9433_s24  ;;  %v9191_v17 = vld [vmem:[#allocation2 + $0x6c] ss:$16 sps:$4 sm:$0xff]   ;;  %v11116_v26 = vpop.permute.xlu0 %4107 }
 0x44a   : > { %14900 = vst [vmem:[#allocation52_spill] sm:$0xff] %v11116_v26  ;;  %v14902_v26 = vld [vmem:[#allocation22_spill] sm:$0xff] }
 0x44d   : > { %4403 = vrot.lane.b32.xlu1 %v10711_v14, %s9433_s24  ;;  %4263 = vrot.lane.b32.xlu0 %v14895_v35, %s9432_s19  ;;  %v11114_v14 = vpop.permute.xlu1 %3953 }
 0x44e   : > { %14899 = vst [vmem:[#allocation51_spill] sm:$0xff] %v11114_v14 }
 0x451   : > { %4259 = vrot.lane.b32.xlu1 %v14897_v41, %s9432_s19  ;;  %4405 = vrot.lane.b32.xlu0 %v9191_v17, %s9433_s24  ;;  %v14901_v17 = vld [vmem:[#allocation21_spill] sm:$0xff] }
 0x455   : > { %3973 = vrot.lane.b32.xlu1 %v10927_v51, %s14808_s26  ;;  %4121 = vrot.lane.b32.xlu0 %v10929_v0, %s14809_s10 }
 0x459   : > { %4123 = vrot.lane.b32.xlu1 %v10927_v51, %s14809_s10  ;;  %4401 = vrot.lane.b32.xlu0 %v14897_v41, %s9433_s24 }
 0x45b   : > { %v3121_v35 = vpop.permute.xlu1 %3120  ;;  %v11122_v8 = vpop.permute.xlu0 %3118 }
 0x45d   : > { %3971 = vrot.lane.b32.xlu1 %v10929_v0, %s14808_s26  ;;  %4257 = vrot.lane.b32.xlu0 %v14901_v17, %s9432_s19 }
 0x45f   : > { %v11128_v15 = vpop.permute.xlu1 %3269  ;;  %v3117_v14 = vpop.permute.xlu0 %3116 }
 0x461   : > { %4255 = vrot.lane.b32.xlu1 %v14902_v26, %s9432_s19  ;;  %4399 = vrot.lane.b32.xlu0 %v14901_v17, %s9433_s24 }
 0x463   : > { %v11134_v24 = vpop.permute.xlu1 %3411  ;;  %v11136_v41 = vpop.permute.xlu0 %3271 }
 0x465   : > { %4397 = vrot.lane.b32.xlu1 %v14902_v26, %s9433_s24  ;;  %4395 = vrot.lane.b32.xlu0 %v10112_v44, %s9433_s24 }
 0x467   : > { %v11142_v18 = vpop.permute.xlu1 %3267  ;;  %v11144_v11 = vpop.permute.xlu0 %3413 }
 0x469   : > { %4253 = vrot.lane.b32.xlu1 %v10112_v44, %s9432_s19  ;;  %4251 = vrot.lane.b32.xlu0 %v10999_v6, %s9432_s19 }
 0x46b   : > { %v11150_v17 = vpop.permute.xlu1 %3563  ;;  %v11152_v7 = vpop.permute.xlu0 %3409 }
 0x46d   : > { %4249 = vrot.lane.b32.xlu1 %v10990_v52, %s9432_s19  ;;  %4413 = vrot.lane.b32.xlu0 %v10929_v0, %s9433_s24 }
 0x46f   : > { %v11158_v26 = vpop.permute.xlu1 %3967  ;;  %v11160_v25 = vpop.permute.xlu0 %3561 }
 0x470   : > { %14903 = vst [vmem:[#allocation21_spill] sm:$0xff] %v11158_v26 }
 0x471   : > { %4273 = vrot.lane.b32.xlu1 %v10927_v51, %s9432_s19  ;;  %4393 = vrot.lane.b32.xlu0 %v10999_v6, %s9433_s24 }
 0x473   : > { %v11166_v44 = vpop.permute.xlu1 %4117  ;;  %v11168_v32 = vpop.permute.xlu0 %3559 }
 0x474   : > { %14904 = vst [vmem:[#allocation22_spill] sm:$0xff] %v11166_v44 }
 0x475   : > { %4415 = vrot.lane.b32.xlu1 %v10927_v51, %s9433_s24  ;;  %4389 = vrot.lane.b32.xlu0 %v11007_v19, %s9433_s24 }
 0x477   : > { %v11174_v30 = vpop.permute.xlu1 %3965  ;;  %v11176_v26 = vpop.permute.xlu0 %4115 }
 0x478   : > { %14905 = vst [vmem:[#allocation53_spill] sm:$0xff] %v11174_v30  ;;  %14906 = vst [vmem:[#allocation54_spill] sm:$0xff] %v11176_v26 }
 0x479   : > { %4271 = vrot.lane.b32.xlu1 %v10929_v0, %s9432_s19  ;;  %4245 = vrot.lane.b32.xlu0 %v11039_v29, %s9432_s19 }
 0x47b   : > { %v3125_v6 = vpop.permute.xlu1 %3124  ;;  %v3127_v44 = vpop.permute.xlu0 %3126 }
 0x47c   : > { %v3139_v61 = vsel %vm524_vm1, %v3125_v6, %v3127_v44  ;;  %v8475_v44 = vld [vmem:[%s14581_s6 + $0x58] sm:$0xff] }
 0x47d   : > { %4391 = vrot.lane.b32.xlu1 %v10990_v52, %s9433_s24  ;;  %4387 = vrot.lane.b32.xlu0 %v11039_v29, %s9433_s24  ;;  %v8473_v29 = vld [vmem:[%s14581_s6 + $0x48] sm:$0xff] }
 0x47e   : > { %3163 = vmatprep.subr.bf16.mxu0 %v3139_v61 }
 0x47f   : > { %v11187_v30 = vpop.permute.xlu1 %3949  ;;  %v11189_v26 = vpop.permute.xlu0 %4103 }
 0x480   : > { %14907 = vst [vmem:[#allocation55_spill] sm:$0xff] %v11187_v30  ;;  %14908 = vst [vmem:[#allocation56_spill] sm:$0xff] %v11189_v26 }
 0x481   : > { %4247 = vrot.lane.b32.xlu1 %v11007_v19, %s9432_s19  ;;  %4383 = vrot.lane.b32.xlu0 %v11052_v2, %s9433_s24 }
 0x483   : > { %v11195_v56 = vpop.permute.xlu1 %4099  ;;  %v11200_v22 = vpop.permute.xlu0 %3951 }
 0x484   : > { %14909 = vst [vmem:[#allocation57_spill] sm:$0xff] %v11195_v56  ;;  %14910 = vst [vmem:[#allocation58_spill] sm:$0xff] %v11200_v22  ;;  %v8565_v22 = vld [vmem:[%s14581_s6 + $0x68] sm:$0xff] }
 0x485   : > { %4243 = vrot.lane.b32.xlu1 %v11020_v60, %s9432_s19  ;;  %2973 = vperm.xlu0 %8878, %v8475_v44  }
 0x487   : > { %v11204_v61 = vpop.permute.xlu1 %3947  ;;  %v11209_v30 = vpop.permute.xlu0 %4101 }
 0x488   : > { %14911 = vst [vmem:[#allocation59_spill] sm:$0xff] %v11204_v61  ;;  %14912 = vst [vmem:[#allocation60_spill] sm:$0xff] %v11209_v30  ;;  %v3137_v61 = vsel %vm524_vm1, %v11122_v8, %v3121_v35 }
 0x489   : > { %4385 = vrot.lane.b32.xlu1 %v11020_v60, %s9433_s24  ;;  %2963 = vperm.xlu0 %8878, %v8473_v29   ;;  %v8474_v29 = vld [vmem:[%s14581_s6 + $0x50] sm:$0xff] }
 0x48b   : > { %v3123_v56 = vpop.permute.xlu1 %3122  ;;  %v11217_v44 = vpop.permute.xlu0 %4097 }
 0x48c   : > { %v3138_v26 = vsel %vm524_vm1, %v3123_v56, %v3125_v6  ;;  %14913 = vst [vmem:[#allocation61_spill] sm:$0xff] %v11217_v44  ;;  %v3136_v56 = vsel %vm524_vm1, %v3117_v14, %v11122_v8  ;;  %v3134_v8 = vsel %vm524_vm1, %v11031_v28, %v11024_v57 }
 0x48d   : > { %4241 = vrot.lane.b32.xlu1 %v11052_v2, %s9432_s19  ;;  %3164 = vmatpush1.bf16.msra.mxu0 %v3138_v26  ;;  %v3135_v26 = vsel %vm524_vm1, %v11024_v57, %v11064_v38  ;;  %v14915_v38 = vld [vmem:[#allocation24_spill] sm:$0xff]  ;;  %v14917_v57 = vld [vmem:[#allocation17_spill] sm:$0xff]  ;;  %v14920_v2 = vld [vmem:[#allocation35_spill] sm:$0xff] }
 0x48e   : > { %4582 = vperm.xlu0 %8878, %v8565_v22   ;;  %3165 = vmatprep.subr.bf16.mxu0 %v3137_v61  ;;  %v8472_v22 = vld [vmem:[%s14581_s6 + $0x40] sm:$0xff] }
 0x48f   : > { %v11226_v30 = vpop.permute.xlu1 %3943  ;;  %v3278_v6 = vpop.permute.xlu0 %3277 }
 0x490   : > { %14914 = vst [vmem:[#allocation62_spill] sm:$0xff] %v11226_v30 }
 0x491   : > { %2968 = vperm.xlu1 %8879, %v8474_v29   ;;  %3166 = vmatpush1.bf16.msra.mxu0 %v3136_v56  ;;  %v14916_v29 = vld [vmem:[#allocation20_spill] sm:$0xff] }
 0x492   : > { %4773 = vrot.lane.b32.xlu0 %v10925_v13, %s9426_s12  ;;  %3167 = vmatprep.subr.bf16.mxu0 %v3135_v26  ;;  %v3133_v56 = vsel %vm524_vm1, %v14916_v29, %v14915_v38  ;;  %v8564_v26 = vld [vmem:[%s14581_s6 + $0x60] sm:$0xff]  ;;  %v3132_v28 = vsel %vm524_vm1, %v14917_v57, %v14916_v29 }
 0x493   : > { %v3276_v35 = vpop.permute.xlu1 %3275  ;;  %v3420_v14 = vpop.permute.xlu0 %3419 }
 0x494   : > { %v3290_v61 = vsel %vm647_vm3, %v3276_v35, %v3278_v6 }
 0x495   : > { %2958 = vperm.xlu1 %8879, %v8472_v22   ;;  %3168 = vmatpush1.bf16.msra.mxu0 %v3134_v8  ;;  %v11253_v22 = vld [vmem:[#allocation2 + $0x68] ss:$16 sps:$4 sm:$0xff]   ;;  %v14918_v8 = vld [vmem:[#allocation31_spill] sm:$0xff] }
 0x496   : > { %4771 = vrot.lane.b32.xlu0 %v10938_v47, %s9426_s12  ;;  %3313 = vmatprep.subr.bf16.mxu1 %v3290_v61  ;;  %v14919_v61 = vld [vmem:[#allocation18_spill] sm:$0xff] }
 0x497   : > { %3169 = vmatprep.subr.bf16.mxu0 %v3133_v56  ;;  %v3418_v30 = vpop.permute.xlu1 %3417  ;;  %v3416_v6 = vpop.permute.xlu0 %3415  ;;  %v3131_v44 = vsel %vm524_vm1, %v14919_v61, %v14918_v8  ;;  %v11260_v56 = vld [vmem:[#allocation2 + $0x88] ss:$16 sps:$4 sm:$0xff]   ;;  %v3130_v29 = vsel %vm524_vm1, %v14920_v2, %v14919_v61  ;;  %v3288_v2 = vsel %vm647_vm3, %v11128_v15, %v11136_v41  ;;  %v11282_v61 = vld [vmem:[#allocation2 + $0x64] ss:$16 sps:$4 sm:$0xff]   ;;  %v3286_v41 = vsel %vm647_vm3, %v11041_v49, %v11072_v37 }
 0x498   : > { %v3285_v37 = vsel %vm647_vm3, %v11062_v46, %v11041_v49  ;;  %v11329_v46 = vld [vmem:[#allocation2 + $0x48] ss:$16 sps:$4 sm:$0xff]  }
 0x499   : > { %4577 = vperm.xlu1 %8879, %v8564_v26   ;;  %3170 = vmatpush1.bf16.msra.mxu0 %v3132_v28  ;;  %v11268_v26 = vld [vmem:[#allocation2 + $0x44] ss:$16 sps:$4 sm:$0xff]  }
 0x49a   : > { %4769 = vrot.lane.b32.xlu0 %v11253_v22, %s9426_s12  ;;  %3171 = vmatprep.subr.bf16.mxu0 %v3131_v44  ;;  %14922 = vst [vmem:[#allocation20_spill] sm:$0xff] %v11268_v26  ;;  %v14923_v44 = vld [vmem:[#allocation19_spill] sm:$0xff]  ;;  %v14924_v28 = vld [vmem:[#allocation29_spill] sm:$0xff] }
 0x49b   : > { %v3274_v38 = vpop.permute.xlu1 %3273  ;;  %v11266_v60 = vpop.permute.xlu0 %3945  ;;  %v3129_v8 = vsel %vm524_vm1, %v14924_v28, %v14923_v44  ;;  %v3287_v44 = vsel %vm647_vm3, %v11142_v18, %v11128_v15  ;;  %v11306_v15 = vld [vmem:[#allocation2 + $0x60] ss:$16 sps:$4 sm:$0xff]  }
 0x49c   : > { %v3289_v57 = vsel %vm647_vm3, %v3274_v38, %v3276_v35  ;;  %14921 = vst [vmem:[#allocation24_spill] sm:$0xff] %v11266_v60  ;;  %v14925_v38 = vld [vmem:[#allocation16_spill] sm:$0xff] }
 0x49d   : > { %4775 = vrot.lane.b32.xlu1 %v11260_v56, %s9426_s12  ;;  %3172 = vmatpush1.bf16.msra.mxu0 %v3130_v29  ;;  %v3128_v29 = vsel %vm524_vm1, %v14925_v38, %v14924_v28  ;;  %v3432_v28 = vsel %vm750_vm2, %v3418_v30, %v3420_v14  ;;  %v14926_v14 = vld [vmem:[#allocation32_spill] sm:$0xff] }
 0x49e   : > { %4761 = vrot.lane.b32.xlu0 %v11268_v26, %s9426_s12  ;;  %3314 = vmatpush1.bf16.msra.mxu1 %v3289_v57  ;;  %v11289_v57 = vld [vmem:[#allocation2 + $0x40] ss:$16 sps:$4 sm:$0xff]  }
 0x49f   : > { %3173 = vmatprep.subr.bf16.mxu0 %v3129_v8  ;;  %3315 = vmatprep.subr.bf16.mxu1 %v3288_v2  ;;  %v11280_v35 = vpop.permute.xlu1 %4093  ;;  %v11287_v60 = vpop.permute.xlu0 %4095  ;;  %v8987_v26 = vld [vmem:[#allocation6] sm:$0xff]   ;;  %v11302_v8 = vld [vmem:[#allocation2 + $0x28] ss:$16 sps:$4 sm:$0xff]   ;;  %v3431_v2 = vsel %vm750_vm2, %v3416_v6, %v3418_v30  ;;  %v3284_v30 = vsel %vm647_vm3, %v10828_v59, %v14926_v14  ;;  %v3430_v6 = vsel %vm750_vm2, %v11134_v24, %v11144_v11 }
 0x4a0   : > { %v3283_v11 = vsel %vm647_vm3, %v10872_v40, %v10828_v59  ;;  %v3427_v40 = vsel %vm750_vm2, %v11089_v31, %v11048_v9  ;;  %v14928_v31 = vld [vmem:[#allocation33_spill] sm:$0xff] }
 0x4a1   : > { %4767 = vrot.lane.b32.xlu1 %v11282_v61, %s9426_s12  ;;  %3174 = vmatpush1.bf16.msra.mxu0 %v3128_v29  ;;  %v3429_v29 = vsel %vm750_vm2, %v11152_v7, %v11134_v24  ;;  %v3282_v7 = vsel %vm647_vm3, %v10893_v12, %v10859_v63  ;;  %v3428_v24 = vsel %vm750_vm2, %v11048_v9, %v11080_v58  ;;  %v11365_v58 = vld [vmem:[#allocation2 + $0x20] ss:$16 sps:$4 sm:$0xff]  }
 0x4a2   : > { %4759 = vrot.lane.b32.xlu0 %v11289_v57, %s9426_s12  ;;  %3316 = vmatpush1.bf16.msra.mxu1 %v3287_v44  ;;  %v3281_v63 = vsel %vm647_vm3, %v10917_v33, %v10893_v12  ;;  %v3280_v9 = vsel %vm647_vm3, %v10921_v5, %v10913_v23  ;;  %v3279_v23 = vsel %vm647_vm3, %v10944_v16, %v10921_v5 }
 0x4a3   : > { %3317 = vmatprep.subr.bf16.mxu1 %v3286_v41  ;;  %3455 = vmatprep.subr.bf16.mxu0 %v3432_v28  ;;  %v11304_v18 = vpop.permute.xlu1 %3941  ;;  %v11309_v38 = vpop.permute.xlu0 %4091  ;;  %v14927_v41 = vmov 0   ;;  %v8993_v28 = vld [vmem:[#allocation6 + $0x8] sm:$0xff]  }
 0x4a4   : > { %8496 = vmatmul.mubr.msk.bf16.vlgmr.msra.gmra.mxu0 %vm3152_vm13, %v8987_v26  ;;  %v11325_v26 = vld [vmem:[#allocation2 + $0x4] ss:$16 sps:$4 sm:$0xff]  }
 0x4a5   : > { %4765 = vrot.lane.b32.xlu1 %v11306_v15, %s9426_s12  ;;  %3456 = vmatpush1.bf16.msra.mxu0 %v3431_v2  ;;  %v11342_v2 = vld [vmem:[#allocation2 + $0x24] ss:$16 sps:$4 sm:$0xff]  }
 0x4a6   : > { %4757 = vrot.lane.b32.xlu0 %v11302_v8, %s9426_s12  ;;  %3318 = vmatpush1.bf16.msra.mxu1 %v3285_v37  ;;  %v11352_v37 = vld [vmem:[#allocation2] ss:$16 sps:$4 sm:$0xff]  }
 0x4a7   : > { %3319 = vmatprep.subr.bf16.mxu1 %v3284_v30  ;;  %3457 = vmatprep.subr.bf16.mxu0 %v3430_v6  ;;  %v11327_v49 = vpop.permute.xlu1 %3567  ;;  %v11334_v44 = vpop.permute.xlu0 %4275  ;;  %v3426_v30 = vsel %vm750_vm2, %v10856_v34, %v14928_v31  ;;  %v3425_v6 = vsel %vm750_vm2, %v10834_v62, %v10856_v34  ;;  %v3424_v62 = vsel %vm750_vm2, %v10908_v42, %v10876_v53 }
 0x4a8   : > { %3201 = vmatprep.mubr.bf16.mxu0 %v14927_v41  ;;  %v3422_v53 = vsel %vm750_vm2, %v10934_v36, %v10919_v48  ;;  %v3577_v31 = vsel %vm872_vm5, %v11078_v43, %v11068_v55 }
 0x4a9   : > { %4763 = vrot.lane.b32.xlu1 %v11329_v46, %s9426_s12  ;;  %3458 = vmatpush1.bf16.msra.mxu0 %v3429_v29  ;;  %v8998_v29 = vld [vmem:[#allocation6 + $0x10] sm:$0xff]  }
 0x4aa   : > { %4749 = vrot.lane.b32.xlu0 %v11325_v26, %s9426_s12  ;;  %3320 = vmatpush1.bf16.msra.mxu1 %v3283_v11  ;;  %v3423_v11 = vsel %vm750_vm2, %v10897_v45, %v10908_v42  ;;  %v3421_v45 = vsel %vm750_vm2, %v10923_v39, %v10934_v36  ;;  %v9000_v42 = vld [vmem:[#allocation6 + $0x18] sm:$0xff]   ;;  %v3580_v39 = vsel %vm872_vm5, %v11160_v25, %v11150_v17 }
 0x4ab   : > { %3321 = vmatprep.subr.bf16.mxu1 %v3282_v7  ;;  %3459 = vmatprep.subr.bf16.mxu0 %v3428_v24  ;;  %v11354_v59 = vpop.permute.xlu1 %4267  ;;  %v3570_v14 = vpop.permute.xlu0 %3569  ;;  %v11453_v17 = vld [vmem:[#allocation2 + $0x68] ss:$16 sps:$4 sm:$0xff]  }
 0x4ac   : > { %8497 = vmatmul.mubr.msk.bf16.gmra.mxu0 %vm3152_vm13, %v8993_v28  ;;  %v11388_v28 = vld [vmem:[#allocation2 + $0x8] ss:$16 sps:$4 sm:$0xff]   ;;  %v3582_v34 = vsel %vm872_vm5, %v11327_v49, %v3570_v14 }
 0x4ad   : > { %4755 = vrot.lane.b32.xlu1 %v11342_v2, %s9426_s12  ;;  %3460 = vmatpush1.bf16.msra.mxu0 %v3427_v40  ;;  %v9001_v40 = vld [vmem:[#allocation6 + $0x20] sm:$0xff]  }
 0x4ae   : > { %4747 = vrot.lane.b32.xlu0 %v11352_v37, %s9426_s12  ;;  %3322 = vmatpush1.bf16.msra.mxu1 %v3281_v63 }
 0x4af   : > { %3323 = vmatprep.subr.bf16.mxu1 %v3280_v9  ;;  %3461 = vmatprep.subr.bf16.mxu0 %v3426_v30  ;;  %v11375_v12 = vpop.permute.xlu1 %4409  ;;  %v11377_v33 = vpop.permute.xlu0 %4417 }
 0x4b0   : > { %3483 = vmatprep.mubr.bf16.mxu0 %v14927_v41 }
 0x4b1   : > { %4753 = vrot.lane.b32.xlu1 %v11365_v58, %s9426_s12  ;;  %3462 = vmatpush1.bf16.msra.mxu0 %v3425_v6  ;;  %v3575_v6 = vsel %vm872_vm5, %v10948_v27, %v10936_v1  ;;  %v14929_v27 = vld [vmem:[#allocation37_spill] sm:$0xff] }
 0x4b2   : > { %4941 = vrot.lane.b32.xlu0 %v11260_v56, %s9427_s22  ;;  %3324 = vmatpush1.bf16.msra.mxu1 %v3279_v23 }
 0x4b3   : > { %3463 = vmatprep.subr.bf16.mxu0 %v3424_v62  ;;  %3605 = vmatprep.subr.bf16.mxu1 %v3582_v34  ;;  %v11397_v5 = vpop.permute.xlu1 %4265  ;;  %v11399_v16 = vpop.permute.xlu0 %4269 }
 0x4b5   : > { %8500 = vmatmul.mubr.msk.bf16.vlgmr.msra.gmra.mxu1 %vm3152_vm13, %v8998_v29  ;;  %4751 = vrot.lane.b32.xlu1 %v11388_v28, %s9426_s12 }
 0x4b6   : > { %5099 = vrot.lane.b32.xlu0 %v11260_v56, %s9428_s13  ;;  %3464 = vmatpush1.bf16.msra.mxu0 %v3423_v11  ;;  %v14931_v11 = vld [vmem:[#allocation43_spill] sm:$0xff] }
 0x4b7   : > { %3465 = vmatprep.subr.bf16.mxu0 %v3422_v53  ;;  %v11412_v7 = vpop.permute.xlu1 %4261  ;;  %3351 = vmatprep.mubr.bf16.mxu1 %v14927_v41  ;;  %v11415_v24 = vpop.permute.xlu0 %4411  ;;  %v14933_v53 = vld [vmem:[#allocation20_spill] sm:$0xff] }
 0x4b9   : > { %4939 = vrot.lane.b32.xlu1 %v10925_v13, %s9427_s22 }
 0x4ba   : > { %5095 = vrot.lane.b32.xlu0 %v10938_v47, %s9428_s13  ;;  %3466 = vmatpush1.bf16.msra.mxu0 %v3421_v45  ;;  %v9010_v45 = vld [vmem:[#allocation6 + $0x40] sm:$0xff]  }
 0x4bb   : > { %3767 = vmatprep.subr.bf16.mxu0 %v10927_v51  ;;  %v3566_v48 = vpop.permute.xlu1 %3565  ;;  %v11427_v63 = vpop.permute.xlu0 %4407 }
 0x4bc   : > { %v3581_v14 = vsel %vm872_vm5, %v3566_v48, %v11327_v49  ;;  %v9005_v49 = vld [vmem:[#allocation6 + $0x28] sm:$0xff]  }
 0x4bd   : > { %8501 = vmatmul.mubr.msk.bf16.gmra.mxu1 %vm3152_vm13, %v9000_v42  ;;  %8504 = vmatmul.mubr.msk.bf16.vlgmr.msra.gmra.mxu0 %vm3152_vm13, %v9001_v40  ;;  %v14934_v42 = vld [vmem:[#allocation47_spill] sm:$0xff]  ;;  %v14935_v40 = vld [vmem:[#allocation38_spill] sm:$0xff] }
 0x4be   : > { %5097 = vrot.lane.b32.xlu1 %v10925_v13, %s9428_s13  ;;  %4935 = vrot.lane.b32.xlu0 %v11253_v22, %s9427_s22 }
 0x4bf   : > { %3606 = vmatpush1.bf16.msra.mxu1 %v3581_v14  ;;  %3768 = vmatpush1.bf16.msra.mxu0 %v10929_v0  ;;  %v11439_v51 = vpop.permute.xlu1 %4403  ;;  %v11442_v36 = vpop.permute.xlu0 %4263  ;;  %v3579_v0 = vsel %vm872_vm5, %v11168_v32, %v11160_v25  ;;  %v11464_v25 = vld [vmem:[#allocation2 + $0x64] ss:$16 sps:$4 sm:$0xff]   ;;  %v14936_v14 = vld [vmem:[#allocation40_spill] sm:$0xff] }
 0x4c0   : > { %3607 = vmatprep.subr.bf16.mxu1 %v3580_v39  ;;  %3769 = vmatprep.subr.bf16.mxu0 %v10962_v20  ;;  %v3578_v20 = vsel %vm872_vm5, %v11068_v55, %v11097_v3  ;;  %v11474_v3 = vld [vmem:[#allocation2 + $0x48] ss:$16 sps:$4 sm:$0xff]   ;;  %v11481_v55 = vld [vmem:[#allocation2 + $0x44] ss:$16 sps:$4 sm:$0xff]  }
 0x4c1   : > { %3493 = vmatprep.mubr.bf16.mxu0 %v14927_v41  ;;  %3633 = vmatprep.mubr.bf16.mxu1 %v14927_v41 }
 0x4c2   : > { %4937 = vrot.lane.b32.xlu1 %v10938_v47, %s9427_s22  ;;  %5093 = vrot.lane.b32.xlu0 %v11253_v22, %s9428_s13 }
 0x4c3   : > { %3608 = vmatpush1.bf16.msra.mxu1 %v3579_v0  ;;  %3770 = vmatpush1.bf16.msra.mxu0 %v10979_v21  ;;  %v11459_v9 = vpop.permute.xlu1 %4259  ;;  %v11462_v32 = vpop.permute.xlu0 %4405  ;;  %v3576_v21 = vsel %vm872_vm5, %v10936_v1, %v10954_v50  ;;  %v3574_v50 = vsel %vm872_vm5, %v10964_v4, %v10956_v10  ;;  %v3573_v1 = vsel %vm872_vm5, %v10976_v54, %v10964_v4  ;;  %v14930_v10 = vld [vmem:[#allocation28_spill] sm:$0xff]  ;;  %v14932_v4 = vld [vmem:[#allocation34_spill] sm:$0xff] }
 0x4c4   : > { %3609 = vmatprep.subr.bf16.mxu1 %v3578_v20  ;;  %3771 = vmatprep.subr.bf16.mxu0 %v11453_v17  ;;  %v3572_v62 = vsel %vm872_vm5, %v14930_v10, %v14929_v27  ;;  %v3571_v54 = vsel %vm872_vm5, %v14932_v4, %v14930_v10  ;;  %v14939_v27 = vld [vmem:[#allocation44_spill] sm:$0xff]  ;;  %v14940_v10 = vld [vmem:[#allocation22_spill] sm:$0xff] }
 0x4c5   : > { %8505 = vmatmul.mubr.msk.bf16.gmra.mxu0 %vm3152_vm13, %v9005_v49  ;;  %v14942_v4 = vld [vmem:[#allocation54_spill] sm:$0xff] }
 0x4c6   : > { %4933 = vrot.lane.b32.xlu1 %v11282_v61, %s9427_s22  ;;  %5089 = vrot.lane.b32.xlu0 %v11306_v15, %s9428_s13 }
 0x4c7   : > { %3610 = vmatpush1.bf16.msra.mxu1 %v3577_v31  ;;  %3772 = vmatpush1.bf16.msra.mxu0 %v11464_v25  ;;  %v3974_v30 = vpop.permute.xlu1 %3973  ;;  %v4122_v43 = vpop.permute.xlu0 %4121 }
 0x4c8   : > { %3611 = vmatprep.subr.bf16.mxu1 %v3576_v21  ;;  %3773 = vmatprep.subr.bf16.mxu0 %v11474_v3  ;;  %v3988_v48 = vsel %vm1123_vm6, %v3974_v30, %v14935_v40 }
 0x4c9   : > { %3795 = vmatprep.mubr.bf16.mxu0 %v14927_v41 }
 0x4ca   : > { %5091 = vrot.lane.b32.xlu1 %v11282_v61, %s9428_s13  ;;  %4929 = vrot.lane.b32.xlu0 %v11329_v46, %s9427_s22 }
 0x4cb   : > { %3612 = vmatpush1.bf16.msra.mxu1 %v3575_v6  ;;  %3774 = vmatpush1.bf16.msra.mxu0 %v11481_v55  ;;  %v4124_v23 = vpop.permute.xlu1 %4123  ;;  %v11495_v29 = vpop.permute.xlu0 %4401  ;;  %v14937_v6 = vld [vmem:[#allocation42_spill] sm:$0xff] }
 0x4cc   : > { %3613 = vmatprep.subr.bf16.mxu1 %v3574_v50  ;;  %3775 = vmatprep.subr.bf16.mxu0 %v10990_v52  ;;  %v4138_v39 = vsel %vm1234_vm7, %v4124_v23, %v14936_v14  ;;  %v4137_v31 = vsel %vm1234_vm7, %v4122_v43, %v4124_v23  ;;  %v14938_v50 = vld [vmem:[#allocation21_spill] sm:$0xff]  ;;  %v9012_v43 = vld [vmem:[#allocation6 + $0x48] sm:$0xff]  }
 0x4cd   : > { %v14941_v23 = vld [vmem:[#allocation53_spill] sm:$0xff]  ;;  %v14946_v14 = vld [vmem:[#allocation50_spill] sm:$0xff] }
 0x4ce   : > { %4931 = vrot.lane.b32.xlu1 %v11306_v15, %s9427_s22  ;;  %5087 = vrot.lane.b32.xlu0 %v11329_v46, %s9428_s13 }
 0x4cf   : > { %3614 = vmatpush1.bf16.msra.mxu1 %v3573_v1  ;;  %3776 = vmatpush1.bf16.msra.mxu0 %v11007_v19  ;;  %v3972_v34 = vpop.permute.xlu1 %3971  ;;  %v11509_v52 = vpop.permute.xlu0 %4257  ;;  %v9009_v19 = vld [vmem:[#allocation6 + $0x30] sm:$0xff]   ;;  %v3986_v1 = vsel %vm1123_vm6, %v14938_v50, %v14937_v6 }
 0x4d0   : > { %3615 = vmatprep.subr.bf16.mxu1 %v3572_v62  ;;  %3777 = vmatprep.subr.bf16.mxu0 %v14931_v11  ;;  %v3987_v20 = vsel %vm1123_vm6, %v3972_v34, %v3974_v30  ;;  %v4136_v30 = vsel %vm1234_vm7, %v14940_v10, %v14939_v27  ;;  %v9011_v34 = vld [vmem:[#allocation6 + $0x38] sm:$0xff]   ;;  %v3985_v11 = vsel %vm1123_vm6, %v14941_v23, %v14938_v50  ;;  %v14948_v50 = vld [vmem:[#allocation30_spill] sm:$0xff]  ;;  %v14952_v23 = vld [vmem:[#allocation41_spill] sm:$0xff] }
 0x4d2   : > { %4927 = vrot.lane.b32.xlu1 %v14933_v53, %s9427_s22  ;;  %5083 = vrot.lane.b32.xlu0 %v11289_v57, %s9428_s13 }
 0x4d3   : > { %3616 = vmatpush1.bf16.msra.mxu1 %v3571_v54  ;;  %3778 = vmatpush1.bf16.msra.mxu0 %v14934_v42  ;;  %v11524_v49 = vpop.permute.xlu1 %4255  ;;  %v11526_v0 = vpop.permute.xlu0 %4399  ;;  %v4135_v54 = vsel %vm1234_vm7, %v14942_v4, %v14940_v10  ;;  %v14944_v42 = vld [vmem:[#allocation49_spill] sm:$0xff]  ;;  %v14949_v10 = vld [vmem:[#allocation48_spill] sm:$0xff] }
 0x4d4   : > { %4011 = vmatprep.subr.bf16.mxu1 %v3988_v48  ;;  %4161 = vmatprep.subr.bf16.mxu0 %v4138_v39  ;;  %v14945_v48 = vld [vmem:[#allocation46_spill] sm:$0xff] }
 0x4d5   : > { %v4134_v39 = vsel %vm1234_vm7, %v14946_v14, %v14945_v48 }
 0x4d6   : > { %8508 = vmatmul.mubr.msk.bf16.vlgmr.msra.gmra.mxu1 %vm3152_vm13, %v9009_v19  ;;  %8524 = vmatmul.mubr.msk.bf16.vlgmr.msra.gmra.mxu0 %vm3152_vm13, %v9010_v45  ;;  %v14943_v45 = vld [vmem:[#allocation45_spill] sm:$0xff] }
 0x4d7   : > { %5085 = vrot.lane.b32.xlu1 %v14933_v53, %s9428_s13  ;;  %4923 = vrot.lane.b32.xlu0 %v11302_v8, %s9427_s22  ;;  %v11536_v21 = vpop.permute.xlu1 %4397  ;;  %v11544_v62 = vpop.permute.xlu0 %4395  ;;  %v3984_v40 = vsel %vm1123_vm6, %v14944_v42, %v14943_v45 }
 0x4d8   : > { %4012 = vmatpush1.bf16.msra.mxu1 %v3987_v20  ;;  %4162 = vmatpush1.bf16.msra.mxu0 %v4137_v31  ;;  %v14947_v31 = vld [vmem:[#allocation36_spill] sm:$0xff] }
 0x4d9   : > { %4013 = vmatprep.subr.bf16.mxu1 %v3986_v1  ;;  %4163 = vmatprep.subr.bf16.mxu0 %v4136_v30  ;;  %v3983_v6 = vsel %vm1123_vm6, %v14947_v31, %v14944_v42  ;;  %v4133_v1 = vsel %vm1234_vm7, %v14948_v50, %v14946_v14  ;;  %v14950_v30 = vld [vmem:[#allocation39_spill] sm:$0xff]  ;;  %v14954_v42 = vld [vmem:[#allocation56_spill] sm:$0xff]  ;;  %v14955_v14 = vld [vmem:[#allocation58_spill] sm:$0xff] }
 0x4da   : > { %3643 = vmatprep.mubr.bf16.mxu1 %v14927_v41  ;;  %3805 = vmatprep.mubr.bf16.mxu0 %v14927_v41  ;;  %v14958_v50 = vld [vmem:[#allocation57_spill] sm:$0xff] }
 0x4db   : > { %4925 = vrot.lane.b32.xlu1 %v11289_v57, %s9427_s22  ;;  %5081 = vrot.lane.b32.xlu0 %v11302_v8, %s9428_s13  ;;  %v11558_v19 = vpop.permute.xlu1 %4253  ;;  %v11566_v20 = vpop.permute.xlu0 %4251 }
 0x4dc   : > { %4014 = vmatpush1.bf16.msra.mxu1 %v3985_v11  ;;  %4164 = vmatpush1.bf16.msra.mxu0 %v4135_v54  ;;  %v14953_v54 = vld [vmem:[#allocation51_spill] sm:$0xff] }
 0x4dd   : > { %4015 = vmatprep.subr.bf16.mxu1 %v3984_v40  ;;  %4165 = vmatprep.subr.bf16.mxu0 %v4134_v39  ;;  %v3981_v45 = vsel %vm1123_vm6, %v14953_v54, %v14950_v30  ;;  %v4131_v40 = vsel %vm1234_vm7, %v14954_v42, %v14952_v23  ;;  %v14956_v39 = vld [vmem:[#allocation55_spill] sm:$0xff]  ;;  %v14961_v54 = vld [vmem:[#allocation24_spill] sm:$0xff] }
 0x4de   : > { %8509 = vmatmul.mubr.msk.bf16.gmra.mxu1 %vm3152_vm13, %v9011_v34  ;;  %8525 = vmatmul.mubr.msk.bf16.gmra.mxu0 %vm3152_vm13, %v9012_v43  ;;  %v3982_v34 = vsel %vm1123_vm6, %v14950_v30, %v14949_v10  ;;  %v14951_v43 = vld [vmem:[#allocation52_spill] sm:$0xff]  ;;  %v3980_v31 = vsel %vm1123_vm6, %v14956_v39, %v14955_v14  ;;  %v14959_v30 = vld [vmem:[#allocation59_spill] sm:$0xff] }
 0x4df   : > { %4921 = vrot.lane.b32.xlu1 %v11342_v2, %s9427_s22  ;;  %5077 = vrot.lane.b32.xlu0 %v11365_v58, %s9428_s13  ;;  %v11580_v27 = vpop.permute.xlu1 %4249  ;;  %v4132_v11 = vsel %vm1234_vm7, %v14952_v23, %v14951_v43  ;;  %v4414_v4 = vpop.permute.xlu0 %4413  ;;  %v14960_v43 = vld [vmem:[#allocation61_spill] sm:$0xff] }
 0x4e0   : > { %4016 = vmatpush1.bf16.msra.mxu1 %v3983_v6  ;;  %4166 = vmatpush1.bf16.msra.mxu0 %v4133_v1  ;;  %v14957_v6 = vld [vmem:[#allocation60_spill] sm:$0xff]  ;;  %v4129_v23 = vsel %vm1234_vm7, %v14960_v43, %v14958_v50 }
 0x4e1   : > { %4017 = vmatprep.subr.bf16.mxu1 %v3982_v34  ;;  %4167 = vmatprep.subr.bf16.mxu0 %v4132_v11  ;;  %v4130_v1 = vsel %vm1234_vm7, %v14958_v50, %v14957_v6  ;;  %v3979_v34 = vsel %vm1123_vm6, %v14959_v30, %v14956_v39  ;;  %v4127_v6 = vsel %vm1234_vm7, %v11309_v38, %v11280_v35  ;;  %v9013_v50 = vld [vmem:[#allocation6 + $0x50] sm:$0xff]   ;;  %v9015_v43 = vld [vmem:[#allocation6 + $0x58] sm:$0xff]  }
 0x4e2   : > { %4039 = vmatprep.mubr.bf16.mxu1 %v14927_v41  ;;  %4189 = vmatprep.mubr.bf16.mxu0 %v14927_v41 }
 0x4e3   : > { %5079 = vrot.lane.b32.xlu1 %v11342_v2, %s9428_s13  ;;  %4917 = vrot.lane.b32.xlu0 %v11388_v28, %s9427_s22  ;;  %v4274_v48 = vpop.permute.xlu1 %4273  ;;  %v11606_v10 = vpop.permute.xlu0 %4393 }
 0x4e4   : > { %4018 = vmatpush1.bf16.msra.mxu1 %v3981_v45  ;;  %4168 = vmatpush1.bf16.msra.mxu0 %v4131_v40  ;;  %v14962_v45 = vld [vmem:[#allocation62_spill] sm:$0xff]  ;;  %v4128_v40 = vsel %vm1234_vm7, %v11280_v35, %v11287_v60 }
 0x4e5   : > { %4019 = vmatprep.subr.bf16.mxu1 %v3980_v31  ;;  %4169 = vmatprep.subr.bf16.mxu0 %v4130_v1  ;;  %v3978_v42 = vsel %vm1123_vm6, %v14962_v45, %v14961_v54  ;;  %v3977_v31 = vsel %vm1123_vm6, %v11304_v18, %v14962_v45  ;;  %v9014_v1 = vld [vmem:[#allocation6 + $0x60] sm:$0xff]   ;;  %v11769_v54 = vld [vmem:[#allocation2 + $0xcc] ss:$16 sps:$4 sm:$0xff]  }
 0x4e6   : > { %14970 = vst [vmem:[#allocation32_spill] sm:$0xff] %v11769_v54 }
 0x4e7   : > { %4919 = vrot.lane.b32.xlu1 %v11365_v58, %s9427_s22  ;;  %5075 = vrot.lane.b32.xlu0 %v11388_v28, %s9428_s13  ;;  %v4416_v11 = vpop.permute.xlu1 %4415  ;;  %v11624_v14 = vpop.permute.xlu0 %4389 }
 0x4e8   : > { %4020 = vmatpush1.bf16.msra.mxu1 %v3979_v34  ;;  %4170 = vmatpush1.bf16.msra.mxu0 %v4129_v23  ;;  %v4430_v39 = vsel %vm1448_vm9, %v4416_v11, %v11377_v33  ;;  %v4288_v33 = vsel %vm1345_vm8, %v4274_v48, %v11334_v44  ;;  %v4429_v30 = vsel %vm1448_vm9, %v4414_v4, %v4416_v11  ;;  %v11745_v23 = vld [vmem:[#allocation2 + $0xec] ss:$16 sps:$4 sm:$0xff]  }
 0x4e9   : > { %4021 = vmatprep.subr.bf16.mxu1 %v3978_v42  ;;  %4171 = vmatprep.subr.bf16.mxu0 %v4128_v40  ;;  %v4286_v44 = vsel %vm1345_vm8, %v11354_v59, %v11399_v16  ;;  %v4285_v4 = vsel %vm1345_vm8, %v11397_v5, %v11354_v59  ;;  %v4427_v16 = vsel %vm1448_vm9, %v11427_v63, %v11375_v12  ;;  %v11779_v40 = vld [vmem:[#allocation2 + $0x84] ss:$16 sps:$4 sm:$0xff]  }
 0x4ea   : > { %v4426_v59 = vsel %vm1448_vm9, %v11439_v51, %v11462_v32  ;;  %v4425_v63 = vsel %vm1448_vm9, %v11495_v29, %v11439_v51  ;;  %v4280_v32 = vsel %vm1345_vm8, %v11580_v27, %v11566_v20  ;;  %14965 = vst [vmem:[#allocation18_spill] sm:$0xff] %v11745_v23  ;;  %14973 = vst [vmem:[#allocation28_spill] sm:$0xff] %v11779_v40 }
 0x4eb   : > { %4915 = vrot.lane.b32.xlu1 %v11325_v26, %s9427_s22  ;;  %5071 = vrot.lane.b32.xlu0 %v11352_v37, %s9428_s13  ;;  %v4272_v60 = vpop.permute.xlu1 %4271  ;;  %v4246_v38 = vpop.permute.xlu0 %4245 }
 0x4ec   : > { %4022 = vmatpush1.bf16.msra.mxu1 %v3977_v31  ;;  %4172 = vmatpush1.bf16.msra.mxu0 %v4127_v6  ;;  %v4287_v18 = vsel %vm1345_vm8, %v4272_v60, %v4274_v48  ;;  %v4428_v48 = vsel %vm1448_vm9, %v11375_v12, %v11415_v24  ;;  %v4284_v24 = vsel %vm1345_vm8, %v11412_v7, %v11442_v36  ;;  %v11789_v31 = vld [vmem:[#allocation2 + $0xac] ss:$16 sps:$4 sm:$0xff]  }
 0x4ed   : > { %4311 = vmatprep.subr.bf16.mxu1 %v4288_v33  ;;  %4453 = vmatprep.subr.bf16.mxu0 %v4430_v39  ;;  %v4282_v36 = vsel %vm1345_vm8, %v11524_v49, %v11509_v52  ;;  %14976 = vst [vmem:[#allocation20_spill] sm:$0xff] %v11789_v31 }
 0x4ef   : > { %8546 = vmatmul.mubr.msk.bf16.vlgmr.msra.gmra.mxu1 %vm3152_vm13, %v9013_v50  ;;  %8550 = vmatmul.mubr.msk.bf16.vlgmr.msra.gmra.mxu0 %vm3152_vm13, %v9014_v1  ;;  %v4392_v35 = vpop.permute.xlu1 %4391  ;;  %v4388_v5 = vpop.permute.xlu0 %4387  ;;  %v11803_v50 = vld [vmem:[#allocation2 + $0x8c] ss:$16 sps:$4 sm:$0xff]  }
 0x4f0   : > { %5073 = vrot.lane.b32.xlu1 %v11325_v26, %s9428_s13  ;;  %5263 = vrot.lane.b32.xlu0 %v10925_v13, %s14806_s20  ;;  %v9016_v13 = vld [vmem:[#allocation6 + $0x68] sm:$0xff]   ;;  %v4422_v29 = vsel %vm1448_vm9, %v4392_v35, %v11606_v10  ;;  %14979 = vst [vmem:[#allocation40_spill] sm:$0xff] %v11803_v50 }
 0x4f1   : > { %4312 = vmatpush1.bf16.msra.mxu1 %v4287_v18  ;;  %4454 = vmatpush1.bf16.msra.mxu0 %v4429_v30  ;;  %v9020_v10 = vld [vmem:[#allocation6 + $0x88] sm:$0xff]  }
 0x4f2   : > { %4313 = vmatprep.subr.bf16.mxu1 %v4286_v44  ;;  %4455 = vmatprep.subr.bf16.mxu0 %v4428_v48  ;;  %v11835_v44 = vld [vmem:[#allocation2 + $0x28] ss:$16 sps:$4 sm:$0xff]  }
 0x4f3   : > { %v4248_v34 = vpop.permute.xlu1 %4247  ;;  %4049 = vmatprep.mubr.bf16.mxu1 %v14927_v41  ;;  %4199 = vmatprep.mubr.bf16.mxu0 %v14927_v41  ;;  %v4384_v51 = vpop.permute.xlu0 %4383  ;;  %14987 = vst [vmem:[#allocation49_spill] sm:$0xff] %v11835_v44 }
 0x4f4   : > { %4913 = vrot.lane.b32.xlu1 %v11352_v37, %s9427_s22  ;;  %5261 = vrot.lane.b32.xlu0 %v10938_v47, %s14806_s20  ;;  %v4283_v47 = vsel %vm1345_vm8, %v11459_v9, %v11412_v7  ;;  %v4424_v7 = vsel %vm1448_vm9, %v11536_v21, %v11526_v0 }
 0x4f5   : > { %4314 = vmatpush1.bf16.msra.mxu1 %v4285_v4  ;;  %4456 = vmatpush1.bf16.msra.mxu0 %v4427_v16  ;;  %v11861_v16 = vld [vmem:[#allocation2 + $0x8] ss:$16 sps:$4 sm:$0xff]  }
 0x4f6   : > { %4315 = vmatprep.subr.bf16.mxu1 %v4284_v24  ;;  %4457 = vmatprep.subr.bf16.mxu0 %v4426_v59  ;;  %14994 = vst [vmem:[#allocation52_spill] sm:$0xff] %v11861_v16  ;;  %v11875_v59 = vld [vmem:[#allocation2 + $0x2c] ss:$16 sps:$4 sm:$0xff]  }
 0x4f7   : > { %8547 = vmatmul.mubr.msk.bf16.gmra.mxu1 %vm3152_vm13, %v9015_v43  ;;  %8551 = vmatmul.mubr.msk.bf16.gmra.mxu0 %vm3152_vm13, %v9016_v13  ;;  %v4244_v12 = vpop.permute.xlu1 %4243  ;;  %v11851_v43 = vld [vmem:[#allocation2 + $0x4c] ss:$16 sps:$4 sm:$0xff]   ;;  %14997 = vst [vmem:[#allocation56_spill] sm:$0xff] %v11875_v59 }
 0x4f8   : > { %5265 = vrot.lane.b32.xlu1 %v11260_v56, %s14806_s20  ;;  %5259 = vrot.lane.b32.xlu0 %v11253_v22, %s14806_s20  ;;  %v4423_v22 = vsel %vm1448_vm9, %v11544_v62, %v11536_v21  ;;  %v4281_v56 = vsel %vm1345_vm8, %v11558_v19, %v11524_v49  ;;  %v4278_v0 = vsel %vm1345_vm8, %v4244_v12, %v4246_v38 }
 0x4f9   : > { %4316 = vmatpush1.bf16.msra.mxu1 %v4283_v47  ;;  %4458 = vmatpush1.bf16.msra.mxu0 %v4425_v63  ;;  %14991 = vst [vmem:[#allocation30_spill] sm:$0xff] %v11851_v43  ;;  %v9038_v63 = vld [vmem:[#allocation2 + $0xa0] ss:$16 sps:$4 sm:$0xff]  }
 0x4fa   : > { %4317 = vmatprep.subr.bf16.mxu1 %v4282_v36  ;;  %4459 = vmatprep.subr.bf16.mxu0 %v4424_v7  ;;  %v11894_v7 = vld [vmem:[#allocation2 + $0xc] ss:$16 sps:$4 sm:$0xff]  }
 0x4fb   : > { %v4386_v9 = vpop.permute.xlu1 %4385  ;;  %4339 = vmatprep.mubr.bf16.mxu1 %v14927_v41  ;;  %4481 = vmatprep.mubr.bf16.mxu0 %v14927_v41  ;;  %15002 = vst [vmem:[#allocation59_spill] sm:$0xff] %v11894_v7 }
 0x4fc   : > { %5257 = vrot.lane.b32.xlu1 %v11282_v61, %s14806_s20  ;;  %5251 = vrot.lane.b32.xlu0 %v14933_v53, %s14806_s20  ;;  %v4420_v49 = vsel %vm1448_vm9, %v4386_v9, %v4388_v5  ;;  %v4421_v61 = vsel %vm1448_vm9, %v11624_v14, %v4392_v35  ;;  %v4279_v53 = vsel %vm1345_vm8, %v4248_v34, %v11580_v27  ;;  %v9019_v27 = vld [vmem:[#allocation6 + $0x78] sm:$0xff]   ;;  %v11849_v34 = vld [vmem:[#allocation2 + $0x24] ss:$16 sps:$4 sm:$0xff]  }
 0x4fd   : > { %4318 = vmatpush1.bf16.msra.mxu1 %v4281_v56  ;;  %4460 = vmatpush1.bf16.msra.mxu0 %v4423_v22  ;;  %v4419_v19 = vsel %vm1448_vm9, %v4384_v51, %v4386_v9  ;;  %v11825_v35 = vld [vmem:[#allocation2 + $0x6c] ss:$16 sps:$4 sm:$0xff]   ;;  %14990 = vst [vmem:[#allocation36_spill] sm:$0xff] %v11849_v34  ;;  %v9040_v22 = vld [vmem:[#allocation2 + $0xa8] ss:$16 sps:$4 sm:$0xff]  }
 0x4fe   : > { %4319 = vmatprep.subr.bf16.mxu1 %v4280_v32  ;;  %4461 = vmatprep.subr.bf16.mxu0 %v4422_v29  ;;  %14984 = vst [vmem:[#allocation53_spill] sm:$0xff] %v11825_v35 }
 0x4ff   : > { %v4242_v52 = vpop.permute.xlu1 %4241 }
 0x500   : > { %5255 = vrot.lane.b32.xlu1 %v11306_v15, %s14806_s20  ;;  %5249 = vrot.lane.b32.xlu0 %v11289_v57, %s14806_s20  ;;  %v11717_v21 = vpop.permute.xlu0 %2973  ;;  %v4277_v62 = vsel %vm1345_vm8, %v4242_v52, %v4244_v12  ;;  %v9017_v15 = vld [vmem:[#allocation6 + $0x70] sm:$0xff]   ;;  %v9018_v57 = vld [vmem:[#allocation6 + $0x80] sm:$0xff]  }
 0x501   : > { %4320 = vmatpush1.bf16.msra.mxu1 %v4279_v53  ;;  %4462 = vmatpush1.bf16.msra.mxu0 %v4421_v61  ;;  %v9035_v12 = vld [vmem:[#allocation2 + $0xa4] ss:$16 sps:$4 sm:$0xff]   ;;  %v11921_v53 = vld [vmem:[#allocation2 + $0xa8] ss:$16 sps:$4 sm:$0xff]  }
 0x502   : > { %4321 = vmatprep.subr.bf16.mxu1 %v4278_v0  ;;  %4463 = vmatprep.subr.bf16.mxu0 %v4420_v49  ;;  %15009 = vst [vmem:[#allocation66_spill] sm:$0xff] %v11921_v53 }
 0x504   : > { %5253 = vrot.lane.b32.xlu1 %v11329_v46, %s14806_s20  ;;  %5247 = vrot.lane.b32.xlu0 %v11302_v8, %s14806_s20  ;;  %v11725_v20 = vpop.permute.xlu0 %2963 }
 0x505   : > { %4322 = vmatpush1.bf16.msra.mxu1 %v4277_v62  ;;  %4464 = vmatpush1.bf16.msra.mxu0 %v4419_v19 }
 0x508   : > { %8554 = vmatmul.mubr.msk.bf16.vlgmr.msra.gmra.mxu1 %vm3152_vm13, %v9017_v15  ;;  %8558 = vmatmul.mubr.msk.bf16.vlgmr.msra.gmra.mxu0 %vm3152_vm13, %v9018_v57 }
 0x509   : > { %5245 = vrot.lane.b32.xlu1 %v11342_v2, %s14806_s20  ;;  %5239 = vrot.lane.b32.xlu0 %v11325_v26, %s14806_s20  ;;  %v11733_v46 = vpop.permute.xlu0 %4582 }
 0x50a   : > { %14963 = vst [vmem:[#allocation17_spill] sm:$0xff] %v11733_v46  ;;  %4349 = vmatprep.mubr.bf16.mxu1 %v14927_v41  ;;  %4491 = vmatprep.mubr.bf16.mxu0 %v14927_v41 }
 0x50c   : > { %v11737_v8 = vpop.permute.xlu1 %2968 }
 0x50d   : > { %5243 = vrot.lane.b32.xlu1 %v11365_v58, %s14806_s20  ;;  %5237 = vrot.lane.b32.xlu0 %v11352_v37, %s14806_s20  ;;  %v11743_v2 = vpop.permute.xlu0 %4773  ;;  %v11759_v37 = vld [vmem:[#allocation2 + $0x88] ss:$16 sps:$4 sm:$0xff]  }
 0x50e   : > { %14964 = vst [vmem:[#allocation31_spill] sm:$0xff] %v11743_v2  ;;  %14967 = vst [vmem:[#allocation19_spill] sm:$0xff] %v11759_v37 }
 0x510   : > { %8555 = vmatmul.mubr.msk.bf16.gmra.mxu1 %vm3152_vm13, %v9019_v27  ;;  %8559 = vmatmul.mubr.msk.bf16.gmra.mxu0 %vm3152_vm13, %v9020_v10  ;;  %v11749_v26 = vpop.permute.xlu1 %2958  ;;  %v11941_v10 = vld [vmem:[#allocation2 + $0xa4] ss:$16 sps:$4 sm:$0xff]  }
 0x511   : > { %5241 = vrot.lane.b32.xlu1 %v11388_v28, %s14806_s20  ;;  %5759 = vrot.lane.b32.xlu0 %v11745_v23, %s14808_s26  ;;  %v11755_v58 = vpop.permute.xlu0 %4771  ;;  %15013 = vst [vmem:[#allocation70_spill] sm:$0xff] %v11941_v10 }
 0x512   : > { %14966 = vst [vmem:[#allocation35_spill] sm:$0xff] %v11755_v58  ;;  %4859 = vmatprep.mubr.bf16.mxu1 %v14927_v41  ;;  %5025 = vmatprep.mubr.bf16.mxu0 %v14927_v41 }
 0x514   : > { %v11761_v11 = vpop.permute.xlu1 %4577 }
 0x515   : > { %14968 = vst [vmem:[#allocation29_spill] sm:$0xff] %v11761_v11  ;;  %5739 = vrot.lane.b32.xlu1 %v11759_v37, %s14808_s26  ;;  %5925 = vrot.lane.b32.xlu0 %v11745_v23, %s14809_s10  ;;  %v11767_v28 = vpop.permute.xlu0 %4769 }
 0x516   : > { %14969 = vst [vmem:[#allocation16_spill] sm:$0xff] %v11767_v28 }
 0x518   : > { %v11771_v45 = vpop.permute.xlu1 %4775 }
 0x519   : > { %14971 = vst [vmem:[#allocation33_spill] sm:$0xff] %v11771_v45  ;;  %5905 = vrot.lane.b32.xlu1 %v11759_v37, %s14809_s10  ;;  %5753 = vrot.lane.b32.xlu0 %v11769_v54, %s14808_s26  ;;  %v11777_v42 = vpop.permute.xlu0 %4761 }
 0x51a   : > { %14972 = vst [vmem:[#allocation37_spill] sm:$0xff] %v11777_v42 }
 0x51c   : > { %v11781_v14 = vpop.permute.xlu1 %4767 }
 0x51d   : > { %14974 = vst [vmem:[#allocation43_spill] sm:$0xff] %v11781_v14  ;;  %5737 = vrot.lane.b32.xlu1 %v11779_v40, %s14808_s26  ;;  %5919 = vrot.lane.b32.xlu0 %v11769_v54, %s14809_s10  ;;  %v11787_v39 = vpop.permute.xlu0 %4759 }
 0x51e   : > { %14975 = vst [vmem:[#allocation34_spill] sm:$0xff] %v11787_v39 }
 0x520   : > { %v11795_v6 = vpop.permute.xlu1 %4765 }
 0x521   : > { %5733 = vrot.lane.b32.xlu1 %v11453_v17, %s14808_s26  ;;  %5747 = vrot.lane.b32.xlu0 %v11789_v31, %s14808_s26  ;;  %14977 = vst [vmem:[#allocation47_spill] sm:$0xff] %v11795_v6  ;;  %v11797_v60 = vpop.permute.xlu0 %4757 }
 0x522   : > { %14978 = vst [vmem:[#allocation38_spill] sm:$0xff] %v11797_v60 }
 0x524   : > { %v11805_v1 = vpop.permute.xlu1 %4763 }
 0x525   : > { %5899 = vrot.lane.b32.xlu1 %v11453_v17, %s14809_s10  ;;  %5913 = vrot.lane.b32.xlu0 %v11789_v31, %s14809_s10  ;;  %14980 = vst [vmem:[#allocation42_spill] sm:$0xff] %v11805_v1  ;;  %v11807_v33 = vpop.permute.xlu0 %4749 }
 0x526   : > { %14981 = vst [vmem:[#allocation21_spill] sm:$0xff] %v11807_v33 }
 0x528   : > { %v11813_v18 = vpop.permute.xlu1 %4755 }
 0x529   : > { %5731 = vrot.lane.b32.xlu1 %v11464_v25, %s14808_s26  ;;  %5741 = vrot.lane.b32.xlu0 %v11803_v50, %s14808_s26  ;;  %14982 = vst [vmem:[#allocation44_spill] sm:$0xff] %v11813_v18  ;;  %v11819_v17 = vpop.permute.xlu0 %4747 }
 0x52a   : > { %14983 = vst [vmem:[#allocation22_spill] sm:$0xff] %v11819_v17 }
 0x52c   : > { %v11827_v38 = vpop.permute.xlu1 %4753 }
 0x52d   : > { %5727 = vrot.lane.b32.xlu1 %v11474_v3, %s14808_s26  ;;  %5907 = vrot.lane.b32.xlu0 %v11803_v50, %s14809_s10  ;;  %14985 = vst [vmem:[#allocation54_spill] sm:$0xff] %v11827_v38  ;;  %v11829_v30 = vpop.permute.xlu0 %4941 }
 0x52e   : > { %14986 = vst [vmem:[#allocation45_spill] sm:$0xff] %v11829_v30 }
 0x530   : > { %v11837_v48 = vpop.permute.xlu1 %4751 }
 0x531   : > { %5893 = vrot.lane.b32.xlu1 %v11474_v3, %s14809_s10  ;;  %5903 = vrot.lane.b32.xlu0 %v11779_v40, %s14809_s10  ;;  %14988 = vst [vmem:[#allocation46_spill] sm:$0xff] %v11837_v48  ;;  %v11843_v3 = vpop.permute.xlu0 %5099 }
 0x532   : > { %14989 = vst [vmem:[#allocation50_spill] sm:$0xff] %v11843_v3 }
 0x534   : > { %v11853_v13 = vpop.permute.xlu1 %4939 }
 0x535   : > { %5725 = vrot.lane.b32.xlu1 %v11481_v55, %s14808_s26  ;;  %5735 = vrot.lane.b32.xlu0 %v11825_v35, %s14808_s26  ;;  %14992 = vst [vmem:[#allocation48_spill] sm:$0xff] %v11853_v13  ;;  %v11855_v4 = vpop.permute.xlu0 %5095 }
 0x536   : > { %14993 = vst [vmem:[#allocation39_spill] sm:$0xff] %v11855_v4 }
 0x538   : > { %v11863_v24 = vpop.permute.xlu1 %5097 }
 0x539   : > { %5721 = vrot.lane.b32.xlu1 %v11835_v44, %s14808_s26  ;;  %5901 = vrot.lane.b32.xlu0 %v11825_v35, %s14809_s10  ;;  %14995 = vst [vmem:[#allocation41_spill] sm:$0xff] %v11863_v24 }
 0x53c   : > { %v11877_v5 = vpop.permute.xlu1 %4937 }
 0x53d   : > { %5887 = vrot.lane.b32.xlu1 %v11835_v44, %s14809_s10  ;;  %5897 = vrot.lane.b32.xlu0 %v11464_v25, %s14809_s10  ;;  %v11869_v25 = vpop.permute.xlu0 %4935  ;;  %14998 = vst [vmem:[#allocation58_spill] sm:$0xff] %v11877_v5  ;;  %v15036_v44 = vld [vmem:[#allocation25_spill] sm:$0xff] }
 0x53e   : > { %14996 = vst [vmem:[#allocation51_spill] sm:$0xff] %v11869_v25 }
 0x540   : > { %v11884_v36 = vpop.permute.xlu1 %4933 }
 0x541   : > { %5719 = vrot.lane.b32.xlu1 %v11849_v34, %s14808_s26  ;;  %5729 = vrot.lane.b32.xlu0 %v11851_v43, %s14808_s26  ;;  %v11879_v47 = vpop.permute.xlu0 %5093  ;;  %15000 = vst [vmem:[#allocation60_spill] sm:$0xff] %v11884_v36 }
 0x542   : > { %14999 = vst [vmem:[#allocation55_spill] sm:$0xff] %v11879_v47 }
 0x544   : > { %v11896_v9 = vpop.permute.xlu1 %5091 }
 0x545   : > { %5715 = vrot.lane.b32.xlu1 %v11861_v16, %s14808_s26  ;;  %5895 = vrot.lane.b32.xlu0 %v11851_v43, %s14809_s10  ;;  %15003 = vst [vmem:[#allocation61_spill] sm:$0xff] %v11896_v9 }
 0x548   : > { %v11903_v56 = vpop.permute.xlu1 %4931 }
 0x549   : > { %5881 = vrot.lane.b32.xlu1 %v11861_v16, %s14809_s10  ;;  %5891 = vrot.lane.b32.xlu0 %v11481_v55, %s14809_s10  ;;  %v11889_v55 = vpop.permute.xlu0 %5089  ;;  %15005 = vst [vmem:[#allocation62_spill] sm:$0xff] %v11903_v56 }
 0x54a   : > { %15001 = vst [vmem:[#allocation57_spill] sm:$0xff] %v11889_v55 }
 0x54c   : > { %v11911_v29 = vpop.permute.xlu1 %4927 }
 0x54d   : > { %4779 = vrot.lane.b32.xlu1 %v9035_v12, %s9426_s12  ;;  %5723 = vrot.lane.b32.xlu0 %v11875_v59, %s14808_s26  ;;  %v11898_v51 = vpop.permute.xlu0 %4929  ;;  %15007 = vst [vmem:[#allocation64_spill] sm:$0xff] %v11911_v29 }
 0x54e   : > { %15004 = vst [vmem:[#allocation24_spill] sm:$0xff] %v11898_v51 }
 0x550   : > { %v11925_v62 = vpop.permute.xlu1 %5085 }
 0x551   : > { %4777 = vrot.lane.b32.xlu1 %v9038_v63, %s9426_s12  ;;  %5889 = vrot.lane.b32.xlu0 %v11875_v59, %s14809_s10  ;;  %v11907_v32 = vpop.permute.xlu0 %5087  ;;  %15010 = vst [vmem:[#allocation67_spill] sm:$0xff] %v11925_v62 }
 0x552   : > { %15006 = vst [vmem:[#allocation63_spill] sm:$0xff] %v11907_v32 }
 0x554   : > { %v11937_v57 = vpop.permute.xlu1 %4925 }
 0x555   : > { %4945 = vrot.lane.b32.xlu1 %v9035_v12, %s9427_s22  ;;  %5885 = vrot.lane.b32.xlu0 %v11849_v34, %s14809_s10  ;;  %v11915_v49 = vpop.permute.xlu0 %5083  ;;  %15012 = vst [vmem:[#allocation69_spill] sm:$0xff] %v11937_v57 }
 0x556   : > { %15008 = vst [vmem:[#allocation65_spill] sm:$0xff] %v11915_v49 }
 0x558   : > { %v11951_v46 = vpop.permute.xlu1 %4921 }
 0x559   : > { %5103 = vrot.lane.b32.xlu1 %v9035_v12, %s9428_s13  ;;  %5717 = vrot.lane.b32.xlu0 %v11894_v7, %s14808_s26  ;;  %v11930_v19 = vpop.permute.xlu0 %4923  ;;  %15015 = vst [vmem:[#allocation72_spill] sm:$0xff] %v11951_v46 }
 0x55a   : > { %15011 = vst [vmem:[#allocation68_spill] sm:$0xff] %v11930_v19 }
 0x55c   : > { %v11959_v62 = vpop.permute.xlu1 %5079 }
 0x55d   : > { %4943 = vrot.lane.b32.xlu1 %v9038_v63, %s9427_s22  ;;  %4781 = vrot.lane.b32.xlu0 %v9040_v22, %s9426_s12  ;;  %15017 = vst [vmem:[#allocation74_spill] sm:$0xff] %v11959_v62 }
 0x560   : > { %v11973_v24 = vpop.permute.xlu1 %4919 }
 0x561   : > { %5269 = vrot.lane.b32.xlu1 %v9035_v12, %s14806_s20  ;;  %4947 = vrot.lane.b32.xlu0 %v9040_v22, %s9427_s22  ;;  %v11943_v12 = vpop.permute.xlu0 %5081  ;;  %15019 = vst [vmem:[#allocation76_spill] sm:$0xff] %v11973_v24 }
 0x562   : > { %15014 = vst [vmem:[#allocation71_spill] sm:$0xff] %v11943_v12 }
 0x564   : > { %v11913_v52 = vpop.f32.mrf.mxu0  ;;  %v11983_v19 = vpop.permute.xlu1 %4915 }
 0x565   : > { %5267 = vrot.lane.b32.xlu1 %v9038_v63, %s14806_s20  ;;  %5105 = vrot.lane.b32.xlu0 %v9040_v22, %s9428_s13  ;;  %v11953_v11 = vpop.permute.xlu0 %5077  ;;  %15021 = vst [vmem:[#allocation78_spill] sm:$0xff] %v11983_v19 }
 0x566   : > { %v11919_v61 = vpop.f32.mrf.mxu0  ;;  %15016 = vst [vmem:[#allocation73_spill] sm:$0xff] %v11953_v11 }
 0x567   : > { %v3213_v43 = vmul.f32 %v11919_v61, %v15036_v44 }
 0x568   : > { %v11923_v0 = vpop.f32.mrf.mxu0  ;;  %v11995_v24 = vpop.permute.xlu1 %5073 }
 0x569   : > { %5745 = vrot.lane.b32.xlu1 %v11921_v53, %s14808_s26  ;;  %5101 = vrot.lane.b32.xlu0 %v9038_v63, %s9428_s13  ;;  %v11965_v55 = vpop.permute.xlu0 %4917  ;;  %15023 = vst [vmem:[#allocation80_spill] sm:$0xff] %v11995_v24 }
 0x56a   : > { %v11932_v15 = vpop.f32.mrf.mxu0  ;;  %15018 = vst [vmem:[#allocation75_spill] sm:$0xff] %v11965_v55 }
 0x56b   : > { %v3215_v35 = vmul.f32 %v11932_v15, %v15036_v44 }
 0x56c   : > { %v11939_v27 = vpop.f32.mrf.mxu0  ;;  %v12003_v25 = vpop.permute.xlu1 %4913 }
 0x56d   : > { %5911 = vrot.lane.b32.xlu1 %v11921_v53, %s14809_s10  ;;  %5271 = vrot.lane.b32.xlu0 %v9040_v22, %s14806_s20  ;;  %v11977_v3 = vpop.permute.xlu0 %5075  ;;  %15025 = vst [vmem:[#allocation82_spill] sm:$0xff] %v12003_v25  ;;  %v15039_v53 = vld [vmem:[#allocation26_spill] sm:$0xff] }
 0x56e   : > { %v11949_v63 = vpop.f32.mrf.mxu0  ;;  %15020 = vst [vmem:[#allocation77_spill] sm:$0xff] %v11977_v3 }
 0x56f   : > { %v3217_v37 = vmul.f32 %v11949_v63, %v15036_v44  ;;  %v3223_v63 = vadd.f32 %v3215_v35, %v11725_v20 }
 0x570   : > { %v11955_v22 = vpop.f32.mrf.mxu0  ;;  %v12015_v24 = vpop.permute.xlu1 %5265 }
 0x571   : > { %5743 = vrot.lane.b32.xlu1 %v11941_v10, %s14808_s26  ;;  %5909 = vrot.lane.b32.xlu0 %v11941_v10, %s14809_s10  ;;  %v11989_v41 = vpop.permute.xlu0 %5071  ;;  %15027 = vst [vmem:[#allocation84_spill] sm:$0xff] %v12015_v24  ;;  %v3221_v10 = vadd.f32 %v3213_v43, %v11749_v26  ;;  %v3225_v23 = vadd.f32 %v3217_v37, %v11737_v8 }
 0x572   : > { %v11961_v32 = vpop.f32.mrf.mxu0  ;;  %15022 = vst [vmem:[#allocation79_spill] sm:$0xff] %v11989_v41 }
 0x574   : > { %v12027_v60 = vpop.permute.xlu1 %5257 }
 0x575   : > { %v11957_v49 = vpop.f32.mrf.mxu1  ;;  %v11997_v56 = vpop.permute.xlu0 %5263  ;;  %15029 = vst [vmem:[#allocation86_spill] sm:$0xff] %v12027_v60 }
 0x576   : > { %15024 = vst [vmem:[#allocation81_spill] sm:$0xff] %v11997_v56 }
 0x577   : > { %v11963_v12 = vpop.f32.mrf.mxu1 }
 0x578   : > { %v12039_v6 = vpop.permute.xlu1 %5255 }
 0x579   : > { %v11971_v4 = vpop.f32.mrf.mxu1  ;;  %v12009_v17 = vpop.permute.xlu0 %5261  ;;  %15031 = vst [vmem:[#allocation88_spill] sm:$0xff] %v12039_v6 }
 0x57a   : > { %15026 = vst [vmem:[#allocation83_spill] sm:$0xff] %v12009_v17 }
 0x57b   : > { %v11979_v46 = vpop.f32.mrf.mxu1 }
 0x57c   : > { %v12047_v58 = vpop.permute.xlu1 %5253  ;;  %v3365_v43 = vadd.f32 %v11979_v46, %v3223_v63 }
 0x57d   : > { %v11967_v9 = vpop.f32.mrf.mxu0  ;;  %v11985_v57 = vpop.f32.mrf.mxu1  ;;  %15033 = vst [vmem:[#allocation90_spill] sm:$0xff] %v12047_v58 }
 0x57e   : > { %v12021_v38 = vpop.permute.xlu0 %5259 }
 0x57f   : > { %v11969_v47 = vpop.f32.mrf.mxu0  ;;  %v11991_v29 = vpop.f32.mrf.mxu1  ;;  %15028 = vst [vmem:[#allocation85_spill] sm:$0xff] %v12021_v38 }
 0x581   : > { %v11975_v11 = vpop.f32.mrf.mxu0  ;;  %v11999_v3 = vpop.f32.mrf.mxu1 }
 0x582   : > { %v12033_v42 = vpop.permute.xlu0 %5251 }
 0x583   : > { %v11981_v62 = vpop.f32.mrf.mxu0  ;;  %v12005_v19 = vpop.f32.mrf.mxu1  ;;  %15030 = vst [vmem:[#allocation87_spill] sm:$0xff] %v12033_v42 }
 0x585   : > { %v11987_v55 = vpop.f32.mrf.mxu0 }
 0x586   : > { %v12041_v14 = vpop.permute.xlu0 %5249  ;;  %v3508_v46 = vmul.f32 %v11987_v55, %v15039_v53 }
 0x587   : > { %v11993_v51 = vpop.f32.mrf.mxu0  ;;  %15032 = vst [vmem:[#allocation89_spill] sm:$0xff] %v12041_v14  ;;  %v15035_v14 = vld [vmem:[#allocation23_spill] sm:$0xff] }
 0x588   : > { %v3212_v59 = vmul.f32 %v11913_v52, %v15035_v14  ;;  %v3214_v58 = vmul.f32 %v11923_v0, %v15035_v14  ;;  %v3216_v40 = vmul.f32 %v11939_v27, %v15035_v14  ;;  %v3218_v52 = vmul.f32 %v11955_v22, %v15035_v14 }
 0x589   : > { %v12001_v36 = vpop.f32.mrf.mxu0  ;;  %v3219_v0 = vmul.f32 %v11961_v32, %v15036_v44  ;;  %v3504_v22 = vmul.f32 %v11967_v9, %v15039_v53  ;;  %v15040_v32 = vld [vmem:[#allocation27_spill] sm:$0xff] }
 0x58a   : > { %v12053_v45 = vpop.permute.xlu0 %5247  ;;  %v3220_v15 = vadd.f32 %v3212_v59, %v11749_v26  ;;  %v3222_v27 = vadd.f32 %v3214_v58, %v11725_v20  ;;  %v3224_v54 = vadd.f32 %v3216_v40, %v11737_v8  ;;  %v3226_v59 = vadd.f32 %v3218_v52, %v11717_v21 }
 0x58b   : > { %v12007_v5 = vpop.f32.mrf.mxu0  ;;  %15034 = vst [vmem:[#allocation91_spill] sm:$0xff] %v12053_v45  ;;  %v12069_v45 = vpop.permute.xlu1 %5245  ;;  %v3506_v58 = vmul.f32 %v11975_v11, %v15039_v53  ;;  %v3227_v20 = vadd.f32 %v3219_v0, %v11717_v21  ;;  %v3363_v8 = vadd.f32 %v11963_v12, %v3221_v10  ;;  %v3367_v21 = vadd.f32 %v11991_v29, %v3225_v23 }
 0x58c   : > { %15037 = vst [vmem:[#allocation92_spill] sm:$0xff] %v12069_v45  ;;  %v3362_v26 = vadd.f32 %v11957_v49, %v3220_v15  ;;  %v3364_v37 = vadd.f32 %v11971_v4, %v3222_v27  ;;  %v3366_v49 = vadd.f32 %v11985_v57, %v3224_v54  ;;  %v3507_v0 = vmul.f32 %v11981_v62, %v15040_v32 }
 0x58d   : > { %v3368_v4 = vadd.f32 %v11999_v3, %v3226_v59  ;;  %v3510_v54 = vmul.f32 %v12001_v36, %v15039_v53  ;;  %v3511_v29 = vmul.f32 %v12007_v5, %v15040_v32  ;;  %v3369_v15 = vadd.f32 %v12005_v19, %v3227_v20 }
 0x58e   : > { %v12083_v31 = vpop.permute.xlu0 %5239  ;;  %v3512_v11 = vadd.f32 %v3504_v22, %v3362_v26  ;;  %v3514_v12 = vadd.f32 %v3506_v58, %v3364_v37  ;;  %v3515_v36 = vadd.f32 %v3507_v0, %v3365_v43  ;;  %v3516_v63 = vadd.f32 %v3508_v46, %v3366_v49 }
 0x58f   : > { %15038 = vst [vmem:[#allocation93_spill] sm:$0xff] %v12083_v31  ;;  %v3505_v31 = vmul.f32 %v11969_v47, %v15040_v32  ;;  %v12104_v35 = vpop.permute.xlu1 %5243  ;;  %v3518_v59 = vadd.f32 %v3510_v54, %v3368_v4 }
 0x591   : > { %v3513_v10 = vadd.f32 %v3505_v31, %v3363_v8 }
 0x593   : > { %v12137_v27 = vpop.permute.xlu1 %5241 }
 0x596   : > { %v3635_v41 = vpop.f32.mrf.mxu1  ;;  %v12011_v13 = vpop.f32.mrf.mxu0 }
 0x597   : > { %v3654_v40 = vmul.f32 %v3635_v41, %v15035_v14  ;;  %v12117_v41 = vpop.permute.xlu0 %5237 }
 0x598   : > { %v3637_v30 = vpop.f32.mrf.mxu1  ;;  %v12013_v33 = vpop.f32.mrf.mxu0 }
 0x599   : > { %v3655_v47 = vmul.f32 %v3637_v30, %v15036_v44  ;;  %v3509_v30 = vmul.f32 %v11993_v51, %v15040_v32  ;;  %v3662_v57 = vadd.f32 %v3654_v40, %v3512_v11 }
 0x59a   : > { %v12017_v56 = vpop.f32.mrf.mxu1  ;;  %v12019_v48 = vpop.f32.mrf.mxu0 }
 0x59b   : > { %v3656_v23 = vmul.f32 %v12017_v56, %v15035_v14  ;;  %v3663_v31 = vadd.f32 %v3655_v47, %v3513_v10  ;;  %v3517_v22 = vadd.f32 %v3509_v30, %v3367_v21  ;;  %v12146_v26 = vpop.permute.xlu0 %5759  ;;  %v3816_v19 = vadd.f32 %v12011_v13, %v3662_v57  ;;  %v12158_v21 = vpop.permute.xlu1 %5739 }
 0x59c   : > { %v12023_v25 = vpop.f32.mrf.mxu1  ;;  %v12025_v18 = vpop.f32.mrf.mxu0 }
 0x59d   : > { %v3657_v3 = vmul.f32 %v12023_v25, %v15036_v44  ;;  %v3664_v58 = vadd.f32 %v3656_v23, %v3514_v12 }
 0x59e   : > { %v12029_v17 = vpop.f32.mrf.mxu1  ;;  %v12031_v39 = vpop.f32.mrf.mxu0 }
 0x59f   : > { %v3658_v55 = vmul.f32 %v12029_v17, %v15035_v14  ;;  %v3665_v40 = vadd.f32 %v3657_v3, %v3515_v36  ;;  %v12164_v12 = vpop.permute.xlu0 %5925 }
 0x5a0   : > { %v12035_v1 = vpop.f32.mrf.mxu1  ;;  %v12037_v24 = vpop.f32.mrf.mxu0 }
 0x5a1   : > { %v3659_v56 = vmul.f32 %v12035_v1, %v15036_v44  ;;  %v3519_v1 = vadd.f32 %v3511_v29, %v3369_v15  ;;  %v3666_v8 = vadd.f32 %v3658_v55, %v3516_v63  ;;  %v3819_v10 = vadd.f32 %v12025_v18, %v3665_v40 }
 0x5a2   : > { %v12043_v38 = vpop.f32.mrf.mxu1  ;;  %v12045_v28 = vpop.f32.mrf.mxu0 }
 0x5a3   : > { %v3660_v25 = vmul.f32 %v12043_v38, %v15035_v14  ;;  %v3667_v38 = vadd.f32 %v3659_v56, %v3517_v22  ;;  %v3820_v4 = vadd.f32 %v12031_v39, %v3666_v8  ;;  %v12180_v56 = vpop.permute.xlu1 %5905 }
 0x5a4   : > { %v12049_v60 = vpop.f32.mrf.mxu1  ;;  %v12051_v2 = vpop.f32.mrf.mxu0 }
 0x5a5   : > { %v3661_v17 = vmul.f32 %v12049_v60, %v15036_v44  ;;  %v3668_v13 = vadd.f32 %v3660_v25, %v3518_v59 }
 0x5a7   : > { %v3669_v11 = vadd.f32 %v3661_v17, %v3519_v1 }
 0x5a9   : > { %v3823_v23 = vadd.f32 %v12051_v2, %v3669_v11 }
 0x5af   : > { %v4041_v42 = vpop.f32.mrf.mxu1  ;;  %v12055_v16 = vpop.f32.mrf.mxu0 }
 0x5b0   : > { %v4060_v5 = vmul.f32 %v4041_v42, %v15039_v53  ;;  %v3817_v42 = vadd.f32 %v12013_v33, %v3663_v31  ;;  %v4210_v60 = vmul.f32 %v12055_v16, %v15035_v14  ;;  %v3818_v33 = vadd.f32 %v12019_v48, %v3664_v58  ;;  %v12186_v58 = vpop.permute.xlu0 %5753 }
 0x5b1   : > { %v12057_v34 = vpop.f32.mrf.mxu1  ;;  %v12059_v6 = vpop.f32.mrf.mxu0  ;;  %v3822_v48 = vadd.f32 %v12045_v28, %v3668_v13 }
 0x5b2   : > { %v4061_v20 = vmul.f32 %v12057_v34, %v15040_v32  ;;  %v4068_v47 = vadd.f32 %v4060_v5, %v3816_v19 }
 0x5b3   : > { %v12071_v50 = vpop.f32.mrf.mxu1  ;;  %v12079_v61 = vpop.f32.mrf.mxu0 }
 0x5b4   : > { %v4062_v49 = vmul.f32 %v12071_v50, %v15039_v53  ;;  %v4069_v0 = vadd.f32 %v4061_v20, %v3817_v42  ;;  %v3821_v50 = vadd.f32 %v12037_v24, %v3667_v38  ;;  %v4218_v57 = vadd.f32 %v4210_v60, %v4068_v47 }
 0x5b5   : > { %v12086_v45 = vpop.f32.mrf.mxu1  ;;  %v12098_v7 = vpop.f32.mrf.mxu0  ;;  %v4212_v31 = vmul.f32 %v12079_v61, %v15035_v14 }
 0x5b6   : > { %v4063_v34 = vmul.f32 %v12086_v45, %v15040_v32  ;;  %v4211_v45 = vmul.f32 %v12059_v6, %v15036_v44  ;;  %v4070_v54 = vadd.f32 %v4062_v49, %v3818_v33  ;;  %v4213_v6 = vmul.f32 %v12098_v7, %v15036_v44 }
 0x5b7   : > { %v4051_v9 = vpop.f32.mrf.mxu1  ;;  %v12111_v52 = vpop.f32.mrf.mxu0 }
 0x5b8   : > { %v4064_v46 = vmul.f32 %v4051_v9, %v15039_v53  ;;  %v4071_v18 = vadd.f32 %v4063_v34, %v3819_v10  ;;  %v4219_v55 = vadd.f32 %v4211_v45, %v4069_v0  ;;  %v4214_v28 = vmul.f32 %v12111_v52, %v15035_v14 }
 0x5b9   : > { %v4053_v62 = vpop.f32.mrf.mxu1  ;;  %v12134_v51 = vpop.f32.mrf.mxu0  ;;  %v4220_v22 = vadd.f32 %v4212_v31, %v4070_v54 }
 0x5ba   : > { %v4065_v39 = vmul.f32 %v4053_v62, %v15040_v32  ;;  %v4072_v15 = vadd.f32 %v4064_v46, %v3820_v4  ;;  %v4215_v17 = vmul.f32 %v12134_v51, %v15036_v44  ;;  %v4221_v52 = vadd.f32 %v4213_v6, %v4071_v18  ;;  %v12192_v4 = vpop.permute.xlu1 %5737 }
 0x5bb   : > { %v4055_v37 = vpop.f32.mrf.mxu1  ;;  %v4205_v43 = vpop.f32.mrf.mxu0 }
 0x5bc   : > { %v4066_v2 = vmul.f32 %v4055_v37, %v15039_v53  ;;  %v4073_v25 = vadd.f32 %v4065_v39, %v3821_v50  ;;  %v4216_v20 = vmul.f32 %v4205_v43, %v15035_v14  ;;  %v4222_v60 = vadd.f32 %v4214_v28, %v4072_v15  ;;  %v12202_v39 = vpop.permute.xlu0 %5919  ;;  %v15071_v14 = vld [vmem:[#allocation53_spill] sm:$0xff] }
 0x5bd   : > { %v4057_v16 = vpop.f32.mrf.mxu1  ;;  %v4207_v30 = vpop.f32.mrf.mxu0 }
 0x5be   : > { %v4067_v7 = vmul.f32 %v4057_v16, %v15040_v32  ;;  %v4074_v8 = vadd.f32 %v4066_v2, %v3822_v48  ;;  %v4217_v51 = vmul.f32 %v4207_v30, %v15036_v44  ;;  %v4223_v10 = vadd.f32 %v4215_v17, %v4073_v25  ;;  %v12206_v17 = vpop.permute.xlu1 %5733  ;;  %v9193_v44 = vld [vmem:[#allocation2 + $0x64] ss:$16 sps:$4 sm:$0xff]  }
 0x5bf   : > { %15041 = vst [vmem:[#allocation94_spill] sm:$0xff] %v12206_v17 }
 0x5c0   : > { %v4075_v11 = vadd.f32 %v4067_v7, %v3823_v23  ;;  %v4224_v18 = vadd.f32 %v4216_v20, %v4074_v8 }
 0x5c2   : > { %v4225_v2 = vadd.f32 %v4217_v51, %v4075_v11 }
 0x5c8   : > { %v4341_v29 = vpop.f32.mrf.mxu1  ;;  %v4483_v9 = vpop.f32.mrf.mxu0 }
 0x5c9   : > { %v4360_v3 = vadd.f32 %v4341_v29, %v4218_v57  ;;  %v4502_v24 = vmul.f32 %v4483_v9, %v15039_v53 }
 0x5ca   : > { %v4343_v36 = vpop.f32.mrf.mxu1  ;;  %v4485_v62 = vpop.f32.mrf.mxu0 }
 0x5cb   : > { %v4510_v5 = vadd.f32 %v4502_v24, %v4360_v3  ;;  %v4361_v63 = vadd.f32 %v4343_v36, %v4219_v55  ;;  %v4503_v61 = vmul.f32 %v4485_v62, %v15040_v32 }
 0x5cc   : > { %v4345_v59 = vpop.f32.mrf.mxu1  ;;  %v4487_v19 = vpop.f32.mrf.mxu0 }
 0x5cd   : > { %v4526_v1 = vmul.f32 0.01, %v4510_v5  ;;  %v4511_v42 = vadd.f32 %v4503_v61, %v4361_v63  ;;  %v4362_v40 = vadd.f32 %v4345_v59, %v4220_v22  ;;  %vm4518_vm14 = vcmp.ge.f32.partialorder %v4510_v5, 0.0 }
 0x5ce   : > { %v4504_v37 = vmul.f32 %v4487_v19, %v15039_v53  ;;  %v4347_v38 = vpop.f32.mrf.mxu1  ;;  %v4489_v47 = vpop.f32.mrf.mxu0 }
 0x5cf   : > { %vm4519_vm15 = vcmp.ge.f32.partialorder %v4511_v42, 0.0  ;;  %v4527_v49 = vmul.f32 0.01, %v4511_v42  ;;  %v4363_v13 = vadd.f32 %v4347_v38, %v4221_v52  ;;  %v4505_v33 = vmul.f32 %v4489_v47, %v15040_v32  ;;  %v12209_v52 = vpop.permute.xlu0 %5747  ;;  %v12211_v38 = vpop.permute.xlu1 %5899 }
 0x5d0   : > { %v4512_v34 = vadd.f32 %v4504_v37, %v4362_v40  ;;  %v4351_v43 = vpop.f32.mrf.mxu1  ;;  %v4493_v0 = vpop.f32.mrf.mxu0  ;;  %v12195_v46 = vsel %vm4518_vm14, %v4510_v5, %v4526_v1  ;;  %15042 = vst [vmem:[#allocation95_spill] sm:$0xff] %v12211_v38 }
 0x5d1   : > { %v12197_v16 = vsel %vm4519_vm15, %v4511_v42, %v4527_v49  ;;  %v4364_v50 = vadd.f32 %v4351_v43, %v4222_v60  ;;  %v4506_v30 = vmul.f32 %v4493_v0, %v15039_v53  ;;  %v4513_v57 = vadd.f32 %v4505_v33, %v4363_v13 }
 0x5d2   : > { %v8776_v45 = vpack.c.bf16 %v12197_v16, %v12195_v46  ;;  %v4528_v54 = vmul.f32 0.01, %v4512_v34  ;;  %v4353_v48 = vpop.f32.mrf.mxu1  ;;  %v4495_v23 = vpop.f32.mrf.mxu0  ;;  %vm4520_vm0 = vcmp.ge.f32.partialorder %v4512_v34, 0.0 }
 0x5d3   : > { %v4514_v29 = vadd.f32 %v4506_v30, %v4364_v50  ;;  %v4365_v9 = vadd.f32 %v4353_v48, %v4223_v10  ;;  %v4507_v31 = vmul.f32 %v4495_v23, %v15040_v32  ;;  %vm4521_vm10 = vcmp.ge.f32.partialorder %v4513_v57, 0.0  ;;  %v12213_v51 = vpop.permute.xlu0 %5913  ;;  %v12224_v43 = vpop.permute.xlu1 %5731  ;;  %v12228_v10 = vld [vmem:[#allocation2 + $0xc0] ss:$16 sps:$4 sm:$0xff]  }
 0x5d4   : > { %4566 = vst [vmem:[#allocation2 + $0xc4] sm:$0xff] %v8776_v45  ;;  %v4529_v3 = vmul.f32 0.01, %v4513_v57  ;;  %v4355_v24 = vpop.f32.mrf.mxu1  ;;  %v4497_v55 = vpop.f32.mrf.mxu0  ;;  %v4536_v36 = vsel %vm4520_vm0, %v4512_v34, %v4528_v54  ;;  %15043 = vst [vmem:[#allocation96_spill] sm:$0xff] %v12224_v43  ;;  %v15076_v43 = vld [vmem:[#allocation52_spill] sm:$0xff] }
 0x5d5   : > { %v4530_v6 = vmul.f32 0.01, %v4514_v29  ;;  %v4515_v15 = vadd.f32 %v4507_v31, %v4365_v9  ;;  %v4366_v28 = vadd.f32 %v4355_v24, %v4224_v18  ;;  %vm4522_vm11 = vcmp.ge.f32.partialorder %v4514_v29, 0.0  ;;  %v12280_v24 = vld [vmem:[#allocation2 + $0x4] ss:$16 sps:$4 sm:$0xff]  }
 0x5d6   : > { %v4537_v62 = vsel %vm4521_vm10, %v4513_v57, %v4529_v3  ;;  %v4508_v5 = vmul.f32 %v4497_v55, %v15039_v53  ;;  %v4357_v63 = vpop.f32.mrf.mxu1  ;;  %v4499_v61 = vpop.f32.mrf.mxu0 }
 0x5d7   : > { %v8777_v22 = vpack.c.bf16 %v4537_v62, %v4536_v36  ;;  %vm4523_vm12 = vcmp.ge.f32.partialorder %v4515_v15, 0.0  ;;  %v4531_v25 = vmul.f32 0.01, %v4515_v15  ;;  %v4367_v59 = vadd.f32 %v4357_v63, %v4225_v2  ;;  %v12226_v0 = vpop.permute.xlu0 %5741  ;;  %v12234_v50 = vpop.permute.xlu1 %5727 }
 0x5d8   : > { %v4516_v7 = vadd.f32 %v4508_v5, %v4366_v28  ;;  %v4509_v19 = vmul.f32 %v4499_v61, %v15040_v32  ;;  %v4538_v20 = vsel %vm4522_vm11, %v4514_v29, %v4530_v6  ;;  %15044 = vst [vmem:[#allocation97_spill] sm:$0xff] %v12234_v50  ;;  %v12252_v57 = vpack.c.bf16 %v4537_v62, %v12197_v16  ;;  %v9052_v28 = vld [vmem:[#allocation2 + $0xe0] ss:$16 sps:$4 sm:$0xff]   ;;  %v15057_v62 = vld [vmem:[#allocation18_spill] sm:$0xff]  ;;  %v15060_v61 = vld [vmem:[#allocation32_spill] sm:$0xff] }
 0x5d9   : > { %4567 = vst [vmem:[#allocation2 + $0xd4] sm:$0xff] %v8777_v22  ;;  %v4539_v1 = vsel %vm4523_vm12, %v4515_v15, %v4531_v25  ;;  %v12269_v16 = vpack.c.bf16 %v4536_v36, %v12195_v46  ;;  %v15052_v46 = vld [vmem:[#allocation59_spill] sm:$0xff] }
 0x5da   : > { %v8778_v42 = vpack.c.bf16 %v4539_v1, %v4538_v20  ;;  %v4532_v40 = vmul.f32 0.01, %v4516_v7  ;;  %v4517_v8 = vadd.f32 %v4509_v19, %v4367_v59  ;;  %vm4524_vm13 = vcmp.ge.f32.partialorder %v4516_v7, 0.0 }
 0x5db   : > { %v12238_v30 = vpop.permute.xlu0 %5907  ;;  %v12244_v45 = vpop.permute.xlu1 %5893 }
 0x5dc   : > { %4568 = vst [vmem:[#allocation2 + $0xe4] sm:$0xff] %v8778_v42  ;;  %vm4525_vm14 = vcmp.ge.f32.partialorder %v4517_v8, 0.0  ;;  %v4533_v37 = vmul.f32 0.01, %v4517_v8  ;;  %v4540_v47 = vsel %vm4524_vm13, %v4516_v7, %v4532_v40  ;;  %15045 = vst [vmem:[#allocation98_spill] sm:$0xff] %v12244_v45 }
 0x5dd   : > { %v12219_v33 = vpack.c.bf16 %v4540_v47, %v4538_v20  ;;  %v15063_v20 = vld [vmem:[#allocation66_spill] sm:$0xff] }
 0x5de   : > { %v4541_v60 = vsel %vm4525_vm14, %v4517_v8, %v4533_v37  ;;  %v15066_v8 = vld [vmem:[#allocation70_spill] sm:$0xff]  ;;  %v15067_v37 = vld [vmem:[#allocation20_spill] sm:$0xff] }
 0x5df   : > { %v8779_v49 = vpack.c.bf16 %v4541_v60, %v4540_v47  ;;  %v12217_v34 = vpack.c.bf16 %v4541_v60, %v4539_v1  ;;  %v12246_v54 = vpop.permute.xlu0 %5903  ;;  %v12254_v48 = vpop.permute.xlu1 %5725  ;;  %v15068_v60 = vld [vmem:[#allocation19_spill] sm:$0xff] }
 0x5e0   : > { %v9044_v13 = vld [vmem:[#allocation2 + $0xc8] ss:$16 sps:$4 sm:$0xff]   ;;  %v12215_v11 = vld [vmem:[#allocation2 + $0xc4] ss:$16 sps:$4 sm:$0xff]   ;;  %15046 = vst [vmem:[#allocation99_spill] sm:$0xff] %v12254_v48 }
 0x5e1   : > { %4569 = vst [vmem:[#allocation2 + $0xf4] sm:$0xff] %v8779_v49  ;;  %4787 = vrot.lane.b32.xlu1 %v9044_v13, %s9426_s12  ;;  %4785 = vrot.lane.b32.xlu0 %v12215_v11, %s9426_s12 }
 0x5e3   : > { %v12258_v23 = vpop.permute.xlu0 %5735  ;;  %v12266_v18 = vpop.permute.xlu1 %5721 }
 0x5e4   : > { %15047 = vst [vmem:[#allocation100_spill] sm:$0xff] %v12258_v23  ;;  %15048 = vst [vmem:[#allocation101_spill] sm:$0xff] %v12266_v18 }
 0x5e5   : > { %4951 = vrot.lane.b32.xlu1 %v12215_v11, %s9427_s22  ;;  %4783 = vrot.lane.b32.xlu0 %v12228_v10, %s9426_s12 }
 0x5e7   : > { %v12271_v29 = vpop.permute.xlu0 %5901  ;;  %v12277_v3 = vpop.permute.xlu1 %5887 }
 0x5e8   : > { %15049 = vst [vmem:[#allocation102_spill] sm:$0xff] %v12271_v29  ;;  %v9048_v9 = vld [vmem:[#allocation2 + $0xe4] ss:$16 sps:$4 sm:$0xff]   ;;  %v9050_v31 = vld [vmem:[#allocation2 + $0xe8] ss:$16 sps:$4 sm:$0xff]   ;;  %15050 = vst [vmem:[#allocation103_spill] sm:$0xff] %v12277_v3 }
 0x5e9   : > { %5109 = vrot.lane.b32.xlu1 %v12215_v11, %s9428_s13  ;;  %4953 = vrot.lane.b32.xlu0 %v9044_v13, %s9427_s22 }
 0x5eb   : > { %v12282_v55 = vpop.permute.xlu0 %5897  ;;  %v12289_v6 = vpop.permute.xlu1 %5719 }
 0x5ec   : > { %15051 = vst [vmem:[#allocation104_spill] sm:$0xff] %v12282_v55  ;;  %15053 = vst [vmem:[#allocation59_spill] sm:$0xff] %v12289_v6 }
 0x5ed   : > { %4949 = vrot.lane.b32.xlu1 %v12228_v10, %s9427_s22  ;;  %5111 = vrot.lane.b32.xlu0 %v9044_v13, %s9428_s13 }
 0x5ef   : > { %v12291_v15 = vpop.permute.xlu0 %5729  ;;  %v12297_v2 = vpop.permute.xlu1 %5715 }
 0x5f0   : > { %15054 = vst [vmem:[#allocation105_spill] sm:$0xff] %v12291_v15  ;;  %15055 = vst [vmem:[#allocation106_spill] sm:$0xff] %v12297_v2 }
 0x5f1   : > { %5277 = vrot.lane.b32.xlu1 %v9044_v13, %s14806_s20  ;;  %5107 = vrot.lane.b32.xlu0 %v12228_v10, %s9428_s13 }
 0x5f3   : > { %v12300_v36 = vpop.permute.xlu0 %5895  ;;  %v12308_v5 = vpop.permute.xlu1 %5881 }
 0x5f4   : > { %15056 = vst [vmem:[#allocation107_spill] sm:$0xff] %v12300_v36  ;;  %15058 = vst [vmem:[#allocation18_spill] sm:$0xff] %v12308_v5  ;;  %v15075_v36 = vld [vmem:[#allocation36_spill] sm:$0xff] }
 0x5f5   : > { %5751 = vrot.lane.b32.xlu1 %v12252_v57, %s14808_s26  ;;  %5275 = vrot.lane.b32.xlu0 %v12215_v11, %s14806_s20 }
 0x5f7   : > { %v12310_v63 = vpop.permute.xlu0 %5891  ;;  %v12315_v22 = vpop.permute.xlu1 %4779 }
 0x5f8   : > { %15059 = vst [vmem:[#allocation108_spill] sm:$0xff] %v12310_v63 }
 0x5f9   : > { %5917 = vrot.lane.b32.xlu1 %v12252_v57, %s14809_s10  ;;  %5273 = vrot.lane.b32.xlu0 %v12228_v10, %s14806_s20 }
 0x5fb   : > { %v12318_v25 = vpop.permute.xlu0 %5723  ;;  %v12323_v7 = vpop.permute.xlu1 %4777 }
 0x5fc   : > { %15061 = vst [vmem:[#allocation32_spill] sm:$0xff] %v12318_v25  ;;  %v15074_v25 = vld [vmem:[#allocation56_spill] sm:$0xff] }
 0x5fd   : > { %5749 = vrot.lane.b32.xlu1 %v12269_v16, %s14808_s26  ;;  %5915 = vrot.lane.b32.xlu0 %v12269_v16, %s14809_s10 }
 0x5ff   : > { %v12325_v59 = vpop.permute.xlu0 %5889  ;;  %v12330_v19 = vpop.permute.xlu1 %4945 }
 0x600   : > { %15062 = vst [vmem:[#allocation109_spill] sm:$0xff] %v12325_v59 }
 0x601   : > { %4791 = vrot.lane.b32.xlu1 %v9048_v9, %s9426_s12  ;;  %4793 = vrot.lane.b32.xlu0 %v9050_v31, %s9426_s12 }
 0x603   : > { %v12334_v1 = vpop.permute.xlu0 %5885  ;;  %v12342_v42 = vpop.permute.xlu1 %5103 }
 0x604   : > { %15064 = vst [vmem:[#allocation66_spill] sm:$0xff] %v12334_v1 }
 0x605   : > { %5713 = vrot.lane.b32.xlu1 %v12280_v24, %s14808_s26  ;;  %5883 = vrot.lane.b32.xlu0 %v15052_v46, %s14809_s10 }
 0x607   : > { %v12344_v40 = vpop.permute.xlu0 %5717  ;;  %v12350_v47 = vpop.permute.xlu1 %4943 }
 0x608   : > { %15065 = vst [vmem:[#allocation110_spill] sm:$0xff] %v12344_v40  ;;  %v15072_v40 = vld [vmem:[#allocation30_spill] sm:$0xff] }
 0x609   : > { %6083 = vrot.lane.b32.xlu1 %v12252_v57, %s9432_s19  ;;  %5879 = vrot.lane.b32.xlu0 %v12280_v24, %s14809_s10 }
 0x60b   : > { %v12354_v49 = vpop.permute.xlu0 %4781  ;;  %v12362_v13 = vpop.permute.xlu1 %5269 }
 0x60d   : > { %4789 = vrot.lane.b32.xlu1 %v9052_v28, %s9426_s12  ;;  %6091 = vrot.lane.b32.xlu0 %v15057_v62, %s9432_s19 }
 0x60f   : > { %v12370_v32 = vpop.permute.xlu1 %5267 }
 0x611   : > { %6241 = vrot.lane.b32.xlu1 %v12252_v57, %s9433_s24  ;;  %6249 = vrot.lane.b32.xlu0 %v15057_v62, %s9433_s24  ;;  %v12364_v62 = vpop.permute.xlu0 %4947 }
 0x615   : > { %4957 = vrot.lane.b32.xlu1 %v9048_v9, %s9427_s22  ;;  %6085 = vrot.lane.b32.xlu0 %v15060_v61, %s9432_s19 }
 0x619   : > { %5115 = vrot.lane.b32.xlu1 %v9048_v9, %s9428_s13  ;;  %4959 = vrot.lane.b32.xlu0 %v9050_v31, %s9427_s22 }
 0x61d   : > { %4955 = vrot.lane.b32.xlu1 %v9052_v28, %s9427_s22  ;;  %5117 = vrot.lane.b32.xlu0 %v9050_v31, %s9428_s13 }
 0x621   : > { %6081 = vrot.lane.b32.xlu1 %v12269_v16, %s9432_s19  ;;  %5113 = vrot.lane.b32.xlu0 %v9052_v28, %s9428_s13 }
 0x625   : > { %6077 = vrot.lane.b32.xlu1 %v15063_v20, %s9432_s19  ;;  %6243 = vrot.lane.b32.xlu0 %v15060_v61, %s9433_s24  ;;  %v15069_v61 = vld [vmem:[#allocation28_spill] sm:$0xff] }
 0x629   : > { %6235 = vrot.lane.b32.xlu1 %v15063_v20, %s9433_s24  ;;  %6239 = vrot.lane.b32.xlu0 %v12269_v16, %s9433_s24  ;;  %v15070_v20 = vld [vmem:[#allocation40_spill] sm:$0xff] }
 0x62d   : > { %6075 = vrot.lane.b32.xlu1 %v15066_v8, %s9432_s19  ;;  %6079 = vrot.lane.b32.xlu0 %v15067_v37, %s9432_s19 }
 0x631   : > { %6071 = vrot.lane.b32.xlu1 %v15068_v60, %s9432_s19  ;;  %6237 = vrot.lane.b32.xlu0 %v15067_v37, %s9433_s24  ;;  %v12373_v37 = vpop.permute.xlu0 %5105 }
 0x635   : > { %6229 = vrot.lane.b32.xlu1 %v15068_v60, %s9433_s24  ;;  %6233 = vrot.lane.b32.xlu0 %v15066_v8, %s9433_s24  ;;  %v9192_v8 = vld [vmem:[#allocation2 + $0x68] ss:$16 sps:$4 sm:$0xff]   ;;  %v12379_v60 = vpop.permute.xlu1 %5745  ;;  %v12381_v53 = vpop.permute.xlu0 %5101 }
 0x639   : > { %6069 = vrot.lane.b32.xlu1 %v15069_v61, %s9432_s19  ;;  %6073 = vrot.lane.b32.xlu0 %v15070_v20, %s9432_s19 }
 0x63d   : > { %5281 = vrot.lane.b32.xlu1 %v9048_v9, %s14806_s20  ;;  %6231 = vrot.lane.b32.xlu0 %v15070_v20, %s9433_s24  ;;  %v12386_v9 = vpop.permute.xlu1 %5911  ;;  %v12389_v20 = vpop.permute.xlu0 %5271 }
 0x641   : > { %6065 = vrot.lane.b32.xlu1 %v9192_v8, %s9432_s19  ;;  %5283 = vrot.lane.b32.xlu0 %v9050_v31, %s14806_s20  ;;  %v12396_v31 = vpop.permute.xlu1 %5743 }
 0x645   : > { %6223 = vrot.lane.b32.xlu1 %v9192_v8, %s9433_s24  ;;  %6227 = vrot.lane.b32.xlu0 %v15069_v61, %s9433_s24  ;;  %v12398_v8 = vpop.permute.xlu0 %5909  ;;  %v9194_v61 = vld [vmem:[#allocation2 + $0x48] ss:$16 sps:$4 sm:$0xff]  }
 0x649   : > { %6063 = vrot.lane.b32.xlu1 %v9193_v44, %s9432_s19  ;;  %6067 = vrot.lane.b32.xlu0 %v15071_v14, %s9432_s19 }
 0x64d   : > { %5279 = vrot.lane.b32.xlu1 %v9052_v28, %s14806_s20  ;;  %6225 = vrot.lane.b32.xlu0 %v15071_v14, %s9433_s24  ;;  %v9195_v14 = vld [vmem:[#allocation2 + $0x44] ss:$16 sps:$4 sm:$0xff]  }
 0x651   : > { %6059 = vrot.lane.b32.xlu1 %v9194_v61, %s9432_s19  ;;  %6221 = vrot.lane.b32.xlu0 %v9193_v44, %s9433_s24  ;;  %v15073_v44 = vld [vmem:[#allocation49_spill] sm:$0xff] }
 0x653   : > { %v4788_v5 = vpop.permute.xlu1 %4787  ;;  %v4786_v2 = vpop.permute.xlu0 %4785 }
 0x655   : > { %6217 = vrot.lane.b32.xlu1 %v9194_v61, %s9433_s24  ;;  %6061 = vrot.lane.b32.xlu0 %v15072_v40, %s9432_s19 }
 0x657   : > { %v12405_v28 = vpop.permute.xlu1 %4951  ;;  %v4784_v1 = vpop.permute.xlu0 %4783 }
 0x659   : > { %6057 = vrot.lane.b32.xlu1 %v9195_v14, %s9432_s19  ;;  %6219 = vrot.lane.b32.xlu0 %v15072_v40, %s9433_s24 }
 0x65b   : > { %v12410_v6 = vpop.permute.xlu1 %5109  ;;  %v12412_v3 = vpop.permute.xlu0 %4953 }
 0x65d   : > { %6053 = vrot.lane.b32.xlu1 %v15073_v44, %s9432_s19  ;;  %6215 = vrot.lane.b32.xlu0 %v9195_v14, %s9433_s24 }
 0x65f   : > { %v12417_v61 = vpop.permute.xlu1 %4949  ;;  %v12419_v59 = vpop.permute.xlu0 %5111 }
 0x661   : > { %5757 = vrot.lane.b32.xlu1 %v12217_v34, %s14808_s26  ;;  %5921 = vrot.lane.b32.xlu0 %v12219_v33, %s14809_s10 }
 0x663   : > { %v12425_v40 = vpop.permute.xlu1 %5277  ;;  %v12427_v18 = vpop.permute.xlu0 %5107 }
 0x665   : > { %5923 = vrot.lane.b32.xlu1 %v12217_v34, %s14809_s10  ;;  %6055 = vrot.lane.b32.xlu0 %v15074_v25, %s9432_s19 }
 0x667   : > { %v12433_v14 = vpop.permute.xlu1 %5751  ;;  %v12435_v63 = vpop.permute.xlu0 %5275 }
 0x669   : > { %5755 = vrot.lane.b32.xlu1 %v12219_v33, %s14808_s26  ;;  %6213 = vrot.lane.b32.xlu0 %v15074_v25, %s9433_s24 }
 0x66b   : > { %v12441_v48 = vpop.permute.xlu1 %5917  ;;  %v12443_v45 = vpop.permute.xlu0 %5273 }
 0x66d   : > { %6211 = vrot.lane.b32.xlu1 %v15073_v44, %s9433_s24  ;;  %6209 = vrot.lane.b32.xlu0 %v15075_v36, %s9433_s24 }
 0x66f   : > { %v12449_v50 = vpop.permute.xlu1 %5749  ;;  %v12451_v15 = vpop.permute.xlu0 %5915 }
 0x671   : > { %6051 = vrot.lane.b32.xlu1 %v15075_v36, %s9432_s19  ;;  %6049 = vrot.lane.b32.xlu0 %v15052_v46, %s9432_s19 }
 0x673   : > { %v4792_v25 = vpop.permute.xlu1 %4791  ;;  %v4794_v55 = vpop.permute.xlu0 %4793 }
 0x674   : > { %v4810_v44 = vsel %vm524_vm1, %v4792_v25, %v4794_v55  ;;  %v8566_v55 = vld [vmem:[%s14581_s6 + $0x70] sm:$0xff] }
 0x675   : > { %6047 = vrot.lane.b32.xlu1 %v15076_v43, %s9432_s19  ;;  %6207 = vrot.lane.b32.xlu0 %v15052_v46, %s9433_s24 }
 0x676   : > { %4827 = vmatprep.subr.bf16.mxu1 %v4810_v44 }
 0x677   : > { %v12462_v38 = vpop.permute.xlu1 %5713  ;;  %v12464_v29 = vpop.permute.xlu0 %5883 }
 0x678   : > { %15077 = vst [vmem:[#allocation70_spill] sm:$0xff] %v12462_v38  ;;  %15078 = vst [vmem:[#allocation20_spill] sm:$0xff] %v12464_v29  ;;  %v4807_v29 = vsel %vm524_vm1, %v4784_v1, %v4786_v2 }
 0x679   : > { %6205 = vrot.lane.b32.xlu1 %v15076_v43, %s9433_s24  ;;  %6203 = vrot.lane.b32.xlu0 %v12280_v24, %s9433_s24  ;;  %v8567_v43 = vld [vmem:[%s14581_s6 + $0x78] sm:$0xff] }
 0x67b   : > { %v12470_v36 = vpop.permute.xlu1 %6083  ;;  %v12472_v17 = vpop.permute.xlu0 %5879 }
 0x67c   : > { %15079 = vst [vmem:[#allocation19_spill] sm:$0xff] %v12470_v36  ;;  %15080 = vst [vmem:[#allocation28_spill] sm:$0xff] %v12472_v17  ;;  %v12488_v17 = vld [vmem:[#allocation2] ss:$16 sps:$4 sm:$0xff]  }
 0x67d   : > { %6045 = vrot.lane.b32.xlu1 %v12280_v24, %s9432_s19  ;;  %6245 = vrot.lane.b32.xlu0 %v12219_v33, %s9433_s24  ;;  %v4808_v24 = vsel %vm524_vm1, %v4786_v2, %v4788_v5  ;;  %15082 = vst [vmem:[#allocation53_spill] sm:$0xff] %v12488_v17  ;;  %v12502_v5 = vld [vmem:[#allocation2 + $0x8] ss:$16 sps:$4 sm:$0xff]   ;;  %v4805_v2 = vsel %vm524_vm1, %v12323_v7, %v12315_v22 }
 0x67e   : > { %15085 = vst [vmem:[#allocation56_spill] sm:$0xff] %v12502_v5 }
 0x67f   : > { %v4790_v46 = vpop.permute.xlu1 %4789  ;;  %v12485_v36 = vpop.permute.xlu0 %6091 }
 0x680   : > { %v4809_v44 = vsel %vm524_vm1, %v4790_v46, %v4792_v25  ;;  %15081 = vst [vmem:[#allocation40_spill] sm:$0xff] %v12485_v36  ;;  %v4806_v25 = vsel %vm524_vm1, %v12315_v22, %v12354_v49  ;;  %v15088_v46 = vld [vmem:[#allocation31_spill] sm:$0xff] }
 0x681   : > { %4587 = vperm.xlu1 %8879, %v8566_v55   ;;  %4828 = vmatpush1.bf16.msra.mxu1 %v4809_v44  ;;  %v15089_v22 = vld [vmem:[#allocation35_spill] sm:$0xff] }
 0x682   : > { %4592 = vperm.xlu0 %8878, %v8567_v43   ;;  %4829 = vmatprep.subr.bf16.mxu1 %v4808_v24  ;;  %v12516_v43 = vld [vmem:[#allocation2 + $0x24] ss:$16 sps:$4 sm:$0xff]   ;;  %v4803_v7 = vsel %vm524_vm1, %v15089_v22, %v15088_v46  ;;  %v12739_v36 = vld [vmem:[#allocation2 + $0x60] ss:$16 sps:$4 sm:$0xff]  }
 0x683   : > { %v12490_v38 = vpop.permute.xlu1 %6241  ;;  %v12493_v23 = vpop.permute.xlu0 %6249  ;;  %v15092_v22 = vld [vmem:[#allocation47_spill] sm:$0xff] }
 0x684   : > { %15083 = vst [vmem:[#allocation30_spill] sm:$0xff] %v12490_v38  ;;  %15084 = vst [vmem:[#allocation49_spill] sm:$0xff] %v12493_v23  ;;  %v12538_v23 = vld [vmem:[#allocation2 + $0x40] ss:$16 sps:$4 sm:$0xff]  }
 0x685   : > { %6089 = vrot.lane.b32.xlu1 %v12217_v34, %s9432_s19  ;;  %4830 = vmatpush1.bf16.msra.mxu1 %v4807_v29  ;;  %v15087_v29 = vld [vmem:[#allocation33_spill] sm:$0xff] }
 0x686   : > { %6588 = vrot.lane.b32.xlu0 %v12488_v17, %s9426_s12  ;;  %4831 = vmatprep.subr.bf16.mxu1 %v4806_v25  ;;  %v4804_v49 = vsel %vm524_vm1, %v15088_v46, %v15087_v29  ;;  %v15091_v29 = vld [vmem:[#allocation43_spill] sm:$0xff] }
 0x687   : > { %v4958_v55 = vpop.permute.xlu1 %4957  ;;  %v12507_v1 = vpop.permute.xlu0 %6085 }
 0x688   : > { %15086 = vst [vmem:[#allocation36_spill] sm:$0xff] %v12507_v1  ;;  %v8654_v1 = vld [vmem:[%s14581_s6 + $0x80] sm:$0xff] }
 0x689   : > { %6247 = vrot.lane.b32.xlu1 %v12217_v34, %s9433_s24  ;;  %4832 = vmatpush1.bf16.msra.mxu1 %v4805_v2  ;;  %v15090_v2 = vld [vmem:[#allocation16_spill] sm:$0xff] }
 0x68a   : > { %6592 = vrot.lane.b32.xlu0 %v12502_v5, %s9426_s12  ;;  %4833 = vmatprep.subr.bf16.mxu1 %v4804_v49  ;;  %v4802_v49 = vsel %vm524_vm1, %v15091_v29, %v15090_v2  ;;  %v15094_v2 = vld [vmem:[#allocation42_spill] sm:$0xff] }
 0x68b   : > { %v12518_v44 = vpop.permute.xlu1 %5115  ;;  %v4960_v24 = vpop.permute.xlu0 %4959 }
 0x68c   : > { %v4976_v25 = vsel %vm647_vm3, %v4958_v55, %v4960_v24 }
 0x68d   : > { %6087 = vrot.lane.b32.xlu1 %v12219_v33, %s9432_s19  ;;  %4834 = vmatpush1.bf16.msra.mxu1 %v4803_v7  ;;  %v4801_v7 = vsel %vm524_vm1, %v15092_v22, %v15091_v29  ;;  %v4974_v29 = vsel %vm647_vm3, %v12405_v28, %v12412_v3  ;;  %v12562_v3 = vld [vmem:[#allocation2 + $0x20] ss:$16 sps:$4 sm:$0xff]  }
 0x68e   : > { %6596 = vrot.lane.b32.xlu0 %v12516_v43, %s9426_s12  ;;  %4993 = vmatprep.subr.bf16.mxu0 %v4976_v25  ;;  %v12540_v25 = vld [vmem:[#allocation2 + $0x4] ss:$16 sps:$4 sm:$0xff]  }
 0x68f   : > { %4835 = vmatprep.subr.bf16.mxu1 %v4802_v49  ;;  %v4956_v46 = vpop.permute.xlu1 %4955  ;;  %v5118_v38 = vpop.permute.xlu0 %5117  ;;  %15093 = vst [vmem:[#allocation52_spill] sm:$0xff] %v12540_v25  ;;  %v15095_v49 = vld [vmem:[#allocation37_spill] sm:$0xff] }
 0x690   : > { %v4975_v24 = vsel %vm647_vm3, %v4956_v46, %v4958_v55  ;;  %v4800_v5 = vsel %vm524_vm1, %v15095_v49, %v15094_v2  ;;  %v15099_v2 = vld [vmem:[#allocation44_spill] sm:$0xff] }
 0x691   : > { %6408 = vperm.xlu1 %8879, %v8654_v1   ;;  %4836 = vmatpush1.bf16.msra.mxu1 %v4801_v7  ;;  %v15097_v1 = vld [vmem:[#allocation34_spill] sm:$0xff] }
 0x692   : > { %6600 = vrot.lane.b32.xlu0 %v12538_v23, %s9426_s12  ;;  %4994 = vmatpush1.bf16.msra.mxu0 %v4975_v24  ;;  %v4799_v46 = vsel %vm524_vm1, %v15097_v1, %v15095_v49  ;;  %v12555_v7 = vld [vmem:[#allocation2 + $0x48] ss:$16 sps:$4 sm:$0xff]   ;;  %v4973_v24 = vsel %vm647_vm3, %v12417_v61, %v12405_v28 }
 0x693   : > { %4837 = vmatprep.subr.bf16.mxu1 %v4800_v5  ;;  %4995 = vmatprep.subr.bf16.mxu0 %v4974_v29  ;;  %v12550_v55 = vpop.permute.xlu1 %6081  ;;  %v5114_v22 = vpop.permute.xlu0 %5113  ;;  %v15098_v5 = vld [vmem:[#allocation38_spill] sm:$0xff]  ;;  %v4972_v29 = vsel %vm647_vm3, %v12330_v19, %v12364_v62 }
 0x694   : > { %15096 = vst [vmem:[#allocation33_spill] sm:$0xff] %v12550_v55  ;;  %v4798_v49 = vsel %vm524_vm1, %v15099_v2, %v15098_v5  ;;  %v15101_v61 = vld [vmem:[#allocation54_spill] sm:$0xff] }
 0x695   : > { %6590 = vrot.lane.b32.xlu1 %v12540_v25, %s9426_s12  ;;  %4838 = vmatpush1.bf16.msra.mxu1 %v4799_v46  ;;  %v4797_v1 = vsel %vm524_vm1, %v15101_v61, %v15099_v2  ;;  %v12584_v5 = vld [vmem:[#allocation2 + $0x28] ss:$16 sps:$4 sm:$0xff]  }
 0x696   : > { %6604 = vrot.lane.b32.xlu0 %v12555_v7, %s9426_s12  ;;  %4996 = vmatpush1.bf16.msra.mxu0 %v4973_v24  ;;  %v4971_v24 = vsel %vm647_vm3, %v12350_v47, %v12330_v19  ;;  %v15103_v62 = vld [vmem:[#allocation46_spill] sm:$0xff]  ;;  %v15106_v61 = vld [vmem:[#allocation48_spill] sm:$0xff] }
 0x697   : > { %4839 = vmatprep.subr.bf16.mxu1 %v4798_v49  ;;  %4997 = vmatprep.subr.bf16.mxu0 %v4972_v29  ;;  %v12572_v28 = vpop.permute.xlu1 %6077  ;;  %v12577_v46 = vpop.permute.xlu0 %6243  ;;  %v15104_v49 = vld [vmem:[#allocation21_spill] sm:$0xff]  ;;  %v15108_v47 = vld [vmem:[#allocation22_spill] sm:$0xff] }
 0x698   : > { %15100 = vst [vmem:[#allocation31_spill] sm:$0xff] %v12572_v28  ;;  %15102 = vst [vmem:[#allocation35_spill] sm:$0xff] %v12577_v46  ;;  %v4796_v2 = vsel %vm524_vm1, %v15104_v49, %v15103_v62  ;;  %v15105_v29 = vld [vmem:[#allocation45_spill] sm:$0xff]  ;;  %v9064_v46 = vld [vmem:[#allocation8] sm:$0xff]  }
 0x699   : > { %6594 = vrot.lane.b32.xlu1 %v12562_v3, %s9426_s12  ;;  %4840 = vmatpush1.bf16.msra.mxu1 %v4797_v1  ;;  %v4970_v28 = vsel %vm647_vm3, %v15106_v61, %v15105_v29  ;;  %v4795_v1 = vsel %vm524_vm1, %v15108_v47, %v15104_v49  ;;  %v15112_v62 = vld [vmem:[#allocation60_spill] sm:$0xff]  ;;  %v5134_v49 = vsel %vm750_vm2, %v12518_v44, %v5118_v38 }
 0x69a   : > { %6626 = vrot.lane.b32.xlu0 %v12215_v11, %s9426_s12  ;;  %4998 = vmatpush1.bf16.msra.mxu0 %v4971_v24  ;;  %v15110_v24 = vld [vmem:[#allocation58_spill] sm:$0xff]  ;;  %v5133_v47 = vsel %vm750_vm2, %v5114_v22, %v12518_v44  ;;  %v15116_v38 = vld [vmem:[#allocation24_spill] sm:$0xff]  ;;  %v5132_v22 = vsel %vm750_vm2, %v12410_v6, %v12419_v59 }
 0x69b   : > { %4841 = vmatprep.subr.bf16.mxu1 %v4796_v2  ;;  %4999 = vmatprep.subr.bf16.mxu0 %v4970_v28  ;;  %v12594_v19 = vpop.permute.xlu1 %6235  ;;  %v12599_v55 = vpop.permute.xlu0 %6239  ;;  %v4969_v17 = vsel %vm647_vm3, %v15110_v24, %v15106_v61  ;;  %v15111_v28 = vld [vmem:[#allocation51_spill] sm:$0xff]  ;;  %v15115_v24 = vld [vmem:[#allocation62_spill] sm:$0xff] }
 0x69c   : > { %15107 = vst [vmem:[#allocation16_spill] sm:$0xff] %v12594_v19  ;;  %15109 = vst [vmem:[#allocation43_spill] sm:$0xff] %v12599_v55  ;;  %v4968_v2 = vsel %vm647_vm3, %v15112_v62, %v15111_v28  ;;  %v12615_v61 = vld [vmem:[#allocation2 + $0x44] ss:$16 sps:$4 sm:$0xff]   ;;  %v4967_v28 = vsel %vm647_vm3, %v15115_v24, %v15112_v62  ;;  %v12638_v62 = vld [vmem:[#allocation2 + $0xc8] ss:$16 sps:$4 sm:$0xff]  }
 0x69d   : > { %6598 = vrot.lane.b32.xlu1 %v12584_v5, %s9426_s12  ;;  %4842 = vmatpush1.bf16.msra.mxu1 %v4795_v1  ;;  %v12645_v24 = vld [vmem:[#allocation2 + $0x84] ss:$16 sps:$4 sm:$0xff]  }
 0x69e   : > { %6624 = vrot.lane.b32.xlu0 %v12228_v10, %s9426_s12  ;;  %5000 = vmatpush1.bf16.msra.mxu0 %v4969_v17  ;;  %v12621_v17 = vld [vmem:[#allocation2 + $0xa8] ss:$16 sps:$4 sm:$0xff]   ;;  %15120 = vst [vmem:[#allocation38_spill] sm:$0xff] %v12645_v24 }
 0x69f   : > { %5001 = vmatprep.subr.bf16.mxu0 %v4968_v2  ;;  %5151 = vmatprep.subr.bf16.mxu1 %v5134_v49  ;;  %v12613_v29 = vpop.permute.xlu1 %6075  ;;  %v12619_v1 = vpop.permute.xlu0 %6079  ;;  %v15117_v2 = vld [vmem:[#allocation64_spill] sm:$0xff]  ;;  %v5131_v49 = vsel %vm750_vm2, %v12427_v18, %v12410_v6 }
 0x6a0   : > { %15113 = vst [vmem:[#allocation47_spill] sm:$0xff] %v12613_v29  ;;  %15114 = vst [vmem:[#allocation42_spill] sm:$0xff] %v12619_v1  ;;  %4860 = vmatmul.mubr.bf16.vlgmr.msra.gmra.mxu1 %v9064_v46  ;;  %v4966_v44 = vsel %vm647_vm3, %v15117_v2, %v15116_v38  ;;  %v9070_v38 = vld [vmem:[#allocation8 + $0x8] sm:$0xff]   ;;  %v15122_v29 = vld [vmem:[#allocation69_spill] sm:$0xff] }
 0x6a1   : > { %6602 = vrot.lane.b32.xlu1 %v12615_v61, %s9426_s12  ;;  %5152 = vmatpush1.bf16.msra.mxu1 %v5133_v47  ;;  %v4965_v59 = vsel %vm647_vm3, %v15122_v29, %v15117_v2  ;;  %v15123_v18 = vld [vmem:[#allocation68_spill] sm:$0xff]  ;;  %v12663_v29 = vld [vmem:[#allocation2 + $0xa4] ss:$16 sps:$4 sm:$0xff]   ;;  %v5129_v2 = vsel %vm750_vm2, %v12381_v53, %v12342_v42 }
 0x6a2   : > { %6622 = vrot.lane.b32.xlu0 %v12621_v17, %s9426_s12  ;;  %5002 = vmatpush1.bf16.msra.mxu0 %v4967_v28  ;;  %v15121_v28 = vmov 0   ;;  %v15124_v6 = vld [vmem:[#allocation72_spill] sm:$0xff] }
 0x6a3   : > { %5003 = vmatprep.subr.bf16.mxu0 %v4966_v44  ;;  %5153 = vmatprep.subr.bf16.mxu1 %v5132_v22  ;;  %v12636_v46 = vpop.permute.xlu1 %6071  ;;  %v12643_v47 = vpop.permute.xlu0 %6237  ;;  %v4964_v44 = vsel %vm647_vm3, %v15124_v6, %v15123_v18  ;;  %v5130_v22 = vsel %vm750_vm2, %v12342_v42, %v12373_v37  ;;  %v15127_v18 = vld [vmem:[#allocation76_spill] sm:$0xff]  ;;  %v15128_v37 = vld [vmem:[#allocation75_spill] sm:$0xff]  ;;  %v15130_v42 = vld [vmem:[#allocation50_spill] sm:$0xff] }
 0x6a4   : > { %15118 = vst [vmem:[#allocation37_spill] sm:$0xff] %v12636_v46  ;;  %15119 = vst [vmem:[#allocation34_spill] sm:$0xff] %v12643_v47  ;;  %4869 = vmatprep.mubr.bf16.mxu1 %v15121_v28  ;;  %v4963_v1 = vsel %vm647_vm3, %v15127_v18, %v15124_v6  ;;  %v12687_v6 = vld [vmem:[#allocation2 + $0xa0] ss:$16 sps:$4 sm:$0xff]   ;;  %v9080_v47 = vld [vmem:[#allocation8 + $0x18] sm:$0xff]  }
 0x6a5   : > { %6628 = vrot.lane.b32.xlu1 %v12638_v62, %s9426_s12  ;;  %5154 = vmatpush1.bf16.msra.mxu1 %v5131_v49 }
 0x6a6   : > { %6614 = vrot.lane.b32.xlu0 %v12645_v24, %s9426_s12  ;;  %5004 = vmatpush1.bf16.msra.mxu0 %v4965_v59  ;;  %v12670_v59 = vld [vmem:[#allocation2 + $0x80] ss:$16 sps:$4 sm:$0xff]  }
 0x6a7   : > { %5005 = vmatprep.subr.bf16.mxu0 %v4964_v44  ;;  %5155 = vmatprep.subr.bf16.mxu1 %v5130_v22  ;;  %v12661_v46 = vpop.permute.xlu1 %6229  ;;  %v12668_v49 = vpop.permute.xlu0 %6233  ;;  %v15129_v44 = vld [vmem:[#allocation78_spill] sm:$0xff] }
 0x6a8   : > { %15125 = vst [vmem:[#allocation44_spill] sm:$0xff] %v12661_v46  ;;  %15126 = vst [vmem:[#allocation54_spill] sm:$0xff] %v12668_v49  ;;  %4870 = vmatmul.mubr.bf16.gmra.mxu1 %v9070_v38  ;;  %v4962_v53 = vsel %vm647_vm3, %v15129_v44, %v15128_v37  ;;  %v15131_v38 = vld [vmem:[#allocation41_spill] sm:$0xff]  ;;  %v15135_v37 = vld [vmem:[#allocation82_spill] sm:$0xff] }
 0x6a9   : > { %6620 = vrot.lane.b32.xlu1 %v12663_v29, %s9426_s12  ;;  %5156 = vmatpush1.bf16.msra.mxu1 %v5129_v2  ;;  %v5128_v22 = vsel %vm750_vm2, %v15131_v38, %v15130_v42  ;;  %v12691_v2 = vld [vmem:[#allocation2 + $0x68] ss:$16 sps:$4 sm:$0xff]   ;;  %v4961_v42 = vsel %vm647_vm3, %v15135_v37, %v15129_v44  ;;  %v15140_v37 = vld [vmem:[#allocation63_spill] sm:$0xff] }
 0x6aa   : > { %6612 = vrot.lane.b32.xlu0 %v12670_v59, %s9426_s12  ;;  %5006 = vmatpush1.bf16.msra.mxu0 %v4963_v1  ;;  %v15134_v1 = vld [vmem:[#allocation39_spill] sm:$0xff] }
 0x6ab   : > { %5007 = vmatprep.subr.bf16.mxu0 %v4962_v53  ;;  %5157 = vmatprep.subr.bf16.mxu1 %v5128_v22  ;;  %v12685_v46 = vpop.permute.xlu1 %6069  ;;  %v12689_v18 = vpop.permute.xlu0 %6073  ;;  %v5127_v49 = vsel %vm750_vm2, %v15134_v1, %v15131_v38  ;;  %v9076_v53 = vld [vmem:[#allocation8 + $0x10] sm:$0xff]   ;;  %v15136_v22 = vld [vmem:[#allocation55_spill] sm:$0xff]  ;;  %v12707_v1 = vld [vmem:[#allocation2 + $0x88] ss:$16 sps:$4 sm:$0xff]  }
 0x6ac   : > { %15132 = vst [vmem:[#allocation46_spill] sm:$0xff] %v12685_v46  ;;  %15133 = vst [vmem:[#allocation21_spill] sm:$0xff] %v12689_v18  ;;  %5183 = vmatprep.mubr.bf16.mxu1 %v15121_v28  ;;  %v15137_v46 = vld [vmem:[#allocation61_spill] sm:$0xff] }
 0x6ad   : > { %6618 = vrot.lane.b32.xlu1 %v12687_v6, %s9426_s12  ;;  %5158 = vmatpush1.bf16.msra.mxu1 %v5127_v49  ;;  %v5126_v18 = vsel %vm750_vm2, %v15137_v46, %v15136_v22  ;;  %v15139_v49 = vld [vmem:[#allocation57_spill] sm:$0xff] }
 0x6ae   : > { %6610 = vrot.lane.b32.xlu0 %v12691_v2, %s9426_s12  ;;  %5008 = vmatpush1.bf16.msra.mxu0 %v4961_v42  ;;  %v5125_v44 = vsel %vm750_vm2, %v15139_v49, %v15137_v46  ;;  %v15141_v42 = vld [vmem:[#allocation67_spill] sm:$0xff]  ;;  %v15143_v46 = vld [vmem:[#allocation65_spill] sm:$0xff] }
 0x6af   : > { %5159 = vmatprep.subr.bf16.mxu1 %v5126_v18  ;;  %v5282_v38 = vpop.permute.xlu1 %5281  ;;  %v12709_v19 = vpop.permute.xlu0 %6231  ;;  %v5124_v18 = vsel %vm750_vm2, %v15141_v42, %v15140_v37  ;;  %v5123_v49 = vsel %vm750_vm2, %v15143_v46, %v15141_v42  ;;  %v15144_v37 = vld [vmem:[#allocation71_spill] sm:$0xff]  ;;  %v15146_v42 = vld [vmem:[#allocation73_spill] sm:$0xff] }
 0x6b0   : > { %15138 = vst [vmem:[#allocation45_spill] sm:$0xff] %v12709_v19  ;;  %v12723_v19 = vld [vmem:[#allocation2 + $0x64] ss:$16 sps:$4 sm:$0xff]  }
 0x6b1   : > { %5026 = vmatmul.mubr.bf16.vlgmr.msra.gmra.mxu0 %v9076_v53  ;;  %6616 = vrot.lane.b32.xlu1 %v12707_v1, %s9426_s12 }
 0x6b2   : > { %6782 = vrot.lane.b32.xlu0 %v12215_v11, %s9427_s22  ;;  %5160 = vmatpush1.bf16.msra.mxu1 %v5125_v44 }
 0x6b3   : > { %5161 = vmatprep.subr.bf16.mxu1 %v5124_v18  ;;  %v12721_v22 = vpop.permute.xlu1 %6065  ;;  %5035 = vmatprep.mubr.bf16.mxu0 %v15121_v28  ;;  %v5284_v53 = vpop.permute.xlu0 %5283  ;;  %v15145_v18 = vld [vmem:[#allocation74_spill] sm:$0xff] }
 0x6b4   : > { %15142 = vst [vmem:[#allocation48_spill] sm:$0xff] %v12721_v22  ;;  %v5300_v44 = vsel %vm872_vm5, %v5282_v38, %v5284_v53  ;;  %v5122_v22 = vsel %vm750_vm2, %v15145_v18, %v15144_v37  ;;  %v15147_v53 = vld [vmem:[#allocation77_spill] sm:$0xff] }
 0x6b5   : > { %6608 = vrot.lane.b32.xlu1 %v12723_v19, %s9426_s12  ;;  %5317 = vmatprep.subr.bf16.mxu0 %v5300_v44  ;;  %v15149_v44 = vld [vmem:[#allocation79_spill] sm:$0xff] }
 0x6b6   : > { %6936 = vrot.lane.b32.xlu0 %v12215_v11, %s9428_s13  ;;  %5162 = vmatpush1.bf16.msra.mxu1 %v5123_v49  ;;  %v5121_v11 = vsel %vm750_vm2, %v15146_v42, %v15145_v18  ;;  %v9082_v18 = vld [vmem:[#allocation8 + $0x20] sm:$0xff]  }
 0x6b7   : > { %5163 = vmatprep.subr.bf16.mxu1 %v5122_v22  ;;  %v12737_v55 = vpop.permute.xlu1 %6223  ;;  %v12741_v25 = vpop.permute.xlu0 %6227  ;;  %v15148_v22 = vld [vmem:[#allocation80_spill] sm:$0xff] }
 0x6b8   : > { %v5120_v46 = vsel %vm750_vm2, %v15148_v22, %v15147_v53  ;;  %v5119_v37 = vsel %vm750_vm2, %v15149_v44, %v15148_v22  ;;  %v5298_v22 = vsel %vm872_vm5, %v12435_v63, %v12425_v40  ;;  %v9086_v44 = vld [vmem:[#allocation8 + $0x28] sm:$0xff]  }
 0x6b9   : > { %5036 = vmatmul.mubr.bf16.gmra.mxu0 %v9080_v47  ;;  %6606 = vrot.lane.b32.xlu1 %v12739_v36, %s9426_s12 }
 0x6ba   : > { %6780 = vrot.lane.b32.xlu0 %v12228_v10, %s9427_s22  ;;  %5164 = vmatpush1.bf16.msra.mxu1 %v5121_v11 }
 0x6bb   : > { %5165 = vmatprep.subr.bf16.mxu1 %v5120_v46  ;;  %v12753_v49 = vpop.permute.xlu1 %6063  ;;  %5349 = vmatprep.mubr.bf16.mxu0 %v15121_v28  ;;  %v12756_v47 = vpop.permute.xlu0 %6067  ;;  %v5297_v46 = vsel %vm872_vm5, %v12443_v45, %v12435_v63  ;;  %v12804_v63 = vld [vmem:[#allocation2 + $0xa4] ss:$16 sps:$4 sm:$0xff]  }
 0x6bc   : > { %15151 = vst [vmem:[#allocation58_spill] sm:$0xff] %v12804_v63 }
 0x6bd   : > { %6784 = vrot.lane.b32.xlu1 %v12638_v62, %s9427_s22 }
 0x6be   : > { %6776 = vrot.lane.b32.xlu0 %v12663_v29, %s9427_s22  ;;  %5166 = vmatpush1.bf16.msra.mxu1 %v5119_v37 }
 0x6bf   : > { %5499 = vmatprep.subr.bf16.mxu1 %v12217_v34  ;;  %v5280_v42 = vpop.permute.xlu1 %5279  ;;  %v12767_v53 = vpop.permute.xlu0 %6225 }
 0x6c0   : > { %v5299_v11 = vsel %vm872_vm5, %v5280_v42, %v5282_v38  ;;  %v15156_v42 = vld [vmem:[#allocation83_spill] sm:$0xff] }
 0x6c1   : > { %5184 = vmatmul.mubr.bf16.vlgmr.msra.gmra.mxu1 %v9082_v18  ;;  %6938 = vrot.lane.b32.xlu1 %v12638_v62, %s9428_s13  ;;  %v12813_v18 = vld [vmem:[#allocation2 + $0x88] ss:$16 sps:$4 sm:$0xff]  }
 0x6c2   : > { %6930 = vrot.lane.b32.xlu0 %v12663_v29, %s9428_s13  ;;  %5318 = vmatpush1.bf16.msra.mxu0 %v5299_v11  ;;  %15154 = vst [vmem:[#allocation51_spill] sm:$0xff] %v12813_v18 }
 0x6c3   : > { %5500 = vmatpush1.bf16.msra.mxu1 %v12219_v33  ;;  %5319 = vmatprep.subr.bf16.mxu0 %v5298_v22  ;;  %v12777_v34 = vpop.permute.xlu1 %6059  ;;  %v12780_v38 = vpop.permute.xlu0 %6221  ;;  %v5296_v33 = vsel %vm872_vm5, %v12362_v13, %v12389_v20  ;;  %v15153_v20 = vld [vmem:[#allocation81_spill] sm:$0xff] }
 0x6c4   : > { %5501 = vmatprep.subr.bf16.mxu1 %v12252_v57  ;;  %5193 = vmatprep.mubr.bf16.mxu1 %v15121_v28  ;;  %v12793_v57 = vld [vmem:[#allocation2 + $0xa8] ss:$16 sps:$4 sm:$0xff]   ;;  %v5293_v11 = vsel %vm872_vm5, %v15156_v42, %v15153_v20  ;;  %v12825_v22 = vld [vmem:[#allocation2 + $0x84] ss:$16 sps:$4 sm:$0xff]  }
 0x6c5   : > { %6934 = vrot.lane.b32.xlu1 %v12228_v10, %s9428_s13  ;;  %15150 = vst [vmem:[#allocation22_spill] sm:$0xff] %v12793_v57  ;;  %v5295_v10 = vsel %vm872_vm5, %v12370_v32, %v12362_v13  ;;  %15157 = vst [vmem:[#allocation62_spill] sm:$0xff] %v12825_v22 }
 0x6c6   : > { %6774 = vrot.lane.b32.xlu0 %v12687_v6, %s9427_s22  ;;  %5320 = vmatpush1.bf16.msra.mxu0 %v5297_v46  ;;  %v15158_v46 = vld [vmem:[#allocation85_spill] sm:$0xff] }
 0x6c7   : > { %5502 = vmatpush1.bf16.msra.mxu1 %v12269_v16  ;;  %5321 = vmatprep.subr.bf16.mxu0 %v5296_v33  ;;  %v12796_v40 = vpop.permute.xlu1 %6217  ;;  %v12799_v45 = vpop.permute.xlu0 %6061  ;;  %v15152_v16 = vld [vmem:[#allocation84_spill] sm:$0xff] }
 0x6c8   : > { %5503 = vmatprep.subr.bf16.mxu1 %v12793_v57  ;;  %v5294_v37 = vsel %vm872_vm5, %v15153_v20, %v15152_v16 }
 0x6c9   : > { %5194 = vmatmul.mubr.bf16.gmra.mxu1 %v9086_v44  ;;  %6778 = vrot.lane.b32.xlu1 %v12621_v17, %s9427_s22  ;;  %v15159_v44 = vld [vmem:[#allocation86_spill] sm:$0xff] }
 0x6ca   : > { %6770 = vrot.lane.b32.xlu0 %v12645_v24, %s9427_s22  ;;  %5322 = vmatpush1.bf16.msra.mxu0 %v5295_v10  ;;  %v5292_v33 = vsel %vm872_vm5, %v15159_v44, %v15158_v46  ;;  %v12834_v10 = vld [vmem:[#allocation2 + $0x68] ss:$16 sps:$4 sm:$0xff]  }
 0x6cb   : > { %5504 = vmatpush1.bf16.msra.mxu1 %v12804_v63  ;;  %5323 = vmatprep.subr.bf16.mxu0 %v5294_v37  ;;  %v12816_v32 = vpop.permute.xlu1 %6057  ;;  %v12819_v13 = vpop.permute.xlu0 %6219  ;;  %15160 = vst [vmem:[#allocation24_spill] sm:$0xff] %v12834_v10  ;;  %v15162_v37 = vld [vmem:[#allocation88_spill] sm:$0xff]  ;;  %v15164_v46 = vld [vmem:[#allocation90_spill] sm:$0xff]  ;;  %v15168_v63 = vld [vmem:[#allocation89_spill] sm:$0xff] }
 0x6cc   : > { %15155 = vst [vmem:[#allocation60_spill] sm:$0xff] %v12816_v32  ;;  %5505 = vmatprep.subr.bf16.mxu1 %v12813_v18  ;;  %5531 = vmatprep.mubr.bf16.mxu1 %v15121_v28  ;;  %v5291_v42 = vsel %vm872_vm5, %v15162_v37, %v15159_v44  ;;  %v12858_v37 = vld [vmem:[#allocation2 + $0x28] ss:$16 sps:$4 sm:$0xff]  }
 0x6cd   : > { %6932 = vrot.lane.b32.xlu1 %v12621_v17, %s9428_s13  ;;  %15167 = vst [vmem:[#allocation72_spill] sm:$0xff] %v12858_v37 }
 0x6ce   : > { %6924 = vrot.lane.b32.xlu0 %v12645_v24, %s9428_s13  ;;  %5324 = vmatpush1.bf16.msra.mxu0 %v5293_v11  ;;  %v12845_v11 = vld [vmem:[#allocation2 + $0x64] ss:$16 sps:$4 sm:$0xff]  }
 0x6cf   : > { %5506 = vmatpush1.bf16.msra.mxu1 %v12825_v22  ;;  %5325 = vmatprep.subr.bf16.mxu0 %v5292_v33  ;;  %v12837_v16 = vpop.permute.xlu1 %6053  ;;  %v12840_v20 = vpop.permute.xlu0 %6215  ;;  %15163 = vst [vmem:[#allocation69_spill] sm:$0xff] %v12845_v11  ;;  %v15165_v33 = vld [vmem:[#allocation87_spill] sm:$0xff] }
 0x6d0   : > { %15161 = vst [vmem:[#allocation64_spill] sm:$0xff] %v12837_v16  ;;  %5507 = vmatprep.subr.bf16.mxu1 %v12834_v10  ;;  %v5290_v22 = vsel %vm872_vm5, %v15165_v33, %v15164_v46  ;;  %v12854_v10 = vld [vmem:[#allocation2 + $0x48] ss:$16 sps:$4 sm:$0xff]   ;;  %v5289_v57 = vsel %vm872_vm5, %v15168_v63, %v15165_v33  ;;  %v12873_v63 = vld [vmem:[#allocation2 + $0x24] ss:$16 sps:$4 sm:$0xff]  }
 0x6d1   : > { %6928 = vrot.lane.b32.xlu1 %v12687_v6, %s9428_s13  ;;  %15166 = vst [vmem:[#allocation68_spill] sm:$0xff] %v12854_v10  ;;  %v5386_v46 = vld [vmem:[#allocation2 + $0x4] sm:$0xff]  ;;  %v5387_v16 = vld [vmem:[#allocation2 + $0x14] sm:$0xff] }
 0x6d2   : > { %6768 = vrot.lane.b32.xlu0 %v12670_v59, %s9427_s22  ;;  %5326 = vmatpush1.bf16.msra.mxu0 %v5291_v42  ;;  %v12863_v42 = vld [vmem:[#allocation2 + $0x44] ss:$16 sps:$4 sm:$0xff]   ;;  %v12878_v24 = vcombine.high %v5386_v46, %v5387_v16 }
 0x6d3   : > { %5508 = vmatpush1.bf16.msra.mxu1 %v12845_v11  ;;  %5327 = vmatprep.subr.bf16.mxu0 %v5290_v22  ;;  %v5758_v18 = vpop.permute.xlu1 %5757  ;;  %v5922_v44 = vpop.permute.xlu0 %5921  ;;  %15169 = vst [vmem:[#allocation76_spill] sm:$0xff] %v12863_v42  ;;  %v15170_v22 = vld [vmem:[#allocation91_spill] sm:$0xff] }
 0x6d4   : > { %5509 = vmatprep.subr.bf16.mxu1 %v12854_v10  ;;  %v15171_v10 = vld [vmem:[#allocation92_spill] sm:$0xff]  ;;  %15173 = vst [vmem:[#allocation78_spill] sm:$0xff] %v12878_v24 }
 0x6d5   : > { %6772 = vrot.lane.b32.xlu1 %v12707_v1, %s9427_s22  ;;  %v5288_v11 = vsel %vm872_vm5, %v15171_v10, %v15170_v22 }
 0x6d6   : > { %6764 = vrot.lane.b32.xlu0 %v12723_v19, %s9427_s22  ;;  %5328 = vmatpush1.bf16.msra.mxu0 %v5289_v57  ;;  %v5287_v57 = vsel %vm872_vm5, %v12104_v35, %v15171_v10  ;;  %v9101_v10 = vld [vmem:[#allocation8 + $0x30] sm:$0xff]  }
 0x6d7   : > { %5510 = vmatpush1.bf16.msra.mxu1 %v12863_v42  ;;  %5329 = vmatprep.subr.bf16.mxu0 %v5288_v11  ;;  %v5924_v32 = vpop.permute.xlu1 %5923  ;;  %v12875_v33 = vpop.permute.xlu0 %6055  ;;  %v15174_v11 = vld [vmem:[#allocation93_spill] sm:$0xff]  ;;  %v8602_v42 = vcombine.low %v5386_v46, %v5387_v16  ;;  %v9102_v16 = vld [vmem:[#allocation8 + $0x40] sm:$0xff]  }
 0x6d8   : > { %15172 = vst [vmem:[#allocation75_spill] sm:$0xff] %v12875_v33  ;;  %5511 = vmatprep.subr.bf16.mxu1 %v12858_v37  ;;  %v5286_v22 = vsel %vm872_vm5, %v15174_v11, %v12137_v27  ;;  %v5285_v35 = vsel %vm872_vm5, %v12117_v41, %v15174_v11  ;;  %v5776_v27 = vsel %vm1123_vm6, %v5758_v18, %v12146_v26 }
 0x6d9   : > { %6926 = vrot.lane.b32.xlu1 %v12707_v1, %s9428_s13  ;;  %v5942_v46 = vsel %vm1234_vm7, %v5924_v32, %v12164_v12  ;;  %v5941_v26 = vsel %vm1234_vm7, %v5922_v44, %v5924_v32  ;;  %v5774_v12 = vsel %vm1123_vm6, %v12433_v14, %v12186_v58  ;;  %v5773_v32 = vsel %vm1123_vm6, %v12449_v50, %v12433_v14 }
 0x6da   : > { %6918 = vrot.lane.b32.xlu0 %v12723_v19, %s9428_s13  ;;  %5330 = vmatpush1.bf16.msra.mxu0 %v5287_v57  ;;  %v5939_v58 = vsel %vm1234_vm7, %v12451_v15, %v12441_v48  ;;  %v5772_v50 = vsel %vm1123_vm6, %v12379_v60, %v12209_v52  ;;  %v5771_v15 = vsel %vm1123_vm6, %v12396_v31, %v12379_v60  ;;  %v15176_v31 = vld [vmem:[#allocation94_spill] sm:$0xff] }
 0x6db   : > { %5512 = vmatpush1.bf16.msra.mxu1 %v12873_v63  ;;  %5331 = vmatprep.subr.bf16.mxu0 %v5286_v22  ;;  %v5756_v37 = vpop.permute.xlu1 %5755  ;;  %v12891_v33 = vpop.permute.xlu0 %6213  ;;  %v5937_v14 = vsel %vm1234_vm7, %v12398_v8, %v12386_v9  ;;  %v5770_v52 = vsel %vm1123_vm6, %v12158_v21, %v12226_v0  ;;  %v5935_v0 = vsel %vm1234_vm7, %v12246_v54, %v12180_v56 }
 0x6dc   : > { %5513 = vmatprep.subr.bf16.mxu1 %v12878_v24  ;;  %v5775_v11 = vsel %vm1123_vm6, %v5756_v37, %v5758_v18  ;;  %v9103_v18 = vld [vmem:[#allocation8 + $0x38] sm:$0xff]  }
 0x6dd   : > { %6922 = vrot.lane.b32.xlu1 %v12670_v59, %s9428_s13 }
 0x6de   : > { %6762 = vrot.lane.b32.xlu0 %v12739_v36, %s9427_s22  ;;  %5332 = vmatpush1.bf16.msra.mxu0 %v5285_v35  ;;  %v15177_v35 = vld [vmem:[#allocation102_spill] sm:$0xff] }
 0x6df   : > { %5514 = vmatpush1.bf16.msra.mxu1 %v8602_v42  ;;  %5793 = vmatprep.subr.bf16.mxu0 %v5776_v27  ;;  %v12905_v57 = vpop.permute.xlu1 %6211  ;;  %v12907_v41 = vpop.permute.xlu0 %6209  ;;  %v5940_v42 = vsel %vm1234_vm7, %v12441_v48, %v12202_v39  ;;  %v9104_v39 = vld [vmem:[#allocation8 + $0x48] sm:$0xff]   ;;  %v5938_v48 = vsel %vm1234_vm7, %v12386_v9, %v12213_v51  ;;  %v5936_v51 = vsel %vm1234_vm7, %v12180_v56, %v12238_v30 }
 0x6e0   : > { %5959 = vmatprep.subr.bf16.mxu1 %v5942_v46  ;;  %v5769_v9 = vsel %vm1123_vm6, %v12192_v4, %v12158_v21  ;;  %v15175_v30 = vld [vmem:[#allocation100_spill] sm:$0xff] }
 0x6e1   : > { %5350 = vmatmul.mubr.bf16.vlgmr.msra.gmra.mxu0 %v9101_v10  ;;  %6766 = vrot.lane.b32.xlu1 %v12691_v2, %s9427_s22  ;;  %v5768_v8 = vsel %vm1123_vm6, %v15176_v31, %v15175_v30  ;;  %v15178_v10 = vld [vmem:[#allocation95_spill] sm:$0xff]  ;;  %v15179_v21 = vld [vmem:[#allocation96_spill] sm:$0xff] }
 0x6e2   : > { %6758 = vrot.lane.b32.xlu0 %v12615_v61, %s9427_s22  ;;  %5532 = vmatmul.mubr.bf16.vlgmr.msra.gmra.mxu1 %v9102_v16  ;;  %v5934_v27 = vsel %vm1234_vm7, %v15178_v10, %v15177_v35  ;;  %v5767_v56 = vsel %vm1123_vm6, %v15179_v21, %v15176_v31  ;;  %v15180_v4 = vld [vmem:[#allocation104_spill] sm:$0xff] }
 0x6e3   : > { %5794 = vmatpush1.bf16.msra.mxu0 %v5775_v11  ;;  %5960 = vmatpush1.bf16.msra.mxu1 %v5941_v26  ;;  %v12930_v44 = vpop.permute.xlu1 %6051  ;;  %v12935_v37 = vpop.permute.xlu0 %6049  ;;  %v5933_v54 = vsel %vm1234_vm7, %v15180_v4, %v15178_v10  ;;  %v15181_v11 = vld [vmem:[#allocation105_spill] sm:$0xff]  ;;  %v15192_v10 = vld [vmem:[#allocation66_spill] sm:$0xff]  ;;  %v15193_v21 = vld [vmem:[#allocation52_spill] sm:$0xff] }
 0x6e4   : > { %5795 = vmatprep.subr.bf16.mxu0 %v5774_v12  ;;  %5961 = vmatprep.subr.bf16.mxu1 %v5940_v42  ;;  %v15182_v26 = vld [vmem:[#allocation97_spill] sm:$0xff]  ;;  %v15183_v42 = vld [vmem:[#allocation107_spill] sm:$0xff]  ;;  %v15195_v4 = vld [vmem:[#allocation106_spill] sm:$0xff] }
 0x6e5   : > { %6920 = vrot.lane.b32.xlu1 %v12691_v2, %s9428_s13  ;;  %5359 = vmatprep.mubr.bf16.mxu0 %v15121_v28  ;;  %v5766_v12 = vsel %vm1123_vm6, %v15182_v26, %v15181_v11  ;;  %v15196_v11 = vld [vmem:[#allocation20_spill] sm:$0xff] }
 0x6e6   : > { %6912 = vrot.lane.b32.xlu0 %v12615_v61, %s9428_s13  ;;  %5541 = vmatprep.mubr.bf16.mxu1 %v15121_v28 }
 0x6e7   : > { %5796 = vmatpush1.bf16.msra.mxu0 %v5773_v32  ;;  %5962 = vmatpush1.bf16.msra.mxu1 %v5939_v58  ;;  %v12959_v22 = vpop.permute.xlu1 %6047  ;;  %v12961_v60 = vpop.permute.xlu0 %6207  ;;  %v15185_v58 = vld [vmem:[#allocation99_spill] sm:$0xff] }
 0x6e8   : > { %5797 = vmatprep.subr.bf16.mxu0 %v5772_v50  ;;  %5963 = vmatprep.subr.bf16.mxu1 %v5938_v48  ;;  %v15186_v50 = vld [vmem:[#allocation108_spill] sm:$0xff] }
 0x6e9   : > { %5360 = vmatmul.mubr.bf16.gmra.mxu0 %v9103_v18  ;;  %6916 = vrot.lane.b32.xlu1 %v12739_v36, %s9428_s13  ;;  %v15184_v18 = vld [vmem:[#allocation98_spill] sm:$0xff] }
 0x6ea   : > { %6756 = vrot.lane.b32.xlu0 %v12538_v23, %s9427_s22  ;;  %5542 = vmatmul.mubr.bf16.gmra.mxu1 %v9104_v39  ;;  %v5932_v32 = vsel %vm1234_vm7, %v15184_v18, %v15183_v42  ;;  %v5765_v39 = vsel %vm1123_vm6, %v15185_v58, %v15182_v26  ;;  %v5931_v48 = vsel %vm1234_vm7, %v15186_v50, %v15184_v18  ;;  %v15197_v26 = vld [vmem:[#allocation18_spill] sm:$0xff] }
 0x6eb   : > { %5798 = vmatpush1.bf16.msra.mxu0 %v5771_v15  ;;  %5964 = vmatpush1.bf16.msra.mxu1 %v5937_v14  ;;  %v12989_v16 = vpop.permute.xlu1 %6205  ;;  %v12993_v46 = vpop.permute.xlu0 %6203  ;;  %v15187_v15 = vld [vmem:[#allocation32_spill] sm:$0xff]  ;;  %v15188_v14 = vld [vmem:[#allocation101_spill] sm:$0xff] }
 0x6ec   : > { %5799 = vmatprep.subr.bf16.mxu0 %v5770_v52  ;;  %5965 = vmatprep.subr.bf16.mxu1 %v5936_v51  ;;  %v5764_v52 = vsel %vm1123_vm6, %v15188_v14, %v15187_v15  ;;  %v15189_v51 = vld [vmem:[#allocation109_spill] sm:$0xff]  ;;  %v9106_v15 = vld [vmem:[#allocation8 + $0x60] sm:$0xff]  }
 0x6ed   : > { %6760 = vrot.lane.b32.xlu1 %v12555_v7, %s9427_s22  ;;  %5825 = vmatprep.mubr.bf16.mxu0 %v15121_v28 }
 0x6ee   : > { %6752 = vrot.lane.b32.xlu0 %v12516_v43, %s9427_s22  ;;  %5991 = vmatprep.mubr.bf16.mxu1 %v15121_v28 }
 0x6ef   : > { %5800 = vmatpush1.bf16.msra.mxu0 %v5769_v9  ;;  %5966 = vmatpush1.bf16.msra.mxu1 %v5935_v0  ;;  %v15190_v9 = vld [vmem:[#allocation103_spill] sm:$0xff]  ;;  %v13017_v30 = vpop.permute.xlu1 %6045  ;;  %v6246_v31 = vpop.permute.xlu0 %6245 }
 0x6f0   : > { %5801 = vmatprep.subr.bf16.mxu0 %v5768_v8  ;;  %5967 = vmatprep.subr.bf16.mxu1 %v5934_v27  ;;  %v5930_v0 = vsel %vm1234_vm7, %v15190_v9, %v15189_v51  ;;  %v15191_v8 = vld [vmem:[#allocation59_spill] sm:$0xff]  ;;  %v5929_v27 = vsel %vm1234_vm7, %v15192_v10, %v15190_v9  ;;  %v15201_v51 = vld [vmem:[#allocation40_spill] sm:$0xff] }
 0x6f1   : > { %6914 = vrot.lane.b32.xlu1 %v12555_v7, %s9428_s13  ;;  %v5763_v35 = vsel %vm1123_vm6, %v15191_v8, %v15188_v14  ;;  %v15204_v10 = vld [vmem:[#allocation56_spill] sm:$0xff] }
 0x6f2   : > { %6906 = vrot.lane.b32.xlu0 %v12516_v43, %s9428_s13 }
 0x6f3   : > { %5802 = vmatpush1.bf16.msra.mxu0 %v5767_v56  ;;  %5968 = vmatpush1.bf16.msra.mxu1 %v5933_v54  ;;  %v15194_v56 = vld [vmem:[#allocation110_spill] sm:$0xff] }
 0x6f4   : > { %5803 = vmatprep.subr.bf16.mxu0 %v5766_v12  ;;  %5969 = vmatprep.subr.bf16.mxu1 %v5932_v32  ;;  %v5762_v54 = vsel %vm1123_vm6, %v15195_v4, %v15194_v56  ;;  %v5928_v12 = vsel %vm1234_vm7, %v15197_v26, %v15196_v11  ;;  %v15198_v32 = vld [vmem:[#allocation70_spill] sm:$0xff]  ;;  %v15206_v11 = vld [vmem:[#allocation35_spill] sm:$0xff] }
 0x6f5   : > { %6910 = vrot.lane.b32.xlu1 %v12538_v23, %s9428_s13  ;;  %v5761_v58 = vsel %vm1123_vm6, %v15198_v32, %v15195_v4  ;;  %v9108_v32 = vld [vmem:[#allocation8 + $0x68] sm:$0xff]  }
 0x6f6   : > { %6750 = vrot.lane.b32.xlu0 %v12562_v3, %s9427_s22 }
 0x6f7   : > { %5804 = vmatpush1.bf16.msra.mxu0 %v5765_v39  ;;  %5970 = vmatpush1.bf16.msra.mxu1 %v5931_v48  ;;  %v15199_v39 = vld [vmem:[#allocation28_spill] sm:$0xff]  ;;  %v9105_v48 = vld [vmem:[#allocation8 + $0x50] sm:$0xff]  }
 0x6f8   : > { %5805 = vmatprep.subr.bf16.mxu0 %v5764_v52  ;;  %5971 = vmatprep.subr.bf16.mxu1 %v5930_v0  ;;  %v5927_v50 = vsel %vm1234_vm7, %v15199_v39, %v15197_v26  ;;  %v15202_v0 = vld [vmem:[#allocation53_spill] sm:$0xff]  ;;  %v15207_v26 = vld [vmem:[#allocation30_spill] sm:$0xff] }
 0x6f9   : > { %6754 = vrot.lane.b32.xlu1 %v12584_v5, %s9427_s22 }
 0x6fa   : > { %6746 = vrot.lane.b32.xlu0 %v15193_v21, %s9427_s22 }
 0x6fb   : > { %5806 = vmatpush1.bf16.msra.mxu0 %v5763_v35  ;;  %5972 = vmatpush1.bf16.msra.mxu1 %v5929_v27  ;;  %v15205_v27 = vld [vmem:[#allocation49_spill] sm:$0xff] }
 0x6fc   : > { %5807 = vmatprep.subr.bf16.mxu0 %v5762_v54  ;;  %5973 = vmatprep.subr.bf16.mxu1 %v5928_v12  ;;  %v13035_v42 = vpop.permute.xlu1 %4587  ;;  %v9107_v54 = vld [vmem:[#allocation8 + $0x58] sm:$0xff]   ;;  %v6264_v12 = vsel %vm1448_vm9, %v15207_v26, %v15206_v11 }
 0x6fd   : > { %v13037_v18 = vpop.permute.xlu0 %4592  ;;  %6908 = vrot.lane.b32.xlu1 %v12584_v5, %s9428_s13 }
 0x6fe   : > { %6900 = vrot.lane.b32.xlu0 %v15193_v21, %s9428_s13 }
 0x6ff   : > { %5808 = vmatpush1.bf16.msra.mxu0 %v5761_v58  ;;  %5974 = vmatpush1.bf16.msra.mxu1 %v5927_v50 }
 0x700   : > { %v6090_v14 = vpop.permute.xlu1 %6089 }
 0x701   : > { %v13049_v52 = vpop.permute.xlu0 %6588  ;;  %6904 = vrot.lane.b32.xlu1 %v12562_v3, %s9428_s13  ;;  %v6108_v9 = vsel %vm1345_vm8, %v6090_v14, %v15201_v51 }
 0x702   : > { %15200 = vst [vmem:[#allocation50_spill] sm:$0xff] %v13049_v52  ;;  %5826 = vmatmul.mubr.bf16.vlgmr.msra.gmra.mxu0 %v9105_v48  ;;  %6744 = vrot.lane.b32.xlu0 %v15202_v0, %s9427_s22  ;;  %v15210_v48 = vld [vmem:[#allocation36_spill] sm:$0xff] }
 0x703   : > { %5992 = vmatmul.mubr.bf16.vlgmr.msra.gmra.mxu1 %v9106_v15  ;;  %6125 = vmatprep.subr.bf16.mxu0 %v6108_v9  ;;  %v15211_v15 = vld [vmem:[#allocation19_spill] sm:$0xff]  ;;  %v15213_v9 = vld [vmem:[#allocation34_spill] sm:$0xff] }
 0x704   : > { %v6248_v8 = vpop.permute.xlu1 %6247  ;;  %5835 = vmatprep.mubr.bf16.mxu0 %v15121_v28  ;;  %6001 = vmatprep.mubr.bf16.mxu1 %v15121_v28  ;;  %v6106_v51 = vsel %vm1345_vm8, %v15211_v15, %v15210_v48  ;;  %v15224_v48 = vld [vmem:[#allocation47_spill] sm:$0xff] }
 0x705   : > { %v13059_v35 = vpop.permute.xlu0 %6592  ;;  %6748 = vrot.lane.b32.xlu1 %v15204_v10, %s9427_s22  ;;  %v6266_v56 = vsel %vm1448_vm9, %v6248_v8, %v15205_v27  ;;  %v6265_v4 = vsel %vm1448_vm9, %v6246_v31, %v6248_v8  ;;  %v15214_v8 = vld [vmem:[#allocation16_spill] sm:$0xff] }
 0x706   : > { %15203 = vst [vmem:[#allocation41_spill] sm:$0xff] %v13059_v35  ;;  %7094 = vrot.lane.b32.xlu0 %v12638_v62, %s14806_s20  ;;  %6283 = vmatprep.subr.bf16.mxu1 %v6266_v56  ;;  %v15209_v62 = vld [vmem:[#allocation43_spill] sm:$0xff]  ;;  %v6262_v27 = vsel %vm1448_vm9, %v15214_v8, %v15213_v9  ;;  %v15216_v56 = vld [vmem:[#allocation33_spill] sm:$0xff] }
 0x707   : > { %6284 = vmatpush1.bf16.msra.mxu1 %v6265_v4  ;;  %v6263_v31 = vsel %vm1448_vm9, %v15209_v62, %v15207_v26  ;;  %v6105_v4 = vsel %vm1345_vm8, %v15216_v56, %v15211_v15  ;;  %v15218_v26 = vld [vmem:[#allocation42_spill] sm:$0xff]  ;;  %v15225_v9 = vld [vmem:[#allocation21_spill] sm:$0xff] }
 0x708   : > { %v6088_v58 = vpop.permute.xlu1 %6087  ;;  %6285 = vmatprep.subr.bf16.mxu1 %v6264_v12  ;;  %v15219_v12 = vld [vmem:[#allocation31_spill] sm:$0xff] }
 0x709   : > { %v6107_v39 = vsel %vm1345_vm8, %v6088_v58, %v6090_v14  ;;  %v13072_v50 = vpop.permute.xlu0 %6596  ;;  %6902 = vrot.lane.b32.xlu1 %v15204_v10, %s9428_s13  ;;  %v15221_v58 = vld [vmem:[#allocation45_spill] sm:$0xff]  ;;  %v6103_v15 = vsel %vm1345_vm8, %v15224_v48, %v15219_v12 }
 0x70a   : > { %15208 = vst [vmem:[#allocation39_spill] sm:$0xff] %v13072_v50  ;;  %5836 = vmatmul.mubr.bf16.gmra.mxu0 %v9107_v54  ;;  %7086 = vrot.lane.b32.xlu0 %v12663_v29, %s14806_s20  ;;  %v15217_v54 = vld [vmem:[#allocation54_spill] sm:$0xff] }
 0x70b   : > { %6002 = vmatmul.mubr.bf16.gmra.mxu1 %v9108_v32  ;;  %6126 = vmatpush1.bf16.msra.mxu0 %v6107_v39  ;;  %v6261_v11 = vsel %vm1448_vm9, %v15217_v54, %v15214_v8  ;;  %v6104_v32 = vsel %vm1345_vm8, %v15219_v12, %v15218_v26  ;;  %v15222_v39 = vld [vmem:[#allocation44_spill] sm:$0xff]  ;;  %v15226_v8 = vld [vmem:[#allocation37_spill] sm:$0xff]  ;;  %v6257_v26 = vsel %vm1448_vm9, %v12780_v38, %v12737_v55 }
 0x70c   : > { %6127 = vmatprep.subr.bf16.mxu0 %v6106_v51  ;;  %6286 = vmatpush1.bf16.msra.mxu1 %v6263_v31  ;;  %v13084_v14 = vpop.permute.xlu1 %6408  ;;  %v9196_v31 = vld [vmem:[#allocation2 + $0xc4] ss:$16 sps:$4 sm:$0xff]   ;;  %v6259_v51 = vsel %vm1448_vm9, %v12741_v25, %v15222_v39  ;;  %v15229_v25 = vld [vmem:[#allocation46_spill] sm:$0xff] }
 0x70d   : > { %15212 = vst [vmem:[#allocation82_spill] sm:$0xff] %v13084_v14  ;;  %6287 = vmatprep.subr.bf16.mxu1 %v6262_v27  ;;  %v13089_v29 = vpop.permute.xlu0 %6600  ;;  %6898 = vrot.lane.b32.xlu1 %v15202_v0, %s9428_s13  ;;  %v6102_v27 = vsel %vm1345_vm8, %v15226_v8, %v15225_v9  ;;  %v9121_v14 = vld [vmem:[#allocation2 + $0x4c] ss:$16 sps:$4 sm:$0xff]  }
 0x70e   : > { %15215 = vst [vmem:[#allocation55_spill] sm:$0xff] %v13089_v29  ;;  %7084 = vrot.lane.b32.xlu0 %v12687_v6, %s14806_s20  ;;  %6315 = vmatprep.mubr.bf16.mxu1 %v15121_v28  ;;  %v6260_v6 = vsel %vm1448_vm9, %v15222_v39, %v15221_v58  ;;  %v6256_v58 = vsel %vm1448_vm9, %v12796_v40, %v12819_v13 }
 0x70f   : > { %6128 = vmatpush1.bf16.msra.mxu0 %v6105_v4  ;;  %6157 = vmatprep.mubr.bf16.mxu0 %v15121_v28  ;;  %v6258_v4 = vsel %vm1448_vm9, %v12737_v55, %v12767_v53  ;;  %v15230_v53 = vld [vmem:[#allocation48_spill] sm:$0xff] }
 0x710   : > { %6129 = vmatprep.subr.bf16.mxu0 %v6104_v32  ;;  %6288 = vmatpush1.bf16.msra.mxu1 %v6261_v11  ;;  %v13106_v0 = vpop.permute.xlu1 %6590  ;;  %v6101_v11 = vsel %vm1345_vm8, %v15229_v25, %v15226_v8  ;;  %v6100_v12 = vsel %vm1345_vm8, %v15230_v53, %v12756_v47  ;;  %v6099_v55 = vsel %vm1345_vm8, %v12753_v49, %v15230_v53  ;;  %v15258_v53 = vld [vmem:[#allocation58_spill] sm:$0xff] }
 0x711   : > { %15220 = vst [vmem:[#allocation61_spill] sm:$0xff] %v13106_v0  ;;  %6289 = vmatprep.subr.bf16.mxu1 %v6260_v6  ;;  %v13111_v62 = vpop.permute.xlu0 %6604  ;;  %7092 = vrot.lane.b32.xlu1 %v9196_v31, %s14806_s20  ;;  %v6098_v47 = vsel %vm1345_vm8, %v12777_v34, %v12799_v45  ;;  %v6253_v45 = vsel %vm1448_vm9, %v12907_v41, %v12905_v57 }
 0x712   : > { %15223 = vst [vmem:[#allocation57_spill] sm:$0xff] %v13111_v62  ;;  %7082 = vrot.lane.b32.xlu0 %v12707_v1, %s14806_s20  ;;  %v9197_v1 = vld [vmem:[#allocation2 + $0xc0] ss:$16 sps:$4 sm:$0xff]   ;;  %v6094_v41 = vsel %vm1345_vm8, %v12959_v22, %v12935_v37 }
 0x713   : > { %6130 = vmatpush1.bf16.msra.mxu0 %v6103_v15 }
 0x714   : > { %6131 = vmatprep.subr.bf16.mxu0 %v6102_v27  ;;  %6290 = vmatpush1.bf16.msra.mxu1 %v6259_v51  ;;  %v13125_v56 = vpop.permute.xlu1 %6594  ;;  %v9198_v27 = vld [vmem:[#allocation2] ss:$16 sps:$4 sm:$0xff]  }
 0x715   : > { %15227 = vst [vmem:[#allocation63_spill] sm:$0xff] %v13125_v56  ;;  %6291 = vmatprep.subr.bf16.mxu1 %v6258_v4  ;;  %v13130_v54 = vpop.permute.xlu0 %6626  ;;  %7090 = vrot.lane.b32.xlu1 %v9197_v1, %s14806_s20  ;;  %v15253_v4 = vld [vmem:[#allocation22_spill] sm:$0xff] }
 0x716   : > { %15228 = vst [vmem:[#allocation67_spill] sm:$0xff] %v13130_v54  ;;  %7074 = vrot.lane.b32.xlu0 %v12723_v19, %s14806_s20  ;;  %v6255_v19 = vsel %vm1448_vm9, %v12840_v20, %v12796_v40  ;;  %v15236_v40 = vld [vmem:[#allocation60_spill] sm:$0xff]  ;;  %v15237_v20 = vld [vmem:[#allocation75_spill] sm:$0xff] }
 0x717   : > { %6132 = vmatpush1.bf16.msra.mxu0 %v6101_v11  ;;  %v6097_v13 = vsel %vm1345_vm8, %v15236_v40, %v12777_v34  ;;  %v6252_v34 = vsel %vm1448_vm9, %v12989_v16, %v12961_v60  ;;  %v9109_v60 = vld [vmem:[#allocation8 + $0x80] sm:$0xff]   ;;  %v9118_v40 = vld [vmem:[#allocation2 + $0xac] ss:$16 sps:$4 sm:$0xff]  }
 0x718   : > { %6133 = vmatprep.subr.bf16.mxu0 %v6100_v12  ;;  %6292 = vmatpush1.bf16.msra.mxu1 %v6257_v26  ;;  %v13144_v32 = vpop.permute.xlu1 %6598  ;;  %v9117_v26 = vld [vmem:[#allocation2 + $0xcc] ss:$16 sps:$4 sm:$0xff]  }
 0x719   : > { %15231 = vst [vmem:[#allocation65_spill] sm:$0xff] %v13144_v32  ;;  %6293 = vmatprep.subr.bf16.mxu1 %v6256_v58  ;;  %v13149_v39 = vpop.permute.xlu0 %6624  ;;  %7088 = vrot.lane.b32.xlu1 %v12621_v17, %s14806_s20  ;;  %v6254_v17 = vsel %vm1448_vm9, %v12905_v57, %v12891_v33  ;;  %v15238_v33 = vld [vmem:[#allocation64_spill] sm:$0xff]  ;;  %v6251_v57 = vsel %vm1448_vm9, %v12993_v46, %v12989_v16 }
 0x71a   : > { %15232 = vst [vmem:[#allocation71_spill] sm:$0xff] %v13149_v39  ;;  %7072 = vrot.lane.b32.xlu0 %v12739_v36, %s14806_s20  ;;  %v15235_v36 = vld [vmem:[#allocation38_spill] sm:$0xff]  ;;  %v6096_v6 = vsel %vm1345_vm8, %v15238_v33, %v15237_v20 }
 0x71b   : > { %6134 = vmatpush1.bf16.msra.mxu0 %v6099_v55  ;;  %v15261_v55 = vld [vmem:[#allocation51_spill] sm:$0xff] }
 0x71c   : > { %6135 = vmatprep.subr.bf16.mxu0 %v6098_v47  ;;  %6294 = vmatpush1.bf16.msra.mxu1 %v6255_v19  ;;  %v13164_v38 = vpop.permute.xlu1 %6602 }
 0x71d   : > { %15233 = vst [vmem:[#allocation74_spill] sm:$0xff] %v13164_v38  ;;  %6295 = vmatprep.subr.bf16.mxu1 %v6254_v17  ;;  %v13169_v49 = vpop.permute.xlu0 %6622  ;;  %7080 = vrot.lane.b32.xlu1 %v15235_v36, %s14806_s20 }
 0x71e   : > { %15234 = vst [vmem:[#allocation73_spill] sm:$0xff] %v13169_v49  ;;  %7070 = vrot.lane.b32.xlu0 %v12555_v7, %s14806_s20  ;;  %v6095_v7 = vsel %vm1345_vm8, %v12930_v44, %v15238_v33  ;;  %v9110_v44 = vld [vmem:[#allocation8 + $0x70] sm:$0xff]   ;;  %v15269_v33 = vld [vmem:[#allocation24_spill] sm:$0xff] }
 0x71f   : > { %6136 = vmatpush1.bf16.msra.mxu0 %v6097_v13  ;;  %v15266_v13 = vld [vmem:[#allocation62_spill] sm:$0xff]  ;;  %v15347_v49 = vld [vmem:[#allocation17_spill] sm:$0xff] }
 0x720   : > { %6137 = vmatprep.subr.bf16.mxu0 %v6096_v6  ;;  %6296 = vmatpush1.bf16.msra.mxu1 %v6253_v45  ;;  %v13184_v31 = vpop.permute.xlu1 %6628 }
 0x721   : > { %15239 = vst [vmem:[#allocation77_spill] sm:$0xff] %v13184_v31  ;;  %6297 = vmatprep.subr.bf16.mxu1 %v6252_v34  ;;  %v13189_v48 = vpop.permute.xlu0 %6614  ;;  %7078 = vrot.lane.b32.xlu1 %v12670_v59, %s14806_s20 }
 0x722   : > { %15240 = vst [vmem:[#allocation80_spill] sm:$0xff] %v13189_v48  ;;  %7062 = vrot.lane.b32.xlu0 %v12516_v43, %s14806_s20  ;;  %v6093_v43 = vsel %vm1345_vm8, %v13017_v30, %v12959_v22  ;;  %v9111_v22 = vld [vmem:[#allocation2 + $0xc8] ss:$16 sps:$4 sm:$0xff]   ;;  %v15342_v48 = vld [vmem:[#allocation23_spill] sm:$0xff] }
 0x723   : > { %6138 = vmatpush1.bf16.msra.mxu0 %v6095_v7  ;;  %v9113_v30 = vld [vmem:[#allocation8 + $0x78] sm:$0xff]  }
 0x724   : > { %6139 = vmatprep.subr.bf16.mxu0 %v6094_v41  ;;  %6298 = vmatpush1.bf16.msra.mxu1 %v6251_v57  ;;  %v13204_v59 = vpop.permute.xlu1 %6620  ;;  %v9119_v41 = vld [vmem:[#allocation2 + $0x8c] ss:$16 sps:$4 sm:$0xff]  }
 0x725   : > { %15241 = vst [vmem:[#allocation79_spill] sm:$0xff] %v13204_v59  ;;  %v13206_v15 = vpop.permute.xlu0 %6612  ;;  %7076 = vrot.lane.b32.xlu1 %v12691_v2, %s14806_s20  ;;  %v9114_v2 = vld [vmem:[#allocation8 + $0x88] sm:$0xff]  }
 0x726   : > { %15242 = vst [vmem:[#allocation84_spill] sm:$0xff] %v13206_v15  ;;  %7060 = vrot.lane.b32.xlu0 %v12562_v3, %s14806_s20 }
 0x727   : > { %6140 = vmatpush1.bf16.msra.mxu0 %v6093_v43  ;;  %6316 = vmatmul.mubr.bf16.vlgmr.msra.gmra.mxu1 %v9109_v60  ;;  %v15274_v60 = vld [vmem:[#allocation69_spill] sm:$0xff] }
 0x728   : > { %v13215_v37 = vpop.permute.xlu1 %6618  ;;  %6325 = vmatprep.mubr.bf16.mxu1 %v15121_v28 }
 0x729   : > { %15243 = vst [vmem:[#allocation81_spill] sm:$0xff] %v13215_v37  ;;  %v13218_v16 = vpop.permute.xlu0 %6610  ;;  %7068 = vrot.lane.b32.xlu1 %v12615_v61, %s14806_s20 }
 0x72a   : > { %15244 = vst [vmem:[#allocation83_spill] sm:$0xff] %v13218_v16  ;;  %7058 = vrot.lane.b32.xlu0 %v15204_v10, %s14806_s20  ;;  %6158 = vmatmul.mubr.bf16.vlgmr.msra.gmra.mxu0 %v9110_v44  ;;  %v9115_v10 = vld [vmem:[#allocation2 + $0xc4] ss:$16 sps:$4 sm:$0xff]  }
 0x72b   : > { %6167 = vmatprep.mubr.bf16.mxu0 %v15121_v28 }
 0x72c   : > { %v13225_v3 = vpop.permute.xlu1 %6616 }
 0x72d   : > { %15245 = vst [vmem:[#allocation85_spill] sm:$0xff] %v13225_v3  ;;  %v13227_v46 = vpop.permute.xlu0 %6782  ;;  %7066 = vrot.lane.b32.xlu1 %v12538_v23, %s14806_s20 }
 0x72e   : > { %15246 = vst [vmem:[#allocation86_spill] sm:$0xff] %v13227_v46  ;;  %7592 = vrot.lane.b32.xlu0 %v9111_v22, %s14808_s26 }
 0x72f   : > { %6326 = vmatmul.mubr.bf16.gmra.mxu1 %v9114_v2  ;;  %v15277_v2 = vld [vmem:[#allocation68_spill] sm:$0xff] }
 0x730   : > { %v13232_v61 = vpop.permute.xlu1 %6608 }
 0x731   : > { %15247 = vst [vmem:[#allocation88_spill] sm:$0xff] %v13232_v61  ;;  %v13234_v51 = vpop.permute.xlu0 %6936  ;;  %7064 = vrot.lane.b32.xlu1 %v12584_v5, %s14806_s20  ;;  %v9116_v5 = vld [vmem:[#allocation2 + $0xec] ss:$16 sps:$4 sm:$0xff]  }
 0x732   : > { %15248 = vst [vmem:[#allocation90_spill] sm:$0xff] %v13234_v51  ;;  %7748 = vrot.lane.b32.xlu0 %v9111_v22, %s14809_s10  ;;  %6168 = vmatmul.mubr.bf16.gmra.mxu0 %v9113_v30 }
 0x734   : > { %v13239_v28 = vpop.permute.xlu1 %6606 }
 0x735   : > { %15249 = vst [vmem:[#allocation87_spill] sm:$0xff] %v13239_v28  ;;  %v13241_v9 = vpop.permute.xlu0 %6780  ;;  %7056 = vrot.lane.b32.xlu1 %v15193_v21, %s14806_s20 }
 0x736   : > { %15250 = vst [vmem:[#allocation89_spill] sm:$0xff] %v13241_v9  ;;  %7590 = vrot.lane.b32.xlu0 %v9115_v10, %s14808_s26 }
 0x738   : > { %v13246_v23 = vpop.permute.xlu1 %6784 }
 0x739   : > { %15251 = vst [vmem:[#allocation91_spill] sm:$0xff] %v13246_v23  ;;  %v13248_v8 = vpop.permute.xlu0 %6776  ;;  %7054 = vrot.lane.b32.xlu1 %v9198_v27, %s14806_s20 }
 0x73a   : > { %15252 = vst [vmem:[#allocation92_spill] sm:$0xff] %v13248_v8  ;;  %7586 = vrot.lane.b32.xlu0 %v15253_v4, %s14808_s26 }
 0x73c   : > { %v13253_v1 = vpop.permute.xlu1 %6938 }
 0x73d   : > { %15254 = vst [vmem:[#allocation93_spill] sm:$0xff] %v13253_v1  ;;  %v13255_v25 = vpop.permute.xlu0 %6930  ;;  %7600 = vrot.lane.b32.xlu1 %v9116_v5, %s14808_s26 }
 0x73e   : > { %15255 = vst [vmem:[#allocation100_spill] sm:$0xff] %v13255_v25  ;;  %7742 = vrot.lane.b32.xlu0 %v15253_v4, %s14809_s10  ;;  %v15282_v4 = vld [vmem:[#allocation76_spill] sm:$0xff]  ;;  %v9126_v25 = vld [vmem:[#allocation2 + $0xe0] ss:$16 sps:$4 sm:$0xff]  }
 0x740   : > { %v13260_v21 = vpop.permute.xlu1 %6934 }
 0x741   : > { %15256 = vst [vmem:[#allocation94_spill] sm:$0xff] %v13260_v21  ;;  %v13262_v11 = vpop.permute.xlu0 %6774  ;;  %7756 = vrot.lane.b32.xlu1 %v9116_v5, %s14809_s10  ;;  %v9120_v5 = vld [vmem:[#allocation2 + $0x6c] ss:$16 sps:$4 sm:$0xff]  }
 0x742   : > { %15257 = vst [vmem:[#allocation102_spill] sm:$0xff] %v13262_v11  ;;  %7584 = vrot.lane.b32.xlu0 %v15258_v53, %s14808_s26 }
 0x744   : > { %v13267_v12 = vpop.permute.xlu1 %6778 }
 0x745   : > { %15259 = vst [vmem:[#allocation95_spill] sm:$0xff] %v13267_v12  ;;  %v13269_v58 = vpop.permute.xlu0 %6770  ;;  %7594 = vrot.lane.b32.xlu1 %v9117_v26, %s14808_s26 }
 0x746   : > { %15260 = vst [vmem:[#allocation96_spill] sm:$0xff] %v13269_v58  ;;  %7580 = vrot.lane.b32.xlu0 %v15261_v55, %s14808_s26 }
 0x748   : > { %v13274_v19 = vpop.permute.xlu1 %6932 }
 0x749   : > { %15262 = vst [vmem:[#allocation104_spill] sm:$0xff] %v13274_v19  ;;  %v13276_v47 = vpop.permute.xlu0 %6924  ;;  %7750 = vrot.lane.b32.xlu1 %v9117_v26, %s14809_s10  ;;  %v9127_v19 = vld [vmem:[#allocation2 + $0xc] ss:$16 sps:$4 sm:$0xff]  }
 0x74a   : > { %15263 = vst [vmem:[#allocation105_spill] sm:$0xff] %v13276_v47  ;;  %7736 = vrot.lane.b32.xlu0 %v15261_v55, %s14809_s10  ;;  %v15285_v55 = vld [vmem:[#allocation72_spill] sm:$0xff] }
 0x74c   : > { %v13281_v17 = vpop.permute.xlu1 %6928 }
 0x74d   : > { %15264 = vst [vmem:[#allocation97_spill] sm:$0xff] %v13281_v17  ;;  %v13283_v36 = vpop.permute.xlu0 %6768  ;;  %7746 = vrot.lane.b32.xlu1 %v9115_v10, %s14809_s10 }
 0x74e   : > { %15265 = vst [vmem:[#allocation107_spill] sm:$0xff] %v13283_v36  ;;  %7578 = vrot.lane.b32.xlu0 %v15266_v13, %s14808_s26 }
 0x750   : > { %v13288_v45 = vpop.permute.xlu1 %6772 }
 0x751   : > { %15267 = vst [vmem:[#allocation98_spill] sm:$0xff] %v13288_v45  ;;  %v13290_v20 = vpop.permute.xlu0 %6764  ;;  %7588 = vrot.lane.b32.xlu1 %v9118_v40, %s14808_s26 }
 0x752   : > { %15268 = vst [vmem:[#allocation99_spill] sm:$0xff] %v13290_v20  ;;  %7574 = vrot.lane.b32.xlu0 %v15269_v33, %s14808_s26 }
 0x754   : > { %v13295_v6 = vpop.permute.xlu1 %6926 }
 0x755   : > { %15270 = vst [vmem:[#allocation108_spill] sm:$0xff] %v13295_v6  ;;  %v13297_v34 = vpop.permute.xlu0 %6918  ;;  %7744 = vrot.lane.b32.xlu1 %v9118_v40, %s14809_s10 }
 0x756   : > { %15271 = vst [vmem:[#allocation32_spill] sm:$0xff] %v13297_v34  ;;  %7730 = vrot.lane.b32.xlu0 %v15269_v33, %s14809_s10  ;;  %v13378_v34 = vld [vmem:[#allocation2 + $0xe8] ss:$16 sps:$4 sm:$0xff]  }
 0x758   : > { %v13302_v7 = vpop.permute.xlu1 %6922 }
 0x759   : > { %15272 = vst [vmem:[#allocation101_spill] sm:$0xff] %v13302_v7  ;;  %v13304_v57 = vpop.permute.xlu0 %6762  ;;  %7740 = vrot.lane.b32.xlu1 %v15258_v53, %s14809_s10  ;;  %v9123_v7 = vld [vmem:[#allocation2 + $0x2c] ss:$16 sps:$4 sm:$0xff]  }
 0x75a   : > { %15273 = vst [vmem:[#allocation109_spill] sm:$0xff] %v13304_v57  ;;  %7572 = vrot.lane.b32.xlu0 %v15274_v60, %s14808_s26 }
 0x75c   : > { %v13310_v43 = vpop.permute.xlu1 %6766 }
 0x75d   : > { %15275 = vst [vmem:[#allocation103_spill] sm:$0xff] %v13310_v43  ;;  %v13312_v44 = vpop.permute.xlu0 %6758  ;;  %7582 = vrot.lane.b32.xlu1 %v9119_v41, %s14808_s26 }
 0x75e   : > { %15276 = vst [vmem:[#allocation59_spill] sm:$0xff] %v13312_v44  ;;  %7568 = vrot.lane.b32.xlu0 %v15277_v2, %s14808_s26 }
 0x760   : > { %v13317_v22 = vpop.permute.xlu1 %6920 }
 0x761   : > { %15278 = vst [vmem:[#allocation66_spill] sm:$0xff] %v13317_v22  ;;  %v13319_v30 = vpop.permute.xlu0 %6912  ;;  %7738 = vrot.lane.b32.xlu1 %v9119_v41, %s14809_s10 }
 0x762   : > { %15279 = vst [vmem:[#allocation52_spill] sm:$0xff] %v13319_v30  ;;  %7724 = vrot.lane.b32.xlu0 %v15277_v2, %s14809_s10 }
 0x764   : > { %v13324_v10 = vpop.permute.xlu1 %6916 }
 0x765   : > { %15280 = vst [vmem:[#allocation110_spill] sm:$0xff] %v13324_v10  ;;  %v13326_v27 = vpop.permute.xlu0 %6756  ;;  %7734 = vrot.lane.b32.xlu1 %v15266_v13, %s14809_s10  ;;  %v13346_v13 = vpop.f32.mrf.mxu1 }
 0x766   : > { %15281 = vst [vmem:[#allocation106_spill] sm:$0xff] %v13326_v27  ;;  %7566 = vrot.lane.b32.xlu0 %v15282_v4, %s14808_s26  ;;  %v4880_v3 = vmul.f32 %v13346_v13, %v15342_v48 }
 0x767   : > { %v13356_v30 = vpop.f32.mrf.mxu1 }
 0x768   : > { %v13332_v26 = vpop.permute.xlu1 %6760 }
 0x769   : > { %15283 = vst [vmem:[#allocation20_spill] sm:$0xff] %v13332_v26  ;;  %v13334_v53 = vpop.permute.xlu0 %6752  ;;  %7576 = vrot.lane.b32.xlu1 %v9120_v5, %s14808_s26 }
 0x76a   : > { %15284 = vst [vmem:[#allocation18_spill] sm:$0xff] %v13334_v53  ;;  %7562 = vrot.lane.b32.xlu0 %v15285_v55, %s14808_s26 }
 0x76c   : > { %v13339_v40 = vpop.permute.xlu1 %6914 }
 0x76d   : > { %15286 = vst [vmem:[#allocation70_spill] sm:$0xff] %v13339_v40  ;;  %v13341_v33 = vpop.permute.xlu0 %6906  ;;  %7732 = vrot.lane.b32.xlu1 %v9120_v5, %s14809_s10 }
 0x76e   : > { %15287 = vst [vmem:[#allocation28_spill] sm:$0xff] %v13341_v33  ;;  %7718 = vrot.lane.b32.xlu0 %v15285_v55, %s14809_s10  ;;  %v13365_v55 = vpop.f32.mrf.mxu1 }
 0x770   : > { %v13348_v41 = vpop.permute.xlu1 %6910  ;;  %v13374_v40 = vpop.f32.mrf.mxu1 }
 0x771   : > { %15288 = vst [vmem:[#allocation40_spill] sm:$0xff] %v13348_v41  ;;  %v13350_v2 = vpop.permute.xlu0 %6750  ;;  %7728 = vrot.lane.b32.xlu1 %v15274_v60, %s14809_s10 }
 0x772   : > { %15289 = vst [vmem:[#allocation53_spill] sm:$0xff] %v13350_v2  ;;  %7560 = vrot.lane.b32.xlu0 %v12873_v63, %s14808_s26 }
 0x774   : > { %v13358_v33 = vpop.permute.xlu1 %6754 }
 0x775   : > { %15290 = vst [vmem:[#allocation56_spill] sm:$0xff] %v13358_v33  ;;  %v13360_v5 = vpop.permute.xlu0 %6746  ;;  %7570 = vrot.lane.b32.xlu1 %v9121_v14, %s14808_s26 }
 0x776   : > { %15291 = vst [vmem:[#allocation49_spill] sm:$0xff] %v13360_v5  ;;  %7556 = vrot.lane.b32.xlu0 %v12878_v24, %s14808_s26 }
 0x778   : > { %v13367_v41 = vpop.permute.xlu1 %6908 }
 0x779   : > { %15292 = vst [vmem:[#allocation35_spill] sm:$0xff] %v13367_v41  ;;  %v13369_v60 = vpop.permute.xlu0 %6900  ;;  %7726 = vrot.lane.b32.xlu1 %v9121_v14, %s14809_s10  ;;  %v9124_v41 = vld [vmem:[#allocation2 + $0xe4] ss:$16 sps:$4 sm:$0xff]  }
 0x77a   : > { %15293 = vst [vmem:[#allocation30_spill] sm:$0xff] %v13369_v60  ;;  %7712 = vrot.lane.b32.xlu0 %v12878_v24, %s14809_s10  ;;  %v13386_v60 = vpop.f32.mrf.mxu1 }
 0x77b   : > { %v4884_v46 = vmul.f32 %v13386_v60, %v15342_v48  ;;  %v15348_v60 = vld [vmem:[#allocation26_spill] sm:$0xff] }
 0x77c   : > { %v13376_v10 = vpop.permute.xlu1 %6904 }
 0x77d   : > { %15294 = vst [vmem:[#allocation43_spill] sm:$0xff] %v13376_v10  ;;  %v13380_v22 = vpop.permute.xlu0 %6744  ;;  %7722 = vrot.lane.b32.xlu1 %v15282_v4, %s14809_s10  ;;  %v13394_v10 = vpop.f32.mrf.mxu1 }
 0x77e   : > { %15295 = vst [vmem:[#allocation36_spill] sm:$0xff] %v13380_v22  ;;  %6634 = vrot.lane.b32.xlu0 %v13378_v34, %s9426_s12 }
 0x77f   : > { %v13402_v6 = vpop.f32.mrf.mxu1 }
 0x780   : > { %v13388_v14 = vpop.permute.xlu1 %6748  ;;  %v4886_v13 = vmul.f32 %v13402_v6, %v15342_v48 }
 0x781   : > { %15296 = vst [vmem:[#allocation19_spill] sm:$0xff] %v13388_v14  ;;  %v13390_v24 = vpop.permute.xlu0 %7094  ;;  %7564 = vrot.lane.b32.xlu1 %v9123_v7, %s14808_s26 }
 0x782   : > { %15297 = vst [vmem:[#allocation34_spill] sm:$0xff] %v13390_v24  ;;  %6788 = vrot.lane.b32.xlu0 %v9124_v41, %s9427_s22 }
 0x784   : > { %v13396_v47 = vpop.permute.xlu1 %6902 }
 0x785   : > { %15298 = vst [vmem:[#allocation16_spill] sm:$0xff] %v13396_v47  ;;  %v13398_v4 = vpop.permute.xlu0 %7086  ;;  %7720 = vrot.lane.b32.xlu1 %v9123_v7, %s14809_s10  ;;  %v13411_v47 = vpop.f32.mrf.mxu1 }
 0x786   : > { %15299 = vst [vmem:[#allocation33_spill] sm:$0xff] %v13398_v4  ;;  %6942 = vrot.lane.b32.xlu0 %v9124_v41, %s9428_s13 }
 0x787   : > { %v13415_v7 = vpop.f32.mrf.mxu1 }
 0x788   : > { %v13404_v17 = vpop.permute.xlu1 %6898  ;;  %v5204_v54 = vmul.f32 %v13415_v7, %v15348_v60 }
 0x789   : > { %15300 = vst [vmem:[#allocation54_spill] sm:$0xff] %v13404_v17  ;;  %v13406_v24 = vpop.permute.xlu0 %7084  ;;  %7716 = vrot.lane.b32.xlu1 %v12873_v63, %s14809_s10  ;;  %v13421_v17 = vpop.f32.mrf.mxu0 }
 0x78a   : > { %15301 = vst [vmem:[#allocation42_spill] sm:$0xff] %v13406_v24  ;;  %6786 = vrot.lane.b32.xlu0 %v9126_v25, %s9427_s22  ;;  %v13425_v63 = vpop.f32.mrf.mxu1 }
 0x78c   : > { %v13413_v4 = vpop.permute.xlu1 %7092  ;;  %v13437_v22 = vpop.f32.mrf.mxu1 }
 0x78d   : > { %15302 = vst [vmem:[#allocation31_spill] sm:$0xff] %v13413_v4  ;;  %v13417_v21 = vpop.permute.xlu0 %7082  ;;  %7558 = vrot.lane.b32.xlu1 %v9127_v19, %s14808_s26  ;;  %v13431_v4 = vpop.f32.mrf.mxu0 }
 0x78e   : > { %15303 = vst [vmem:[#allocation45_spill] sm:$0xff] %v13417_v21  ;;  %7098 = vrot.lane.b32.xlu0 %v9124_v41, %s14806_s20  ;;  %v13435_v21 = vld [vmem:[#allocation2 + $0xe8] ss:$16 sps:$4 sm:$0xff]  }
 0x78f   : > { %15307 = vst [vmem:[#allocation37_spill] sm:$0xff] %v13435_v21 }
 0x790   : > { %v13423_v24 = vpop.permute.xlu1 %7090 }
 0x791   : > { %15304 = vst [vmem:[#allocation44_spill] sm:$0xff] %v13423_v24  ;;  %v13427_v51 = vpop.permute.xlu0 %7074  ;;  %7714 = vrot.lane.b32.xlu1 %v9127_v19, %s14809_s10  ;;  %v13448_v24 = vpop.f32.mrf.mxu1 }
 0x792   : > { %15305 = vst [vmem:[#allocation47_spill] sm:$0xff] %v13427_v51  ;;  %7096 = vrot.lane.b32.xlu0 %v9126_v25, %s14806_s20  ;;  %v13444_v51 = vpop.f32.mrf.mxu0 }
 0x793   : > { %v13461_v2 = vpop.f32.mrf.mxu1 }
 0x794   : > { %v13433_v1 = vpop.permute.xlu1 %7088 }
 0x795   : > { %15306 = vst [vmem:[#allocation21_spill] sm:$0xff] %v13433_v1  ;;  %v13439_v5 = vpop.permute.xlu0 %7072  ;;  %6632 = vrot.lane.b32.xlu1 %v9124_v41, %s9426_s12  ;;  %v13455_v1 = vpop.f32.mrf.mxu0  ;;  %v13459_v41 = vld [vmem:[#allocation2 + $0xe4] ss:$16 sps:$4 sm:$0xff]  }
 0x796   : > { %15308 = vst [vmem:[#allocation46_spill] sm:$0xff] %v13439_v5  ;;  %7598 = vrot.lane.b32.xlu0 %v13435_v21, %s14808_s26  ;;  %15312 = vst [vmem:[#allocation75_spill] sm:$0xff] %v13459_v41 }
 0x798   : > { %v13446_v19 = vpop.permute.xlu1 %7080 }
 0x799   : > { %15309 = vst [vmem:[#allocation48_spill] sm:$0xff] %v13446_v19  ;;  %v13450_v14 = vpop.permute.xlu0 %7070  ;;  %6630 = vrot.lane.b32.xlu1 %v9126_v25, %s9426_s12 }
 0x79a   : > { %15310 = vst [vmem:[#allocation38_spill] sm:$0xff] %v13450_v14  ;;  %7754 = vrot.lane.b32.xlu0 %v13435_v21, %s14809_s10  ;;  %v13469_v14 = vpop.f32.mrf.mxu0  ;;  %v13473_v21 = vpop.f32.mrf.mxu1 }
 0x79c   : > { %v13457_v5 = vpop.permute.xlu1 %7078  ;;  %v13483_v33 = vpop.f32.mrf.mxu1 }
 0x79d   : > { %15311 = vst [vmem:[#allocation60_spill] sm:$0xff] %v13457_v5  ;;  %v13463_v52 = vpop.permute.xlu0 %7062  ;;  %6790 = vrot.lane.b32.xlu1 %v13378_v34, %s9427_s22  ;;  %v13479_v5 = vpop.f32.mrf.mxu0 }
 0x79e   : > { %15313 = vst [vmem:[#allocation64_spill] sm:$0xff] %v13463_v52  ;;  %7596 = vrot.lane.b32.xlu0 %v13459_v41, %s14808_s26  ;;  %v13492_v27 = vpop.f32.mrf.mxu1 }
 0x79f   : > { %v13488_v35 = vpop.f32.mrf.mxu0 }
 0x7a0   : > { %v13471_v19 = vpop.permute.xlu1 %7076 }
 0x7a1   : > { %15314 = vst [vmem:[#allocation22_spill] sm:$0xff] %v13471_v19  ;;  %v13475_v53 = vpop.permute.xlu0 %7060  ;;  %6944 = vrot.lane.b32.xlu1 %v13378_v34, %s9428_s13 }
 0x7a2   : > { %15315 = vst [vmem:[#allocation58_spill] sm:$0xff] %v13475_v53  ;;  %v13498_v56 = vpop.f32.mrf.mxu1 }
 0x7a4   : > { %v13481_v52 = vpop.permute.xlu1 %7068 }
 0x7a5   : > { %15316 = vst [vmem:[#allocation51_spill] sm:$0xff] %v13481_v52  ;;  %v13485_v0 = vpop.permute.xlu0 %7058  ;;  %6940 = vrot.lane.b32.xlu1 %v9126_v25, %s9428_s13  ;;  %v13500_v52 = vpop.f32.mrf.mxu0 }
 0x7a6   : > { %15317 = vst [vmem:[#allocation62_spill] sm:$0xff] %v13485_v0 }
 0x7a7   : > { %v13508_v25 = vpop.f32.mrf.mxu0 }
 0x7a8   : > { %v13490_v19 = vpop.permute.xlu1 %7066  ;;  %v5370_v7 = vmul.f32 %v13508_v25, %v15342_v48 }
 0x7a9   : > { %15318 = vst [vmem:[#allocation24_spill] sm:$0xff] %v13490_v19  ;;  %v13494_v53 = vpop.permute.xlu0 %7592  ;;  %7100 = vrot.lane.b32.xlu1 %v13378_v34, %s14806_s20  ;;  %v13510_v19 = vpop.f32.mrf.mxu1 }
 0x7aa   : > { %15319 = vst [vmem:[#allocation69_spill] sm:$0xff] %v13494_v53  ;;  %v13516_v34 = vpop.f32.mrf.mxu0 }
 0x7ab   : > { %v13518_v50 = vpop.f32.mrf.mxu1 }
 0x7ac   : > { %v13502_v44 = vpop.permute.xlu1 %7064 }
 0x7ad   : > { %15320 = vst [vmem:[#allocation68_spill] sm:$0xff] %v13502_v44  ;;  %v13504_v0 = vpop.permute.xlu0 %7748  ;;  %7752 = vrot.lane.b32.xlu1 %v13459_v41, %s14809_s10  ;;  %v13526_v57 = vpop.f32.mrf.mxu1 }
 0x7ae   : > { %15321 = vst [vmem:[#allocation76_spill] sm:$0xff] %v13504_v0  ;;  %v13524_v0 = vpop.f32.mrf.mxu0 }
 0x7b0   : > { %v13512_v26 = vpop.permute.xlu1 %7056  ;;  %v13532_v20 = vpop.f32.mrf.mxu0 }
 0x7b1   : > { %15322 = vst [vmem:[#allocation72_spill] sm:$0xff] %v13512_v26  ;;  %v13514_v53 = vpop.permute.xlu0 %7590  ;;  %v13534_v26 = vpop.f32.mrf.mxu1 }
 0x7b2   : > { %15323 = vst [vmem:[#allocation111_spill] sm:$0xff] %v13514_v53  ;;  %v13540_v38 = vpop.f32.mrf.mxu0 }
 0x7b4   : > { %v13520_v32 = vpop.permute.xlu1 %7054  ;;  %v13548_v36 = vpop.f32.mrf.mxu0 }
 0x7b5   : > { %15324 = vst [vmem:[#allocation112_spill] sm:$0xff] %v13520_v32  ;;  %v13522_v44 = vpop.permute.xlu0 %7586  ;;  %v13542_v32 = vpop.f32.mrf.mxu1 }
 0x7b6   : > { %15325 = vst [vmem:[#allocation113_spill] sm:$0xff] %v13522_v44  ;;  %v13556_v58 = vpop.f32.mrf.mxu0 }
 0x7b8   : > { %v13528_v41 = vpop.permute.xlu1 %7600 }
 0x7b9   : > { %15326 = vst [vmem:[#allocation114_spill] sm:$0xff] %v13528_v41  ;;  %v13530_v29 = vpop.permute.xlu0 %7742  ;;  %v13550_v41 = vpop.f32.mrf.mxu1 }
 0x7ba   : > { %15327 = vst [vmem:[#allocation115_spill] sm:$0xff] %v13530_v29 }
 0x7bc   : > { %v13536_v53 = vpop.permute.xlu1 %7756 }
 0x7bd   : > { %15328 = vst [vmem:[#allocation116_spill] sm:$0xff] %v13536_v53  ;;  %v13538_v43 = vpop.permute.xlu0 %7584  ;;  %v13558_v53 = vpop.f32.mrf.mxu1 }
 0x7be   : > { %15329 = vst [vmem:[#allocation117_spill] sm:$0xff] %v13538_v43  ;;  %15334 = vst [vmem:[#allocation122_spill] sm:$0xff] %v13558_v53 }
 0x7c0   : > { %v13544_v44 = vpop.permute.xlu1 %7594 }
 0x7c1   : > { %15330 = vst [vmem:[#allocation118_spill] sm:$0xff] %v13544_v44  ;;  %v13546_v62 = vpop.permute.xlu0 %7580  ;;  %v13566_v44 = vpop.f32.mrf.mxu0 }
 0x7c2   : > { %15331 = vst [vmem:[#allocation119_spill] sm:$0xff] %v13546_v62 }
 0x7c3   : > { %v13562_v45 = vpop.f32.mrf.mxu1  ;;  %v13568_v62 = vpop.f32.mrf.mxu0 }
 0x7c4   : > { %v13552_v29 = vpop.permute.xlu1 %7750 }
 0x7c5   : > { %15332 = vst [vmem:[#allocation120_spill] sm:$0xff] %v13552_v29  ;;  %v13554_v28 = vpop.permute.xlu0 %7736  ;;  %v13572_v11 = vpop.f32.mrf.mxu1 }
 0x7c6   : > { %15333 = vst [vmem:[#allocation121_spill] sm:$0xff] %v13554_v28  ;;  %v13576_v28 = vpop.f32.mrf.mxu0 }
 0x7c7   : > { %v13580_v8 = vpop.f32.mrf.mxu1 }
 0x7c8   : > { %v13560_v43 = vpop.permute.xlu1 %7746  ;;  %v13584_v12 = vpop.f32.mrf.mxu0 }
 0x7c9   : > { %15335 = vst [vmem:[#allocation123_spill] sm:$0xff] %v13560_v43  ;;  %v13564_v61 = vpop.permute.xlu0 %7578  ;;  %v13594_v37 = vpop.f32.mrf.mxu1 }
 0x7ca   : > { %15336 = vst [vmem:[#allocation124_spill] sm:$0xff] %v13564_v61 }
 0x7cc   : > { %v13570_v16 = vpop.permute.xlu1 %7588 }
 0x7cd   : > { %15337 = vst [vmem:[#allocation125_spill] sm:$0xff] %v13570_v16  ;;  %v13574_v29 = vpop.permute.xlu0 %7574  ;;  %v15343_v16 = vld [vmem:[#allocation25_spill] sm:$0xff] }
 0x7ce   : > { %15338 = vst [vmem:[#allocation126_spill] sm:$0xff] %v13574_v29  ;;  %v4881_v9 = vmul.f32 %v13356_v30, %v15343_v16  ;;  %v4882_v29 = vmul.f32 %v13365_v55, %v15342_v48  ;;  %v4887_v30 = vmul.f32 %v13411_v47, %v15343_v16  ;;  %v13608_v55 = vpop.f32.mrf.mxu0  ;;  %v4892_v47 = vadd.f32 %v4884_v46, %v13035_v42 }
 0x7d0   : > { %v13578_v15 = vpop.permute.xlu1 %7744  ;;  %v4890_v39 = vadd.f32 %v4882_v29, %v15347_v49  ;;  %v15350_v29 = vld [vmem:[#allocation27_spill] sm:$0xff] }
 0x7d1   : > { %15339 = vst [vmem:[#allocation127_spill] sm:$0xff] %v13578_v15  ;;  %v13582_v43 = vpop.permute.xlu0 %7730 }
 0x7d2   : > { %15340 = vst [vmem:[#allocation128_spill] sm:$0xff] %v13582_v43  ;;  %v4883_v43 = vmul.f32 %v13374_v40, %v15343_v16 }
 0x7d4   : > { %v13586_v61 = vpop.permute.xlu1 %7740  ;;  %v4891_v6 = vadd.f32 %v4883_v43, %v15347_v49  ;;  %v5048_v49 = vadd.f32 %v13444_v51, %v4890_v39  ;;  %v5050_v51 = vadd.f32 %v13469_v14, %v4892_v47 }
 0x7d5   : > { %15341 = vst [vmem:[#allocation129_spill] sm:$0xff] %v13586_v61  ;;  %v13596_v15 = vpop.permute.xlu0 %7572  ;;  %v4885_v61 = vmul.f32 %v13394_v10, %v15343_v16  ;;  %v13617_v10 = vpop.f32.mrf.mxu1 }
 0x7d6   : > { %15344 = vst [vmem:[#allocation130_spill] sm:$0xff] %v13596_v15  ;;  %v15346_v15 = vld [vmem:[#allocation29_spill] sm:$0xff]  ;;  %v5049_v46 = vadd.f32 %v13455_v1, %v4891_v6 }
 0x7d7   : > { %v4888_v59 = vadd.f32 %v4880_v3, %v15346_v15  ;;  %v4889_v40 = vadd.f32 %v4881_v9, %v15346_v15  ;;  %v4893_v53 = vadd.f32 %v4885_v61, %v13035_v42  ;;  %v4895_v15 = vadd.f32 %v4887_v30, %v13037_v18  ;;  %v5837_v61 = vpop.f32.mrf.mxu0 }
 0x7d8   : > { %v13610_v23 = vpop.permute.xlu1 %7582  ;;  %v5205_v9 = vmul.f32 %v13425_v63, %v15350_v29  ;;  %v5206_v42 = vmul.f32 %v13437_v22, %v15348_v60  ;;  %v13644_v63 = vpop.f32.mrf.mxu1 }
 0x7d9   : > { %15345 = vst [vmem:[#allocation131_spill] sm:$0xff] %v13610_v23  ;;  %v13619_v31 = vpop.permute.xlu0 %7568  ;;  %v4894_v23 = vadd.f32 %v4886_v13, %v13037_v18  ;;  %v5046_v3 = vadd.f32 %v13421_v17, %v4888_v59  ;;  %v5207_v18 = vmul.f32 %v13448_v24, %v15350_v29  ;;  %v5208_v17 = vmul.f32 %v13461_v2, %v15348_v60 }
 0x7da   : > { %15349 = vst [vmem:[#allocation29_spill] sm:$0xff] %v13619_v31  ;;  %v5047_v31 = vadd.f32 %v13431_v4, %v4889_v40  ;;  %v5371_v4 = vmul.f32 %v13516_v34, %v15343_v16  ;;  %v5051_v1 = vadd.f32 %v13479_v5, %v4893_v53  ;;  %v5372_v24 = vmul.f32 %v13524_v0, %v15342_v48  ;;  %v5839_v5 = vpop.f32.mrf.mxu0  ;;  %v13667_v6 = vpop.f32.mrf.mxu1 }
 0x7db   : > { %v5212_v59 = vadd.f32 %v5204_v54, %v5046_v3  ;;  %v5209_v54 = vmul.f32 %v13473_v21, %v15350_v29  ;;  %v5373_v2 = vmul.f32 %v13532_v20, %v15343_v16  ;;  %v5374_v34 = vmul.f32 %v13540_v38, %v15342_v48 }
 0x7dc   : > { %v13636_v43 = vpop.permute.xlu1 %7738  ;;  %v5213_v22 = vadd.f32 %v5205_v9, %v5047_v31  ;;  %v5052_v13 = vadd.f32 %v13488_v35, %v4894_v23  ;;  %v5214_v30 = vadd.f32 %v5206_v42, %v5048_v49  ;;  %v5210_v53 = vmul.f32 %v13483_v33, %v15348_v60 }
 0x7dd   : > { %v13646_v39 = vpop.permute.xlu0 %7724  ;;  %v5378_v25 = vadd.f32 %v5370_v7, %v5212_v59  ;;  %v5375_v21 = vmul.f32 %v13548_v36, %v15343_v16  ;;  %v5215_v0 = vadd.f32 %v5207_v18, %v5049_v46  ;;  %v5216_v31 = vadd.f32 %v5208_v17, %v5050_v51  ;;  %v13688_v18 = vpop.f32.mrf.mxu1 }
 0x7de   : > { %v5379_v40 = vadd.f32 %v5371_v4, %v5213_v22  ;;  %v5846_v20 = vmul.f32 %v13568_v62, %v15348_v60  ;;  %v5053_v35 = vadd.f32 %v13500_v52, %v4895_v15  ;;  %v5217_v23 = vadd.f32 %v5209_v54, %v5051_v1  ;;  %v5841_v15 = vpop.f32.mrf.mxu0 }
 0x7df   : > { %v5211_v33 = vmul.f32 %v13492_v27, %v15350_v29  ;;  %v5380_v36 = vadd.f32 %v5372_v24, %v5214_v30  ;;  %v5552_v47 = vadd.f32 %v13498_v56, %v5378_v25  ;;  %v5381_v3 = vadd.f32 %v5373_v2, %v5215_v0 }
 0x7e0   : > { %v13663_v14 = vpop.permute.xlu1 %7734  ;;  %v5382_v9 = vadd.f32 %v5374_v34, %v5216_v31  ;;  %v5847_v7 = vmul.f32 %v13576_v28, %v15350_v29  ;;  %v5218_v49 = vadd.f32 %v5210_v53, %v5052_v13  ;;  %v5376_v62 = vmul.f32 %v13556_v58, %v15342_v48 }
 0x7e1   : > { %v13669_v38 = vpop.permute.xlu0 %7566  ;;  %v5377_v46 = vmul.f32 %v13566_v44, %v15343_v16  ;;  %v5383_v52 = vadd.f32 %v5375_v21, %v5217_v23  ;;  %v5553_v27 = vadd.f32 %v13510_v19, %v5379_v40  ;;  %v5854_v59 = vadd.f32 %v5846_v20, %v5552_v47 }
 0x7e2   : > { %v6012_v56 = vmul.f32 %v13562_v45, %v15342_v48  ;;  %v5848_v28 = vmul.f32 %v13584_v12, %v15348_v60  ;;  %v5219_v17 = vadd.f32 %v5211_v33, %v5053_v35  ;;  %v5554_v58 = vadd.f32 %v13518_v50, %v5380_v36 }
 0x7e3   : > { %v5849_v44 = vmul.f32 %v13608_v55, %v15350_v29  ;;  %v5850_v4 = vmul.f32 %v5837_v61, %v15348_v60  ;;  %v5555_v51 = vadd.f32 %v13526_v57, %v5381_v3  ;;  %v5556_v19 = vadd.f32 %v13534_v26, %v5382_v9  ;;  %v5843_v55 = vpop.f32.mrf.mxu0 }
 0x7e4   : > { %v13681_v42 = vpop.permute.xlu1 %7576  ;;  %v5855_v1 = vadd.f32 %v5847_v7, %v5553_v27  ;;  %v6013_v45 = vmul.f32 %v13572_v11, %v15343_v16  ;;  %v5557_v24 = vadd.f32 %v13542_v32, %v5383_v52  ;;  %v5384_v22 = vadd.f32 %v5376_v62, %v5218_v49  ;;  %v15351_v7 = vld [vmem:[#allocation122_spill] sm:$0xff] }
 0x7e5   : > { %v13698_v54 = vpop.permute.xlu0 %7562  ;;  %v5385_v50 = vadd.f32 %v5377_v46, %v5219_v17  ;;  %v5851_v25 = vmul.f32 %v5839_v5, %v15350_v29  ;;  %v5856_v61 = vadd.f32 %v5848_v28, %v5554_v58  ;;  %v6014_v57 = vmul.f32 %v13580_v8, %v15342_v48 }
 0x7e6   : > { %v6020_v34 = vadd.f32 %v6012_v56, %v5854_v59  ;;  %v5857_v13 = vadd.f32 %v5849_v44, %v5555_v51  ;;  %v5858_v30 = vadd.f32 %v5850_v4, %v5556_v19  ;;  %v6015_v32 = vmul.f32 %v13594_v37, %v15343_v16 }
 0x7e7   : > { %v6317_v12 = vpop.f32.mrf.mxu1  ;;  %v6016_v53 = vmul.f32 %v13617_v10, %v15342_v48  ;;  %v6021_v0 = vadd.f32 %v6013_v45, %v5855_v1  ;;  %v5558_v40 = vadd.f32 %v13550_v41, %v5384_v22  ;;  %v5859_v20 = vadd.f32 %v5851_v25, %v5557_v24 }
 0x7e8   : > { %v13702_v2 = vpop.permute.xlu1 %7732  ;;  %v6336_v26 = vmul.f32 %v6317_v12, %v15348_v60  ;;  %v5852_v8 = vmul.f32 %v5841_v15, %v15348_v60  ;;  %v6017_v35 = vmul.f32 %v13644_v63, %v15343_v16  ;;  %v6022_v3 = vadd.f32 %v6014_v57, %v5856_v61 }
 0x7e9   : > { %v6319_v11 = vpop.f32.mrf.mxu1  ;;  %v13717_v36 = vpop.permute.xlu0 %7718  ;;  %v5559_v49 = vadd.f32 %v15351_v7, %v5385_v50  ;;  %v5853_v41 = vmul.f32 %v5843_v55, %v15350_v29  ;;  %v6023_v46 = vadd.f32 %v6015_v32, %v5857_v13  ;;  %v6024_v52 = vadd.f32 %v6016_v53, %v5858_v30 }
 0x7ea   : > { %v6159_v21 = vpop.f32.mrf.mxu0  ;;  %v6337_v10 = vmul.f32 %v6319_v11, %v15350_v29  ;;  %v5860_v28 = vadd.f32 %v5852_v8, %v5558_v40  ;;  %v6018_v17 = vmul.f32 %v13667_v6, %v15342_v48  ;;  %v6025_v4 = vadd.f32 %v6017_v35, %v5859_v20  ;;  %v15406_v48 = vld [vmem:[#allocation101_spill] sm:$0xff] }
 0x7eb   : > { %v6178_v5 = vadd.f32 %v6159_v21, %v6020_v34  ;;  %v6321_v31 = vpop.f32.mrf.mxu1  ;;  %v5861_v12 = vadd.f32 %v5853_v41, %v5559_v49  ;;  %v6019_v24 = vmul.f32 %v13688_v18, %v15343_v16  ;;  %v15404_v16 = vld [vmem:[#allocation105_spill] sm:$0xff] }
 0x7ec   : > { %v6161_v23 = vpop.f32.mrf.mxu0  ;;  %v13715_v33 = vpop.permute.xlu1 %7728  ;;  %v6338_v27 = vmul.f32 %v6321_v31, %v15348_v60 }
 0x7ed   : > { %v6344_v37 = vadd.f32 %v6336_v26, %v6178_v5  ;;  %v6179_v47 = vadd.f32 %v6161_v23, %v6021_v0  ;;  %v6323_v9 = vpop.f32.mrf.mxu1  ;;  %v13735_v61 = vpop.permute.xlu0 %7560  ;;  %v6026_v5 = vadd.f32 %v6018_v17, %v5860_v28 }
 0x7ee   : > { %v6163_v62 = vpop.f32.mrf.mxu0  ;;  %v6339_v22 = vmul.f32 %v6323_v9, %v15350_v29 }
 0x7ef   : > { %v6360_v15 = vmul.f32 0.01, %v6344_v37  ;;  %v6345_v63 = vadd.f32 %v6337_v10, %v6179_v47  ;;  %v6180_v59 = vadd.f32 %v6163_v62, %v6022_v3  ;;  %v6327_v56 = vpop.f32.mrf.mxu1  ;;  %vm6352_vm15 = vcmp.ge.f32.partialorder %v6344_v37, 0.0 }
 0x7f0   : > { %v6165_v58 = vpop.f32.mrf.mxu0  ;;  %v13725_v44 = vpop.permute.xlu1 %7570  ;;  %v6340_v1 = vmul.f32 %v6327_v56, %v15348_v60 }
 0x7f1   : > { %vm6353_vm0 = vcmp.ge.f32.partialorder %v6345_v63, 0.0  ;;  %v6361_v51 = vmul.f32 0.01, %v6345_v63  ;;  %v6346_v19 = vadd.f32 %v6338_v27, %v6180_v59  ;;  %v6329_v45 = vpop.f32.mrf.mxu1  ;;  %v6181_v50 = vadd.f32 %v6165_v58, %v6023_v46  ;;  %v13752_v41 = vpop.permute.xlu0 %7556 }
 0x7f2   : > { %v6169_v25 = vpop.f32.mrf.mxu0  ;;  %v13731_v6 = vsel %vm6352_vm15, %v6344_v37, %v6360_v15  ;;  %v6341_v26 = vmul.f32 %v6329_v45, %v15350_v29  ;;  %v6027_v37 = vadd.f32 %v6019_v24, %v5861_v12  ;;  %v9132_v12 = vld [vmem:[#allocation2 + $0x100] ss:$16 sps:$4 sm:$0xff]  }
 0x7f3   : > { %v13733_v55 = vsel %vm6353_vm0, %v6345_v63, %v6361_v51  ;;  %v6182_v57 = vadd.f32 %v6169_v25, %v6024_v52  ;;  %v6331_v34 = vpop.f32.mrf.mxu1  ;;  %v6362_v13 = vmul.f32 0.01, %v6346_v19  ;;  %v6347_v30 = vadd.f32 %v6339_v22, %v6181_v50  ;;  %6636 = vrot.lane.b32.xlu0 %v9132_v12, %s9426_s12 }
 0x7f4   : > { %v8780_v11 = vpack.c.bf16 %v13733_v55, %v13731_v6  ;;  %v6171_v18 = vpop.f32.mrf.mxu0  ;;  %v13740_v32 = vpop.permute.xlu1 %7726  ;;  %vm6354_vm10 = vcmp.ge.f32.partialorder %v6346_v19, 0.0  ;;  %v6342_v20 = vmul.f32 %v6331_v34, %v15348_v60  ;;  %v9220_v60 = vld [vmem:[#allocation2 + $0xc] ss:$16 sps:$4 sm:$0xff]  }
 0x7f5   : > { %v6348_v53 = vadd.f32 %v6340_v1, %v6182_v57  ;;  %v6183_v21 = vadd.f32 %v6171_v18, %v6025_v4  ;;  %v6333_v0 = vpop.f32.mrf.mxu1  ;;  %vm6355_vm11 = vcmp.ge.f32.partialorder %v6347_v30, 0.0  ;;  %v6363_v31 = vmul.f32 0.01, %v6347_v30  ;;  %v13756_v58 = vpop.permute.xlu0 %7712 }
 0x7f6   : > { %6400 = vst [vmem:[#allocation2 + $0x104] sm:$0xff] %v8780_v11  ;;  %v6173_v40 = vpop.f32.mrf.mxu0  ;;  %v13743_v10 = vsel %vm6354_vm10, %v6346_v19, %v6362_v13  ;;  %v6343_v9 = vmul.f32 %v6333_v0, %v15350_v29  ;;  %v15353_v0 = vld [vmem:[#allocation67_spill] sm:$0xff]  ;;  %v15398_v29 = vld [vmem:[#allocation94_spill] sm:$0xff] }
 0x7f7   : > { %v6364_v8 = vmul.f32 0.01, %v6348_v53  ;;  %v6349_v35 = vadd.f32 %v6341_v26, %v6183_v21  ;;  %v6184_v23 = vadd.f32 %v6173_v40, %v6026_v5  ;;  %v13745_v47 = vsel %vm6355_vm11, %v6347_v30, %v6363_v31  ;;  %v15352_v5 = vld [vmem:[#allocation77_spill] sm:$0xff] }
 0x7f8   : > { %vm6356_vm12 = vcmp.ge.f32.partialorder %v6348_v53, 0.0  ;;  %v6175_v3 = vpop.f32.mrf.mxu0  ;;  %v13748_v7 = vpop.permute.xlu1 %7722  ;;  %v8781_v49 = vpack.c.bf16 %v13745_v47, %v13743_v10  ;;  %v6661_v31 = vsel %vm524_vm1, %v15353_v0, %v15352_v5  ;;  %v15365_v5 = vld [vmem:[#allocation84_spill] sm:$0xff] }
 0x7f9   : > { %vm6357_vm13 = vcmp.ge.f32.partialorder %v6349_v35, 0.0  ;;  %v6365_v62 = vmul.f32 0.01, %v6349_v35  ;;  %v6350_v46 = vadd.f32 %v6342_v20, %v6184_v23  ;;  %v6185_v52 = vadd.f32 %v6175_v3, %v6027_v37  ;;  %v6635_v25 = vpop.permute.xlu0 %6634  ;;  %v13793_v37 = vld [vmem:[#allocation9] sm:$0xff] }
 0x7fa   : > { %6401 = vst [vmem:[#allocation2 + $0x114] sm:$0xff] %v8781_v49  ;;  %v6372_v15 = vsel %vm6356_vm12, %v6348_v53, %v6364_v8  ;;  %v15354_v8 = vld [vmem:[#allocation71_spill] sm:$0xff]  ;;  %v15355_v49 = vld [vmem:[#allocation73_spill] sm:$0xff] }
 0x7fb   : > { %v6373_v63 = vsel %vm6357_vm13, %v6349_v35, %v6365_v62  ;;  %v6366_v59 = vmul.f32 0.01, %v6350_v46  ;;  %v6351_v56 = vadd.f32 %v6343_v9, %v6185_v52  ;;  %vm6358_vm14 = vcmp.ge.f32.partialorder %v6350_v46, 0.0  ;;  %v15356_v62 = vld [vmem:[#allocation79_spill] sm:$0xff] }
 0x7fc   : > { %v8782_v27 = vpack.c.bf16 %v6373_v63, %v6372_v15  ;;  %v13754_v28 = vpop.permute.xlu1 %7564  ;;  %v6660_v35 = vsel %vm524_vm1, %v15354_v8, %v15353_v0  ;;  %v8656_v52 = vcombine.high %v13793_v37, %v13793_v37  ;;  %v15368_v8 = vld [vmem:[#allocation88_spill] sm:$0xff] }
 0x7fd   : > { %vm6359_vm15 = vcmp.ge.f32.partialorder %v6351_v56, 0.0  ;;  %v6367_v17 = vmul.f32 0.01, %v6351_v56  ;;  %v6374_v4 = vsel %vm6358_vm14, %v6350_v46, %v6366_v59  ;;  %v6789_v34 = vpop.permute.xlu0 %6788  ;;  %v6659_v46 = vsel %vm524_vm1, %v15356_v62, %v15355_v49  ;;  %v15370_v49 = vld [vmem:[#allocation96_spill] sm:$0xff] }
 0x7fe   : > { %6402 = vst [vmem:[#allocation2 + $0x124] sm:$0xff] %v8782_v27  ;;  %v13762_v22 = vpack.c.bf16 %v6374_v4, %v6372_v15  ;;  %v15358_v27 = vld [vmem:[#allocation86_spill] sm:$0xff]  ;;  %8687 = vmatprep.mubr.msk.bf16.mxu0 %vm533_vm4, %v8656_v52  ;;  %v15371_v52 = vld [vmem:[#allocation87_spill] sm:$0xff] }
 0x7ff   : > { %v6375_v51 = vsel %vm6359_vm15, %v6351_v56, %v6367_v17  ;;  %v15359_v56 = vld [vmem:[#allocation81_spill] sm:$0xff] }
 0x800   : > { %v13758_v19 = vpop.permute.xlu1 %7720  ;;  %v8783_v1 = vpack.c.bf16 %v6375_v51, %v6374_v4  ;;  %v13760_v24 = vpack.c.bf16 %v6375_v51, %v6373_v63  ;;  %v15357_v63 = vld [vmem:[#allocation91_spill] sm:$0xff]  ;;  %v6658_v17 = vsel %vm524_vm1, %v15359_v56, %v15356_v62  ;;  %v9200_v51 = vld [vmem:[#allocation2 + $0x14] sm:$0xff] }
 0x801   : > { %v9131_v45 = vld [vmem:[#allocation2 + $0x108] ss:$16 sps:$4 sm:$0xff]   ;;  %v9134_v57 = vld [vmem:[#allocation2 + $0x104] ss:$16 sps:$4 sm:$0xff]   ;;  %v13777_v30 = vpop.permute.xlu0 %6942  ;;  %v6817_v59 = vsel %vm647_vm3, %v15358_v27, %v15357_v63  ;;  %v6654_v63 = vsel %vm524_vm1, %v15371_v52, %v15368_v8 }
 0x802   : > { %6403 = vst [vmem:[#allocation2 + $0x134] sm:$0xff] %v8783_v1  ;;  %6640 = vrot.lane.b32.xlu1 %v9131_v45, %s9426_s12  ;;  %6638 = vrot.lane.b32.xlu0 %v9134_v57, %s9426_s12  ;;  %v9199_v4 = vld [vmem:[#allocation2 + $0x4] sm:$0xff]  ;;  %v15388_v52 = vld [vmem:[#allocation18_spill] sm:$0xff] }
 0x803   : > { %v13815_v1 = vcombine.low %v9199_v4, %v9200_v51  ;;  %v15376_v4 = vld [vmem:[#allocation99_spill] sm:$0xff] }
 0x804   : > { %v13765_v50 = vpop.permute.xlu1 %7716 }
 0x805   : > { %v6787_v40 = vpop.permute.xlu0 %6786 }
 0x806   : > { %6796 = vrot.lane.b32.xlu1 %v9131_v45, %s9427_s22  ;;  %6794 = vrot.lane.b32.xlu0 %v9134_v57, %s9427_s22  ;;  %v6818_v3 = vsel %vm647_vm3, %v6787_v40, %v6789_v34 }
 0x808   : > { %v13769_v26 = vpop.permute.xlu1 %7558 }
 0x809   : > { %v13796_v9 = vld [vmem:[#allocation2 + $0x124] ss:$16 sps:$4 sm:$0xff]   ;;  %v13803_v15 = vld [vmem:[#allocation2 + $0x128] ss:$16 sps:$4 sm:$0xff]  }
 0x80a   : > { %6950 = vrot.lane.b32.xlu1 %v9131_v45, %s9428_s13  ;;  %6948 = vrot.lane.b32.xlu0 %v9134_v57, %s9428_s13 }
 0x80c   : > { %v13773_v11 = vpop.permute.xlu1 %7714 }
 0x80e   : > { %6946 = vrot.lane.b32.xlu1 %v9132_v12, %s9428_s13  ;;  %6792 = vrot.lane.b32.xlu0 %v9132_v12, %s9427_s22 }
 0x810   : > { %v6633_v13 = vpop.permute.xlu1 %6632 }
 0x811   : > { %v6663_v18 = vsel %vm524_vm1, %v6633_v13, %v6635_v25  ;;  %v13821_v25 = vld [vmem:[#allocation2 + $0x120] ss:$16 sps:$4 sm:$0xff]  }
 0x812   : > { %6691 = vmatprep.subr.bf16.mxu0 %v6663_v18  ;;  %7104 = vrot.lane.b32.xlu1 %v9134_v57, %s14806_s20  ;;  %v15361_v57 = vld [vmem:[#allocation85_spill] sm:$0xff]  ;;  %v15363_v18 = vld [vmem:[#allocation95_spill] sm:$0xff] }
 0x813   : > { %7106 = vrot.lane.b32.xlu0 %v9131_v45, %s14806_s20  ;;  %v15360_v45 = vld [vmem:[#allocation89_spill] sm:$0xff] }
 0x814   : > { %v6631_v53 = vpop.permute.xlu1 %6630 }
 0x815   : > { %v6662_v21 = vsel %vm524_vm1, %v6631_v53, %v6633_v13  ;;  %v15364_v53 = vld [vmem:[#allocation92_spill] sm:$0xff] }
 0x816   : > { %6692 = vmatpush1.bf16.msra.mxu0 %v6662_v21  ;;  %7102 = vrot.lane.b32.xlu1 %v9132_v12, %s14806_s20  ;;  %v6816_v12 = vsel %vm647_vm3, %v15360_v45, %v15358_v27  ;;  %v6815_v21 = vsel %vm647_vm3, %v15364_v53, %v15363_v18  ;;  %v15373_v27 = vld [vmem:[#allocation57_spill] sm:$0xff]  ;;  %v15377_v45 = vld [vmem:[#allocation55_spill] sm:$0xff] }
 0x817   : > { %6693 = vmatprep.subr.bf16.mxu0 %v6661_v31  ;;  %6646 = vrot.lane.b32.xlu0 %v13803_v15, %s9426_s12  ;;  %v15366_v31 = vld [vmem:[#allocation102_spill] sm:$0xff]  ;;  %v15380_v18 = vld [vmem:[#allocation39_spill] sm:$0xff] }
 0x818   : > { %v6791_v20 = vpop.permute.xlu1 %6790  ;;  %v6814_v40 = vsel %vm647_vm3, %v15366_v31, %v15364_v53 }
 0x819   : > { %v6819_v23 = vsel %vm647_vm3, %v6789_v34, %v6791_v20  ;;  %v15362_v34 = vld [vmem:[#allocation80_spill] sm:$0xff]  ;;  %v15367_v20 = vld [vmem:[#allocation83_spill] sm:$0xff] }
 0x81a   : > { %6694 = vmatpush1.bf16.msra.mxu0 %v6660_v35  ;;  %6847 = vmatprep.subr.bf16.mxu1 %v6819_v23  ;;  %v6657_v13 = vsel %vm524_vm1, %v15362_v34, %v15361_v57  ;;  %v6656_v0 = vsel %vm524_vm1, %v15365_v5, %v15362_v34  ;;  %v6655_v35 = vsel %vm524_vm1, %v15368_v8, %v15367_v20  ;;  %v15378_v57 = vld [vmem:[#allocation109_spill] sm:$0xff]  ;;  %v15381_v5 = vld [vmem:[#allocation20_spill] sm:$0xff]  ;;  %v15383_v20 = vld [vmem:[#allocation63_spill] sm:$0xff] }
 0x81b   : > { %6695 = vmatprep.subr.bf16.mxu0 %v6659_v46  ;;  %6848 = vmatpush1.bf16.msra.mxu1 %v6818_v3  ;;  %v13844_v23 = vpack.c.bf16 %v13745_v47, %v13733_v55  ;;  %v15369_v3 = vld [vmem:[#allocation98_spill] sm:$0xff]  ;;  %v15372_v55 = vld [vmem:[#allocation107_spill] sm:$0xff]  ;;  %v6810_v34 = vsel %vm647_vm3, %v15378_v57, %v15376_v4  ;;  %v6650_v8 = vsel %vm524_vm1, %v15383_v20, %v15380_v18  ;;  %v13957_v20 = vpop.permute.xlu0 %7098 }
 0x81c   : > { %6644 = vrot.lane.b32.xlu1 %v13796_v9, %s9426_s12  ;;  %6849 = vmatprep.subr.bf16.mxu1 %v6817_v59  ;;  %v6813_v62 = vsel %vm647_vm3, %v15370_v49, %v15369_v3  ;;  %v13851_v46 = vld [vmem:[#allocation2 + $0x12c] ss:$16 sps:$4 sm:$0xff]   ;;  %v6812_v47 = vsel %vm647_vm3, %v15372_v55, %v15370_v49  ;;  %v15386_v3 = vld [vmem:[#allocation61_spill] sm:$0xff] }
 0x81d   : > { %7554 = vrot.lane.b32.xlu0 %v13815_v1, %s14808_s26  ;;  %v15374_v59 = vld [vmem:[#allocation74_spill] sm:$0xff]  ;;  %v15389_v55 = vld [vmem:[#allocation37_spill] sm:$0xff] }
 0x81e   : > { %6696 = vmatpush1.bf16.msra.mxu0 %v6658_v17  ;;  %v6653_v56 = vsel %vm524_vm1, %v15374_v59, %v15373_v27  ;;  %v15375_v17 = vld [vmem:[#allocation103_spill] sm:$0xff]  ;;  %v13929_v57 = vld [vmem:[#allocation9 + $0x8] sm:$0xff] }
 0x81f   : > { %6697 = vmatprep.subr.bf16.mxu0 %v6657_v13  ;;  %6850 = vmatpush1.bf16.msra.mxu1 %v6816_v12  ;;  %v6811_v51 = vsel %vm647_vm3, %v15376_v4, %v15375_v17  ;;  %v6652_v12 = vsel %vm524_vm1, %v15377_v45, %v15374_v59  ;;  %v15379_v13 = vld [vmem:[#allocation65_spill] sm:$0xff]  ;;  %v15392_v17 = vld [vmem:[#allocation19_spill] sm:$0xff]  ;;  %v15394_v45 = vld [vmem:[#allocation36_spill] sm:$0xff] }
 0x820   : > { %6642 = vrot.lane.b32.xlu1 %v13821_v25, %s9426_s12  ;;  %6851 = vmatprep.subr.bf16.mxu1 %v6815_v21  ;;  %v6651_v53 = vsel %vm524_vm1, %v15380_v18, %v15379_v13  ;;  %v13882_v21 = vpack.c.bf16 %v13743_v10, %v13731_v6  ;;  %v15384_v6 = vld [vmem:[#allocation106_spill] sm:$0xff]  ;;  %v15391_v59 = vld [vmem:[#allocation53_spill] sm:$0xff]  ;;  %v8689_v13 = vcombine.high %v13929_v57, %v13929_v57  ;;  %v15395_v18 = vld [vmem:[#allocation75_spill] sm:$0xff]  ;;  %s355_s12 = sand.u32 1, %s9407_s28  }
 0x821   : > { %7604 = vrot.lane.b32.xlu0 %v13844_v23, %s14808_s26  ;;  %v15393_v4 = vld [vmem:[#allocation49_spill] sm:$0xff]  ;;  %s8174_s25 = scalar_lea.sflag [#allocation5], %s355_s12 }
 0x822   : > { %6698 = vmatpush1.bf16.msra.mxu0 %v6656_v0  ;;  %v15382_v0 = vld [vmem:[#allocation59_spill] sm:$0xff]  ;;  %8690 = vmatprep.mubr.msk.bf16.mxu1 %vm533_vm4, %v8689_v13 }
 0x823   : > { %6699 = vmatprep.subr.bf16.mxu0 %v6655_v35  ;;  %6852 = vmatpush1.bf16.msra.mxu1 %v6814_v40  ;;  %v6809_v31 = vsel %vm647_vm3, %v15382_v0, %v15381_v5  ;;  %v13889_v40 = vld [vmem:[#allocation2 + $0x10c] ss:$16 sps:$4 sm:$0xff]   ;;  %v6808_v10 = vsel %vm647_vm3, %v15384_v6, %v15382_v0  ;;  %v15385_v35 = vld [vmem:[#allocation41_spill] sm:$0xff]  ;;  %v13961_v6 = vpop.permute.xlu1 %6944 }
 0x824   : > { %7710 = vrot.lane.b32.xlu1 %v13815_v1, %s14809_s10  ;;  %6853 = vmatprep.subr.bf16.mxu1 %v6813_v62  ;;  %v6649_v49 = vsel %vm524_vm1, %v15386_v3, %v15385_v35  ;;  %v15387_v62 = vld [vmem:[#allocation56_spill] sm:$0xff]  ;;  %v9203_v5 = vld [vmem:[#allocation2 + $0xc4] ss:$16 sps:$4 sm:$0xff]   ;;  %v13964_v35 = vpop.permute.xlu0 %7096 }
 0x825   : > { %7760 = vrot.lane.b32.xlu0 %v13844_v23, %s14809_s10  ;;  %v9204_v0 = vld [vmem:[#allocation2 + $0xcc] ss:$16 sps:$4 sm:$0xff]  }
 0x826   : > { %6700 = vmatpush1.bf16.msra.mxu0 %v6654_v63  ;;  %v6807_v63 = vsel %vm647_vm3, %v15388_v52, %v15387_v62 }
 0x827   : > { %6701 = vmatprep.subr.bf16.mxu0 %v6653_v56  ;;  %6854 = vmatpush1.bf16.msra.mxu1 %v6812_v47  ;;  %v15390_v47 = vld [vmem:[#allocation50_spill] sm:$0xff]  ;;  %v6806_v56 = vsel %vm647_vm3, %v15391_v59, %v15388_v52 }
 0x828   : > { %7612 = vrot.lane.b32.xlu1 %v13851_v46, %s14808_s26  ;;  %6855 = vmatprep.subr.bf16.mxu1 %v6811_v51  ;;  %v6648_v27 = vsel %vm524_vm1, %v15390_v47, %v15386_v3  ;;  %v6805_v51 = vsel %vm647_vm3, %v15393_v4, %v15392_v17  ;;  %v9208_v3 = vld [vmem:[#allocation2 + $0x88] ss:$16 sps:$4 sm:$0xff]   ;;  %v13972_v62 = vpop.permute.xlu0 %7598  ;;  %v9210_v47 = vld [vmem:[#allocation2 + $0x8c] ss:$16 sps:$4 sm:$0xff]  }
 0x829   : > { %7602 = vrot.lane.b32.xlu0 %v13882_v21, %s14808_s26  ;;  %v9211_v59 = vld [vmem:[#allocation2 + $0x68] ss:$16 sps:$4 sm:$0xff]  }
 0x82a   : > { %6702 = vmatpush1.bf16.msra.mxu0 %v6652_v12  ;;  %v6804_v12 = vsel %vm647_vm3, %v15394_v45, %v15393_v4 }
 0x82b   : > { %6703 = vmatprep.subr.bf16.mxu0 %v6651_v53  ;;  %6856 = vmatpush1.bf16.msra.mxu1 %v6810_v34  ;;  %v9201_v34 = vld [vmem:[#allocation2 + $0xec] ss:$16 sps:$4 sm:$0xff]   ;;  %v9202_v53 = vld [vmem:[#allocation2 + $0xc8] ss:$16 sps:$4 sm:$0xff]  }
 0x82c   : > { %7768 = vrot.lane.b32.xlu1 %v13851_v46, %s14809_s10  ;;  %6857 = vmatprep.subr.bf16.mxu1 %v6809_v31  ;;  %v9205_v31 = vld [vmem:[#allocation2 + $0xa8] ss:$16 sps:$4 sm:$0xff]  }
 0x82d   : > { %7910 = vrot.lane.b32.xlu0 %v15389_v55, %s9432_s19 }
 0x82e   : > { %6704 = vmatpush1.bf16.msra.mxu0 %v6650_v8  ;;  %v9206_v8 = vld [vmem:[#allocation2 + $0xa4] ss:$16 sps:$4 sm:$0xff]  }
 0x82f   : > { %6705 = vmatprep.subr.bf16.mxu0 %v6649_v49  ;;  %6858 = vmatpush1.bf16.msra.mxu1 %v6808_v10  ;;  %v9207_v10 = vld [vmem:[#allocation2 + $0xac] ss:$16 sps:$4 sm:$0xff]   ;;  %v13970_v49 = vpop.permute.xlu1 %6940 }
 0x830   : > { %7606 = vrot.lane.b32.xlu1 %v13889_v40, %s14808_s26  ;;  %6859 = vmatprep.subr.bf16.mxu1 %v6807_v63  ;;  %v13980_v63 = vpop.permute.xlu0 %7754 }
 0x831   : > { %8064 = vrot.lane.b32.xlu0 %v15389_v55, %s9433_s24  ;;  %v9209_v55 = vld [vmem:[#allocation2 + $0x84] ss:$16 sps:$4 sm:$0xff]  }
 0x832   : > { %6706 = vmatpush1.bf16.msra.mxu0 %v6648_v27 }
 0x833   : > { %6860 = vmatpush1.bf16.msra.mxu1 %v6806_v56  ;;  %v13976_v52 = vpop.permute.xlu1 %7100 }
 0x834   : > { %7762 = vrot.lane.b32.xlu1 %v13889_v40, %s14809_s10  ;;  %6861 = vmatprep.subr.bf16.mxu1 %v6805_v51  ;;  %v13988_v27 = vpop.permute.xlu0 %7596  ;;  %v9212_v51 = vld [vmem:[#allocation2 + $0x6c] ss:$16 sps:$4 sm:$0xff]  }
 0x835   : > { %6800 = vrot.lane.b32.xlu0 %v13796_v9, %s9427_s22 }
 0x837   : > { %6862 = vmatpush1.bf16.msra.mxu1 %v6804_v12 }
 0x838   : > { %7758 = vrot.lane.b32.xlu1 %v13882_v21, %s14809_s10 }
 0x839   : > { %6954 = vrot.lane.b32.xlu0 %v13796_v9, %s9428_s13 }
 0x83c   : > { %7912 = vrot.lane.b32.xlu1 %v9201_v34, %s9432_s19 }
 0x83d   : > { %6798 = vrot.lane.b32.xlu0 %v13821_v25, %s9427_s22 }
 0x840   : > { %6802 = vrot.lane.b32.xlu1 %v13803_v15, %s9427_s22  ;;  %s8300_s22 = sshll.u32 %s355_s12, 3 }
 0x841   : > { %7908 = vrot.lane.b32.xlu0 %v15395_v18, %s9432_s19 }
 0x844   : > { %6956 = vrot.lane.b32.xlu1 %v13803_v15, %s9428_s13 }
 0x845   : > { %7904 = vrot.lane.b32.xlu0 %v9202_v53, %s9432_s19 }
 0x848   : > { %6952 = vrot.lane.b32.xlu1 %v13821_v25, %s9428_s13  ;;  %s8784_s13 = sshll.u32 %s9501_s9, 7  ;;  %s9434_s9 = smov [#allocation11]  }
 0x849   : > { %8058 = vrot.lane.b32.xlu0 %v9202_v53, %s9433_s24  ;;  %s9347_s21 = sshll.u32 %s9434_s9, 4  ;;  %s9348_s21 = int_to_ptr.vmem [resolvable:$false] %s9347_s21 }
 0x84a   : > { %s9349_s23 = scalar_lea.vmem %s9348_s21, 256 }
 0x84c   : > { %8066 = vrot.lane.b32.xlu1 %v9201_v34, %s9433_s24  ;;  %v9214_v34 = vld [vmem:[#allocation2 + $0x48] ss:$16 sps:$4 sm:$0xff]  }
 0x84d   : > { %7902 = vrot.lane.b32.xlu0 %v9203_v5, %s9432_s19 }
 0x850   : > { %8062 = vrot.lane.b32.xlu1 %v15395_v18, %s9433_s24 }
 0x851   : > { %7898 = vrot.lane.b32.xlu0 %v9205_v31, %s9432_s19 }
 0x854   : > { %7906 = vrot.lane.b32.xlu1 %v9204_v0, %s9432_s19 }
 0x855   : > { %8052 = vrot.lane.b32.xlu0 %v9205_v31, %s9433_s24  ;;  %v9216_v31 = vld [vmem:[#allocation2 + $0x44] ss:$16 sps:$4 sm:$0xff]  }
 0x858   : > { %8060 = vrot.lane.b32.xlu1 %v9204_v0, %s9433_s24  ;;  %v9215_v0 = vld [vmem:[#allocation2 + $0x4c] ss:$16 sps:$4 sm:$0xff]  }
 0x859   : > { %7896 = vrot.lane.b32.xlu0 %v9206_v8, %s9432_s19 }
 0x85c   : > { %8056 = vrot.lane.b32.xlu1 %v9203_v5, %s9433_s24 }
 0x85d   : > { %7892 = vrot.lane.b32.xlu0 %v9208_v3, %s9432_s19 }
 0x860   : > { %7900 = vrot.lane.b32.xlu1 %v9207_v10, %s9432_s19 }
 0x861   : > { %7110 = vrot.lane.b32.xlu0 %v13796_v9, %s14806_s20  ;;  %v13986_v9 = vpop.permute.xlu1 %7752 }
 0x864   : > { %8054 = vrot.lane.b32.xlu1 %v9207_v10, %s9433_s24 }
 0x865   : > { %8046 = vrot.lane.b32.xlu0 %v9208_v3, %s9433_s24  ;;  %v6637_v56 = vpop.permute.xlu0 %6636 }
 0x868   : > { %8050 = vrot.lane.b32.xlu1 %v9206_v8, %s9433_s24 }
 0x869   : > { %7890 = vrot.lane.b32.xlu0 %v9209_v55, %s9432_s19 }
 0x86c   : > { %7112 = vrot.lane.b32.xlu1 %v13803_v15, %s14806_s20 }
 0x86d   : > { %7108 = vrot.lane.b32.xlu0 %v13821_v25, %s14806_s20  ;;  %v9213_v25 = vld [vmem:[#allocation2 + $0x64] ss:$16 sps:$4 sm:$0xff]  }
 0x870   : > { %7894 = vrot.lane.b32.xlu1 %v9210_v47, %s9432_s19 }
 0x871   : > { %7886 = vrot.lane.b32.xlu0 %v9211_v59, %s9432_s19 }
 0x874   : > { %8048 = vrot.lane.b32.xlu1 %v9210_v47, %s9433_s24  ;;  %v6641_v15 = vpop.permute.xlu1 %6640  ;;  %v6639_v4 = vpop.permute.xlu0 %6638  ;;  %v9217_v47 = vld [vmem:[#allocation2 + $0x28] ss:$16 sps:$4 sm:$0xff]  }
 0x875   : > { %8040 = vrot.lane.b32.xlu0 %v9211_v59, %s9433_s24 }
 0x878   : > { %8044 = vrot.lane.b32.xlu1 %v9209_v55, %s9433_s24  ;;  %v13994_v17 = vpop.permute.xlu1 %6796  ;;  %v14000_v12 = vpop.permute.xlu0 %6794 }
 0x879   : > { %7884 = vrot.lane.b32.xlu0 %v9213_v25, %s9432_s19 }
 0x87c   : > { %7888 = vrot.lane.b32.xlu1 %v9212_v51, %s9432_s19  ;;  %v13998_v45 = vpop.permute.xlu1 %6950  ;;  %v14006_v18 = vpop.permute.xlu0 %6948 }
 0x87d   : > { %7880 = vrot.lane.b32.xlu0 %v9214_v34, %s9432_s19 }
 0x880   : > { %8042 = vrot.lane.b32.xlu1 %v9212_v51, %s9433_s24  ;;  %v14004_v13 = vpop.permute.xlu1 %6946  ;;  %v14010_v5 = vpop.permute.xlu0 %6792 }
 0x881   : > { %8034 = vrot.lane.b32.xlu0 %v9214_v34, %s9433_s24 }
 0x884   : > { %8038 = vrot.lane.b32.xlu1 %v9213_v25, %s9433_s24  ;;  %v7105_v53 = vpop.permute.xlu1 %7104 }
 0x885   : > { %7878 = vrot.lane.b32.xlu0 %v9216_v31, %s9432_s19  ;;  %v7107_v3 = vpop.permute.xlu0 %7106 }
 0x886   : > { %v14019_v55 = vsel %vm872_vm5, %v7105_v53, %v7107_v3  ;;  %v6665_v3 = vsel %vm524_vm1, %v6639_v4, %v6641_v15  ;;  %v6973_v15 = vsel %vm750_vm2, %v13777_v30, %v13961_v6  ;;  %v15397_v6 = vld [vmem:[#allocation90_spill] sm:$0xff] }
 0x888   : > { %7882 = vrot.lane.b32.xlu1 %v9215_v0, %s9432_s19  ;;  %v7103_v8 = vpop.permute.xlu1 %7102 }
 0x889   : > { %v14015_v10 = vsel %vm872_vm5, %v7103_v8, %v7105_v53  ;;  %7874 = vrot.lane.b32.xlu0 %v9217_v47, %s9432_s19  ;;  %v6647_v51 = vpop.permute.xlu0 %6646  ;;  %v9218_v53 = vld [vmem:[#allocation2 + $0x2c] ss:$16 sps:$4 sm:$0xff]  }
 0x88c   : > { %8036 = vrot.lane.b32.xlu1 %v9215_v0, %s9433_s24 }
 0x88d   : > { %7610 = vrot.lane.b32.xlu0 %v13760_v24, %s14808_s26 }
 0x88e   : > { %v6645_v59 = vpop.permute.xlu1 %6644 }
 0x88f   : > { %v6667_v25 = vsel %vm524_vm1, %v6645_v59, %v6647_v51  ;;  %v14027_v0 = vpop.permute.xlu0 %7554  ;;  %v6664_v51 = vsel %vm524_vm1, %v6637_v56, %v6639_v4 }
 0x890   : > { %8032 = vrot.lane.b32.xlu1 %v9216_v31, %s9433_s24  ;;  %6719 = vmatprep.subr.bf16.mxu0 %v6667_v25 }
 0x891   : > { %7766 = vrot.lane.b32.xlu0 %v13760_v24, %s14809_s10 }
 0x892   : > { %v6643_v34 = vpop.permute.xlu1 %6642 }
 0x893   : > { %v6666_v8 = vsel %vm524_vm1, %v6643_v34, %v6645_v59  ;;  %v7605_v25 = vpop.permute.xlu0 %7604  ;;  %v8655_v59 = vcombine.low %v13793_v37, %v13793_v37  ;;  %v14038_v34 = vld [vmem:[#allocation9 + $0x10] sm:$0xff]  ;;  %v6972_v37 = vsel %vm750_vm2, %v13970_v49, %v13777_v30  ;;  %v6970_v30 = vsel %vm750_vm2, %v15398_v29, %v15397_v6 }
 0x894   : > { %7876 = vrot.lane.b32.xlu1 %v9218_v53, %s9432_s19  ;;  %6720 = vmatpush2.bf16.msra.mxu0 %v6666_v8  ;;  %v8692_v56 = vcombine.high %v14038_v34, %v14038_v34 }
 0x895   : > { %6721 = vmatprep.subr.bf16.mxu0 %v6665_v3  ;;  %7608 = vrot.lane.b32.xlu0 %v13762_v22, %s14808_s26  ;;  %v15396_v3 = vld [vmem:[#allocation93_spill] sm:$0xff] }
 0x896   : > { %v14033_v31 = vpop.permute.xlu1 %7710 }
 0x897   : > { %v7761_v4 = vpop.permute.xlu0 %7760 }
 0x898   : > { %7764 = vrot.lane.b32.xlu1 %v13762_v22, %s14809_s10  ;;  %6722 = vmatpush2.bf16.msra.mxu0 %v6664_v51  ;;  %v6971_v51 = vsel %vm750_vm2, %v15397_v6, %v15396_v3  ;;  %v15401_v3 = vld [vmem:[#allocation100_spill] sm:$0xff]  ;;  %s8186_s10 = scalar_lea.hbm %s14583_s8, %s8784_s13 }
 0x899   : > { %7001 = vmatprep.subr.bf16.mxu0 %v6973_v15  ;;  %8028 = vrot.lane.b32.xlu0 %v9217_v47, %s9433_s24 }
 0x89a   : > { %v14047_v8 = vpop.permute.xlu1 %7612 }
 0x89b   : > { %6724 = vmatmul.mubr.bf16.vlgmr.msra.gmra.mxu0 %v8655_v59  ;;  %v7603_v49 = vpop.permute.xlu0 %7602 }
 0x89c   : > { %8030 = vrot.lane.b32.xlu1 %v9218_v53, %s9433_s24  ;;  %7002 = vmatpush1.bf16.msra.mxu0 %v6972_v37  ;;  %v14066_v59 = vsel %vm1123_vm6, %v7603_v49, %v7605_v25  ;;  %v9219_v53 = vld [vmem:[#allocation2 + $0x24] ss:$16 sps:$4 sm:$0xff]   ;;  %v15400_v37 = vld [vmem:[#allocation104_spill] sm:$0xff] }
 0x89d   : > { %7003 = vmatprep.subr.bf16.mxu0 %v6971_v51  ;;  %8693 = vmatprep.mubr.msk.bf16.mxu0 %vm533_vm4, %v8692_v56  ;;  %15399 = vst [vmem:[#allocation17_spill] sm:$0xff] %v14066_v59  ;;  %v6969_v47 = vsel %vm750_vm2, %v15401_v3, %v15400_v37  ;;  %v15402_v51 = vld [vmem:[#allocation97_spill] sm:$0xff]  ;;  %v15409_v59 = vld [vmem:[#allocation110_spill] sm:$0xff] }
 0x89e   : > { %v14059_v15 = vpop.permute.xlu1 %7768  ;;  %7872 = vrot.lane.b32.xlu0 %v9219_v53, %s9432_s19  ;;  %v6968_v29 = vsel %vm750_vm2, %v15402_v51, %v15401_v3  ;;  %v6966_v3 = vsel %vm750_vm2, %v15406_v48, %v15404_v16 }
 0x89f   : > { %v7911_v6 = vpop.permute.xlu0 %7910 }
 0x8a0   : > { %8026 = vrot.lane.b32.xlu1 %v9219_v53, %s9433_s24  ;;  %7004 = vmatpush1.bf16.msra.mxu0 %v6970_v30  ;;  %v15403_v30 = vld [vmem:[#allocation108_spill] sm:$0xff]  ;;  %v15405_v53 = vld [vmem:[#allocation78_spill] sm:$0xff] }
 0x8a1   : > { %7005 = vmatprep.subr.bf16.mxu0 %v6969_v47  ;;  %v6967_v37 = vsel %vm750_vm2, %v15404_v16, %v15403_v30 }
 0x8a2   : > { %v7607_v56 = vpop.permute.xlu1 %7606  ;;  %7868 = vrot.lane.b32.xlu0 %v15405_v53, %s9432_s19 }
 0x8a3   : > { %v14077_v49 = vsel %vm1123_vm6, %v7605_v25, %v7607_v56  ;;  %v14088_v51 = vpop.permute.xlu0 %8064  ;;  %v15407_v56 = vld [vmem:[#allocation66_spill] sm:$0xff] }
 0x8a4   : > { %7870 = vrot.lane.b32.xlu1 %v9220_v60, %s9432_s19  ;;  %7006 = vmatpush1.bf16.msra.mxu0 %v6968_v29  ;;  %v15408_v29 = vld [vmem:[#allocation32_spill] sm:$0xff] }
 0x8a5   : > { %7007 = vmatprep.subr.bf16.mxu0 %v6967_v37  ;;  %v6965_v30 = vsel %vm750_vm2, %v15408_v29, %v15407_v56  ;;  %v6964_v48 = vsel %vm750_vm2, %v15409_v59, %v15408_v29 }
 0x8a6   : > { %v7763_v47 = vpop.permute.xlu1 %7762  ;;  %8022 = vrot.lane.b32.xlu0 %v15405_v53, %s9433_s24 }
 0x8a7   : > { %v14091_v25 = vsel %vm1234_vm7, %v7761_v4, %v7763_v47  ;;  %v6801_v47 = vpop.permute.xlu0 %6800 }
 0x8a8   : > { %8024 = vrot.lane.b32.xlu1 %v9220_v60, %s9433_s24  ;;  %7008 = vmatpush1.bf16.msra.mxu0 %v6966_v3  ;;  %v15410_v60 = vld [vmem:[#allocation70_spill] sm:$0xff]  ;;  %v15411_v3 = vld [vmem:[#allocation52_spill] sm:$0xff] }
 0x8a9   : > { %7009 = vmatprep.subr.bf16.mxu0 %v6965_v30  ;;  %v6963_v56 = vsel %vm750_vm2, %v15411_v3, %v15410_v60  ;;  %v15412_v30 = vld [vmem:[#allocation40_spill] sm:$0xff] }
 0x8aa   : > { %v7759_v37 = vpop.permute.xlu1 %7758  ;;  %7866 = vrot.lane.b32.xlu0 %v13815_v1, %s9432_s19  ;;  %v6962_v59 = vsel %vm750_vm2, %v15412_v30, %v15411_v3  ;;  %v15416_v30 = vld [vmem:[#allocation43_spill] sm:$0xff] }
 0x8ab   : > { %v14103_v16 = vsel %vm1234_vm7, %v7759_v37, %v7761_v4  ;;  %v6955_v4 = vpop.permute.xlu0 %6954  ;;  %v15414_v37 = vld [vmem:[#allocation35_spill] sm:$0xff] }
 0x8ac   : > { %8020 = vrot.lane.b32.xlu1 %v13815_v1, %s9433_s24  ;;  %7010 = vmatpush1.bf16.msra.mxu0 %v6964_v48  ;;  %v15415_v48 = vld [vmem:[#allocation28_spill] sm:$0xff] }
 0x8ad   : > { %7011 = vmatprep.subr.bf16.mxu0 %v6963_v56  ;;  %v6961_v60 = vsel %vm750_vm2, %v15415_v48, %v15414_v37  ;;  %v15418_v37 = vld [vmem:[#allocation30_spill] sm:$0xff] }
 0x8ae   : > { %v7913_v53 = vpop.permute.xlu1 %7912  ;;  %7916 = vrot.lane.b32.xlu0 %v13844_v23, %s9432_s19 }
 0x8af   : > { %v14116_v29 = vsel %vm1345_vm8, %v7911_v6, %v7913_v53  ;;  %v6799_v56 = vpop.permute.xlu0 %6798  ;;  %v6960_v53 = vsel %vm750_vm2, %v15416_v30, %v15415_v48  ;;  %v6821_v48 = vsel %vm647_vm3, %v14000_v12, %v13994_v17  ;;  %v8688_v17 = vcombine.low %v13929_v57, %v13929_v57 }
 0x8b0   : > { %15413 = vst [vmem:[#allocation122_spill] sm:$0xff] %v14116_v29  ;;  %7924 = vrot.lane.b32.xlu1 %v13851_v46, %s9432_s19  ;;  %7012 = vmatpush1.bf16.msra.mxu0 %v6962_v59  ;;  %v6822_v29 = vsel %vm647_vm3, %v6799_v56, %v6801_v47  ;;  %v15417_v59 = vld [vmem:[#allocation16_spill] sm:$0xff]  ;;  %v15419_v56 = vld [vmem:[#allocation54_spill] sm:$0xff]  ;;  %v7128_v57 = vsel %vm872_vm5, %v13964_v35, %v13957_v20 }
 0x8b1   : > { %7013 = vmatprep.subr.bf16.mxu0 %v6961_v60  ;;  %v6959_v60 = vsel %vm750_vm2, %v15418_v37, %v15417_v59  ;;  %v7129_v59 = vsel %vm872_vm5, %v13957_v20, %v13976_v52  ;;  %v6975_v52 = vsel %vm750_vm2, %v14006_v18, %v13998_v45  ;;  %v15422_v35 = vld [vmem:[#allocation44_spill] sm:$0xff] }
 0x8b2   : > { %v6803_v1 = vpop.permute.xlu1 %6802  ;;  %8070 = vrot.lane.b32.xlu0 %v13844_v23, %s9433_s24 }
 0x8b3   : > { %v6823_v3 = vsel %vm647_vm3, %v6801_v47, %v6803_v1  ;;  %v7909_v47 = vpop.permute.xlu0 %7908 }
 0x8b4   : > { %8078 = vrot.lane.b32.xlu1 %v13851_v46, %s9433_s24  ;;  %6875 = vmatprep.subr.bf16.mxu1 %v6823_v3  ;;  %v6958_v3 = vsel %vm750_vm2, %v15419_v56, %v15418_v37  ;;  %v14145_v30 = vsel %vm1345_vm8, %v7909_v47, %v7911_v6  ;;  %v6974_v47 = vsel %vm750_vm2, %v14004_v13, %v14006_v18 }
 0x8b5   : > { %7014 = vmatpush1.bf16.msra.mxu0 %v6960_v53  ;;  %6876 = vmatpush2.bf16.msra.mxu1 %v6822_v29  ;;  %v6820_v29 = vsel %vm647_vm3, %v14010_v5, %v14000_v12  ;;  %v14156_v53 = vld [vmem:[#allocation9 + $0x18] sm:$0xff]  ;;  %v8691_v56 = vcombine.low %v14038_v34, %v14038_v34 }
 0x8b6   : > { %7015 = vmatprep.subr.bf16.mxu0 %v6959_v60  ;;  %v6957_v1 = vpop.permute.xlu1 %6956  ;;  %6877 = vmatprep.subr.bf16.mxu1 %v6821_v48  ;;  %v8695_v5 = vcombine.high %v14156_v53, %v14156_v53  ;;  %v15420_v60 = vld [vmem:[#allocation34_spill] sm:$0xff] }
 0x8b7   : > { %v6977_v46 = vsel %vm750_vm2, %v6955_v4, %v6957_v1  ;;  %7922 = vrot.lane.b32.xlu0 %v13760_v24, %s9432_s19  ;;  %v7905_v12 = vpop.permute.xlu0 %7904 }
 0x8b8   : > { %7918 = vrot.lane.b32.xlu1 %v13889_v40, %s9432_s19 }
 0x8b9   : > { %7016 = vmatpush1.bf16.msra.mxu0 %v6958_v3  ;;  %6878 = vmatpush2.bf16.msra.mxu1 %v6820_v29  ;;  %v14194_v3 = vld [vmem:[#allocation9 + $0x20] sm:$0xff] }
 0x8ba   : > { %7029 = vmatprep.subr.bf16.mxu0 %v6977_v46  ;;  %v6953_v6 = vpop.permute.xlu1 %6952  ;;  %7157 = vmatprep.subr.bf16.mxu1 %v7129_v59  ;;  %v9148_v46 = vld [vmem:[#allocation2 + $0xe8] ss:$16 sps:$4 sm:$0xff]   ;;  %v8698_v34 = vcombine.high %v14194_v3, %v14194_v3 }
 0x8bb   : > { %v6976_v37 = vsel %vm750_vm2, %v6953_v6, %v6955_v4  ;;  %8076 = vrot.lane.b32.xlu0 %v13760_v24, %s9433_s24  ;;  %v8059_v48 = vpop.permute.xlu0 %8058  ;;  %v15424_v6 = vld [vmem:[#allocation33_spill] sm:$0xff] }
 0x8bc   : > { %8072 = vrot.lane.b32.xlu1 %v13889_v40, %s9433_s24  ;;  %6880 = vmatmul.mubr.bf16.vlgmr.msra.gmra.mxu1 %v8688_v17  ;;  %v15421_v40 = vld [vmem:[#allocation31_spill] sm:$0xff]  ;;  %v15423_v17 = vld [vmem:[#allocation21_spill] sm:$0xff] }
 0x8bd   : > { %7030 = vmatpush2.bf16.msra.mxu0 %v6976_v37  ;;  %7158 = vmatpush1.bf16.msra.mxu1 %v7128_v57  ;;  %v7127_v1 = vsel %vm872_vm5, %v15421_v40, %v15420_v60  ;;  %v7126_v45 = vsel %vm872_vm5, %v15422_v35, %v15421_v40  ;;  %v7125_v59 = vsel %vm872_vm5, %v15424_v6, %v15423_v17  ;;  %v9146_v37 = vld [vmem:[#allocation2 + $0xe4] ss:$16 sps:$4 sm:$0xff]   ;;  %v15425_v57 = vld [vmem:[#allocation42_spill] sm:$0xff]  ;;  %v15427_v40 = vld [vmem:[#allocation48_spill] sm:$0xff] }
 0x8be   : > { %v8067_v4 = vpop.permute.xlu1 %8066  ;;  %7031 = vmatprep.subr.bf16.mxu0 %v6975_v52  ;;  %7159 = vmatprep.subr.bf16.mxu1 %v7127_v1  ;;  %v7124_v52 = vsel %vm872_vm5, %v15425_v57, %v15424_v6  ;;  %v15426_v60 = vld [vmem:[#allocation45_spill] sm:$0xff]  ;;  %v15429_v6 = vld [vmem:[#allocation22_spill] sm:$0xff] }
 0x8bf   : > { %v14179_v20 = vsel %vm1448_vm9, %v14088_v51, %v8067_v4  ;;  %8696 = vmatprep.mubr.msk.bf16.mxu1 %vm533_vm4, %v8695_v5  ;;  %7920 = vrot.lane.b32.xlu0 %v13762_v22, %s9432_s19  ;;  %v7903_v18 = vpop.permute.xlu0 %7902  ;;  %v7123_v1 = vsel %vm872_vm5, %v15427_v40, %v15426_v60  ;;  %v9154_v57 = vld [vmem:[#allocation2 + $0xa4] ss:$16 sps:$4 sm:$0xff]   ;;  %v15432_v60 = vld [vmem:[#allocation38_spill] sm:$0xff] }
 0x8c0   : > { %8074 = vrot.lane.b32.xlu1 %v13762_v22, %s9433_s24  ;;  %v14204_v5 = vsel %vm1345_vm8, %v7903_v18, %v7905_v12 }
 0x8c1   : > { %7032 = vmatpush2.bf16.msra.mxu0 %v6974_v47  ;;  %7160 = vmatpush1.bf16.msra.mxu1 %v7126_v45  ;;  %v9151_v47 = vld [vmem:[#allocation2 + $0xc4] ss:$16 sps:$4 sm:$0xff]  }
 0x8c2   : > { %v8063_v29 = vpop.permute.xlu1 %8062  ;;  %7333 = vmatprep.subr.bf16.mxu0 %v9148_v46  ;;  %7161 = vmatprep.subr.bf16.mxu1 %v7125_v59  ;;  %v15428_v46 = vld [vmem:[#allocation60_spill] sm:$0xff]  ;;  %v15430_v59 = vld [vmem:[#allocation47_spill] sm:$0xff] }
 0x8c3   : > { %v14201_v13 = vsel %vm1448_vm9, %v8063_v29, %v14088_v51  ;;  %7914 = vrot.lane.b32.xlu0 %v13882_v21, %s9432_s19  ;;  %v9153_v51 = vld [vmem:[#allocation2 + $0xc8] ss:$16 sps:$4 sm:$0xff]   ;;  %v7899_v35 = vpop.permute.xlu0 %7898  ;;  %v7121_v18 = vsel %vm872_vm5, %v15430_v59, %v15429_v6  ;;  %s357_s19 = scalar_lea.vmem [#allocation11], %s8300_s22 }
 0x8c4   : > { %8068 = vrot.lane.b32.xlu1 %v13882_v21, %s9433_s24  ;;  %7034 = vmatmul.mubr.bf16.vlgmr.msra.gmra.mxu0 %v8691_v56  ;;  %v7122_v56 = vsel %vm872_vm5, %v15428_v46, %v15427_v40  ;;  %v9156_v29 = vld [vmem:[#allocation2 + $0xa8] ss:$16 sps:$4 sm:$0xff]   ;;  %v15433_v40 = vld [vmem:[#allocation51_spill] sm:$0xff]  ;;  %s8188_s24 = sshll.u32 %s357_s19, 4  ;;  %s8189_s24 = int_to_ptr.vmem [resolvable:$true] %s8188_s24 }
 0x8c5   : > { %7334 = vmatpush1.bf16.msra.mxu0 %v9146_v37  ;;  %7162 = vmatpush1.bf16.msra.mxu1 %v7124_v52  ;;  %s9343_s18 = scalar_lea.vmem %s8189_s24, 128  ;;  %p9350_p4 = scmp.lt.s32.totalorder %s8189_s24, %s9348_s21 }
 0x8c6   : > { %v7907_v4 = vpop.permute.xlu1 %7906  ;;  %7335 = vmatprep.subr.bf16.mxu0 %v9153_v51  ;;  %7163 = vmatprep.subr.bf16.mxu1 %v7123_v1  ;;  %v9159_v51 = vld [vmem:[#allocation2 + $0x88] ss:$16 sps:$4 sm:$0xff]   ;;  %v7119_v1 = vsel %vm872_vm5, %v15433_v40, %v15432_v60  ;;  %p9344_p9 = scmp.ne.s32.totalorder %s8189_s24, %s9343_s18  ;;  %p9351_p5 = scmp.lt.s32.totalorder %s9349_s23, %s9343_s18 }
 0x8c7   : > { %v14219_v45 = vsel %vm1345_vm8, %v7905_v12, %v7907_v4  ;;  %8719 = vmatprep.mubr.msk.bf16.mxu0 %vm533_vm4, %v8698_v34  ;;  %v8053_v37 = vpop.permute.xlu0 %8052  ;;  %v15431_v34 = vld [vmem:[#allocation46_spill] sm:$0xff] }
 0x8c8   : > { %v7120_v52 = vsel %vm872_vm5, %v15431_v34, %v15430_v59  ;;  %v9162_v59 = vld [vmem:[#allocation2 + $0x68] ss:$16 sps:$4 sm:$0xff]   ;;  %p9345_p3 = pnand %p9344_p9, %p15474_p1  ;;  %p9352_p7 = por %p9351_p5, %p9350_p4 }
 0x8c9   : > { %7336 = vmatpush1.bf16.msra.mxu0 %v9151_v47  ;;  %7164 = vmatpush1.bf16.msra.mxu1 %v7122_v56  ;;  %v9157_v56 = vld [vmem:[#allocation2 + $0x84] ss:$16 sps:$4 sm:$0xff]   ;;  %v15437_v34 = vld [vmem:[#allocation64_spill] sm:$0xff]  ;;  %v15438_v60 = vld [vmem:[#allocation58_spill] sm:$0xff] }
 0x8ca   : > { %v8061_v17 = vpop.permute.xlu1 %8060  ;;  %7337 = vmatprep.subr.bf16.mxu0 %v9156_v29  ;;  %7165 = vmatprep.subr.bf16.mxu1 %v7121_v18  ;;  %p9346_p2 = pneg %p9345_p3 }
 0x8cb   : > { %v14229_v12 = vsel %vm1448_vm9, %v8059_v48, %v8061_v17  ;;  %v7897_v46 = vpop.permute.xlu0 %7896  ;;  %v15435_v17 = vld [vmem:[#allocation24_spill] sm:$0xff] }
 0x8cc   : > { %v14241_v29 = vsel %vm1345_vm8, %v7897_v46, %v7899_v35  ;;  %v7118_v6 = vsel %vm872_vm5, %v15435_v17, %v15433_v40  ;;  %v7116_v40 = vsel %vm872_vm5, %v15438_v60, %v15437_v34  ;;  %v15440_v17 = vld [vmem:[#allocation72_spill] sm:$0xff]  ;;  %v9166_v60 = vld [vmem:[#allocation2 + $0x24] ss:$16 sps:$4 sm:$0xff]   ;;  %p9353_p8 = pnand %p9352_p7, %p9346_p2 }
 0x8cd   : > { %7338 = vmatpush1.bf16.msra.mxu0 %v9154_v57  ;;  %7166 = vmatpush1.bf16.msra.mxu1 %v7120_v52  ;;  %15434 = vst [vmem:[#allocation77_spill] sm:$0xff] %v14241_v29  ;;  %v15436_v57 = vld [vmem:[#allocation68_spill] sm:$0xff] }
 0x8ce   : > { %v8057_v4 = vpop.permute.xlu1 %8056  ;;  %7339 = vmatprep.subr.bf16.mxu0 %v9159_v51  ;;  %7167 = vmatprep.subr.bf16.mxu1 %v7119_v1  ;;  %v7117_v52 = vsel %vm872_vm5, %v15437_v34, %v15436_v57  ;;  %v9165_v1 = vld [vmem:[#allocation2 + $0x48] ss:$16 sps:$4 sm:$0xff]  }
 0x8cf   : > { %v14238_v47 = vsel %vm1448_vm9, %v8057_v4, %v8059_v48  ;;  %v14249_v48 = vpop.permute.xlu0 %7892  ;;  %v9160_v4 = vld [vmem:[#allocation2 + $0x64] ss:$16 sps:$4 sm:$0xff]   ;;  %v9168_v57 = vld [vmem:[#allocation2 + $0x28] ss:$16 sps:$4 sm:$0xff]  }
 0x8d1   : > { %7340 = vmatpush1.bf16.msra.mxu0 %v9157_v56  ;;  %7168 = vmatpush1.bf16.msra.mxu1 %v7118_v6  ;;  %v15439_v56 = vld [vmem:[#allocation62_spill] sm:$0xff] }
 0x8d2   : > { %v7901_v18 = vpop.permute.xlu1 %7900  ;;  %7341 = vmatprep.subr.bf16.mxu0 %v9162_v59  ;;  %7169 = vmatprep.subr.bf16.mxu1 %v7117_v52  ;;  %v7115_v6 = vsel %vm872_vm5, %v15440_v17, %v15439_v56  ;;  %v15442_v52 = vld [vmem:[#allocation112_spill] sm:$0xff] }
 0x8d3   : > { %v14252_v51 = vsel %vm1345_vm8, %v7899_v35, %v7901_v18  ;;  %v7111_v59 = vpop.permute.xlu0 %7110  ;;  %v9163_v18 = vld [vmem:[#allocation2 + $0x44] ss:$16 sps:$4 sm:$0xff]   ;;  %v7114_v34 = vsel %vm872_vm5, %v15442_v52, %v15440_v17 }
 0x8d5   : > { %7342 = vmatpush1.bf16.msra.mxu0 %v9160_v4  ;;  %7170 = vmatpush1.bf16.msra.mxu1 %v7116_v40 }
 0x8d6   : > { %v8055_v46 = vpop.permute.xlu1 %8054  ;;  %7343 = vmatprep.subr.bf16.mxu0 %v9165_v1  ;;  %7171 = vmatprep.subr.bf16.mxu1 %v7115_v6  ;;  %v9171_v1 = vld [vmem:[#allocation2 + $0x8] ss:$16 sps:$4 sm:$0xff]  }
 0x8d7   : > { %v14261_v35 = vsel %vm1448_vm9, %v8053_v37, %v8055_v46  ;;  %v14269_v56 = vpop.permute.xlu0 %8046  ;;  %v9169_v46 = vld [vmem:[#allocation2 + $0x4] ss:$16 sps:$4 sm:$0xff]  }
 0x8d8   : > { %15441 = vst [vmem:[#allocation67_spill] sm:$0xff] %v14261_v35 }
 0x8d9   : > { %7344 = vmatpush1.bf16.msra.mxu0 %v9163_v18  ;;  %7172 = vmatpush1.bf16.msra.mxu1 %v7114_v34  ;;  %v14289_v34 = vld [vmem:[#allocation9 + $0x28] sm:$0xff] }
 0x8da   : > { %v8051_v4 = vpop.permute.xlu1 %8050  ;;  %7345 = vmatprep.subr.bf16.mxu0 %v9168_v57 }
 0x8db   : > { %v14267_v40 = vsel %vm1448_vm9, %v8051_v4, %v8053_v37  ;;  %v7891_v29 = vpop.permute.xlu0 %7890 }
 0x8dc   : > { %v14274_v17 = vsel %vm1345_vm8, %v7891_v29, %v14249_v48 }
 0x8dd   : > { %7346 = vmatpush1.bf16.msra.mxu0 %v9166_v60  ;;  %v8721_v60 = vcombine.high %v14289_v34, %v14289_v34 }
 0x8de   : > { %v7113_v6 = vpop.permute.xlu1 %7112  ;;  %7347 = vmatprep.subr.bf16.mxu0 %v9171_v1  ;;  %v7784_v1 = vsel %vm1234_vm7, %v13986_v9, %v13980_v63 }
 0x8df   : > { %v7133_v35 = vsel %vm872_vm5, %v7111_v59, %v7113_v6  ;;  %v7109_v37 = vpop.permute.xlu0 %7108  ;;  %v15445_v6 = vld [vmem:[#allocation118_spill] sm:$0xff] }
 0x8e0   : > { %7185 = vmatprep.subr.bf16.mxu1 %v7133_v35  ;;  %v7132_v57 = vsel %vm872_vm5, %v7109_v37, %v7111_v59  ;;  %v8694_v35 = vcombine.low %v14156_v53, %v14156_v53 }
 0x8e1   : > { %7348 = vmatpush1.bf16.msra.mxu0 %v9169_v46  ;;  %7186 = vmatpush2.bf16.msra.mxu1 %v7132_v57  ;;  %v15446_v46 = vld [vmem:[#allocation69_spill] sm:$0xff]  ;;  %v15447_v57 = vld [vmem:[#allocation120_spill] sm:$0xff] }
 0x8e2   : > { %v14276_v18 = vpop.permute.xlu1 %7894  ;;  %7361 = vmatprep.subr.bf16.mxu0 %v13760_v24  ;;  %7187 = vmatprep.subr.bf16.mxu1 %v14019_v55  ;;  %v15443_v24 = vld [vmem:[#allocation114_spill] sm:$0xff]  ;;  %v14297_v55 = vld [vmem:[#allocation9 + $0x30] sm:$0xff]  ;;  %v7627_v37 = vsel %vm1123_vm6, %v15446_v46, %v15445_v6 }
 0x8e3   : > { %v14285_v29 = vpop.permute.xlu0 %7886  ;;  %v7629_v59 = vsel %vm1123_vm6, %v13972_v62, %v15443_v24  ;;  %v15448_v24 = vld [vmem:[#allocation76_spill] sm:$0xff]  ;;  %v15454_v6 = vld [vmem:[#allocation115_spill] sm:$0xff] }
 0x8e5   : > { %7362 = vmatpush2.bf16.msra.mxu0 %v13762_v22  ;;  %7188 = vmatpush2.bf16.msra.mxu1 %v14015_v10  ;;  %v8697_v22 = vcombine.low %v14194_v3, %v14194_v3  ;;  %v7628_v3 = vsel %vm1123_vm6, %v13988_v27, %v13972_v62  ;;  %v7783_v62 = vsel %vm1234_vm7, %v15448_v24, %v15447_v57 }
 0x8e6   : > { %v14282_v52 = vpop.permute.xlu1 %8048  ;;  %7363 = vmatprep.subr.bf16.mxu0 %v13844_v23  ;;  %7657 = vmatprep.subr.bf16.mxu1 %v7629_v59  ;;  %v15444_v23 = vld [vmem:[#allocation116_spill] sm:$0xff]  ;;  %v15450_v59 = vld [vmem:[#allocation123_spill] sm:$0xff] }
 0x8e7   : > { %v7785_v53 = vsel %vm1234_vm7, %v13980_v63, %v15444_v23  ;;  %v14305_v10 = vpop.permute.xlu0 %8040  ;;  %v15449_v63 = vld [vmem:[#allocation111_spill] sm:$0xff]  ;;  %v15451_v23 = vld [vmem:[#allocation125_spill] sm:$0xff] }
 0x8e8   : > { %7190 = vmatmul.mubr.bf16.vlgmr.msra.gmra.mxu1 %v8694_v35  ;;  %v7626_v9 = vsel %vm1123_vm6, %v15449_v63, %v15446_v46  ;;  %v15457_v63 = vld [vmem:[#allocation131_spill] sm:$0xff] }
 0x8e9   : > { %7364 = vmatpush2.bf16.msra.mxu0 %v13882_v21  ;;  %v8754_v21 = vcombine.high %v14297_v55, %v14297_v55  ;;  %7658 = vmatpush1.bf16.msra.mxu1 %v7628_v3 }
 0x8ea   : > { %v14303_v4 = vpop.permute.xlu1 %8044  ;;  %7813 = vmatprep.subr.bf16.mxu0 %v7785_v53  ;;  %7659 = vmatprep.subr.bf16.mxu1 %v7627_v37  ;;  %v15452_v53 = vld [vmem:[#allocation113_spill] sm:$0xff] }
 0x8eb   : > { %v14325_v35 = vpop.permute.xlu0 %7884  ;;  %8752 = vmatprep.mubr.msk.bf16.mxu1 %vm533_vm4, %v8721_v60  ;;  %v7625_v3 = vsel %vm1123_vm6, %v15452_v53, %v15451_v23 }
 0x8ec   : > { %7366 = vmatmul.mubr.bf16.vlgmr.msra.gmra.mxu0 %v8697_v22  ;;  %v7782_v22 = vsel %vm1234_vm7, %v15450_v59, %v15448_v24  ;;  %v15456_v24 = vld [vmem:[#allocation129_spill] sm:$0xff] }
 0x8ed   : > { %7814 = vmatpush1.bf16.msra.mxu0 %v7784_v1  ;;  %8755 = vmatprep.mubr.msk.bf16.mxu0 %vm533_vm4, %v8754_v21  ;;  %v15453_v1 = vld [vmem:[#allocation127_spill] sm:$0xff]  ;;  %v15455_v21 = vld [vmem:[#allocation117_spill] sm:$0xff] }
 0x8ee   : > { %v14323_v27 = vpop.permute.xlu1 %7888  ;;  %7815 = vmatprep.subr.bf16.mxu0 %v7783_v62  ;;  %7660 = vmatpush1.bf16.msra.mxu1 %v7626_v9  ;;  %v7781_v60 = vsel %vm1234_vm7, %v15454_v6, %v15453_v1  ;;  %v7624_v57 = vsel %vm1123_vm6, %v15455_v21, %v15452_v53  ;;  %v7780_v62 = vsel %vm1234_vm7, %v15456_v24, %v15454_v6  ;;  %v15458_v9 = vld [vmem:[#allocation119_spill] sm:$0xff]  ;;  %v15460_v53 = vld [vmem:[#allocation124_spill] sm:$0xff]  ;;  %v15461_v21 = vld [vmem:[#allocation126_spill] sm:$0xff] }
 0x8ef   : > { %7661 = vmatprep.subr.bf16.mxu1 %v7625_v3  ;;  %v14343_v46 = vpop.permute.xlu0 %7880  ;;  %v7623_v59 = vsel %vm1123_vm6, %v15458_v9, %v15457_v63  ;;  %v7622_v6 = vsel %vm1123_vm6, %v15460_v53, %v15458_v9  ;;  %v15463_v9 = vld [vmem:[#allocation130_spill] sm:$0xff] }
 0x8f1   : > { %7816 = vmatpush1.bf16.msra.mxu0 %v7782_v22  ;;  %v15459_v22 = vld [vmem:[#allocation121_spill] sm:$0xff] }
 0x8f2   : > { %v14341_v37 = vpop.permute.xlu1 %8042  ;;  %7817 = vmatprep.subr.bf16.mxu0 %v7781_v60  ;;  %7662 = vmatpush1.bf16.msra.mxu1 %v7624_v57  ;;  %v7779_v23 = vsel %vm1234_vm7, %v15459_v22, %v13636_v43  ;;  %v7778_v60 = vsel %vm1234_vm7, %v13663_v14, %v15459_v22  ;;  %v7621_v57 = vsel %vm1123_vm6, %v15461_v21, %v13681_v42  ;;  %v15462_v43 = vld [vmem:[#allocation128_spill] sm:$0xff]  ;;  %v15464_v42 = vld [vmem:[#allocation29_spill] sm:$0xff] }
 0x8f3   : > { %7663 = vmatprep.subr.bf16.mxu1 %v7623_v59  ;;  %v14359_v1 = vpop.permute.xlu0 %8034  ;;  %v7777_v24 = vsel %vm1234_vm7, %v15462_v43, %v13702_v2  ;;  %v7620_v14 = vsel %vm1123_vm6, %v15463_v9, %v15461_v21  ;;  %v7776_v59 = vsel %vm1234_vm7, %v13715_v33, %v15462_v43  ;;  %v7619_v22 = vsel %vm1123_vm6, %v15464_v42, %v13725_v44  ;;  %v14446_v9 = vld [vmem:[#allocation9 + $0x40] sm:$0xff] }
 0x8f4   : > { %v7775_v2 = vsel %vm1234_vm7, %v13646_v39, %v13740_v32  ;;  %v7618_v33 = vsel %vm1123_vm6, %v13669_v38, %v15464_v42  ;;  %v7617_v44 = vsel %vm1123_vm6, %v13698_v54, %v13754_v28  ;;  %v7773_v32 = vsel %vm1234_vm7, %v13717_v36, %v13758_v19  ;;  %v15468_v42 = vld [vmem:[#allocation77_spill] sm:$0xff] }
 0x8f5   : > { %7818 = vmatpush1.bf16.msra.mxu0 %v7780_v62  ;;  %v7616_v38 = vsel %vm1123_vm6, %v13735_v61, %v13698_v54  ;;  %v7771_v28 = vsel %vm1234_vm7, %v13756_v58, %v13773_v11  ;;  %v7614_v54 = vsel %vm1123_vm6, %v14027_v0, %v13752_v41  ;;  %v7770_v61 = vsel %vm1234_vm7, %v14033_v31, %v13756_v58 }
 0x8f6   : > { %v14357_v3 = vpop.permute.xlu1 %8038  ;;  %7819 = vmatprep.subr.bf16.mxu0 %v7779_v23  ;;  %7664 = vmatpush1.bf16.msra.mxu1 %v7622_v6  ;;  %v7774_v6 = vsel %vm1234_vm7, %v13748_v7, %v13646_v39  ;;  %v7772_v39 = vsel %vm1234_vm7, %v13765_v50, %v13717_v36  ;;  %v7615_v7 = vsel %vm1123_vm6, %v13752_v41, %v13769_v26 }
 0x8f7   : > { %7665 = vmatprep.subr.bf16.mxu1 %v7621_v57  ;;  %v14375_v63 = vpop.permute.xlu0 %7878  ;;  %v8720_v31 = vcombine.low %v14289_v34, %v14289_v34 }
 0x8f9   : > { %7820 = vmatpush1.bf16.msra.mxu0 %v7778_v60 }
 0x8fa   : > { %v14373_v62 = vpop.permute.xlu1 %7882  ;;  %7821 = vmatprep.subr.bf16.mxu0 %v7777_v24  ;;  %7666 = vmatpush1.bf16.msra.mxu1 %v7620_v14  ;;  %v8753_v24 = vcombine.low %v14297_v55, %v14297_v55 }
 0x8fb   : > { %7667 = vmatprep.subr.bf16.mxu1 %v7619_v22  ;;  %v14391_v53 = vpop.permute.xlu0 %7874  ;;  %v7932_v22 = vsel %vm1345_vm8, %v14325_v35, %v14285_v29 }
 0x8fd   : > { %7822 = vmatpush1.bf16.msra.mxu0 %v7776_v59  ;;  %v8760_v59 = vcombine.high %v14446_v9, %v14446_v9 }
 0x8fe   : > { %v14389_v23 = vpop.permute.xlu1 %8036  ;;  %7823 = vmatprep.subr.bf16.mxu0 %v7775_v2  ;;  %7668 = vmatpush1.bf16.msra.mxu1 %v7618_v33 }
 0x8ff   : > { %7669 = vmatprep.subr.bf16.mxu1 %v7617_v44  ;;  %v7611_v21 = vpop.permute.xlu0 %7610 }
 0x900   : > { %v7633_v50 = vsel %vm1123_vm6, %v7611_v21, %v14047_v8  ;;  %v14441_v8 = vld [vmem:[#allocation9 + $0x38] sm:$0xff] }
 0x901   : > { %7824 = vmatpush1.bf16.msra.mxu0 %v7774_v6  ;;  %v8757_v34 = vcombine.high %v14441_v8, %v14441_v8 }
 0x902   : > { %v14405_v60 = vpop.permute.xlu1 %8032  ;;  %7825 = vmatprep.subr.bf16.mxu0 %v7773_v32  ;;  %7670 = vmatpush1.bf16.msra.mxu1 %v7616_v38 }
 0x903   : > { %7671 = vmatprep.subr.bf16.mxu1 %v7615_v7  ;;  %v7767_v57 = vpop.permute.xlu0 %7766 }
 0x904   : > { %v7789_v36 = vsel %vm1234_vm7, %v7767_v57, %v14059_v15  ;;  %v15465_v15 = vld [vmem:[#allocation17_spill] sm:$0xff] }
 0x905   : > { %7826 = vmatpush1.bf16.msra.mxu0 %v7772_v39 }
 0x906   : > { %v14419_v19 = vpop.permute.xlu1 %7876  ;;  %7827 = vmatprep.subr.bf16.mxu0 %v7771_v28  ;;  %7672 = vmatpush1.bf16.msra.mxu1 %v7614_v54 }
 0x907   : > { %7685 = vmatprep.subr.bf16.mxu1 %v7633_v50  ;;  %v7609_v43 = vpop.permute.xlu0 %7608  ;;  %v7929_v35 = vsel %vm1345_vm8, %v14391_v53, %v14419_v19  ;;  %v8756_v50 = vcombine.low %v14441_v8, %v14441_v8 }
 0x908   : > { %v7632_v41 = vsel %vm1123_vm6, %v7609_v43, %v7611_v21 }
 0x909   : > { %7828 = vmatpush1.bf16.msra.mxu0 %v7770_v61 }
 0x90a   : > { %v7765_v26 = vpop.permute.xlu1 %7764  ;;  %7841 = vmatprep.subr.bf16.mxu0 %v7789_v36  ;;  %7686 = vmatpush2.bf16.msra.mxu1 %v7632_v41 }
 0x90b   : > { %v7788_v11 = vsel %vm1234_vm7, %v7765_v26, %v7767_v57  ;;  %7687 = vmatprep.subr.bf16.mxu1 %v14077_v49  ;;  %v14437_v58 = vpop.permute.xlu0 %8028  ;;  %v15466_v49 = vld [vmem:[#allocation122_spill] sm:$0xff]  ;;  %v8759_v26 = vcombine.low %v14446_v9, %v14446_v9 }
 0x90d   : > { %7842 = vmatpush2.bf16.msra.mxu0 %v7788_v11 }
 0x90e   : > { %v14434_v0 = vpop.permute.xlu1 %8030  ;;  %7843 = vmatprep.subr.bf16.mxu0 %v14091_v25  ;;  %7688 = vmatpush2.bf16.msra.mxu1 %v15465_v15  ;;  %v15470_v15 = vld [vmem:[#allocation25_spill] sm:$0xff] }
 0x90f   : > { %7969 = vmatprep.subr.bf16.mxu1 %v15466_v49  ;;  %v15471_v49 = vld [vmem:[#allocation82_spill] sm:$0xff] }
 0x910   : > { %v7873_v25 = vpop.permute.xlu0 %7872 }
 0x911   : > { %7844 = vmatpush2.bf16.msra.mxu0 %v14103_v16  ;;  %7690 = vmatmul.mubr.bf16.vlgmr.msra.gmra.mxu1 %v8720_v31 }
 0x912   : > { %v8027_v14 = vpop.permute.xlu1 %8026  ;;  %8123 = vmatprep.subr.bf16.mxu0 %v14179_v20  ;;  %7970 = vmatpush1.bf16.msra.mxu1 %v14145_v30  ;;  %v15467_v30 = vld [vmem:[#allocation67_spill] sm:$0xff] }
 0x913   : > { %7971 = vmatprep.subr.bf16.mxu1 %v14219_v45  ;;  %8758 = vmatprep.mubr.msk.bf16.mxu1 %vm533_vm4, %v8757_v34  ;;  %v7935_v45 = vsel %vm1345_vm8, %v14249_v48, %v14276_v18  ;;  %v7933_v48 = vsel %vm1345_vm8, %v14285_v29, %v14323_v27  ;;  %v7930_v29 = vsel %vm1345_vm8, %v14375_v63, %v14343_v46 }
 0x914   : > { %7846 = vmatmul.mubr.bf16.vlgmr.msra.gmra.mxu0 %v8753_v24  ;;  %v7869_v55 = vpop.permute.xlu0 %7868 }
 0x915   : > { %8124 = vmatpush1.bf16.msra.mxu0 %v14201_v13  ;;  %8761 = vmatprep.mubr.msk.bf16.mxu0 %vm533_vm4, %v8760_v59 }
 0x916   : > { %v7871_v16 = vpop.permute.xlu1 %7870  ;;  %8125 = vmatprep.subr.bf16.mxu0 %v14229_v12  ;;  %7972 = vmatpush1.bf16.msra.mxu1 %v14204_v5  ;;  %v8089_v5 = vsel %vm1448_vm9, %v14269_v56, %v14282_v52 }
 0x917   : > { %7973 = vmatprep.subr.bf16.mxu1 %v14252_v51  ;;  %v8088_v51 = vsel %vm1448_vm9, %v14303_v4, %v14269_v56  ;;  %v8086_v56 = vsel %vm1448_vm9, %v14357_v3, %v14305_v10  ;;  %v8085_v4 = vsel %vm1448_vm9, %v14359_v1, %v14389_v23  ;;  %v8083_v3 = vsel %vm1448_vm9, %v14437_v58, %v14434_v0 }
 0x918   : > { %v8023_v13 = vpop.permute.xlu0 %8022  ;;  %v7927_v63 = vsel %vm1345_vm8, %v7869_v55, %v7871_v16 }
 0x919   : > { %8126 = vmatpush1.bf16.msra.mxu0 %v14238_v47 }
 0x91a   : > { %v8025_v20 = vpop.permute.xlu1 %8024  ;;  %8127 = vmatprep.subr.bf16.mxu0 %v15467_v30  ;;  %7974 = vmatpush1.bf16.msra.mxu1 %v15468_v42  ;;  %v15472_v30 = vld [vmem:[#allocation26_spill] sm:$0xff] }
 0x91b   : > { %7975 = vmatprep.subr.bf16.mxu1 %v7935_v45  ;;  %v8081_v23 = vsel %vm1448_vm9, %v8023_v13, %v8025_v20 }
 0x91c   : > { %v7867_v47 = vpop.permute.xlu0 %7866 }
 0x91d   : > { %8128 = vmatpush1.bf16.msra.mxu0 %v14267_v40  ;;  %v8087_v40 = vsel %vm1448_vm9, %v14305_v10, %v14341_v37  ;;  %v8084_v10 = vsel %vm1448_vm9, %v14405_v60, %v14359_v1  ;;  %v8082_v1 = vsel %vm1448_vm9, %v8027_v14, %v14437_v58  ;;  %v7926_v44 = vsel %vm1345_vm8, %v7867_v47, %v7869_v55  ;;  %v15469_v58 = vld [vmem:[#allocation23_spill] sm:$0xff] }
 0x91e   : > { %v8021_v12 = vpop.permute.xlu1 %8020  ;;  %8129 = vmatprep.subr.bf16.mxu0 %v8089_v5  ;;  %7976 = vmatpush1.bf16.msra.mxu1 %v14274_v17  ;;  %v7931_v17 = vsel %vm1345_vm8, %v14343_v46, %v14373_v62  ;;  %v7928_v46 = vsel %vm1345_vm8, %v7873_v25, %v14391_v53  ;;  %v15473_v5 = vld [vmem:[#allocation27_spill] sm:$0xff] }
 0x91f   : > { %7977 = vmatprep.subr.bf16.mxu1 %v7933_v48  ;;  %v8080_v60 = vsel %vm1448_vm9, %v8021_v12, %v8023_v13 }
 0x920   : > { %v7917_v52 = vpop.permute.xlu0 %7916 }
 0x921   : > { %8130 = vmatpush1.bf16.msra.mxu0 %v8088_v51 }
 0x922   : > { %v7925_v18 = vpop.permute.xlu1 %7924  ;;  %8131 = vmatprep.subr.bf16.mxu0 %v8087_v40  ;;  %7978 = vmatpush1.bf16.msra.mxu1 %v7932_v22 }
 0x923   : > { %7979 = vmatprep.subr.bf16.mxu1 %v7931_v17 }
 0x924   : > { %v8071_v37 = vpop.permute.xlu0 %8070 }
 0x925   : > { %8132 = vmatpush1.bf16.msra.mxu0 %v8086_v56 }
 0x926   : > { %v8079_v27 = vpop.permute.xlu1 %8078  ;;  %8133 = vmatprep.subr.bf16.mxu0 %v8085_v4  ;;  %7980 = vmatpush1.bf16.msra.mxu1 %v7930_v29 }
 0x927   : > { %7981 = vmatprep.subr.bf16.mxu1 %v7929_v35 }
 0x929   : > { %8134 = vmatpush1.bf16.msra.mxu0 %v8084_v10  ;;  %v7923_v2 = vpop.permute.xlu0 %7922 }
 0x92a   : > { %v7919_v62 = vpop.permute.xlu1 %7918  ;;  %8135 = vmatprep.subr.bf16.mxu0 %v8083_v3  ;;  %7982 = vmatpush1.bf16.msra.mxu1 %v7928_v46  ;;  %v7945_v53 = vsel %vm1345_vm8, %v7923_v2, %v7925_v18 }
 0x92b   : > { %7983 = vmatprep.subr.bf16.mxu1 %v7927_v63  ;;  %v7943_v28 = vsel %vm1345_vm8, %v7917_v52, %v7919_v62 }
 0x92d   : > { %8136 = vmatpush1.bf16.msra.mxu0 %v8082_v1  ;;  %v8077_v6 = vpop.permute.xlu0 %8076 }
 0x92e   : > { %v8073_v33 = vpop.permute.xlu1 %8072  ;;  %8137 = vmatprep.subr.bf16.mxu0 %v8081_v23  ;;  %v8099_v32 = vsel %vm1448_vm9, %v8077_v6, %v8079_v27  ;;  %7984 = vmatpush1.bf16.msra.mxu1 %v7926_v44 }
 0x92f   : > { %7997 = vmatprep.subr.bf16.mxu1 %v7945_v53  ;;  %v8097_v19 = vsel %vm1448_vm9, %v8071_v37, %v8073_v33 }
 0x931   : > { %8138 = vmatpush1.bf16.msra.mxu0 %v8080_v60  ;;  %v7921_v39 = vpop.permute.xlu0 %7920 }
 0x932   : > { %v8075_v21 = vpop.permute.xlu1 %8074  ;;  %8151 = vmatprep.subr.bf16.mxu0 %v8099_v32  ;;  %v7944_v7 = vsel %vm1345_vm8, %v7921_v39, %v7923_v2 }
 0x933   : > { %v8098_v38 = vsel %vm1448_vm9, %v8075_v21, %v8077_v6  ;;  %7998 = vmatpush2.bf16.msra.mxu1 %v7944_v7 }
 0x934   : > { %7999 = vmatprep.subr.bf16.mxu1 %v7943_v28 }
 0x935   : > { %8152 = vmatpush2.bf16.msra.mxu0 %v8098_v38  ;;  %v7915_v36 = vpop.permute.xlu0 %7914 }
 0x936   : > { %v8069_v57 = vpop.permute.xlu1 %8068  ;;  %8153 = vmatprep.subr.bf16.mxu0 %v8097_v19  ;;  %v7942_v61 = vsel %vm1345_vm8, %v7915_v36, %v7917_v52 }
 0x937   : > { %v8096_v54 = vsel %vm1448_vm9, %v8069_v57, %v8071_v37  ;;  %8000 = vmatpush2.bf16.msra.mxu1 %v7942_v61 }
 0x939   : > { %8154 = vmatpush2.bf16.msra.mxu0 %v8096_v54 }
 0x93a   : > { %8002 = vmatmul.mubr.bf16.vlgmr.msra.gmra.mxu1 %v8756_v50 }
 0x93c   : > { %8156 = vmatmul.mubr.bf16.vlgmr.msra.gmra.mxu0 %v8759_v26 }
 0x95b   : > { %v6725_v11 = vpop.f32.mrf.mxu0 }
 0x95c   : > { %v6732_v31 = vmul.f32 %v6725_v11, %v15469_v58 }
 0x95d   : > { %v6727_v43 = vpop.f32.mrf.mxu0 }
 0x95e   : > { %v6733_v24 = vmul.f32 %v6727_v43, %v15470_v15  ;;  %v6734_v14 = vadd.f32 %v6732_v31, %v15471_v49 }
 0x95f   : > { %v6729_v41 = vpop.f32.mrf.mxu0 }
 0x960   : > { %v6735_v8 = vadd.f32 %v6733_v24, %v15471_v49 }
 0x961   : > { %v6730_v0 = vpop.f32.mrf.mxu0 }
 0x97c   : > { %v6881_v25 = vpop.f32.mrf.mxu1 }
 0x97d   : > { %v6888_v34 = vadd.f32 %v6881_v25, %v6734_v14 }
 0x97e   : > { %v6883_v59 = vpop.f32.mrf.mxu1 }
 0x97f   : > { %v6889_v16 = vadd.f32 %v6883_v59, %v6735_v8 }
 0x980   : > { %v6885_v9 = vpop.f32.mrf.mxu1 }
 0x982   : > { %v6886_v55 = vpop.f32.mrf.mxu1 }
 0x984   : > { %v7035_v20 = vpop.f32.mrf.mxu0 }
 0x985   : > { %v7042_v13 = vmul.f32 %v7035_v20, %v15472_v30 }
 0x986   : > { %v7037_v42 = vpop.f32.mrf.mxu0 }
 0x987   : > { %v7044_v45 = vadd.f32 %v7042_v13, %v6888_v34  ;;  %v7043_v12 = vmul.f32 %v7037_v42, %v15473_v5 }
 0x988   : > { %v7039_v47 = vpop.f32.mrf.mxu0 }
 0x989   : > { %v7045_v51 = vadd.f32 %v7043_v12, %v6889_v16 }
 0x98a   : > { %v7040_v48 = vpop.f32.mrf.mxu0 }
 0x9a8   : > { %v7191_v40 = vpop.f32.mrf.mxu1 }
 0x9a9   : > { %v7198_v18 = vmul.f32 %v7191_v40, %v15469_v58 }
 0x9aa   : > { %v7193_v22 = vpop.f32.mrf.mxu1 }
 0x9ab   : > { %v7200_v56 = vadd.f32 %v7198_v18, %v7044_v45  ;;  %v7199_v17 = vmul.f32 %v7193_v22, %v15470_v15 }
 0x9ac   : > { %v7367_v52 = vpop.f32.mrf.mxu0  ;;  %v7195_v27 = vpop.f32.mrf.mxu1 }
 0x9ad   : > { %v7374_v37 = vadd.f32 %v7367_v52, %v7200_v56  ;;  %v7201_v29 = vadd.f32 %v7199_v17, %v7045_v51 }
 0x9ae   : > { %v7369_v4 = vpop.f32.mrf.mxu0  ;;  %v7196_v35 = vpop.f32.mrf.mxu1 }
 0x9af   : > { %v7375_v3 = vadd.f32 %v7369_v4, %v7201_v29 }
 0x9b0   : > { %v7371_v10 = vpop.f32.mrf.mxu0 }
 0x9b2   : > { %v7372_v62 = vpop.f32.mrf.mxu0 }
 0x9d1   : > { %v7691_v2 = vpop.f32.mrf.mxu1 }
 0x9d2   : > { %v7698_v32 = vmul.f32 %v7691_v2, %v15472_v30 }
 0x9d3   : > { %v7693_v1 = vpop.f32.mrf.mxu1 }
 0x9d4   : > { %v7847_v46 = vpop.f32.mrf.mxu0  ;;  %v7699_v60 = vmul.f32 %v7693_v1, %v15473_v5  ;;  %v7700_v53 = vadd.f32 %v7698_v32, %v7374_v37 }
 0x9d5   : > { %v7695_v23 = vpop.f32.mrf.mxu1  ;;  %v7854_v21 = vmul.f32 %v7847_v46, %v15469_v58 }
 0x9d6   : > { %v7849_v63 = vpop.f32.mrf.mxu0  ;;  %v7701_v38 = vadd.f32 %v7699_v60, %v7375_v3 }
 0x9d7   : > { %v7696_v6 = vpop.f32.mrf.mxu1  ;;  %v7855_v39 = vmul.f32 %v7849_v63, %v15470_v15  ;;  %v7856_v7 = vadd.f32 %v7854_v21, %v7700_v53 }
 0x9d8   : > { %v7851_v33 = vpop.f32.mrf.mxu0 }
 0x9d9   : > { %v7857_v57 = vadd.f32 %v7855_v39, %v7701_v38 }
 0x9da   : > { %v7852_v44 = vpop.f32.mrf.mxu0 }
 0x9fa   : > { %v8003_v28 = vpop.f32.mrf.mxu1 }
 0x9fb   : > { %v8010_v54 = vadd.f32 %v8003_v28, %v7856_v7 }
 0x9fc   : > { %v8157_v19 = vpop.f32.mrf.mxu0  ;;  %v8005_v61 = vpop.f32.mrf.mxu1 }
 0x9fd   : > { %v8164_v36 = vmul.f32 %v8157_v19, %v15472_v30  ;;  %v8011_v50 = vadd.f32 %v8005_v61, %v7857_v57 }
 0x9fe   : > { %v8159_v26 = vpop.f32.mrf.mxu0  ;;  %v8007_v43 = vpop.f32.mrf.mxu1 }
 0x9ff   : > { %v8165_v11 = vmul.f32 %v8159_v26, %v15473_v5  ;;  %v8166_v0 = vadd.f32 %v8164_v36, %v8010_v54 }
 0xa00   : > { %v8161_v41 = vpop.f32.mrf.mxu0  ;;  %v8008_v31 = vpop.f32.mrf.mxu1 }
 0xa01   : > { %v8167_v58 = vadd.f32 %v8165_v11, %v8011_v50 }
 0xa02   : > { %v8162_v15 = vpop.f32.mrf.mxu0 }
 0xa03   : > { %v8170_v24 = vcombine.low %v8166_v0, %v8167_v58 }
 0xa05   : > { %8172 = vst [vmem:[%s357_s19] sm:$0xff] %v8170_v24 }
 0xa06   : > { %9356 = shalt.err (!%p9353_p8)
}
 0xa07   : > { %s9357_s17 = scalar_lea.hbm %s8186_s10, 128  ;;  %s9361_s13 = scalar_lea.hbm %s14583_s8, 256 }
 0xa08   : > { %p9358_p13 = scmp.ne.s32.totalorder %s8186_s10, %s9357_s17  ;;  %p9362_p6 = scmp.lt.s32.totalorder %s8186_s10, %s14583_s8 }
 0xa09   : > { %p9363_p12 = scmp.lt.s32.totalorder %s9361_s13, %s9357_s17 }
 0xa0a   : > { %p9359_p11 = pnand %p9358_p13, %p15474_p1 }
 0xa0b   : > { %p9364_p10 = por %p9363_p12, %p9362_p6 }
 0xa0c   : > { %p9360_p0 = pneg %p9359_p11 }
 0xa0e   : > { %p9365_p9 = pnand %p9364_p10, %p9360_p0 }
 0xa10   : > { %9368 = shalt.err (!%p9365_p9)
}
 0xa11   : > { %8801 = dma.vmem_to_hbm [thread:$0]  (%p15474_p1), %s8189_s24, 128, %s8186_s10, %s8174_s25  }
 0xa12 PF: > { %p8828_p3 = scmp.ge.s32.totalorder %s9415_s30, 2  ;;  %s8200_s26 = sand.u32 1, %s9403_s27  }
 0xa13   : > { %p15475_p2 = scmp.ne.s32.totalorder %s14797_s16, 0  ;;  %s8201_s18 = scalar_lea.sflag [#allocation5], %s8200_s26 }
 0xa15   : > { %p8817_p4 = pnand %p8828_p3, %p15475_p2 }
 0xa17   : > { %p8818_p5 = pneg %p8817_p4 }
 0xa19   : > { %9398 = dma.done.wait (%p8818_p5), %s8201_s18, 128  }
 0xa1a   : > { %9400 = vsyncadd (%p8818_p5), %s8201_s18, 4294967168  ;;  %p21_p7 = scmp.ge.s32.totalorder %s9505_s11, 4   ;;  %s15476_s27 = smov %s9407_s28 }
 0xa1b   : > { %s15477_s28 = smov %s9411_s29  ;;  %s15478_s29 = smov %s9516_s14 }
 0xa1c   : > { %s15479_s30 = smov %s9505_s11  ;;  %23 = sbr.rel (!%p21_p7) target bundleno = 6 (0x6), region = 149 }
 0xa21   :  { %8206 = vsyncpa [#allocation4], 1 }
 0xa22   :  { %8208 = vsyncpa [#allocation4 + $0x1], 1 }
 0xa23   :  { %8209 = vsyncpa [#allocation7], 1 }
 0xa24   :  { %8210 = vsyncpa [#allocation10], 1 }
 0xa25   :  { %8211 = vsyncpa [#allocation5], 1 }
 0xa26   :  { %8213 = vsyncpa [#allocation5 + $0x1], 1 }

</bundles_post_ra>
